<compile_context>
chip_gen: v6e
topology: v6e:2x2x1
jax: 0.10.0
libtpu: 0.0.40
codegen_flags: <defaults>
</compile_context>

<pallas_src>
import functools
import math

import jax
import jax.numpy as jnp
from jax.experimental import pallas as pl
from jax.experimental.pallas import tpu as pltpu

EPS = 1.0e-5                      # clamp used by the reference log_categorical
LOG_EPS = math.log(EPS)
LOG_ONE_MINUS_EPS = math.log(1.0 - EPS)
NEG_SLOPE = 0.01                  # nn.LeakyReLU default negative_slope


def _leaky_relu(x):
    return jnp.where(x >= 0, x, NEG_SLOPE * x)


def decoder_logprob_kernel(z_ref, x_ref,
                           w1_ref, b1_ref, w2_ref, b2_ref, w3_ref, b3_ref,
                           out_ref, *, num_vals, d_out):
    # ---- decoder_net(z): 3-layer MLP on the MXU (f32 accumulate) ----
    z = z_ref[...]                                                   # (TB, L)
    h1 = _leaky_relu(
        jnp.dot(z, w1_ref[...], preferred_element_type=jnp.float32) + b1_ref[...])
    h2 = _leaky_relu(
        jnp.dot(h1, w2_ref[...], preferred_element_type=jnp.float32) + b2_ref[...])
    # w3/b3 columns were permuted to class-major order in the wrapper.
    logits = (jnp.dot(h2, w3_ref[...], preferred_element_type=jnp.float32)
              + b3_ref[...])                                         # (TB, C*D)

    tb = logits.shape[0]
    # class-major reshape: class axis -> sublanes, D -> 128-lane axis
    logits3 = logits.reshape(tb, num_vals, d_out)                    # (TB, C, D)

    # ---- log-sum-exp over the class axis (axis=1) ----
    m = jnp.max(logits3, axis=1, keepdims=True)                      # (TB, 1, D)
    se = jnp.sum(jnp.exp(logits3 - m), axis=1)                       # (TB, D)
    lse = m[:, 0, :] + jnp.log(se)                                   # (TB, D)

    # ---- gather the logit of the observed class via an iota mask ----
    x = x_ref[...]                                                   # (TB, D) int32
    classes = jax.lax.broadcasted_iota(jnp.int32, (tb, num_vals, d_out), 1)
    sel_mask = x[:, None, :] == classes
    sel_logit = jnp.sum(jnp.where(sel_mask, logits3, 0.0), axis=1)   # (TB, D)

    # log p(x_d) with torch's clamp(mu, EPS, 1-EPS) semantics (log is monotone,
    # so clamping the log-prob is exactly equivalent).
    log_p = jnp.clip(sel_logit - lse, LOG_EPS, LOG_ONE_MINUS_EPS)    # (TB, D)

    # per-batch-row log-likelihood, stored lane-dense as (1, TB)
    out_ref[...] = jnp.sum(log_p, axis=-1)[None, :]


def _resident_spec(shape):
    nd = len(shape)
    return pl.BlockSpec(shape, lambda i, _nd=nd: (0,) * _nd)


def decoder_log_prob(z, x, params, num_vals, tb=128):
    """Equivalent of Decoder.forward(z, x=x, type='log_prob')."""
    w1, b1, w2, b2, w3, b3 = params
    B, L = z.shape
    M = w1.shape[1]
    DV = w3.shape[1]
    d_out = DV // num_vals

    # Permute w3/b3 columns once (plain JAX) from torch's (d, class) interleaved
    # order to class-major (class, d) so the kernel's reshape puts D on lanes.
    perm = jnp.arange(DV).reshape(d_out, num_vals).T.reshape(-1)
    w3_cm = w3[:, perm]
    b3_cm = b3[:, perm]

    # Pad the batch up to a multiple of the batch tile.
    b_pad = ((B + tb - 1) // tb) * tb
    if b_pad != B:
        z = jnp.pad(z, ((0, b_pad - B), (0, 0)))
        x = jnp.pad(x, ((0, b_pad - B), (0, 0)))
    grid = (b_pad // tb,)

    kernel = functools.partial(decoder_logprob_kernel,
                               num_vals=num_vals, d_out=d_out)

    n_elems = (z.size + x.size + w1.size + b1.size + w2.size + b2.size
               + w3.size + b3.size + b_pad)
    cost = pl.CostEstimate(
        flops=2 * b_pad * (L * M + M * M + M * DV),
        transcendentals=b_pad * d_out * (num_vals + 1),   # exp per class + 1 log
        bytes_accessed=4 * n_elems,
    )

    out = pl.pallas_call(
        kernel,
        out_shape=jax.ShapeDtypeStruct((1, b_pad), jnp.float32),
        grid_spec=pltpu.PrefetchScalarGridSpec(
            num_scalar_prefetch=0,
            grid=grid,
            in_specs=[
                pl.BlockSpec((tb, L), lambda i: (i, 0)),        # z tile
                pl.BlockSpec((tb, d_out), lambda i: (i, 0)),    # x tile
                _resident_spec(w1.shape),                       # weights stay
                _resident_spec(b1.shape),                       # resident in VMEM
                _resident_spec(w2.shape),
                _resident_spec(b2.shape),
                _resident_spec(w3_cm.shape),
                _resident_spec(b3_cm.shape),
            ],
            out_specs=pl.BlockSpec((1, tb), lambda i: (0, i)),  # lane-dense out
        ),
        compiler_params=pltpu.CompilerParams(
            dimension_semantics=("parallel",),
            vmem_limit_bytes=32 * 1024 * 1024,
        ),
        cost_estimate=cost,
    )(z, x, w1, b1, w2, b2, w3_cm, b3_cm)

    return out[0, :B]


def _reference_log_prob(z, x, params, num_vals):
    # Pure-JAX mirror of the torch reference (softmax + clamp + log + one-hot).
    w1, b1, w2, b2, w3, b3 = params
    h1 = _leaky_relu(z @ w1 + b1)
    h2 = _leaky_relu(h1 @ w2 + b2)
    logits = h2 @ w3 + b3
    b = logits.shape[0]
    d = logits.shape[1] // num_vals
    mu_d = jax.nn.softmax(logits.reshape(b, d, num_vals), axis=2)
    mu_d = jnp.clip(mu_d, EPS, 1.0 - EPS)
    one_hot = jax.nn.one_hot(x, num_vals, dtype=jnp.float32)
    return jnp.sum(one_hot * jnp.log(mu_d), axis=(1, 2))


def init_params(key, latent, hidden, d_out, num_vals):
    ks = jax.random.split(key, 6)

    def lin(kw, kb, fan_in, fan_out):
        lim = 1.0 / jnp.sqrt(fan_in)
        w = jax.random.uniform(kw, (fan_in, fan_out), jnp.float32, -lim, lim)
        b = jax.random.uniform(kb, (1, fan_out), jnp.float32, -lim, lim)
        return w, b

    w1, b1 = lin(ks[0], ks[1], latent, hidden)
    w2, b2 = lin(ks[2], ks[3], hidden, hidden)
    w3, b3 = lin(ks[4], ks[5], hidden, d_out * num_vals)
    return (w1, b1, w2, b2, w3, b3)


if __name__ == "__main__":
    B, L, M, D, NUM_VALS = 2, 16, 32, 16, 8

    key = jax.random.PRNGKey(0)
    kz, kx, kp = jax.random.split(key, 3)

    z = jax.random.normal(kz, (B, L), dtype=jnp.float32)
    x = jax.random.randint(kx, (B, D), 0, NUM_VALS, dtype=jnp.int32)
    params = init_params(kp, L, M, D, NUM_VALS)

    out = decoder_log_prob(z, x, params, NUM_VALS)
    out = jax.block_until_ready(out)

    ref = _reference_log_prob(z, x, params, NUM_VALS)
    assert out.shape == (B,), out.shape
    assert jnp.allclose(out, ref, atol=1e-4, rtol=1e-4), (out, ref)

    print("KERNEL_OK")
</pallas_src>

<mosaic_0001>
module attributes {stable_mosaic.version = 11 : i64} {
  func.func @decoder_logprob_kernel(%arg0: i32, %arg1: memref<128x16xf32, #tpu.memory_space<vmem>>, %arg2: memref<128x16xi32, #tpu.memory_space<vmem>>, %arg3: memref<16x32xf32, #tpu.memory_space<vmem>>, %arg4: memref<1x32xf32, #tpu.memory_space<vmem>>, %arg5: memref<32x32xf32, #tpu.memory_space<vmem>>, %arg6: memref<1x32xf32, #tpu.memory_space<vmem>>, %arg7: memref<32x128xf32, #tpu.memory_space<vmem>>, %arg8: memref<1x128xf32, #tpu.memory_space<vmem>>, %arg9: memref<1x128xf32, #tpu.memory_space<vmem>>) attributes {dimension_semantics = [#tpu.dimension_semantics<parallel>], iteration_bounds = array<i64: 1>, scalar_prefetch = 0 : i64, scratch_operands = 0 : i64, tpu.core_type = #tpu.core_type<tc>, window_params = [{transform_indices = @transform_0, window_bounds = array<i64: 128, 16>}, {transform_indices = @transform_1, window_bounds = array<i64: 128, 16>}, {pipeline_mode = #tpu.pipeline_mode<synchronous>, transform_indices = @transform_2, window_bounds = array<i64: 16, 32>}, {pipeline_mode = #tpu.pipeline_mode<synchronous>, transform_indices = @transform_3, window_bounds = array<i64: 1, 32>}, {pipeline_mode = #tpu.pipeline_mode<synchronous>, transform_indices = @transform_4, window_bounds = array<i64: 32, 32>}, {pipeline_mode = #tpu.pipeline_mode<synchronous>, transform_indices = @transform_5, window_bounds = array<i64: 1, 32>}, {pipeline_mode = #tpu.pipeline_mode<synchronous>, transform_indices = @transform_6, window_bounds = array<i64: 32, 128>}, {pipeline_mode = #tpu.pipeline_mode<synchronous>, transform_indices = @transform_7, window_bounds = array<i64: 1, 128>}, {transform_indices = @transform_8, window_bounds = array<i64: 1, 128>}]} {
    %c0 = arith.constant 0 : index
    %c0_0 = arith.constant 0 : index
    %0 = vector.load %arg1[%c0, %c0_0] : memref<128x16xf32, #tpu.memory_space<vmem>>, vector<128x16xf32>
    %c0_1 = arith.constant 0 : index
    %c0_2 = arith.constant 0 : index
    %1 = vector.load %arg3[%c0_1, %c0_2] : memref<16x32xf32, #tpu.memory_space<vmem>>, vector<16x32xf32>
    %cst = arith.constant dense<0.000000e+00> : vector<128x32xf32>
    %2 = tpu.matmul %0, %1, %cst {dimension_numbers = #tpu.dot_dimension_numbers<[1], [0], [0], [1], [0, 0, 1, 1], [], []>} : vector<128x16xf32>, vector<16x32xf32>, vector<128x32xf32> -> vector<128x32xf32>
    %c0_3 = arith.constant 0 : index
    %c0_4 = arith.constant 0 : index
    %3 = vector.load %arg4[%c0_3, %c0_4] : memref<1x32xf32, #tpu.memory_space<vmem>>, vector<1x32xf32>
    %4 = vector.broadcast %3 : vector<1x32xf32> to vector<128x32xf32>
    %5 = arith.addf %2, %4 : vector<128x32xf32>
    %cst_5 = arith.constant 0.000000e+00 : f32
    %6 = vector.broadcast %cst_5 : f32 to vector<128x32xf32>
    %7 = arith.cmpf oge, %5, %6 : vector<128x32xf32>
    %cst_6 = arith.constant 0.00999999977 : f32
    %8 = vector.broadcast %cst_6 : f32 to vector<128x32xf32>
    %9 = arith.mulf %8, %5 : vector<128x32xf32>
    %10 = arith.select %7, %5, %9 : vector<128x32xi1>, vector<128x32xf32>
    %c0_7 = arith.constant 0 : index
    %c0_8 = arith.constant 0 : index
    %11 = vector.load %arg5[%c0_7, %c0_8] : memref<32x32xf32, #tpu.memory_space<vmem>>, vector<32x32xf32>
    %cst_9 = arith.constant dense<0.000000e+00> : vector<128x32xf32>
    %12 = tpu.matmul %10, %11, %cst_9 {dimension_numbers = #tpu.dot_dimension_numbers<[1], [0], [0], [1], [0, 0, 1, 1], [], []>} : vector<128x32xf32>, vector<32x32xf32>, vector<128x32xf32> -> vector<128x32xf32>
    %c0_10 = arith.constant 0 : index
    %c0_11 = arith.constant 0 : index
    %13 = vector.load %arg6[%c0_10, %c0_11] : memref<1x32xf32, #tpu.memory_space<vmem>>, vector<1x32xf32>
    %14 = vector.broadcast %13 : vector<1x32xf32> to vector<128x32xf32>
    %15 = arith.addf %12, %14 : vector<128x32xf32>
    %cst_12 = arith.constant 0.000000e+00 : f32
    %16 = vector.broadcast %cst_12 : f32 to vector<128x32xf32>
    %17 = arith.cmpf oge, %15, %16 : vector<128x32xf32>
    %cst_13 = arith.constant 0.00999999977 : f32
    %18 = vector.broadcast %cst_13 : f32 to vector<128x32xf32>
    %19 = arith.mulf %18, %15 : vector<128x32xf32>
    %20 = arith.select %17, %15, %19 : vector<128x32xi1>, vector<128x32xf32>
    %c0_14 = arith.constant 0 : index
    %c0_15 = arith.constant 0 : index
    %21 = vector.load %arg7[%c0_14, %c0_15] : memref<32x128xf32, #tpu.memory_space<vmem>>, vector<32x128xf32>
    %cst_16 = arith.constant dense<0.000000e+00> : vector<128x128xf32>
    %22 = tpu.matmul %20, %21, %cst_16 {dimension_numbers = #tpu.dot_dimension_numbers<[1], [0], [0], [1], [0, 0, 1, 1], [], []>} : vector<128x32xf32>, vector<32x128xf32>, vector<128x128xf32> -> vector<128x128xf32>
    %c0_17 = arith.constant 0 : index
    %c0_18 = arith.constant 0 : index
    %23 = vector.load %arg8[%c0_17, %c0_18] : memref<1x128xf32, #tpu.memory_space<vmem>>, vector<1x128xf32>
    %24 = vector.broadcast %23 : vector<1x128xf32> to vector<128x128xf32>
    %25 = arith.addf %22, %24 : vector<128x128xf32>
    %26 = vector.shape_cast %25 : vector<128x128xf32> to vector<128x8x16xf32>
    %cst_19 = arith.constant dense<0xFF800000> : vector<128x16xf32>
    %27 = vector.multi_reduction <maximumf>, %26, %cst_19 [1] : vector<128x8x16xf32> to vector<128x16xf32>
    %28 = vector.shape_cast %27 : vector<128x16xf32> to vector<128x1x16xf32>
    %29 = vector.broadcast %28 : vector<128x1x16xf32> to vector<128x8x16xf32>
    %30 = arith.subf %26, %29 : vector<128x8x16xf32>
    %31 = math.exp %30 : vector<128x8x16xf32>
    %cst_20 = arith.constant dense<0.000000e+00> : vector<128x16xf32>
    %32 = vector.multi_reduction <add>, %31, %cst_20 [1] : vector<128x8x16xf32> to vector<128x16xf32>
    %33 = vector.shape_cast %28 : vector<128x1x16xf32> to vector<128x16xf32>
    %34 = math.log %32 : vector<128x16xf32>
    %35 = arith.addf %33, %34 : vector<128x16xf32>
    %c0_21 = arith.constant 0 : index
    %c0_22 = arith.constant 0 : index
    %36 = vector.load %arg2[%c0_21, %c0_22] : memref<128x16xi32, #tpu.memory_space<vmem>>, vector<128x16xi32>
    %37 = tpu.iota {dimensions = array<i32: 1>} : vector<128x8x16xi32>
    %38 = vector.shape_cast %36 : vector<128x16xi32> to vector<128x1x16xi32>
    %39 = vector.broadcast %38 : vector<128x1x16xi32> to vector<128x8x16xi32>
    %40 = arith.cmpi eq, %39, %37 : vector<128x8x16xi32>
    %cst_23 = arith.constant 0.000000e+00 : f32
    %41 = vector.broadcast %cst_23 : f32 to vector<128x8x16xf32>
    %42 = arith.select %40, %26, %41 : vector<128x8x16xi1>, vector<128x8x16xf32>
    %cst_24 = arith.constant dense<0.000000e+00> : vector<128x16xf32>
    %43 = vector.multi_reduction <add>, %42, %cst_24 [1] : vector<128x8x16xf32> to vector<128x16xf32>
    %44 = arith.subf %43, %35 : vector<128x16xf32>
    %cst_25 = arith.constant -11.5129251 : f32
    %cst_26 = arith.constant -1.00000498E-5 : f32
    %45 = vector.broadcast %cst_25 : f32 to vector<128x16xf32>
    %46 = arith.maximumf %45, %44 : vector<128x16xf32>
    %47 = vector.broadcast %cst_26 : f32 to vector<128x16xf32>
    %48 = arith.minimumf %47, %46 : vector<128x16xf32>
    %cst_27 = arith.constant dense<0.000000e+00> : vector<128xf32>
    %49 = vector.multi_reduction <add>, %48, %cst_27 [1] : vector<128x16xf32> to vector<128xf32>
    %50 = vector.shape_cast %49 : vector<128xf32> to vector<1x128xf32>
    %c0_28 = arith.constant 0 : index
    %c0_29 = arith.constant 0 : index
    %51 = vector.load %arg9[%c0_28, %c0_29] : memref<1x128xf32, #tpu.memory_space<vmem>>, vector<1x128xf32>
    tpu.vector_store %arg9[%c0_28, %c0_29], %50 {strides = array<i32>} : memref<1x128xf32, #tpu.memory_space<vmem>>, vector<1x128xf32>,
    return
  }
  func.func @transform_0(%arg0: i32) -> (i32, i32) {
    %c0_i32 = arith.constant 0 : i32
    %c0_i32_0 = arith.constant 0 : i32
    return %arg0, %c0_i32 : i32, i32
  }
  func.func @transform_1(%arg0: i32) -> (i32, i32) {
    %c0_i32 = arith.constant 0 : i32
    %c0_i32_0 = arith.constant 0 : i32
    return %arg0, %c0_i32 : i32, i32
  }
  func.func @transform_2(%arg0: i32) -> (i32, i32) {
    %c0_i32 = arith.constant 0 : i32
    %c0_i32_0 = arith.constant 0 : i32
    %c0_i32_1 = arith.constant 0 : i32
    return %c0_i32, %c0_i32_0 : i32, i32
  }
  func.func @transform_3(%arg0: i32) -> (i32, i32) {
    %c0_i32 = arith.constant 0 : i32
    %c0_i32_0 = arith.constant 0 : i32
    %c0_i32_1 = arith.constant 0 : i32
    return %c0_i32, %c0_i32_0 : i32, i32
  }
  func.func @transform_4(%arg0: i32) -> (i32, i32) {
    %c0_i32 = arith.constant 0 : i32
    %c0_i32_0 = arith.constant 0 : i32
    %c0_i32_1 = arith.constant 0 : i32
    return %c0_i32, %c0_i32_0 : i32, i32
  }
  func.func @transform_5(%arg0: i32) -> (i32, i32) {
    %c0_i32 = arith.constant 0 : i32
    %c0_i32_0 = arith.constant 0 : i32
    %c0_i32_1 = arith.constant 0 : i32
    return %c0_i32, %c0_i32_0 : i32, i32
  }
  func.func @transform_6(%arg0: i32) -> (i32, i32) {
    %c0_i32 = arith.constant 0 : i32
    %c0_i32_0 = arith.constant 0 : i32
    %c0_i32_1 = arith.constant 0 : i32
    return %c0_i32, %c0_i32_0 : i32, i32
  }
  func.func @transform_7(%arg0: i32) -> (i32, i32) {
    %c0_i32 = arith.constant 0 : i32
    %c0_i32_0 = arith.constant 0 : i32
    %c0_i32_1 = arith.constant 0 : i32
    return %c0_i32, %c0_i32_0 : i32, i32
  }
  func.func @transform_8(%arg0: i32) -> (i32, i32) {
    %c0_i32 = arith.constant 0 : i32
    %c0_i32_0 = arith.constant 0 : i32
    return %c0_i32, %arg0 : i32, i32
  }
}

</mosaic_0001>

<bundles_post_ra>
// kernel: tpu_custom_call.1
= control target key start
LH: loop header
LB: loop body
LE: loop exit
PB: predicated region body
PF: predicated region fallthrough
CT: control target
= control target key end

     0   :  { %vm55_vm0 = vcmask 130048   ;;  %s16030_s0 = inlined_call_operand.vmem [shape: f32[128,16], index: 0, kind: input, shape index: {}]   ;;  %s16031_s1 = inlined_call_operand.vmem [shape: s32[128,16], index: 1, kind: input, shape index: {}]   ;;  %s16032_s2 = inlined_call_operand.vmem [shape: f32[16,32], index: 2, kind: input, shape index: {}]   ;;  %s16033_s3 = inlined_call_operand.vmem [shape: f32[1,32], index: 3, kind: input, shape index: {}]   ;;  %s16034_s4 = inlined_call_operand.vmem [shape: f32[32,32], index: 4, kind: input, shape index: {}]   ;;  %s16035_s5 = inlined_call_operand.vmem [shape: f32[1,32], index: 5, kind: input, shape index: {}]   ;;  %s16036_s6 = inlined_call_operand.vmem [shape: f32[32,128], index: 6, kind: input, shape index: {}]   ;;  %s16037_s7 = inlined_call_operand.vmem [shape: f32[1,128], index: 7, kind: input, shape index: {}]   ;;  %s16038_s8 = inlined_call_operand.hbm [shape: f32[1,128], index: 8, kind: output, shape index: {}]  }
   0x1   :  { %v47_v0 = vld [vmem:[%s16032_s2 + $0x8] sm:$0xff]  ;;  %v46_v1 = vld [vmem:[%s16032_s2] sm:$0xff]  ;;  %v32_v4 = vld [vmem:[%s16030_s0 + $0x10] sm:$0xff] }
   0x2   :  { %v30_v2 = vld [vmem:[%s16030_s0] sm:$0xff]  ;;  %9255 = vmatprep.subr.mxu0 %v47_v0  ;;  %v31_v3 = vld [vmem:[%s16030_s0 + $0x8] sm:$0xff]  ;;  %9347 = vmatprep.subr.mxu1 %v47_v0  ;;  %v33_v7 = vld [vmem:[%s16030_s0 + $0x18] sm:$0xff] }
   0x3   :  { %9259 = vmatprep.mubr.msk.f32.mxu0 %vm55_vm0, %v30_v2  ;;  %9256 = vmatpush3.msra.mxu0 %v47_v0  ;;  %v38_v5 = vld [vmem:[%s16030_s0 + $0x40] sm:$0xff]  ;;  %v39_v6 = vld [vmem:[%s16030_s0 + $0x48] sm:$0xff]  ;;  %v40_v8 = vld [vmem:[%s16030_s0 + $0x50] sm:$0xff] }
   0x4   :  { %9257 = vmatprep.subr.mxu0 %v46_v1  ;;  %9349 = vmatpush3.msra.mxu1 %v47_v0  ;;  %v300_v9 = vld [vmem:[%s16034_s4 + $0x18] sm:$0xff]  ;;  %v299_v10 = vld [vmem:[%s16034_s4 + $0x10] sm:$0xff] }
   0x5   :  { %9258 = vmatpush3.msra.mxu0 %v46_v1  ;;  %9348 = vmatprep.subr.mxu1 %v46_v1 }
   0x6   :  { %9260 = vmatmul.mubr.msk.f32.vlgmr.msra.gmra.mxu0 %vm55_vm0, %v31_v3  ;;  %9350 = vmatpush3.msra.mxu1 %v46_v1 }
   0x7   :  { %9262 = vmatprep.mubr.msk.f32.mxu0 %vm55_vm0, %v32_v4  ;;  %9271 = vmatprep.mubr.msk.f32.mxu1 %vm55_vm0, %v38_v5 }
   0x8   :  { %13 = vsyncpa [#allocation3], 0  ;;  %v34_v11 = vld [vmem:[%s16030_s0 + $0x20] sm:$0xff]  ;;  %9272 = vmatmul.mubr.msk.f32.vlgmr.msra.gmra.mxu1 %vm55_vm0, %v39_v6  ;;  %9283 = vmatprep.subr.mxu1 %v300_v9  ;;  %v41_v12 = vld [vmem:[%s16030_s0 + $0x58] sm:$0xff]  ;;  %vm308_vm1 = vcmask 261120   ;;  %s9913_s12 = smov 96  }
   0x9   :  { %9274 = vmatprep.mubr.msk.f32.mxu1 %vm55_vm0, %v40_v8  ;;  %9284 = vmatpush3.msra.mxu1 %v300_v9  ;;  %v42_v13 = vld [vmem:[%s16030_s0 + $0x60] sm:$0xff]  ;;  %v35_v14 = vld [vmem:[%s16030_s0 + $0x28] sm:$0xff]  ;;  %v36_v15 = vld [vmem:[%s16030_s0 + $0x30] sm:$0xff]  ;;  %s9914_s13 = smov 112   ;;  %s9915_s14 = smov 80  }
   0xa   :  { %9263 = vmatmul.mubr.msk.f32.gmra.mxu0 %vm55_vm0, %v33_v7  ;;  %9285 = vmatprep.subr.mxu1 %v299_v10  ;;  %v43_v16 = vld [vmem:[%s16030_s0 + $0x68] sm:$0xff]  ;;  %v44_v17 = vld [vmem:[%s16030_s0 + $0x70] sm:$0xff]  ;;  %v37_v18 = vld [vmem:[%s16030_s0 + $0x38] sm:$0xff]  ;;  %s9916_s2 = smov 64   ;;  %s9917_s15 = smov 48  }
   0xb   :  { %9265 = vmatprep.mubr.msk.f32.mxu0 %vm55_vm0, %v34_v11  ;;  %9286 = vmatpush3.msra.mxu1 %v299_v10  ;;  %v45_v19 = vld [vmem:[%s16030_s0 + $0x78] sm:$0xff]  ;;  %v298_v20 = vld [vmem:[%s16034_s4 + $0x8] sm:$0xff]  ;;  %v297_v21 = vld [vmem:[%s16034_s4] sm:$0xff]  ;;  %s9918_s16 = smov 32   ;;  %s9919_s17 = smov 16  }
   0xc   :  { %9275 = vmatmul.mubr.msk.f32.gmra.mxu1 %vm55_vm0, %v41_v12  ;;  %9287 = vmatprep.subr.mxu1 %v298_v20  ;;  %v553_v22 = vld [vmem:[%s16036_s6 + $0x18] sm:$0xff]  ;;  %v552_v23 = vld [vmem:[%s16036_s6 + $0x10] sm:$0xff]  ;;  %v10060_v24 = vld [vmem:[%s16033_s3] ss:$0 sm:$0xff] }
   0xd   :  { %9277 = vmatprep.mubr.msk.f32.mxu1 %vm55_vm0, %v42_v13  ;;  %9288 = vmatpush3.msra.mxu1 %v298_v20 }
   0xe   :  { %9266 = vmatmul.mubr.msk.f32.gmra.mxu0 %vm55_vm0, %v35_v14  ;;  %9289 = vmatprep.subr.mxu1 %v297_v21 }
   0xf   :  { %9268 = vmatprep.mubr.msk.f32.mxu0 %vm55_vm0, %v36_v15  ;;  %9290 = vmatpush3.msra.mxu1 %v297_v21 }
  0x10   :  { %9278 = vmatmul.mubr.msk.f32.gmra.mxu1 %vm55_vm0, %v43_v16  ;;  %9315 = vmatprep.subr.mxu0 %v553_v22 }
  0x11   :  { %9280 = vmatprep.mubr.msk.f32.mxu1 %vm55_vm0, %v44_v17  ;;  %9316 = vmatpush3.msra.mxu0 %v553_v22 }
  0x12   :  { %9269 = vmatmul.mubr.msk.f32.gmra.mxu0 %vm55_vm0, %v37_v18  ;;  %9317 = vmatprep.subr.mxu0 %v552_v23 }
  0x13   :  { %9318 = vmatpush3.msra.mxu0 %v552_v23 }
  0x14   :  { %9281 = vmatmul.mubr.msk.f32.gmra.mxu1 %vm55_vm0, %v45_v19 }
  0xc6   :  { %v9261_v25 = vpop.f32.mrf.mxu0 }
  0xc7   :  { %v176_v26 = vadd.f32 %v9261_v25, %v10060_v24 }
  0xc8   :  { %v170_v27 = vpop.f32.mrf.mxu0  ;;  %v9273_v28 = vpop.f32.mrf.mxu1 }
  0xc9   :  { %v171_v29 = vadd.f32 %v10060_v24, %v170_v27  ;;  %v266_v30 = vmul.f32 0.01, %v176_v26  ;;  %vm250_vm2 = vcmp.ge.f32.partialorder %v176_v26, 0.0  ;;  %v216_v57 = vadd.f32 %v9273_v28, %v10060_v24  ;;  %v10103_v27 = vld [vmem:[%s16035_s5] ss:$0 sm:$0xff] }
  0xca   :  { %v9264_v31 = vpop.f32.mrf.mxu0  ;;  %v210_v32 = vpop.f32.mrf.mxu1 }
  0xcb   :  { %vm249_vm3 = vcmp.ge.f32.partialorder %v171_v29, 0.0  ;;  %v265_v33 = vmul.f32 0.01, %v171_v29  ;;  %v186_v34 = vadd.f32 %v9264_v31, %v10060_v24  ;;  %v282_v40 = vsel %vm250_vm2, %v176_v26, %v266_v30  ;;  %v550_v26 = vld [vmem:[%s16036_s6] sm:$0xff] }
  0xcc   :  { %v180_v35 = vpop.f32.mrf.mxu0  ;;  %v9276_v36 = vpop.f32.mrf.mxu1  ;;  %v211_v47 = vadd.f32 %v10060_v24, %v210_v32  ;;  %vm258_vm11 = vcmp.ge.f32.partialorder %v216_v57, 0.0  ;;  %v274_v3 = vmul.f32 0.01, %v216_v57 }
  0xcd   :  { %v281_v37 = vsel %vm249_vm3, %v171_v29, %v265_v33  ;;  %vm252_vm4 = vcmp.ge.f32.partialorder %v186_v34, 0.0  ;;  %v268_v38 = vmul.f32 0.01, %v186_v34  ;;  %v181_v39 = vadd.f32 %v10060_v24, %v180_v35 }
  0xce   :  { %9291 = vmatprep.mubr.msk.f32.mxu1 %vm308_vm1, %v281_v37  ;;  %v9267_v41 = vpop.f32.mrf.mxu0  ;;  %v220_v42 = vpop.f32.mrf.mxu1  ;;  %v273_v58 = vmul.f32 0.01, %v211_v47  ;;  %vm257_vm9 = vcmp.ge.f32.partialorder %v211_v47, 0.0  ;;  %v226_v4 = vadd.f32 %v9276_v36, %v10060_v24  ;;  %v290_v10 = vsel %vm258_vm11, %v216_v57, %v274_v3 }
  0xcf   :  { %9292 = vmatmul.mubr.msk.f32.vlgmr.msra.gmra.mxu1 %vm308_vm1, %v282_v40  ;;  %vm251_vm5 = vcmp.ge.f32.partialorder %v181_v39, 0.0  ;;  %v267_v43 = vmul.f32 0.01, %v181_v39  ;;  %v196_v44 = vadd.f32 %v9267_v41, %v10060_v24  ;;  %v284_v45 = vsel %vm252_vm4, %v186_v34, %v268_v38 }
  0xd0   :  { %v190_v46 = vpop.f32.mrf.mxu0  ;;  %v9279_v48 = vpop.f32.mrf.mxu1  ;;  %v221_v59 = vadd.f32 %v10060_v24, %v220_v42  ;;  %v289_v6 = vsel %vm257_vm9, %v211_v47, %v273_v58  ;;  %v276_v11 = vmul.f32 0.01, %v226_v4  ;;  %vm260_vm13 = vcmp.ge.f32.partialorder %v226_v4, 0.0 }
  0xd1   :  { %v283_v49 = vsel %vm251_vm5, %v181_v39, %v267_v43  ;;  %vm254_vm6 = vcmp.ge.f32.partialorder %v196_v44, 0.0  ;;  %v270_v50 = vmul.f32 0.01, %v196_v44  ;;  %v191_v51 = vadd.f32 %v10060_v24, %v190_v46 }
  0xd2   :  { %9294 = vmatprep.mubr.msk.f32.mxu1 %vm308_vm1, %v283_v49  ;;  %v9270_v52 = vpop.f32.mrf.mxu0  ;;  %v230_v60 = vpop.f32.mrf.mxu1  ;;  %v275_v7 = vmul.f32 0.01, %v221_v59  ;;  %vm259_vm12 = vcmp.ge.f32.partialorder %v221_v59, 0.0  ;;  %v236_v12 = vadd.f32 %v9279_v48, %v10060_v24  ;;  %v292_v16 = vsel %vm260_vm13, %v226_v4, %v276_v11 }
  0xd3   :  { %9295 = vmatmul.mubr.msk.f32.gmra.mxu1 %vm308_vm1, %v284_v45  ;;  %vm253_vm7 = vcmp.ge.f32.partialorder %v191_v51, 0.0  ;;  %v269_v53 = vmul.f32 0.01, %v191_v51  ;;  %v206_v54 = vadd.f32 %v9270_v52, %v10060_v24  ;;  %v286_v55 = vsel %vm254_vm6, %v196_v44, %v270_v50 }
  0xd4   :  { %v200_v56 = vpop.f32.mrf.mxu0  ;;  %v9282_v0 = vpop.f32.mrf.mxu1  ;;  %v231_v8 = vadd.f32 %v10060_v24, %v230_v60  ;;  %v291_v13 = vsel %vm259_vm12, %v221_v59, %v275_v7  ;;  %v278_v17 = vmul.f32 0.01, %v236_v12  ;;  %vm262_vm15 = vcmp.ge.f32.partialorder %v236_v12, 0.0 }
  0xd5   :  { %v285_v61 = vsel %vm253_vm7, %v191_v51, %v269_v53  ;;  %vm256_vm8 = vcmp.ge.f32.partialorder %v206_v54, 0.0  ;;  %v272_v62 = vmul.f32 0.01, %v206_v54  ;;  %v201_v63 = vadd.f32 %v10060_v24, %v200_v56 }
  0xd6   :  { %9297 = vmatprep.mubr.msk.f32.mxu1 %vm308_vm1, %v285_v61  ;;  %v240_v9 = vpop.f32.mrf.mxu1  ;;  %v277_v14 = vmul.f32 0.01, %v231_v8  ;;  %vm261_vm14 = vcmp.ge.f32.partialorder %v231_v8, 0.0  ;;  %v246_v18 = vadd.f32 %v9282_v0, %v10060_v24  ;;  %v294_v21 = vsel %vm262_vm15, %v236_v12, %v278_v17 }
  0xd7   :  { %9298 = vmatmul.mubr.msk.f32.gmra.mxu1 %vm308_vm1, %v286_v55  ;;  %vm255_vm10 = vcmp.ge.f32.partialorder %v201_v63, 0.0  ;;  %v271_v1 = vmul.f32 0.01, %v201_v63  ;;  %v288_v2 = vsel %vm256_vm8, %v206_v54, %v272_v62  ;;  %v241_v15 = vadd.f32 %v10060_v24, %v240_v9  ;;  %v551_v24 = vld [vmem:[%s16036_s6 + $0x8] sm:$0xff] }
  0xd8   :  { %v293_v19 = vsel %vm261_vm14, %v231_v8, %v277_v14  ;;  %v280_v22 = vmul.f32 0.01, %v246_v18  ;;  %vm264_vm3 = vcmp.ge.f32.partialorder %v246_v18, 0.0  ;;  %9319 = vmatprep.subr.mxu0 %v551_v24 }
  0xd9   :  { %v287_v5 = vsel %vm255_vm10, %v201_v63, %v271_v1  ;;  %v279_v20 = vmul.f32 0.01, %v241_v15  ;;  %vm263_vm2 = vcmp.ge.f32.partialorder %v241_v15, 0.0  ;;  %9320 = vmatpush3.msra.mxu0 %v551_v24 }
  0xda   :  { %9300 = vmatprep.mubr.msk.f32.mxu1 %vm308_vm1, %v287_v5  ;;  %v296_v25 = vsel %vm264_vm3, %v246_v18, %v280_v22  ;;  %9321 = vmatprep.subr.mxu0 %v550_v26 }
  0xdb   :  { %9301 = vmatmul.mubr.msk.f32.gmra.mxu1 %vm308_vm1, %v288_v2  ;;  %v295_v23 = vsel %vm263_vm2, %v241_v15, %v279_v20  ;;  %9322 = vmatpush3.msra.mxu0 %v550_v26 }
  0xdc   :  { %9303 = vmatprep.mubr.msk.f32.mxu1 %vm308_vm1, %v289_v6 }
  0xdf   :  { %9304 = vmatmul.mubr.msk.f32.gmra.mxu1 %vm308_vm1, %v290_v10 }
  0xe0   :  { %9306 = vmatprep.mubr.msk.f32.mxu1 %vm308_vm1, %v291_v13 }
  0xe3   :  { %9307 = vmatmul.mubr.msk.f32.gmra.mxu1 %vm308_vm1, %v292_v16 }
  0xe4   :  { %9309 = vmatprep.mubr.msk.f32.mxu1 %vm308_vm1, %v293_v19 }
  0xe7   :  { %9310 = vmatmul.mubr.msk.f32.gmra.mxu1 %vm308_vm1, %v294_v21 }
  0xe8   :  { %9312 = vmatprep.mubr.msk.f32.mxu1 %vm308_vm1, %v295_v23 }
  0xeb   :  { %9313 = vmatmul.mubr.msk.f32.gmra.mxu1 %vm308_vm1, %v296_v25 }
 0x18f   :  { %v9293_v28 = vpop.f32.mrf.mxu1 }
 0x190   :  { %v429_v29 = vadd.f32 %v9293_v28, %v10103_v27 }
 0x191   :  { %v423_v30 = vpop.f32.mrf.mxu1 }
 0x192   :  { %v424_v31 = vadd.f32 %v10103_v27, %v423_v30  ;;  %v519_v32 = vmul.f32 0.01, %v429_v29  ;;  %vm503_vm4 = vcmp.ge.f32.partialorder %v429_v29, 0.0 }
 0x193   :  { %v9296_v33 = vpop.f32.mrf.mxu1 }
 0x194   :  { %vm502_vm5 = vcmp.ge.f32.partialorder %v424_v31, 0.0  ;;  %v518_v34 = vmul.f32 0.01, %v424_v31  ;;  %v439_v35 = vadd.f32 %v9296_v33, %v10103_v27  ;;  %v535_v40 = vsel %vm503_vm4, %v429_v29, %v519_v32  ;;  %v10140_v29 = vld [vmem:[%s16037_s7] ss:$0 sm:$0xff] }
 0x195   :  { %v433_v36 = vpop.f32.mrf.mxu1 }
 0x196   :  { %v534_v37 = vsel %vm502_vm5, %v424_v31, %v518_v34  ;;  %vm505_vm6 = vcmp.ge.f32.partialorder %v439_v35, 0.0  ;;  %v521_v38 = vmul.f32 0.01, %v439_v35  ;;  %v434_v39 = vadd.f32 %v10103_v27, %v433_v36 }
 0x197   :  { %9323 = vmatprep.mubr.msk.f32.mxu0 %vm308_vm1, %v534_v37  ;;  %v9299_v41 = vpop.f32.mrf.mxu1 }
 0x198   :  { %9324 = vmatmul.mubr.msk.f32.vlgmr.msra.gmra.mxu0 %vm308_vm1, %v535_v40  ;;  %vm504_vm7 = vcmp.ge.f32.partialorder %v434_v39, 0.0  ;;  %v520_v42 = vmul.f32 0.01, %v434_v39  ;;  %v449_v43 = vadd.f32 %v9299_v41, %v10103_v27  ;;  %v537_v44 = vsel %vm505_vm6, %v439_v35, %v521_v38 }
 0x199   :  { %v443_v45 = vpop.f32.mrf.mxu1 }
 0x19a   :  { %v536_v46 = vsel %vm504_vm7, %v434_v39, %v520_v42  ;;  %vm507_vm8 = vcmp.ge.f32.partialorder %v449_v43, 0.0  ;;  %v523_v47 = vmul.f32 0.01, %v449_v43  ;;  %v444_v48 = vadd.f32 %v10103_v27, %v443_v45 }
 0x19b   :  { %9326 = vmatprep.mubr.msk.f32.mxu0 %vm308_vm1, %v536_v46  ;;  %v9302_v49 = vpop.f32.mrf.mxu1 }
 0x19c   :  { %9327 = vmatmul.mubr.msk.f32.gmra.mxu0 %vm308_vm1, %v537_v44  ;;  %vm506_vm9 = vcmp.ge.f32.partialorder %v444_v48, 0.0  ;;  %v522_v50 = vmul.f32 0.01, %v444_v48  ;;  %v459_v51 = vadd.f32 %v9302_v49, %v10103_v27  ;;  %v539_v52 = vsel %vm507_vm8, %v449_v43, %v523_v47 }
 0x19d   :  { %v453_v53 = vpop.f32.mrf.mxu1 }
 0x19e   :  { %v538_v54 = vsel %vm506_vm9, %v444_v48, %v522_v50  ;;  %vm509_vm10 = vcmp.ge.f32.partialorder %v459_v51, 0.0  ;;  %v525_v55 = vmul.f32 0.01, %v459_v51  ;;  %v454_v56 = vadd.f32 %v10103_v27, %v453_v53 }
 0x19f   :  { %9329 = vmatprep.mubr.msk.f32.mxu0 %vm308_vm1, %v538_v54  ;;  %v9305_v57 = vpop.f32.mrf.mxu1  ;;  %v16039_v54 = vlaneseq }
 0x1a0   :  { %9330 = vmatmul.mubr.msk.f32.gmra.mxu0 %vm308_vm1, %v539_v52  ;;  %vm508_vm11 = vcmp.ge.f32.partialorder %v454_v56, 0.0  ;;  %v524_v58 = vmul.f32 0.01, %v454_v56  ;;  %v469_v59 = vadd.f32 %v9305_v57, %v10103_v27  ;;  %v541_v60 = vsel %vm509_vm10, %v459_v51, %v525_v55 }
 0x1a1   :  { %v463_v61 = vpop.f32.mrf.mxu1  ;;  %v9920_v52 = vmov 1983009808   ;;  %v10309_v57 = vshrl.u32 %v16039_v54, 7 }
 0x1a2   :  { %v540_v62 = vsel %vm508_vm11, %v454_v56, %v524_v58  ;;  %vm511_vm12 = vcmp.ge.f32.partialorder %v469_v59, 0.0  ;;  %v527_v63 = vmul.f32 0.01, %v469_v59  ;;  %v464_v0 = vadd.f32 %v10103_v27, %v463_v61 }
 0x1a3   :  { %9332 = vmatprep.mubr.msk.f32.mxu0 %vm308_vm1, %v540_v62  ;;  %v9308_v1 = vpop.f32.mrf.mxu1  ;;  %v1109_v53 = vunpack.c.l.s4 %v9920_v52  ;;  %16294 = vst [vmem:[#allocation12_spill] sm:$0xff] %v10309_v57  ;;  %v9921_v58 = vmov 1966171168   ;;  %v9922_v61 = vmov 1934713408  }
 0x1a4   :  { %9333 = vmatmul.mubr.msk.f32.gmra.mxu0 %vm308_vm1, %v541_v60  ;;  %vm510_vm13 = vcmp.ge.f32.partialorder %v464_v0, 0.0  ;;  %v526_v2 = vmul.f32 0.01, %v464_v0  ;;  %v479_v3 = vadd.f32 %v9308_v1, %v10103_v27  ;;  %v543_v4 = vsel %vm511_vm12, %v469_v59, %v527_v63 }
 0x1a5   :  { %v473_v5 = vpop.f32.mrf.mxu1  ;;  %v1110_v56 = vunpack.c.0.s8 %v1109_v53  ;;  %v5862_v59 = vunpack.c.l.s4 %v9921_v58  ;;  %v1173_v62 = vunpack.c.l.s4 %v9922_v61  ;;  %v10399_v58 = vsub.s32 0, %v10309_v57 }
 0x1a6   :  { %v542_v6 = vsel %vm510_vm13, %v464_v0, %v526_v2  ;;  %vm513_vm14 = vcmp.ge.f32.partialorder %v479_v3, 0.0  ;;  %v529_v7 = vmul.f32 0.01, %v479_v3  ;;  %v474_v8 = vadd.f32 %v10103_v27, %v473_v5 }
 0x1a7   :  { %9335 = vmatprep.mubr.msk.f32.mxu0 %vm308_vm1, %v542_v6  ;;  %v9311_v9 = vpop.f32.mrf.mxu1  ;;  %v10322_v1 = vsub.s32 %v1110_v56, %v10309_v57  ;;  %v1174_v5 = vunpack.c.0.s8 %v1173_v62  ;;  %16297 = vst [vmem:[#allocation15_spill] sm:$0xff] %v10399_v58 }
 0x1a8   :  { %9336 = vmatmul.mubr.msk.f32.gmra.mxu0 %vm308_vm1, %v543_v4  ;;  %vm512_vm15 = vcmp.ge.f32.partialorder %v474_v8, 0.0  ;;  %v528_v10 = vmul.f32 0.01, %v474_v8  ;;  %v489_v11 = vadd.f32 %v9311_v9, %v10103_v27  ;;  %v545_v12 = vsel %vm513_vm14, %v479_v3, %v529_v7  ;;  %v5843_v7 = vld [vmem:[%s16031_s1 + $0x8] sm:$0xff] }
 0x1a9   :  { %v483_v13 = vpop.f32.mrf.mxu1  ;;  %v5863_v3 = vunpack.c.0.s8 %v5862_v59 }
 0x1aa   :  { %v544_v14 = vsel %vm512_vm15, %v474_v8, %v528_v10  ;;  %vm515_vm2 = vcmp.ge.f32.partialorder %v489_v11, 0.0  ;;  %v531_v15 = vmul.f32 0.01, %v489_v11  ;;  %v484_v16 = vadd.f32 %v10103_v27, %v483_v13 }
 0x1ab   :  { %9338 = vmatprep.mubr.msk.f32.mxu0 %vm308_vm1, %v544_v14  ;;  %v9314_v17 = vpop.f32.mrf.mxu1  ;;  %v5909_v14 = vcombine.high %v5843_v7, %v5843_v7 }
 0x1ac   :  { %9339 = vmatmul.mubr.msk.f32.gmra.mxu0 %vm308_vm1, %v545_v12  ;;  %vm514_vm3 = vcmp.ge.f32.partialorder %v484_v16, 0.0  ;;  %v530_v18 = vmul.f32 0.01, %v484_v16  ;;  %v499_v19 = vadd.f32 %v9314_v17, %v10103_v27  ;;  %v547_v20 = vsel %vm515_vm2, %v489_v11, %v531_v15 }
 0x1ad   :  { %v493_v21 = vpop.f32.mrf.mxu1  ;;  %v10342_v11 = vsub.s32 %v5863_v3, %v10309_v57 }
 0x1ae   :  { %v546_v22 = vsel %vm514_vm3, %v484_v16, %v530_v18  ;;  %vm517_vm4 = vcmp.ge.f32.partialorder %v499_v19, 0.0  ;;  %v533_v23 = vmul.f32 0.01, %v499_v19  ;;  %v494_v25 = vadd.f32 %v10103_v27, %v493_v21 }
 0x1af   :  { %9341 = vmatprep.mubr.msk.f32.mxu0 %vm308_vm1, %v546_v22  ;;  %16295 = vst [vmem:[#allocation13_spill] sm:$0xff] %v10342_v11  ;;  %v10351_v16 = vsub.s32 %v1174_v5, %v10309_v57  ;;  %v5916_v22 = vrot.slane %v5843_v7, %v10342_v11  ;;  %v5845_v5 = vld [vmem:[%s16031_s1 + $0x18] sm:$0xff] }
 0x1b0   :  { %9342 = vmatmul.mubr.msk.f32.gmra.mxu0 %vm308_vm1, %v547_v20  ;;  %vm516_vm5 = vcmp.ge.f32.partialorder %v494_v25, 0.0  ;;  %v532_v24 = vmul.f32 0.01, %v494_v25  ;;  %v549_v26 = vsel %vm517_vm4, %v499_v19, %v533_v23 }
 0x1b2   :  { %v548_v28 = vsel %vm516_vm5, %v494_v25, %v532_v24  ;;  %v5923_v25 = vrot.slane %v5909_v14, %v10342_v11 }
 0x1b3   :  { %9344 = vmatprep.mubr.msk.f32.mxu0 %vm308_vm1, %v548_v28 }
 0x1b4   :  { %9345 = vmatmul.mubr.msk.f32.gmra.mxu0 %vm308_vm1, %v549_v26 }
 0x258   :  { %v9325_v30 = vpop.f32.mrf.mxu0 }
 0x259   :  { %v10143_v27 = vadd.f32 %v9325_v30, %v10140_v29  ;;  %v5842_v30 = vld [vmem:[%s16031_s1] sm:$0xff] }
 0x25a   :  { %v675_v31 = vpop.f32.mrf.mxu0  ;;  %v5867_v61 = vrot.slane %v5842_v30, %v10342_v11 }
 0x25b   :  { %820 = vrot.lane.b32.xlu1 %v10143_v27, %s9913_s12  ;;  %772 = vrot.lane.b32.xlu0 %v10143_v27, %s9914_s13  ;;  %v10150_v32 = vadd.f32 %v10140_v29, %v675_v31  ;;  %v5924_v31 = vcombine.high %v5916_v22, %v5916_v22 }
 0x25c   :  { %v9328_v33 = vpop.f32.mrf.mxu0 }
 0x25d   :  { %v10173_v34 = vadd.f32 %v9328_v33, %v10140_v29  ;;  %v10396_v56 = vrot.slane %v5924_v31, %v10342_v11 }
 0x25e   :  { %v685_v35 = vpop.f32.mrf.mxu0 }
 0x25f   :  { %868 = vrot.lane.b32.xlu0 %v10143_v27, %s9915_s14  ;;  %866 = vrot.lane.b32.xlu1 %v10150_v32, %s9915_s14  ;;  %v10192_v36 = vadd.f32 %v10140_v29, %v685_v35 }
 0x260   :  { %v9331_v37 = vpop.f32.mrf.mxu0 }
 0x261   :  { %16287 = vst [vmem:[#allocation5_spill] sm:$0xff] %v10192_v36  ;;  %v10211_v38 = vadd.f32 %v9331_v37, %v10140_v29 }
 0x262   :  { %v695_v39 = vpop.f32.mrf.mxu0 }
 0x263   :  { %916 = vrot.lane.b32.xlu0 %v10143_v27, %s9916_s2  ;;  %914 = vrot.lane.b32.xlu1 %v10150_v32, %s9916_s2  ;;  %16288 = vst [vmem:[#allocation6_spill] sm:$0xff] %v10211_v38  ;;  %v10226_v40 = vadd.f32 %v10140_v29, %v695_v39  ;;  %v5925_v39 = vcombine.high %v5923_v25, %v5923_v25 }
 0x264   :  { %v9334_v41 = vpop.f32.mrf.mxu0 }
 0x265   :  { %16289 = vst [vmem:[#allocation7_spill] sm:$0xff] %v10226_v40  ;;  %v10245_v42 = vadd.f32 %v9334_v41, %v10140_v29  ;;  %v10384_v41 = vrot.slane %v5916_v22, %v10342_v11  ;;  %v10407_v62 = vrot.slane %v5925_v39, %v10342_v11  ;;  %v6014_v39 = vrot.slane %v5845_v5, %v10342_v11 }
 0x266   :  { %v705_v43 = vpop.f32.mrf.mxu0 }
 0x267   :  { %964 = vrot.lane.b32.xlu0 %v10143_v27, %s9917_s15  ;;  %962 = vrot.lane.b32.xlu1 %v10150_v32, %s9917_s15  ;;  %16290 = vst [vmem:[#allocation8_spill] sm:$0xff] %v10245_v42  ;;  %v10260_v44 = vadd.f32 %v10140_v29, %v705_v43  ;;  %v10387_v43 = vrot.slane %v5923_v25, %v10342_v11 }
 0x268   :  { %v9337_v45 = vpop.f32.mrf.mxu0  ;;  %v5957_v22 = vcombine.high %v10407_v62, %v10407_v62 }
 0x269   :  { %16291 = vst [vmem:[#allocation9_spill] sm:$0xff] %v10260_v44  ;;  %v10279_v46 = vadd.f32 %v9337_v45, %v10140_v29 }
 0x26a   :  { %v715_v49 = vpop.f32.mrf.mxu0 }
 0x26b   :  { %1012 = vrot.lane.b32.xlu0 %v10143_v27, %s9918_s16  ;;  %1010 = vrot.lane.b32.xlu1 %v10150_v32, %s9918_s16  ;;  %16292 = vst [vmem:[#allocation10_spill] sm:$0xff] %v10279_v46  ;;  %v10298_v50 = vadd.f32 %v10140_v29, %v715_v49  ;;  %v5860_v49 = vcombine.high %v5842_v30, %v5842_v30 }
 0x26c   :  { %v9340_v12 = vpop.f32.mrf.mxu0 }
 0x26d   :  { %16293 = vst [vmem:[#allocation11_spill] sm:$0xff] %v10298_v50  ;;  %v10354_v18 = vadd.f32 %v9340_v12, %v10140_v29 }
 0x26e   :  { %v725_v53 = vpop.f32.mrf.mxu0 }
 0x26f   :  { %1060 = vrot.lane.b32.xlu0 %v10143_v27, %s9919_s17  ;;  %1058 = vrot.lane.b32.xlu1 %v10150_v32, %s9919_s17  ;;  %16296 = vst [vmem:[#allocation14_spill] sm:$0xff] %v10354_v18  ;;  %v10424_v7 = vadd.f32 %v10140_v29, %v725_v53 }
 0x271   :  { %16298 = vst [vmem:[#allocation16_spill] sm:$0xff] %v10424_v7 }
 0x273   :  { %776 = vrot.lane.b32.xlu1 %v10173_v34, %s9914_s13  ;;  %770 = vrot.lane.b32.xlu0 %v10150_v32, %s9914_s13 }
 0x277   :  { %872 = vrot.lane.b32.xlu1 %v10173_v34, %s9915_s14  ;;  %818 = vrot.lane.b32.xlu0 %v10150_v32, %s9913_s12 }
 0x27b   :  { %968 = vrot.lane.b32.xlu1 %v10173_v34, %s9917_s15  ;;  %824 = vrot.lane.b32.xlu0 %v10173_v34, %s9913_s12 }
 0x27f   :  { %1064 = vrot.lane.b32.xlu1 %v10173_v34, %s9919_s17  ;;  %920 = vrot.lane.b32.xlu0 %v10173_v34, %s9916_s2 }
 0x283   :  { %774 = vrot.lane.b32.xlu1 %v10192_v36, %s9914_s13  ;;  %1016 = vrot.lane.b32.xlu0 %v10173_v34, %s9918_s16 }
 0x287   :  { %870 = vrot.lane.b32.xlu1 %v10192_v36, %s9915_s14  ;;  %822 = vrot.lane.b32.xlu0 %v10192_v36, %s9913_s12 }
 0x28b   :  { %966 = vrot.lane.b32.xlu1 %v10192_v36, %s9917_s15  ;;  %918 = vrot.lane.b32.xlu0 %v10192_v36, %s9916_s2 }
 0x28f   :  { %1062 = vrot.lane.b32.xlu1 %v10192_v36, %s9919_s17  ;;  %1014 = vrot.lane.b32.xlu0 %v10192_v36, %s9918_s16 }
 0x293   :  { %780 = vrot.lane.b32.xlu1 %v10211_v38, %s9914_s13  ;;  %828 = vrot.lane.b32.xlu0 %v10211_v38, %s9913_s12 }
 0x297   :  { %876 = vrot.lane.b32.xlu1 %v10211_v38, %s9915_s14  ;;  %924 = vrot.lane.b32.xlu0 %v10211_v38, %s9916_s2 }
 0x29b   :  { %972 = vrot.lane.b32.xlu1 %v10211_v38, %s9917_s15  ;;  %1020 = vrot.lane.b32.xlu0 %v10211_v38, %s9918_s16 }
 0x29f   :  { %1068 = vrot.lane.b32.xlu1 %v10211_v38, %s9919_s17  ;;  %778 = vrot.lane.b32.xlu0 %v10226_v40, %s9914_s13 }
 0x2a3   :  { %874 = vrot.lane.b32.xlu1 %v10226_v40, %s9915_s14  ;;  %826 = vrot.lane.b32.xlu0 %v10226_v40, %s9913_s12 }
 0x2a7   :  { %970 = vrot.lane.b32.xlu1 %v10226_v40, %s9917_s15  ;;  %922 = vrot.lane.b32.xlu0 %v10226_v40, %s9916_s2 }
 0x2ab   :  { %1066 = vrot.lane.b32.xlu1 %v10226_v40, %s9919_s17  ;;  %1018 = vrot.lane.b32.xlu0 %v10226_v40, %s9918_s16 }
 0x2af   :  { %784 = vrot.lane.b32.xlu1 %v10245_v42, %s9914_s13  ;;  %832 = vrot.lane.b32.xlu0 %v10245_v42, %s9913_s12 }
 0x2b3   :  { %880 = vrot.lane.b32.xlu1 %v10245_v42, %s9915_s14  ;;  %928 = vrot.lane.b32.xlu0 %v10245_v42, %s9916_s2 }
 0x2b7   :  { %976 = vrot.lane.b32.xlu1 %v10245_v42, %s9917_s15  ;;  %1024 = vrot.lane.b32.xlu0 %v10245_v42, %s9918_s16 }
 0x2bb   :  { %1072 = vrot.lane.b32.xlu1 %v10245_v42, %s9919_s17  ;;  %782 = vrot.lane.b32.xlu0 %v10260_v44, %s9914_s13 }
 0x2bf   :  { %878 = vrot.lane.b32.xlu1 %v10260_v44, %s9915_s14  ;;  %830 = vrot.lane.b32.xlu0 %v10260_v44, %s9913_s12 }
 0x2c3   :  { %974 = vrot.lane.b32.xlu1 %v10260_v44, %s9917_s15  ;;  %926 = vrot.lane.b32.xlu0 %v10260_v44, %s9916_s2 }
 0x2c7   :  { %1070 = vrot.lane.b32.xlu1 %v10260_v44, %s9919_s17  ;;  %1022 = vrot.lane.b32.xlu0 %v10260_v44, %s9918_s16 }
 0x2cb   :  { %788 = vrot.lane.b32.xlu1 %v10279_v46, %s9914_s13  ;;  %836 = vrot.lane.b32.xlu0 %v10279_v46, %s9913_s12 }
 0x2cd   :  { %v10285_v47 = vpop.permute.xlu0 %772  ;;  %v10315_v60 = vpop.permute.xlu1 %820 }
 0x2ce   :  { %v1242_v2 = vcombine.low %v10143_v27, %v10315_v60 }
 0x2cf   :  { %884 = vrot.lane.b32.xlu1 %v10279_v46, %s9915_s14  ;;  %932 = vrot.lane.b32.xlu0 %v10279_v46, %s9916_s2 }
 0x2d0   :  { %v1250_v10 = vrot.slane %v1242_v2, %v10322_v1  ;;  %v5955_v2 = vcombine.high %v10387_v43, %v10387_v43 }
 0x2d1   :  { %v10291_v48 = vpop.permute.xlu0 %868  ;;  %v10356_v19 = vpop.permute.xlu1 %866 }
 0x2d2   :  { %v1258_v63 = vcombine.low %v10285_v47, %v10291_v48 }
 0x2d3   :  { %980 = vrot.lane.b32.xlu1 %v10279_v46, %s9917_s15  ;;  %1028 = vrot.lane.b32.xlu0 %v10279_v46, %s9918_s16 }
 0x2d4   :  { %v1266_v6 = vrot.slane %v1258_v63, %v10322_v1  ;;  %v5954_v63 = vcombine.high %v10384_v41, %v10384_v41 }
 0x2d5   :  { %v10300_v51 = vpop.permute.xlu0 %916  ;;  %v10379_v37 = vpop.permute.xlu1 %914 }
 0x2d6   :  { %v1306_v17 = vcombine.low %v1250_v10, %v1266_v6  ;;  %v1307_v23 = vcombine.high %v1250_v10, %v1266_v6 }
 0x2d7   :  { %1076 = vrot.lane.b32.xlu1 %v10279_v46, %s9919_s17  ;;  %786 = vrot.lane.b32.xlu0 %v10298_v50, %s9914_s13 }
 0x2d8   :  { %v1314_v26 = vrot.slane %v1306_v17, %v10351_v16  ;;  %v10377_v35 = vrot.slane %v1307_v23, %v10351_v16  ;;  %v5875_v17 = vcombine.high %v5867_v61, %v5867_v61 }
 0x2d9   :  { %v10306_v55 = vpop.permute.xlu0 %964  ;;  %v10421_v6 = vpop.permute.xlu1 %962 }
 0x2da   :  { %v10463_v31 = vrot.slane %v5875_v17, %v10342_v11 }
 0x2db   :  { %882 = vrot.lane.b32.xlu1 %v10298_v50, %s9915_s14  ;;  %834 = vrot.lane.b32.xlu0 %v10298_v50, %s9913_s12 }
 0x2dd   :  { %v10319_v0 = vpop.permute.xlu0 %1012 }
 0x2de   :  { %v1274_v4 = vcombine.low %v10300_v51, %v10319_v0 }
 0x2df   :  { %978 = vrot.lane.b32.xlu1 %v10298_v50, %s9917_s15  ;;  %930 = vrot.lane.b32.xlu0 %v10298_v50, %s9916_s2 }
 0x2e0   :  { %v1282_v13 = vrot.slane %v1274_v4, %v10322_v1  ;;  %v5874_v4 = vrot.slane %v5860_v49, %v10342_v11  ;;  %v10474_v49 = vpop.permute.xlu1 %1010 }
 0x2e1   :  { %v10336_v8 = vpop.permute.xlu0 %1060 }
 0x2e2   :  { %v1290_v9 = vcombine.low %v10306_v55, %v10336_v8  ;;  %v10460_v30 = vrot.slane %v5874_v4, %v10342_v11 }
 0x2e3   :  { %1074 = vrot.lane.b32.xlu1 %v10298_v50, %s9919_s17  ;;  %1026 = vrot.lane.b32.xlu0 %v10298_v50, %s9918_s16 }
 0x2e4   :  { %v1298_v15 = vrot.slane %v1290_v9, %v10322_v1  ;;  %v1291_v9 = vcombine.high %v10306_v55, %v10336_v8  ;;  %v1259_v55 = vcombine.high %v10285_v47, %v10291_v48  ;;  %v1275_v8 = vcombine.high %v10300_v51, %v10319_v0  ;;  %16299 = vst [vmem:[#allocation17_spill] sm:$0xff] %v10460_v30  ;;  %v10517_v23 = vpop.permute.xlu1 %1058 }
 0x2e5   :  { %v10454_v51 = vrot.slane %v5867_v61, %v10342_v11  ;;  %v10457_v0 = vrot.slane %v5954_v63, %v10399_v58  ;;  %v10482_v63 = vrot.slane %v5955_v2, %v10399_v58  ;;  %v10498_v2 = vrot.slane %v5957_v22, %v10399_v58  ;;  %v10525_v50 = vpop.permute.xlu0 %770 }
 0x2e6   :  { %v1338_v20 = vcombine.low %v1282_v13, %v1298_v15  ;;  %v1339_v21 = vcombine.high %v1282_v13, %v1298_v15  ;;  %v5956_v13 = vcombine.high %v10396_v56, %v10396_v56  ;;  %v10451_v47 = vrot.slane %v1291_v9, %v10322_v1 }
 0x2e7   :  { %792 = vrot.lane.b32.xlu1 %v10354_v18, %s9914_s13  ;;  %840 = vrot.lane.b32.xlu0 %v10354_v18, %s9913_s12  ;;  %v5905_v17 = vcombine.high %v10454_v51, %v10454_v51  ;;  %vm7166_vm7 = vcmp.eq.s32.totalorder %v10457_v0, %v10309_v57  ;;  %vm7170_vm11 = vcmp.eq.s32.totalorder %v10482_v63, %v10309_v57 }
 0x2e8   :  { %v1346_v24 = vrot.slane %v1338_v20, %v10351_v16  ;;  %v10367_v28 = vrot.slane %v1339_v21, %v10351_v16  ;;  %v6007_v21 = vcombine.high %v5845_v5, %v5845_v5  ;;  %vm7171_vm12 = vcmp.eq.s32.totalorder %v10498_v2, %v10309_v57 }
 0x2e9   :  { %v10520_v14 = vrot.slane %v5905_v17, %v10399_v58  ;;  %v9343_v17 = vpop.f32.mrf.mxu0  ;;  %v10584_v44 = vpop.permute.xlu0 %818 }
 0x2ea   :  { %v10372_v33 = vcombine.low %v1314_v26, %v1346_v24  ;;  %v10389_v45 = vcombine.high %v1314_v26, %v1346_v24  ;;  %v10393_v52 = vcombine.low %v10377_v35, %v10367_v28  ;;  %v5876_v24 = vcombine.high %v5874_v4, %v5874_v4 }
 0x2eb   :  { %888 = vrot.lane.b32.xlu1 %v10354_v18, %s9915_s14  ;;  %936 = vrot.lane.b32.xlu0 %v10354_v18, %s9916_s2  ;;  %v1243_v26 = vcombine.high %v10143_v27, %v10315_v60  ;;  %v10469_v27 = vrot.slane %v1259_v55, %v10322_v1  ;;  %v10472_v60 = vrot.slane %v1275_v8, %v10322_v1 }
 0x2ec   :  { %v3338_v59 = vsel %vm55_vm0, %v10372_v33, -inf  ;;  %v3345_v3 = vsel %vm55_vm0, %v10389_v45, -inf  ;;  %v3352_v12 = vsel %vm55_vm0, %v10393_v52, -inf  ;;  %v10485_v5 = vrot.slane %v5876_v24, %v10342_v11 }
 0x2ed   :  { %v3339_v10 = vrot.slane %v3338_v59, 4  ;;  %v3346_v20 = vrot.slane %v3345_v3, 4  ;;  %v3353_v25 = vrot.slane %v3352_v12, 4  ;;  %v10488_v9 = vrot.slane %v1243_v26, %v10322_v1 }
 0x2ee   :  { %16300 = vst [vmem:[#allocation18_spill] sm:$0xff] %v10485_v5  ;;  %v10495_v55 = vrot.slane %v5956_v13, %v10399_v58  ;;  %v6022_v8 = vcombine.high %v6014_v39, %v6014_v39  ;;  %v5908_v22 = vcombine.high %v10485_v5, %v10485_v5  ;;  %vm7158_vm15 = vcmp.eq.s32.totalorder %v10520_v14, %v10309_v57 }
 0x2ef   :  { %984 = vrot.lane.b32.xlu1 %v10354_v18, %s9917_s15  ;;  %1032 = vrot.lane.b32.xlu0 %v10354_v18, %s9918_s16  ;;  %v3340_v48 = vmax.f32 %v3338_v59, %v3339_v10  ;;  %v3347_v53 = vmax.f32 %v3345_v3, %v3346_v20  ;;  %v6021_v59 = vrot.slane %v6007_v21, %v10342_v11 }
 0x2f0   :  { %v3354_v4 = vmax.f32 %v3352_v12, %v3353_v25  ;;  %v1354_v3 = vcombine.low %v10472_v60, %v10451_v47  ;;  %v5907_v12 = vcombine.high %v10463_v31, %v10463_v31  ;;  %v1322_v20 = vcombine.low %v10488_v9, %v10469_v27 }
 0x2f1   :  { %v3341_v10 = vrot.slane %v3340_v48, 2  ;;  %v3348_v21 = vrot.slane %v3347_v53, 2  ;;  %v5906_v25 = vcombine.high %v10460_v30, %v10460_v30  ;;  %v6023_v24 = vcombine.high %v6021_v59, %v6021_v59 }
 0x2f2   :  { %v3355_v13 = vrot.slane %v3354_v4, 2  ;;  %v1362_v61 = vrot.slane %v1354_v3, %v10351_v16  ;;  %v10528_v46 = vrot.slane %v5907_v12, %v10399_v58  ;;  %v10533_v54 = vrot.slane %v6021_v59, %v10342_v11 }
 0x2f3   :  { %1080 = vrot.lane.b32.xlu1 %v10354_v18, %s9919_s17  ;;  %790 = vrot.lane.b32.xlu0 %v10424_v7, %s9914_s13  ;;  %v3342_v15 = vmax.f32 %v3340_v48, %v3341_v10  ;;  %v10523_v18 = vrot.slane %v6014_v39, %v10342_v11  ;;  %v10536_v48 = vrot.slane %v6022_v8, %v10342_v11 }
 0x2f4   :  { %16302 = vst [vmem:[#allocation20_spill] sm:$0xff] %v10533_v54  ;;  %v1330_v39 = vrot.slane %v1322_v20, %v10351_v16  ;;  %v10543_v3 = vcombine.high %v10377_v35, %v10367_v28  ;;  %v3349_v10 = vmax.f32 %v3347_v53, %v3348_v21  ;;  %v10546_v12 = vrot.slane %v6023_v24, %v10342_v11 }
 0x2f5   :  { %16301 = vst [vmem:[#allocation19_spill] sm:$0xff] %v10523_v18  ;;  %16303 = vst [vmem:[#allocation21_spill] sm:$0xff] %v10536_v48  ;;  %v3356_v59 = vmax.f32 %v3354_v4, %v3355_v13  ;;  %v1154_v8 = vcombine.low %v10421_v6, %v10517_v23  ;;  %v10555_v20 = vadd.f32 %v9343_v17, %v10140_v29  ;;  %v3343_v35 = vrot.slane %v3342_v15, 1 }
 0x2f6   :  { %16304 = vst [vmem:[#allocation22_spill] sm:$0xff] %v10546_v12  ;;  %v10557_v28 = vcombine.low %v1330_v39, %v1362_v61  ;;  %v10560_v53 = vrot.slane %v5906_v25, %v10399_v58  ;;  %v6052_v21 = vcombine.high %v10523_v18, %v10523_v18  ;;  %v1138_v4 = vcombine.low %v10379_v37, %v10474_v49 }
 0x2f7   :  { %886 = vrot.lane.b32.xlu1 %v10424_v7, %s9915_s14  ;;  %838 = vrot.lane.b32.xlu0 %v10424_v7, %s9913_s12  ;;  %16305 = vst [vmem:[#allocation23_spill] sm:$0xff] %v10555_v20  ;;  %v10566_v24 = vcombine.high %v1330_v39, %v1362_v61  ;;  %v10569_v13 = vrot.slane %v5908_v22, %v10399_v58  ;;  %v3350_v26 = vrot.slane %v3349_v10, 1  ;;  %v3359_v25 = vsel %vm55_vm0, %v10543_v3, -inf }
 0x2f8   :  { %16306 = vst [vmem:[#allocation24_spill] sm:$0xff] %v10560_v53  ;;  %v6054_v17 = vcombine.high %v10536_v48, %v10536_v48  ;;  %v3357_v22 = vrot.slane %v3356_v59, 1  ;;  %v1162_v39 = vrot.slane %v1154_v8, %v10322_v1  ;;  %v10590_v38 = vmax.f32 %v3342_v15, %v3343_v35 }
 0x2f9   :  { %16307 = vst [vmem:[#allocation25_spill] sm:$0xff] %v10569_v13  ;;  %v3366_v36 = vsel %vm55_vm0, %v10557_v28, -inf  ;;  %v1122_v61 = vcombine.low %v10525_v50, %v10356_v19  ;;  %v10597_v13 = vrot.slane %v6052_v21, %v10399_v58  ;;  %v1146_v8 = vrot.slane %v1138_v4, %v10322_v1 }
 0x2fa   :  { %16308 = vst [vmem:[#allocation26_spill] sm:$0xff] %v10590_v38  ;;  %v3360_v53 = vrot.slane %v3359_v25, 4  ;;  %v3373_v42 = vsel %vm55_vm0, %v10566_v24, -inf  ;;  %v10603_v18 = vrot.slane %v6054_v17, %v10399_v58  ;;  %v10607_v15 = vmax.f32 %v3349_v10, %v3350_v26  ;;  %v735_v10 = vpop.f32.mrf.mxu0 }
 0x2fb   :  { %982 = vrot.lane.b32.xlu1 %v10424_v7, %s9917_s15  ;;  %934 = vrot.lane.b32.xlu0 %v10424_v7, %s9916_s2  ;;  %16309 = vst [vmem:[#allocation27_spill] sm:$0xff] %v10597_v13  ;;  %v1106_v35 = vcombine.low %v10150_v32, %v10584_v44  ;;  %v1355_v17 = vcombine.high %v10472_v60, %v10451_v47  ;;  %v3374_v13 = vrot.slane %v3373_v42, 4 }
 0x2fc   :  { %16310 = vst [vmem:[#allocation28_spill] sm:$0xff] %v10603_v18  ;;  %16311 = vst [vmem:[#allocation29_spill] sm:$0xff] %v10607_v15  ;;  %v10619_v40 = vmax.f32 %v3356_v59, %v3357_v22  ;;  %v3367_v18 = vrot.slane %v3366_v36, 4  ;;  %v1202_v26 = vcombine.low %v1146_v8, %v1162_v39  ;;  %v4186_v48 = vsub.f32 %v10372_v33, %v10590_v38 }
 0x2fd   :  { %v1130_v21 = vrot.slane %v1122_v61, %v10322_v1  ;;  %v1323_v4 = vcombine.high %v10488_v9, %v10469_v27  ;;  %v3361_v5 = vmax.f32 %v3359_v25, %v3360_v53  ;;  %v1203_v30 = vcombine.high %v1146_v8, %v1162_v39  ;;  %v5844_v27 = vld [vmem:[%s16031_s1 + $0x10] sm:$0xff] }
 0x2fe   :  { %16312 = vst [vmem:[#allocation30_spill] sm:$0xff] %v10619_v40  ;;  %v4187_v60 = vsub.f32 %v10389_v45, %v10607_v15  ;;  %v10635_v61 = vadd.f32 %v10140_v29, %v735_v10  ;;  %v3368_v9 = vmax.f32 %v3366_v36, %v3367_v18  ;;  %v4188_v53 = vsub.f32 %v10393_v52, %v10619_v40  ;;  %v10768_v36 = vpop.permute.xlu1 %776 }
 0x2ff   :  { %1078 = vrot.lane.b32.xlu1 %v10424_v7, %s9919_s17  ;;  %1030 = vrot.lane.b32.xlu0 %v10424_v7, %s9918_s16  ;;  %v6053_v7 = vcombine.high %v10533_v54, %v10533_v54  ;;  %v1114_v54 = vrot.slane %v1106_v35, %v10322_v1  ;;  %v1210_v25 = vrot.slane %v1202_v26, %v10351_v16  ;;  %v3362_v18 = vrot.slane %v3361_v5, 2 }
 0x300   :  { %16314 = vst [vmem:[#allocation32_spill] sm:$0xff] %v10635_v61  ;;  %v3375_v39 = vmax.f32 %v3373_v42, %v3374_v13  ;;  %v1337_v35 = vrot.slane %v1323_v4, %v10351_v16  ;;  %v5958_v42 = vcombine.high %v5844_v27, %v5844_v27  ;;  %v1155_v13 = vcombine.high %v10421_v6, %v10517_v23 }
 0x301   :  { %v10628_v47 = vrot.slane %v6053_v7, %v10399_v58  ;;  %v1170_v59 = vcombine.low %v1114_v54, %v1130_v21  ;;  %v1171_v22 = vcombine.high %v1114_v54, %v1130_v21  ;;  %v1369_v7 = vrot.slane %v1355_v17, %v10351_v16 }
 0x302   :  { %v4322_v54 = vmul.f32 1.442695, %v4186_v48  ;;  %v16315_v21 = vrot.slane %v10384_v41, %v10399_v58  ;;  %v10660_v17 = vrot.slane %v1203_v30, %v10351_v16  ;;  %v4324_v48 = vmul.f32 1.442695, %v4187_v60 }
 0x303   :  { %796 = vrot.lane.b32.xlu1 %v10555_v20, %s9914_s13  ;;  %844 = vrot.lane.b32.xlu0 %v10555_v20, %s9913_s12  ;;  %16313 = vst [vmem:[#allocation31_spill] sm:$0xff] %v10628_v47  ;;  %v1178_v29 = vrot.slane %v1170_v59, %v10351_v16  ;;  %v10648_v8 = vrot.slane %v1171_v22, %v10351_v16  ;;  %v4326_v30 = vmul.f32 1.442695, %v4188_v53  ;;  %v3369_v6 = vrot.slane %v3368_v9, 2 }
 0x304   :  { %vm10655_vm1 = vcmp.eq.s32.totalorder %v16315_v21, %v10309_v57  ;;  %v1139_v41 = vcombine.high %v10379_v37, %v10474_v49  ;;  %v5965_v60 = vrot.slane %v5844_v27, %v10342_v11  ;;  %v10679_v59 = vcombine.low %v1337_v35, %v1369_v7 }
 0x305   :  { %v10666_v4 = vcombine.low %v1178_v29, %v1210_v25  ;;  %v10668_v26 = vcombine.high %v1178_v29, %v1210_v25  ;;  %v10676_v10 = vcombine.low %v10648_v8, %v10660_v17  ;;  %v3376_v23 = vrot.slane %v3375_v39, 2 }
 0x306   :  { %16318 = vst [vmem:[#allocation33_spill] sm:$0xff] %v10679_v59  ;;  %9378 = vpow2.f32 %v4322_v54  ;;  %v3363_v22 = vmax.f32 %v3361_v5, %v3362_v18  ;;  %v5972_v37 = vrot.slane %v5958_v42, %v10342_v11  ;;  %v16319_v49 = vrot.slane %v10396_v56, %v10399_v58 }
 0x307   :  { %892 = vrot.lane.b32.xlu1 %v10555_v20, %s9915_s14  ;;  %940 = vrot.lane.b32.xlu0 %v10555_v20, %s9916_s2  ;;  %v3282_v25 = vsel %vm55_vm0, %v10666_v4, -inf  ;;  %v3289_v29 = vsel %vm55_vm0, %v10668_v26, -inf  ;;  %9380 = vpow2.f32 %v4324_v48  ;;  %v1169_v5 = vrot.slane %v1155_v13, %v10322_v1 }
 0x308   :  { %vm10692_vm6 = vcmp.eq.s32.totalorder %v16319_v49, %v10309_v57  ;;  %v3283_v53 = vrot.slane %v3282_v25, 4  ;;  %v3290_v54 = vrot.slane %v3289_v29, 4  ;;  %v1153_v21 = vrot.slane %v1139_v41, %v10322_v1 }
 0x309   :  { %vm7167_vm8 = vcmp.eq.s32.totalorder %v10495_v55, %v10309_v57  ;;  %v16322_v56 = vrot.slane %v10387_v43, %v10399_v58  ;;  %v10712_v42 = vcombine.high %v1337_v35, %v1369_v7  ;;  %9382 = vpow2.f32 %v4326_v30 }
 0x30a   :  { %v3296_v48 = vsel %vm55_vm0, %v10676_v10, -inf  ;;  %v16326_v13 = vrot.slane %v10407_v62, %v10399_v58  ;;  %v3370_v43 = vmax.f32 %v3368_v9, %v3369_v6  ;;  %v3377_v49 = vmax.f32 %v3375_v39, %v3376_v23 }
 0x30b   :  { %988 = vrot.lane.b32.xlu1 %v10555_v20, %s9917_s15  ;;  %1036 = vrot.lane.b32.xlu0 %v10555_v20, %s9918_s16  ;;  %vm10708_vm9 = vcmp.eq.s32.totalorder %v16322_v56, %v10309_v57  ;;  %16325 = vst [vmem:[#allocation34_spill] sm:$0xff] %v10712_v42  ;;  %v3380_v7 = vsel %vm55_vm0, %v10679_v59, -inf  ;;  %v3284_v35 = vmax.f32 %v3282_v25, %v3283_v53  ;;  %v3364_v30 = vrot.slane %v3363_v22, 1 }
 0x30c   :  { %vm10720_vm10 = vcmp.eq.s32.totalorder %v16326_v13, %v10309_v57  ;;  %v3297_v56 = vrot.slane %v3296_v48, 4  ;;  %v5973_v13 = vcombine.high %v5965_v60, %v5965_v60  ;;  %v1218_v47 = vcombine.low %v1153_v21, %v1169_v5 }
 0x30d   :  { %v1219_v40 = vcombine.high %v1153_v21, %v1169_v5  ;;  %v3291_v9 = vmax.f32 %v3289_v29, %v3290_v54  ;;  %v5974_v39 = vcombine.high %v5972_v37, %v5972_v37  ;;  %v3381_v6 = vrot.slane %v3380_v7, 4 }
 0x30e   :  { %v10740_v23 = vsel %vm55_vm0, %v10712_v42, -inf  ;;  %v3298_v25 = vmax.f32 %v3296_v48, %v3297_v56  ;;  %v3371_v53 = vrot.slane %v3370_v43, 1  ;;  %v7292_v29 = vsel %vm10655_vm1, %v10372_v33, 0.0 }
 0x30f   :  { %1084 = vrot.lane.b32.xlu1 %v10555_v20, %s9919_s17  ;;  %794 = vrot.lane.b32.xlu0 %v10635_v61, %s9914_s13  ;;  %v16329_v20 = vcombine.high %v10546_v12, %v10546_v12  ;;  %16331 = vst [vmem:[#allocation36_spill] sm:$0xff] %v10740_v23  ;;  %v3285_v5 = vrot.slane %v3284_v35, 2  ;;  %v10750_v54 = vmax.f32 %v3363_v22, %v3364_v30  ;;  %v3292_v22 = vrot.slane %v3291_v9, 2 }
 0x310   :  { %v1107_v21 = vcombine.high %v10150_v32, %v10584_v44  ;;  %v10755_v48 = vrot.slane %v5972_v37, %v10342_v11  ;;  %v10763_v56 = vrot.slane %v1218_v47, %v10351_v16  ;;  %v10766_v33 = vrot.slane %v1219_v40, %v10351_v16 }
 0x311   :  { %v10732_v62 = vrot.slane %v16329_v20, %v10399_v58  ;;  %v10743_v20 = vrot.slane %v5965_v60, %v10342_v11  ;;  %16333 = vst [vmem:[#allocation38_spill] sm:$0xff] %v10750_v54  ;;  %v10758_v60 = vrot.slane %v5973_v13, %v10342_v11  ;;  %v10771_v32 = vrot.slane %v5974_v39, %v10342_v11 }
 0x312   :  { %16334 = vst [vmem:[#allocation39_spill] sm:$0xff] %v10755_v48  ;;  %v7468_v37 = vsel %vm55_vm0, %v7292_v29, 0.0  ;;  %v1123_v47 = vcombine.high %v10525_v50, %v10356_v19  ;;  %v3299_v30 = vrot.slane %v3298_v25, 2  ;;  %v10779_v13 = vmax.f32 %v3370_v43, %v3371_v53 }
 0x313   :  { %890 = vrot.lane.b32.xlu1 %v10635_v61, %s9915_s14  ;;  %842 = vrot.lane.b32.xlu0 %v10635_v61, %s9913_s12  ;;  %16330 = vst [vmem:[#allocation35_spill] sm:$0xff] %v10732_v62  ;;  %16332 = vst [vmem:[#allocation37_spill] sm:$0xff] %v10743_v20  ;;  %v3378_v62 = vrot.slane %v3377_v49, 1  ;;  %v10783_v48 = vmax.f32 %v3380_v7, %v3381_v6  ;;  %v9379_v39 = vpop.eup %9378  ;;  %v4189_v11 = vsub.f32 %v10543_v3, %v10750_v54 }
 0x314   :  { %16335 = vst [vmem:[#allocation40_spill] sm:$0xff] %v10758_v60  ;;  %16336 = vst [vmem:[#allocation41_spill] sm:$0xff] %v10771_v32  ;;  %v3286_v60 = vmax.f32 %v3284_v35, %v3285_v5  ;;  %v7293_v44 = vsel %vm10692_vm6, %v10389_v45, 0.0  ;;  %v7294_v50 = vsel %vm7166_vm7, %v10393_v52, 0.0  ;;  %v10795_v19 = vrot.slane %v1107_v21, %v10322_v1  ;;  %v9381_v45 = vpop.eup %9380  ;;  %v10827_v5 = vpop.permute.xlu0 %824 }
 0x315   :  { %16337 = vst [vmem:[#allocation42_spill] sm:$0xff] %v10779_v13  ;;  %v10781_v40 = vmax.f32 %v3377_v49, %v3378_v62  ;;  %16339 = vst [vmem:[#allocation44_spill] sm:$0xff] %v10783_v48  ;;  %v7295_v43 = vsel %vm7167_vm8, %v10543_v3, 0.0  ;;  %v7296_v49 = vsel %vm10708_vm9, %v10557_v28, 0.0  ;;  %v7469_v7 = vrot.slane %v7468_v37, 4 }
 0x316   :  { %v3293_v27 = vmax.f32 %v3291_v9, %v3292_v22  ;;  %v7297_v0 = vsel %vm10720_vm10, %v10566_v24, 0.0  ;;  %v10811_v52 = vsel %vm7170_vm11, %v10679_v59, 0.0  ;;  %v10814_v55 = vrot.slane %v1123_v47, %v10322_v1  ;;  %v9383_v35 = vpop.eup %9382  ;;  %v10821_v9 = vpop.permute.xlu1 %872 }
 0x317   :  { %986 = vrot.lane.b32.xlu1 %v10635_v61, %s9917_s15  ;;  %938 = vrot.lane.b32.xlu0 %v10635_v61, %s9916_s2  ;;  %16338 = vst [vmem:[#allocation43_spill] sm:$0xff] %v10781_v40  ;;  %v3300_v3 = vmax.f32 %v3298_v25, %v3299_v30  ;;  %v4190_v18 = vsub.f32 %v10557_v28, %v10779_v13  ;;  %v4618_v41 = vsel %vm55_vm0, %v9379_v39, 0.0  ;;  %v3287_v6 = vrot.slane %v3286_v60, 1 }
 0x318   :  { %v4191_v62 = vsub.f32 %v10566_v24, %v10781_v40  ;;  %v4328_v53 = vmul.f32 1.442695, %v4189_v11  ;;  %v7475_v63 = vsel %vm55_vm0, %v7293_v44, 0.0  ;;  %v7482_v29 = vsel %vm55_vm0, %v7294_v50, 0.0 }
 0x319   :  { %v1186_v25 = vcombine.low %v10795_v19, %v10814_v55  ;;  %v4625_v28 = vsel %vm55_vm0, %v9381_v45, 0.0  ;;  %v7470_v21 = vadd.f32 %v7469_v7, %v7468_v37  ;;  %v7489_v24 = vsel %vm55_vm0, %v7295_v43, 0.0 }
 0x31a   :  { %v3294_v22 = vrot.slane %v3293_v27, 1  ;;  %v4619_v47 = vrot.slane %v4618_v41, 4  ;;  %v4632_v30 = vsel %vm55_vm0, %v9383_v35, 0.0  ;;  %v10836_v11 = vsel %vm7171_vm12, %v10712_v42, 0.0  ;;  %v10843_v59 = vpop.permute.xlu1 %968 }
 0x31b   :  { %1082 = vrot.lane.b32.xlu1 %v10635_v61, %s9919_s17  ;;  %1034 = vrot.lane.b32.xlu0 %v10635_v61, %s9918_s16  ;;  %16340 = vst [vmem:[#allocation45_spill] sm:$0xff] %v10836_v11  ;;  %v3301_v44 = vrot.slane %v3300_v3, 1  ;;  %v4330_v39 = vmul.f32 1.442695, %v4190_v18  ;;  %v4332_v50 = vmul.f32 1.442695, %v4191_v62  ;;  %v10838_v40 = vmax.f32 %v3286_v60, %v3287_v6  ;;  %v10849_v60 = vpop.permute.xlu0 %920 }
 0x31c   :  { %v7476_v61 = vrot.slane %v7475_v63, 4  ;;  %v4626_v45 = vrot.slane %v4625_v28, 4  ;;  %v7483_v37 = vrot.slane %v7482_v29, 4  ;;  %v7490_v7 = vrot.slane %v7489_v24, 4 }
 0x31d   :  { %16341 = vst [vmem:[#allocation46_spill] sm:$0xff] %v10838_v40  ;;  %v1194_v43 = vrot.slane %v1186_v25, %v10351_v16  ;;  %9384 = vpow2.f32 %v4328_v53  ;;  %v4633_v13 = vrot.slane %v4632_v30, 4  ;;  %v7471_v35 = vrot.slane %v7470_v21, 2 }
 0x31e   :  { %v10841_v54 = vmax.f32 %v3293_v27, %v3294_v22  ;;  %v4620_v2 = vadd.f32 %v4619_v47, %v4618_v41  ;;  %v7496_v11 = vsel %vm55_vm0, %v7296_v49, 0.0  ;;  %v7503_v18 = vsel %vm55_vm0, %v7297_v0, 0.0 }
 0x31f   :  { %v10847_v62 = vmax.f32 %v3300_v3, %v3301_v44  ;;  %9386 = vpow2.f32 %v4330_v39  ;;  %v10851_v6 = vadd.f32 %v7476_v61, %v7475_v63  ;;  %v10855_v53 = vcombine.high %v10648_v8, %v10660_v17 }
 0x320   :  { %16342 = vst [vmem:[#allocation47_spill] sm:$0xff] %v10841_v54  ;;  %v4178_v27 = vsub.f32 %v10666_v4, %v10838_v40  ;;  %v4627_v25 = vadd.f32 %v4626_v45, %v4625_v28  ;;  %v10859_v41 = vadd.f32 %v7483_v37, %v7482_v29  ;;  %v10861_v49 = vadd.f32 %v7490_v7, %v7489_v24  ;;  %v10883_v45 = vpop.permute.xlu0 %1016 }
 0x321   :  { %16343 = vst [vmem:[#allocation48_spill] sm:$0xff] %v10847_v62  ;;  %v10864_v0 = vcombine.low %v1194_v43, %v10763_v56  ;;  %9388 = vpow2.f32 %v4332_v50  ;;  %v4634_v3 = vadd.f32 %v4633_v13, %v4632_v30  ;;  %v10866_v22 = vadd.f32 %v7471_v35, %v7470_v21  ;;  %v10877_v21 = vpop.permute.xlu1 %1064 }
 0x322   :  { %v4179_v61 = vsub.f32 %v10668_v26, %v10841_v54  ;;  %v4621_v8 = vrot.slane %v4620_v2, 2  ;;  %v7497_v17 = vrot.slane %v7496_v11, 4  ;;  %v7504_v63 = vrot.slane %v7503_v18, 4 }
 0x323   :  { %v4180_v28 = vsub.f32 %v10676_v10, %v10847_v62  ;;  %v7478_v29 = vrot.slane %v10851_v6, 2  ;;  %v3303_v24 = vsel %vm55_vm0, %v10855_v53, -inf  ;;  %v4306_v47 = vmul.f32 1.442695, %v4178_v27 }
 0x324   :  { %v1514_v13 = vcombine.low %v10173_v34, %v10827_v5  ;;  %v4628_v30 = vrot.slane %v4627_v25, 2  ;;  %v7485_v44 = vrot.slane %v10859_v41, 2  ;;  %v7492_v39 = vrot.slane %v10861_v49, 2 }
 0x325   :  { %v3310_v50 = vsel %vm55_vm0, %v10864_v0, -inf  ;;  %v4635_v37 = vrot.slane %v4634_v3, 2  ;;  %v1530_v7 = vcombine.low %v10768_v36, %v10821_v9  ;;  %v10888_v35 = vcombine.high %v1194_v43, %v10763_v56  ;;  %v11088_v14 = vpop.permute.xlu1 %774 }
 0x326   :  { %v4308_v27 = vmul.f32 1.442695, %v4179_v61  ;;  %v4622_v42 = vadd.f32 %v4621_v8, %v4620_v2  ;;  %v3304_v23 = vrot.slane %v3303_v24, 4  ;;  %v4310_v48 = vmul.f32 1.442695, %v4180_v28 }
 0x327   :  { %16344 = vst [vmem:[#allocation49_spill] sm:$0xff] %v10888_v35  ;;  %v1562_v32 = vcombine.low %v10843_v59, %v10877_v21  ;;  %v3311_v20 = vrot.slane %v3310_v50, 4  ;;  %9390 = vpow2.f32 %v4306_v47  ;;  %v1522_v62 = vrot.slane %v1514_v13, %v10322_v1 }
 0x328   :  { %v1546_v54 = vcombine.low %v10849_v60, %v10883_v45  ;;  %v4629_v40 = vadd.f32 %v4628_v30, %v4627_v25  ;;  %v7473_v12 = vrot.slane %v10866_v22, 1  ;;  %v10896_v15 = vadd.f32 %v7497_v17, %v7496_v11 }
 0x329   :  { %v10900_v56 = vsel %vm55_vm0, %v10811_v52, 0.0  ;;  %v4636_v43 = vadd.f32 %v4635_v37, %v4634_v3  ;;  %v1538_v2 = vrot.slane %v1530_v7, %v10322_v1  ;;  %v3317_v61 = vsel %vm55_vm0, %v10888_v35, -inf }
 0x32a   :  { %16345 = vst [vmem:[#allocation50_spill] sm:$0xff] %v10896_v15  ;;  %16346 = vst [vmem:[#allocation51_spill] sm:$0xff] %v10900_v56  ;;  %9392 = vpow2.f32 %v4308_v27  ;;  %v10905_v8 = vpop.eup %9384  ;;  %v4623_v28 = vrot.slane %v4622_v42, 1  ;;  %v1187_v25 = vcombine.high %v10795_v19, %v10814_v55  ;;  %v3305_v47 = vmax.f32 %v3303_v24, %v3304_v23 }
 0x32b   :  { %16347 = vst [vmem:[#allocation52_spill] sm:$0xff] %v10905_v8  ;;  %9394 = vpow2.f32 %v4310_v48  ;;  %v3312_v11 = vmax.f32 %v3310_v50, %v3311_v20  ;;  %v1578_v17 = vcombine.low %v1522_v62, %v1538_v2  ;;  %v1570_v52 = vrot.slane %v1562_v32, %v10322_v1 }
 0x32c   :  { %v1554_v3 = vrot.slane %v1546_v54, %v10322_v1  ;;  %v10911_v13 = vpop.eup %9386  ;;  %v4630_v30 = vrot.slane %v4629_v40, 1  ;;  %v10913_v37 = vadd.f32 %v7504_v63, %v7503_v18  ;;  %v3318_v7 = vrot.slane %v3317_v61, 4 }
 0x32d   :  { %16348 = vst [vmem:[#allocation53_spill] sm:$0xff] %v10911_v13  ;;  %v1579_v27 = vcombine.high %v1522_v62, %v1538_v2  ;;  %v4637_v8 = vrot.slane %v4636_v43, 1  ;;  %v4624_v20 = vadd.f32 %v4623_v28, %v4622_v42  ;;  %v7479_v48 = vadd.f32 %v7478_v29, %v10851_v6 }
 0x32e   :  { %16349 = vst [vmem:[#allocation54_spill] sm:$0xff] %v10913_v37  ;;  %v1610_v35 = vcombine.low %v1554_v3, %v1570_v52  ;;  %v1611_v19 = vcombine.high %v1554_v3, %v1570_v52  ;;  %v10916_v23 = vpop.eup %9388  ;;  %v1201_v32 = vrot.slane %v1187_v25, %v10351_v16  ;;  %v3306_v54 = vrot.slane %v3305_v47, 2  ;;  %v16362_v3 = vld [vmem:[#allocation17_spill] sm:$0xff] }
 0x32f   :  { %16350 = vst [vmem:[#allocation55_spill] sm:$0xff] %v10916_v23  ;;  %v3313_v55 = vrot.slane %v3312_v11, 2  ;;  %v1586_v24 = vrot.slane %v1578_v17, %v10351_v16  ;;  %v4631_v63 = vadd.f32 %v4630_v30, %v4629_v40  ;;  %v10926_v50 = vadd.f32 %v7485_v44, %v10859_v41 }
 0x330   :  { %v1618_v18 = vrot.slane %v1610_v35, %v10351_v16  ;;  %v10923_v62 = vrot.slane %v1611_v19, %v10351_v16  ;;  %v3319_v2 = vmax.f32 %v3317_v61, %v3318_v7  ;;  %v10929_v42 = vrot.slane %v1579_v27, %v10351_v16  ;;  %v16366_v27 = vld [vmem:[#allocation18_spill] sm:$0xff] }
 0x331   :  { %16351 = vst [vmem:[#allocation56_spill] sm:$0xff] %v10926_v50  ;;  %v4638_v6 = vadd.f32 %v4637_v8, %v4636_v43  ;;  %v10932_v29 = vadd.f32 %v7492_v39, %v10861_v49  ;;  %9396 = vlog2.f32 %v4624_v20  ;;  %v16353_v40 = vrot.slane %v10454_v51, %v10399_v58 }
 0x332   :  { %v10934_v28 = vcombine.low %v1586_v24, %v1618_v18  ;;  %v10936_v25 = vcombine.high %v1586_v24, %v1618_v18  ;;  %v10947_v44 = vcombine.low %v1201_v32, %v10766_v33  ;;  %v3307_v35 = vmax.f32 %v3305_v47, %v3306_v54 }
 0x333   :  { %16352 = vst [vmem:[#allocation57_spill] sm:$0xff] %v10932_v29  ;;  %vm10942_vm13 = vcmp.eq.s32.totalorder %v16353_v40, %v10309_v57  ;;  %v10951_v49 = vcombine.low %v10929_v42, %v10923_v62  ;;  %v10954_v39 = vadd.f32 %v7473_v12, %v10866_v22  ;;  %v7480_v43 = vrot.slane %v7479_v48, 1 }
 0x334   :  { %16356 = vst [vmem:[#allocation58_spill] sm:$0xff] %v10947_v44  ;;  %v1531_v61 = vcombine.high %v10768_v36, %v10821_v9  ;;  %v16358_v51 = vrot.slane %v10463_v31, %v10399_v58  ;;  %v3314_v47 = vmax.f32 %v3312_v11, %v3313_v55  ;;  %v9391_v17 = vpop.eup %9390  ;;  %9398 = vlog2.f32 %v4631_v63 }
 0x335   :  { %16357 = vst [vmem:[#allocation59_spill] sm:$0xff] %v10954_v39  ;;  %v3320_v12 = vrot.slane %v3319_v2, 2  ;;  %v3450_v22 = vsel %vm55_vm0, %v10934_v28, -inf  ;;  %v3457_v36 = vsel %vm55_vm0, %v10936_v25, -inf  ;;  %9400 = vlog2.f32 %v4638_v6 }
 0x336   :  { %vm10962_vm14 = vcmp.eq.s32.totalorder %v16358_v51, %v10309_v57  ;;  %vm7159_vm2 = vcmp.eq.s32.totalorder %v10528_v46, %v10309_v57  ;;  %v10977_v11 = vcombine.high %v1201_v32, %v10766_v33  ;;  %v16363_v30 = vrot.slane %v16362_v3, %v10399_v58 }
 0x337   :  { %v9393_v52 = vpop.eup %9392  ;;  %v16367_v19 = vrot.slane %v16366_v27, %v10399_v58  ;;  %v3308_v54 = vrot.slane %v3307_v35, 1  ;;  %v3324_v33 = vsel %vm55_vm0, %v10947_v44, -inf  ;;  %v3451_v32 = vrot.slane %v3450_v22, 4 }
 0x338   :  { %16361 = vst [vmem:[#allocation60_spill] sm:$0xff] %v10977_v11  ;;  %vm10983_vm3 = vcmp.eq.s32.totalorder %v16363_v30, %v10309_v57  ;;  %v3464_v55 = vsel %vm55_vm0, %v10951_v49, -inf  ;;  %v9395_v24 = vpop.eup %9394  ;;  %v3315_v18 = vrot.slane %v3314_v47, 1  ;;  %v4562_v63 = vsel %vm55_vm0, %v9391_v17, 0.0  ;;  %v16371_v30 = vld [vmem:[#allocation24_spill] sm:$0xff] }
 0x339   :  { %vm10991_vm4 = vcmp.eq.s32.totalorder %v16367_v19, %v10309_v57  ;;  %v1515_v6 = vcombine.high %v10173_v34, %v10827_v5  ;;  %v3458_v40 = vrot.slane %v3457_v36, 4  ;;  %v11002_v51 = vadd.f32 %v7480_v43, %v7479_v48  ;;  %v16372_v5 = vld [vmem:[#allocation25_spill] sm:$0xff] }
 0x33a   :  { %v11005_v3 = vrot.slane %v1531_v61, %v10322_v1  ;;  %vm7162_vm5 = vcmp.eq.s32.totalorder %v16371_v30, %v10309_v57  ;;  %v3321_v27 = vmax.f32 %v3319_v2, %v3320_v12  ;;  %v3465_v19 = vrot.slane %v3464_v55, 4 }
 0x33b   :  { %16370 = vst [vmem:[#allocation17_spill] sm:$0xff] %v11002_v51  ;;  %v3325_v38 = vrot.slane %v3324_v33, 4  ;;  %v11011_v9 = vsel %vm55_vm0, %v10977_v11, -inf  ;;  %v4569_v17 = vsel %vm55_vm0, %v9393_v52, 0.0  ;;  %v1547_v34 = vcombine.high %v10849_v60, %v10883_v45 }
 0x33c   :  { %vm7163_vm1 = vcmp.eq.s32.totalorder %v16372_v5, %v10309_v57  ;;  %v11018_v48 = vmax.f32 %v3307_v35, %v3308_v54  ;;  %v4563_v43 = vrot.slane %v4562_v63, 4  ;;  %v4576_v61 = vsel %vm55_vm0, %v9395_v24, 0.0 }
 0x33d   :  { %v3452_v2 = vmax.f32 %v3450_v22, %v3451_v32  ;;  %v11021_v12 = vmax.f32 %v3314_v47, %v3315_v18  ;;  %v11024_v31 = vrot.slane %v1515_v6, %v10322_v1  ;;  %v1563_v52 = vcombine.high %v10843_v59, %v10877_v21 }
 0x33e   :  { %16373 = vst [vmem:[#allocation18_spill] sm:$0xff] %v11018_v48  ;;  %v3459_v51 = vmax.f32 %v3457_v36, %v3458_v40  ;;  %v3322_v39 = vrot.slane %v3321_v27, 1  ;;  %v4570_v45 = vrot.slane %v4569_v17, 4  ;;  %v3466_v56 = vmax.f32 %v3464_v55, %v3465_v19  ;;  %v9397_v55 = vpop.eup %9396 }
 0x33f   :  { %16374 = vst [vmem:[#allocation24_spill] sm:$0xff] %v11021_v12  ;;  %v11029_v35 = vmax.f32 %v3324_v33, %v3325_v38  ;;  %v4577_v54 = vrot.slane %v4576_v61, 4  ;;  %v7284_v47 = vsel %vm10942_vm13, %v10666_v4, 0.0  ;;  %v11035_v22 = vrot.slane %v1547_v34, %v10322_v1 }
 0x340   :  { %v4181_v32 = vsub.f32 %v10855_v53, %v11018_v48  ;;  %v4564_v59 = vadd.f32 %v4563_v43, %v4562_v63  ;;  %v7285_v21 = vsel %vm10962_vm14, %v10668_v26, 0.0  ;;  %v3453_v36 = vrot.slane %v3452_v2, 2 }
 0x341   :  { %v4182_v38 = vsub.f32 %v10864_v0, %v11021_v12  ;;  %v7286_v4 = vsel %vm7158_vm15, %v10676_v10, 0.0  ;;  %v11049_v41 = vrot.slane %v1563_v52, %v10322_v1  ;;  %v3460_v33 = vrot.slane %v3459_v51, 2  ;;  %v9399_v63 = vpop.eup %9398  ;;  %v16376_v10 = vld [vmem:[#allocation49_spill] sm:$0xff] }
 0x342   :  { %v11051_v24 = vmax.f32 %v3321_v27, %v3322_v39  ;;  %v4571_v18 = vadd.f32 %v4570_v45, %v4569_v17  ;;  %v7287_v26 = vsel %vm7159_vm2, %v10855_v53, 0.0  ;;  %v3467_v8 = vrot.slane %v3466_v56, 2  ;;  %v9401_v27 = vpop.eup %9400 }
 0x343   :  { %v4578_v6 = vadd.f32 %v4577_v54, %v4576_v61  ;;  %v1626_v39 = vcombine.low %v11035_v22, %v11049_v41  ;;  %v5475_v19 = vmul.f32 0.6931472, %v9397_v55  ;;  %v4312_v17 = vmul.f32 1.442695, %v4181_v32 }
 0x344   :  { %16375 = vst [vmem:[#allocation25_spill] sm:$0xff] %v11051_v24  ;;  %v4565_v34 = vrot.slane %v4564_v59, 2  ;;  %v3454_v46 = vmax.f32 %v3452_v2, %v3453_v36  ;;  %v4314_v53 = vmul.f32 1.442695, %v4182_v38  ;;  %v11069_v43 = vsel %vm7162_vm5, %v10947_v44, 0.0 }
 0x345   :  { %v1594_v61 = vcombine.low %v11024_v31, %v11005_v3  ;;  %v3461_v52 = vmax.f32 %v3459_v51, %v3460_v33  ;;  %v4183_v45 = vsub.f32 %v16376_v10, %v11051_v24  ;;  %v4572_v54 = vrot.slane %v4571_v18, 2  ;;  %v16378_v51 = vld [vmem:[#allocation26_spill] sm:$0xff] }
 0x346   :  { %v7412_v55 = vsel %vm55_vm0, %v7284_v47, 0.0  ;;  %v3468_v32 = vmax.f32 %v3466_v56, %v3467_v8  ;;  %v5477_v60 = vmul.f32 0.6931472, %v9399_v63  ;;  %v4579_v2 = vrot.slane %v4578_v6, 2 }
 0x347   :  { %v11080_v30 = vsel %vm7163_vm1, %v10977_v11, 0.0  ;;  %v1634_v36 = vrot.slane %v1626_v39, %v10351_v16  ;;  %v11083_v38 = vmul.f32 0.6931472, %v9401_v27  ;;  %v11086_v33 = vadd.f32 %v5475_v19, %v16378_v51 }
 0x348   :  { %16377 = vst [vmem:[#allocation49_spill] sm:$0xff] %v11080_v30  ;;  %v4566_v40 = vadd.f32 %v4565_v34, %v4564_v59  ;;  %v3455_v47 = vrot.slane %v3454_v46, 1  ;;  %v7413_v56 = vrot.slane %v7412_v55, 4  ;;  %v1602_v8 = vrot.slane %v1594_v61, %v10351_v16  ;;  %v16380_v34 = vld [vmem:[#allocation29_spill] sm:$0xff] }
 0x349   :  { %16379 = vst [vmem:[#allocation26_spill] sm:$0xff] %v11086_v33  ;;  %v11093_v63 = vcombine.high %v10929_v42, %v10923_v62  ;;  %v3462_v5 = vrot.slane %v3461_v52, 1  ;;  %v4316_v15 = vmul.f32 1.442695, %v4183_v45  ;;  %v4573_v50 = vadd.f32 %v4572_v54, %v4571_v18  ;;  %v11112_v54 = vpop.permute.xlu1 %870 }
 0x34a   :  { %v7419_v39 = vsel %vm55_vm0, %v7285_v21, 0.0  ;;  %v3469_v27 = vrot.slane %v3468_v32, 1  ;;  %9402 = vpow2.f32 %v4312_v17  ;;  %v4580_v19 = vadd.f32 %v4579_v2, %v4578_v6 }
 0x34b   :  { %v11096_v51 = vcombine.low %v1602_v8, %v1634_v36  ;;  %v11098_v59 = vcombine.high %v1602_v8, %v1634_v36  ;;  %v11101_v33 = vadd.f32 %v5477_v60, %v16380_v34  ;;  %9404 = vpow2.f32 %v4314_v53 }
 0x34c   :  { %v4567_v61 = vrot.slane %v4566_v40, 1  ;;  %v11103_v37 = vmax.f32 %v3454_v46, %v3455_v47  ;;  %v7414_v62 = vadd.f32 %v7413_v56, %v7412_v55  ;;  %v7420_v42 = vrot.slane %v7419_v39, 4 }
 0x34d   :  { %16381 = vst [vmem:[#allocation29_spill] sm:$0xff] %v11101_v33  ;;  %v11105_v45 = vmax.f32 %v3461_v52, %v3462_v5  ;;  %v3471_v21 = vsel %vm55_vm0, %v11093_v63, -inf  ;;  %9406 = vpow2.f32 %v4316_v15  ;;  %v4574_v18 = vrot.slane %v4573_v50, 1 }
 0x34e   :  { %v7426_v6 = vsel %vm55_vm0, %v7286_v4, 0.0  ;;  %v11110_v17 = vmax.f32 %v3468_v32, %v3469_v27  ;;  %v4581_v60 = vrot.slane %v4580_v19, 1  ;;  %v7433_v53 = vsel %vm55_vm0, %v7287_v26, 0.0  ;;  %v11129_v27 = vpop.permute.xlu0 %822 }
 0x34f   :  { %v3478_v46 = vsel %vm55_vm0, %v11096_v51, -inf  ;;  %v3485_v52 = vsel %vm55_vm0, %v11098_v59, -inf  ;;  %v4568_v55 = vadd.f32 %v4567_v61, %v4566_v40  ;;  %v1627_v15 = vcombine.high %v11035_v22, %v11049_v41 }
 0x350   :  { %v3472_v2 = vrot.slane %v3471_v21, 4  ;;  %v4202_v4 = vsub.f32 %v10934_v28, %v11103_v37  ;;  %v7421_v32 = vadd.f32 %v7420_v42, %v7419_v39  ;;  %v7427_v36 = vrot.slane %v7426_v6, 4  ;;  %v11137_v42 = vpop.permute.xlu1 %966 }
 0x351   :  { %v1595_v47 = vcombine.high %v11024_v31, %v11005_v3  ;;  %v4203_v26 = vsub.f32 %v10936_v25, %v11105_v45  ;;  %v4575_v56 = vadd.f32 %v4574_v18, %v4573_v50  ;;  %v3479_v8 = vrot.slane %v3478_v46, 4 }
 0x352   :  { %v3486_v5 = vrot.slane %v3485_v52, 4  ;;  %v4204_v40 = vsub.f32 %v10951_v49, %v11110_v17  ;;  %v4582_v22 = vadd.f32 %v4581_v60, %v4580_v19  ;;  %v7415_v41 = vrot.slane %v7414_v62, 2 }
 0x353   :  { %v7434_v34 = vrot.slane %v7433_v53, 4  ;;  %v16382_v39 = vsel %vm10983_vm3, %v10864_v0, 0.0  ;;  %9408 = vlog2.f32 %v4568_v55  ;;  %v1641_v3 = vrot.slane %v1627_v15, %v10351_v16 }
 0x354   :  { %v7440_v31 = vsel %vm55_vm0, %v16382_v39, 0.0  ;;  %v3473_v50 = vmax.f32 %v3471_v21, %v3472_v2  ;;  %v4354_v61 = vmul.f32 1.442695, %v4202_v4  ;;  %v7422_v18 = vrot.slane %v7421_v32, 2 }
 0x355   :  { %v7428_v33 = vadd.f32 %v7427_v36, %v7426_v6  ;;  %v1609_v29 = vrot.slane %v1595_v47, %v10351_v16  ;;  %v4356_v19 = vmul.f32 1.442695, %v4203_v26  ;;  %9410 = vlog2.f32 %v4575_v56  ;;  %v11149_v36 = vpop.permute.xlu0 %918  ;;  %v16390_v47 = vld [vmem:[#allocation19_spill] sm:$0xff] }
 0x356   :  { %v3480_v60 = vmax.f32 %v3478_v46, %v3479_v8  ;;  %v3487_v23 = vmax.f32 %v3485_v52, %v3486_v5  ;;  %v4358_v7 = vmul.f32 1.442695, %v4204_v40  ;;  %9412 = vlog2.f32 %v4582_v22  ;;  %v16387_v52 = vld [vmem:[#allocation30_spill] sm:$0xff]  ;;  %v16394_v8 = vld [vmem:[#allocation21_spill] sm:$0xff] }
 0x357   :  { %v7416_v0 = vadd.f32 %v7415_v41, %v7414_v62  ;;  %v7441_v13 = vrot.slane %v7440_v31, 4  ;;  %v16383_v55 = vsel %vm10991_vm4, %v16376_v10, 0.0  ;;  %v11145_v15 = vpop.eup %9402  ;;  %v7435_v2 = vadd.f32 %v7434_v34, %v7433_v53  ;;  %v11179_v41 = vpop.permute.xlu1 %1062  ;;  %v16418_v5 = vld [vmem:[#allocation22_spill] sm:$0xff] }
 0x358   :  { %v7447_v21 = vsel %vm55_vm0, %v16383_v55, 0.0  ;;  %16384 = vst [vmem:[#allocation61_spill] sm:$0xff] %v11145_v15  ;;  %v11147_v6 = vcombine.low %v1609_v29, %v1641_v3  ;;  %v3474_v4 = vrot.slane %v3473_v50, 2  ;;  %9414 = vpow2.f32 %v4354_v61  ;;  %v11151_v46 = vpop.eup %9404  ;;  %v16401_v61 = vld [vmem:[#allocation28_spill] sm:$0xff] }
 0x359   :  { %16386 = vst [vmem:[#allocation63_spill] sm:$0xff] %v11151_v46  ;;  %v11155_v62 = vadd.f32 %v11083_v38, %v16387_v52  ;;  %v7429_v20 = vrot.slane %v7428_v33, 2  ;;  %v11159_v10 = vsel %vm55_vm0, %v11069_v43, 0.0  ;;  %v16391_v53 = vrot.slane %v16390_v47, %v10399_v58  ;;  %v16398_v43 = vld [vmem:[#allocation27_spill] sm:$0xff]  ;;  %v16406_v52 = vld [vmem:[#allocation5_spill] sm:$0xff] }
 0x35a   :  { %16385 = vst [vmem:[#allocation62_spill] sm:$0xff] %v11147_v6  ;;  %16389 = vst [vmem:[#allocation64_spill] sm:$0xff] %v11159_v10  ;;  %9416 = vpow2.f32 %v4356_v19  ;;  %v7423_v56 = vadd.f32 %v7422_v18, %v7421_v32  ;;  %v16395_v38 = vrot.slane %v16394_v8, %v10399_v58  ;;  %vm7182_vm8 = vcmp.eq.s32.totalorder %v16398_v43, %v10309_v57  ;;  %v11181_v34 = vpop.eup %9406  ;;  %v16402_v18 = vld [vmem:[#allocation20_spill] sm:$0xff] }
 0x35b   :  { %16388 = vst [vmem:[#allocation30_spill] sm:$0xff] %v11155_v62  ;;  %vm11165_vm6 = vcmp.eq.s32.totalorder %v16391_v53, %v10309_v57  ;;  %v3481_v40 = vrot.slane %v3480_v60, 2  ;;  %v3488_v22 = vrot.slane %v3487_v23, 2  ;;  %9418 = vpow2.f32 %v4358_v7  ;;  %16399 = vst [vmem:[#allocation19_spill] sm:$0xff] %v11181_v34  ;;  %v11210_v34 = vpop.permute.xlu0 %1014 }
 0x35c   :  { %vm11173_vm7 = vcmp.eq.s32.totalorder %v16395_v38, %v10309_v57  ;;  %v11183_v39 = vadd.f32 %v7441_v13, %v7440_v31  ;;  %v7448_v32 = vrot.slane %v7447_v21, 4  ;;  %vm7183_vm9 = vcmp.eq.s32.totalorder %v16401_v61, %v10309_v57 }
 0x35d   :  { %v16403_v19 = vrot.slane %v16402_v18, %v10399_v58  ;;  %v1394_v7 = vcombine.low %v11088_v14, %v11112_v54  ;;  %v1378_v47 = vcombine.low %v16406_v52, %v11129_v27  ;;  %v7417_v13 = vrot.slane %v7416_v0, 1 }
 0x35e   :  { %16400 = vst [vmem:[#allocation21_spill] sm:$0xff] %v11183_v39  ;;  %v7436_v31 = vrot.slane %v7435_v2, 2  ;;  %v3475_v53 = vmax.f32 %v3473_v50, %v3474_v4  ;;  %v3492_v8 = vsel %vm55_vm0, %v11147_v6, -inf  ;;  %v11201_v38 = vadd.f32 %v7429_v20, %v7428_v33 }
 0x35f   :  { %vm11191_vm10 = vcmp.eq.s32.totalorder %v16403_v19, %v10309_v57  ;;  %v11204_v19 = vcombine.high %v1609_v29, %v1641_v3  ;;  %v1426_v62 = vcombine.low %v11137_v42, %v11179_v41  ;;  %v7424_v24 = vrot.slane %v7423_v56, 1 }
 0x360   :  { %16407 = vst [vmem:[#allocation27_spill] sm:$0xff] %v11201_v38  ;;  %v3482_v12 = vmax.f32 %v3480_v60, %v3481_v40  ;;  %v3489_v48 = vmax.f32 %v3487_v23, %v3488_v22  ;;  %v1395_v30 = vcombine.high %v11088_v14, %v11112_v54  ;;  %v3493_v4 = vrot.slane %v3492_v8, 4  ;;  %v9409_v23 = vpop.eup %9408 }
 0x361   :  { %16408 = vst [vmem:[#allocation28_spill] sm:$0xff] %v11204_v19  ;;  %v1402_v33 = vrot.slane %v1394_v7, %v10322_v1  ;;  %v1386_v20 = vrot.slane %v1378_v47, %v10322_v1  ;;  %v11215_v29 = vadd.f32 %v7417_v13, %v7416_v0  ;;  %v11217_v3 = vadd.f32 %v7436_v31, %v7435_v2 }
 0x362   :  { %v11219_v18 = vadd.f32 %v7448_v32, %v7447_v21  ;;  %v3476_v60 = vrot.slane %v3475_v53, 1  ;;  %v11224_v14 = vsel %vm55_vm0, %v11204_v19, -inf  ;;  %v1434_v54 = vrot.slane %v1426_v62, %v10322_v1  ;;  %v9411_v32 = vpop.eup %9410 }
 0x363   :  { %16409 = vst [vmem:[#allocation20_spill] sm:$0xff] %v11215_v29  ;;  %16410 = vst [vmem:[#allocation5_spill] sm:$0xff] %v11217_v3  ;;  %v1410_v22 = vcombine.low %v11149_v36, %v11210_v34  ;;  %v11229_v7 = vadd.f32 %v7424_v24, %v7423_v56  ;;  %v3483_v0 = vrot.slane %v3482_v12, 1  ;;  %v3490_v2 = vrot.slane %v3489_v48, 1  ;;  %v9413_v50 = vpop.eup %9412 }
 0x364   :  { %16411 = vst [vmem:[#allocation65_spill] sm:$0xff] %v11219_v18  ;;  %16412 = vst [vmem:[#allocation66_spill] sm:$0xff] %v11224_v14  ;;  %v11232_v21 = vrot.slane %v1395_v30, %v10322_v1  ;;  %v11234_v47 = vmax.f32 %v3492_v8, %v3493_v4  ;;  %v1442_v13 = vcombine.low %v1386_v20, %v1402_v33  ;;  %v5459_v38 = vmul.f32 0.6931472, %v9409_v23 }
 0x365   :  { %16413 = vst [vmem:[#allocation67_spill] sm:$0xff] %v11229_v7  ;;  %v1443_v31 = vcombine.high %v1386_v20, %v1402_v33  ;;  %v1418_v40 = vrot.slane %v1410_v22, %v10322_v1  ;;  %v11237_v62 = vmax.f32 %v3475_v53, %v3476_v60  ;;  %v7308_v24 = vsel %vm11165_vm6, %v10934_v28, 0.0  ;;  %v9415_v56 = vpop.eup %9414 }
 0x366   :  { %16414 = vst [vmem:[#allocation68_spill] sm:$0xff] %v11234_v47  ;;  %v7309_v30 = vsel %vm11173_vm7, %v10936_v25, 0.0  ;;  %v7310_v8 = vsel %vm7182_vm8, %v10951_v49, 0.0  ;;  %v11250_v20 = vmax.f32 %v3482_v12, %v3483_v0  ;;  %v11252_v60 = vmax.f32 %v3489_v48, %v3490_v2  ;;  %v16424_v0 = vld [vmem:[#allocation31_spill] sm:$0xff] }
 0x367   :  { %16415 = vst [vmem:[#allocation69_spill] sm:$0xff] %v11237_v62  ;;  %v1474_v4 = vcombine.low %v1418_v40, %v1434_v54  ;;  %v1475_v33 = vcombine.high %v1418_v40, %v1434_v54  ;;  %v9417_v53 = vpop.eup %9416  ;;  %v7311_v28 = vsel %vm7183_vm9, %v11093_v63, 0.0  ;;  %v16419_v49 = vrot.slane %v16418_v5, %v10399_v58  ;;  %v16422_v54 = vld [vmem:[#allocation46_spill] sm:$0xff] }
 0x368   :  { %16416 = vst [vmem:[#allocation70_spill] sm:$0xff] %v11250_v20  ;;  %16417 = vst [vmem:[#allocation71_spill] sm:$0xff] %v11252_v60  ;;  %v9419_v26 = vpop.eup %9418  ;;  %v1450_v48 = vrot.slane %v1442_v13, %v10351_v16  ;;  %v11271_v12 = vrot.slane %v1443_v31, %v10351_v16  ;;  %v5461_v40 = vmul.f32 0.6931472, %v9411_v32  ;;  %v11278_v22 = vadd.f32 %v5459_v38, %v16422_v54 }
 0x369   :  { %vm11265_vm11 = vcmp.eq.s32.totalorder %v16419_v49, %v10309_v57  ;;  %v1482_v61 = vrot.slane %v1474_v4, %v10351_v16  ;;  %v11275_v23 = vrot.slane %v1475_v33, %v10351_v16  ;;  %vm7186_vm12 = vcmp.eq.s32.totalorder %v16424_v0, %v10309_v57  ;;  %v16425_v33 = vld [vmem:[#allocation35_spill] sm:$0xff] }
 0x36a   :  { %16423 = vst [vmem:[#allocation22_spill] sm:$0xff] %v11278_v22  ;;  %v4205_v2 = vsub.f32 %v11093_v63, %v11237_v62  ;;  %v4730_v13 = vsel %vm55_vm0, %v9415_v56, 0.0  ;;  %v4737_v31 = vsel %vm55_vm0, %v9417_v53, 0.0  ;;  %v5463_v38 = vmul.f32 0.6931472, %v9413_v50 }
 0x36b   :  { %v11286_v5 = vcombine.low %v1450_v48, %v1482_v61  ;;  %v11288_v4 = vcombine.high %v1450_v48, %v1482_v61  ;;  %v11292_v32 = vcombine.low %v11271_v12, %v11275_v23  ;;  %vm7187_vm13 = vcmp.eq.s32.totalorder %v16425_v33, %v10309_v57 }
 0x36c   :  { %v4206_v49 = vsub.f32 %v11096_v51, %v11250_v20  ;;  %v4207_v63 = vsub.f32 %v11098_v59, %v11252_v60  ;;  %v4744_v56 = vsel %vm55_vm0, %v9419_v26, 0.0  ;;  %v4731_v53 = vrot.slane %v4730_v13, 4  ;;  %v16426_v20 = vld [vmem:[#allocation47_spill] sm:$0xff] }
 0x36d   :  { %v3394_v48 = vsel %vm55_vm0, %v11286_v5, -inf  ;;  %v3401_v61 = vsel %vm55_vm0, %v11288_v4, -inf  ;;  %v3408_v50 = vsel %vm55_vm0, %v11292_v32, -inf  ;;  %v4738_v54 = vrot.slane %v4737_v31, 4 }
 0x36e   :  { %v1427_v29 = vcombine.high %v11137_v42, %v11179_v41  ;;  %v1411_v25 = vcombine.high %v11149_v36, %v11210_v34  ;;  %v3395_v60 = vrot.slane %v3394_v48, 4  ;;  %v11312_v26 = vadd.f32 %v5461_v40, %v16426_v20 }
 0x36f   :  { %v4360_v62 = vmul.f32 1.442695, %v4205_v2  ;;  %v4745_v14 = vrot.slane %v4744_v56, 4  ;;  %v3402_v47 = vrot.slane %v3401_v61, 4  ;;  %v4362_v7 = vmul.f32 1.442695, %v4206_v49 }
 0x370   :  { %16427 = vst [vmem:[#allocation46_spill] sm:$0xff] %v11312_v26  ;;  %v7580_v22 = vsel %vm55_vm0, %v7308_v24, 0.0  ;;  %v1379_v3 = vcombine.high %v16406_v52, %v11129_v27  ;;  %v3409_v10 = vrot.slane %v3408_v50, 4  ;;  %v4364_v39 = vmul.f32 1.442695, %v4207_v63  ;;  %v16428_v2 = vld [vmem:[#allocation48_spill] sm:$0xff] }
 0x371   :  { %v4732_v18 = vadd.f32 %v4731_v53, %v4730_v13  ;;  %v7587_v42 = vsel %vm55_vm0, %v7309_v30, 0.0  ;;  %v7594_v36 = vsel %vm55_vm0, %v7310_v8, 0.0  ;;  %v4739_v41 = vadd.f32 %v4738_v54, %v4737_v31 }
 0x372   :  { %v11320_v34 = vrot.slane %v1427_v29, %v10322_v1  ;;  %v11323_v20 = vrot.slane %v1411_v25, %v10322_v1  ;;  %v3396_v40 = vmax.f32 %v3394_v48, %v3395_v60  ;;  %v11326_v24 = vadd.f32 %v5463_v38, %v16428_v2 }
 0x373   :  { %v4746_v49 = vadd.f32 %v4745_v14, %v4744_v56  ;;  %v7581_v27 = vrot.slane %v7580_v22, 4  ;;  %v3403_v52 = vmax.f32 %v3401_v61, %v3402_v47  ;;  %v7313_v30 = vsel %vm11265_vm11, %v11098_v59, 0.0 }
 0x374   :  { %16429 = vst [vmem:[#allocation31_spill] sm:$0xff] %v11326_v24  ;;  %v7588_v13 = vrot.slane %v7587_v42, 4  ;;  %v11332_v8 = vrot.slane %v1379_v3, %v10322_v1  ;;  %v3410_v29 = vmax.f32 %v3408_v50, %v3409_v10  ;;  %9420 = vpow2.f32 %v4360_v62 }
 0x375   :  { %v4733_v31 = vrot.slane %v4732_v18, 2  ;;  %v7314_v60 = vsel %vm7186_vm12, %v11147_v6, 0.0  ;;  %v7595_v25 = vrot.slane %v7594_v36, 4  ;;  %v4740_v14 = vrot.slane %v4739_v41, 2 }
 0x376   :  { %v7601_v47 = vsel %vm55_vm0, %v7311_v28, 0.0  ;;  %v1490_v43 = vcombine.low %v11323_v20, %v11320_v34  ;;  %v3397_v59 = vrot.slane %v3396_v40, 2  ;;  %v4747_v38 = vrot.slane %v4746_v49, 2 }
 0x377   :  { %v11345_v10 = vsel %vm7187_vm13, %v11204_v19, 0.0  ;;  %v7582_v3 = vadd.f32 %v7581_v27, %v7580_v22  ;;  %v3404_v62 = vrot.slane %v3403_v52, 2  ;;  %v7589_v63 = vadd.f32 %v7588_v13, %v7587_v42 }
 0x378   :  { %16430 = vst [vmem:[#allocation35_spill] sm:$0xff] %v11345_v10  ;;  %v16431_v0 = vsel %vm11191_vm10, %v11096_v51, 0.0  ;;  %v1458_v56 = vcombine.low %v11332_v8, %v11232_v21  ;;  %v3411_v53 = vrot.slane %v3410_v29, 2  ;;  %9422 = vpow2.f32 %v4362_v7 }
 0x379   :  { %v7608_v28 = vsel %vm55_vm0, %v16431_v0, 0.0  ;;  %v4734_v48 = vadd.f32 %v4733_v31, %v4732_v18  ;;  %v7596_v61 = vadd.f32 %v7595_v25, %v7594_v36  ;;  %v7602_v50 = vrot.slane %v7601_v47, 4 }
 0x37a   :  { %9424 = vpow2.f32 %v4364_v39  ;;  %v4741_v33 = vadd.f32 %v4740_v14, %v4739_v41  ;;  %v1498_v22 = vrot.slane %v1490_v43, %v10351_v16  ;;  %v3398_v54 = vmax.f32 %v3396_v40, %v3397_v59 }
 0x37b   :  { %v4748_v42 = vadd.f32 %v4747_v38, %v4746_v49  ;;  %v7583_v2 = vrot.slane %v7582_v3, 2  ;;  %v7609_v55 = vrot.slane %v7608_v28, 4  ;;  %v3405_v27 = vmax.f32 %v3403_v52, %v3404_v62 }
 0x37c   :  { %v7590_v51 = vrot.slane %v7589_v63, 2  ;;  %v1466_v13 = vrot.slane %v1458_v56, %v10351_v16  ;;  %v11358_v0 = vcombine.high %v11271_v12, %v11275_v23  ;;  %v3412_v7 = vmax.f32 %v3410_v29, %v3411_v53  ;;  %v11368_v12 = vpop.permute.xlu1 %780 }
 0x37d   :  { %v4735_v18 = vrot.slane %v4734_v48, 1  ;;  %v7597_v36 = vrot.slane %v7596_v61, 2  ;;  %v7603_v31 = vadd.f32 %v7602_v50, %v7601_v47  ;;  %v7615_v39 = vsel %vm55_vm0, %v7313_v30, 0.0 }
 0x37e   :  { %v4742_v41 = vrot.slane %v4741_v33, 1  ;;  %v11362_v40 = vsel %vm55_vm0, %v7314_v60, 0.0  ;;  %v11364_v49 = vcombine.low %v1466_v13, %v1498_v22  ;;  %v3399_v52 = vrot.slane %v3398_v54, 1 }
 0x37f   :  { %16432 = vst [vmem:[#allocation47_spill] sm:$0xff] %v11362_v40  ;;  %v4749_v25 = vrot.slane %v4748_v42, 1  ;;  %v7584_v14 = vadd.f32 %v7583_v2, %v7582_v3  ;;  %v11366_v43 = vadd.f32 %v7609_v55, %v7608_v28  ;;  %v3406_v59 = vrot.slane %v3405_v27, 1 }
 0x380   :  { %v7591_v23 = vadd.f32 %v7590_v51, %v7589_v63  ;;  %v7616_v29 = vrot.slane %v7615_v39, 4  ;;  %v3413_v38 = vrot.slane %v3412_v7, 1  ;;  %v3415_v30 = vsel %vm55_vm0, %v11358_v0, -inf }
 0x381   :  { %16433 = vst [vmem:[#allocation48_spill] sm:$0xff] %v11366_v43  ;;  %v4736_v47 = vadd.f32 %v4735_v18, %v4734_v48  ;;  %v11372_v62 = vadd.f32 %v7597_v36, %v7596_v61  ;;  %v7604_v60 = vrot.slane %v7603_v31, 2  ;;  %v11375_v53 = vpop.eup %9420  ;;  %v4743_v3 = vadd.f32 %v4742_v41, %v4741_v33 }
 0x382   :  { %16435 = vst [vmem:[#allocation73_spill] sm:$0xff] %v11375_v53  ;;  %v11377_v28 = vcombine.high %v1466_v13, %v1498_v22  ;;  %v11379_v50 = vmax.f32 %v3398_v54, %v3399_v52  ;;  %v3422_v63 = vsel %vm55_vm0, %v11364_v49, -inf  ;;  %v4750_v2 = vadd.f32 %v4749_v25, %v4748_v42  ;;  %v11393_v13 = vpop.permute.xlu0 %828  ;;  %v11395_v42 = vpop.permute.xlu1 %876 }
 0x383   :  { %16434 = vst [vmem:[#allocation72_spill] sm:$0xff] %v11372_v62  ;;  %v7585_v55 = vrot.slane %v7584_v14, 1  ;;  %v11383_v51 = vmax.f32 %v3405_v27, %v3406_v59  ;;  %v3416_v48 = vrot.slane %v3415_v30, 4  ;;  %v7592_v61 = vrot.slane %v7591_v23, 1 }
 0x384   :  { %v11386_v36 = vadd.f32 %v7616_v29, %v7615_v39  ;;  %v11388_v56 = vmax.f32 %v3412_v7, %v3413_v38  ;;  %9426 = vlog2.f32 %v4736_v47  ;;  %v11391_v22 = vadd.f32 %v7604_v60, %v7603_v31  ;;  %v16442_v38 = vld [vmem:[#allocation37_spill] sm:$0xff]  ;;  %v9346_v60 = vpop.f32.mrf.mxu0 }
 0x385   :  { %v3423_v54 = vrot.slane %v3422_v63, 4  ;;  %v11397_v27 = vpop.eup %9422  ;;  %9428 = vlog2.f32 %v4743_v3  ;;  %v1459_v41 = vcombine.high %v11332_v8, %v11232_v21  ;;  %v3429_v7 = vsel %vm55_vm0, %v11377_v28, -inf  ;;  %v16443_v3 = vld [vmem:[#allocation40_spill] sm:$0xff] }
 0x386   :  { %16436 = vst [vmem:[#allocation74_spill] sm:$0xff] %v11386_v36  ;;  %16437 = vst [vmem:[#allocation75_spill] sm:$0xff] %v11391_v22  ;;  %v4194_v39 = vsub.f32 %v11286_v5, %v11379_v50  ;;  %9430 = vlog2.f32 %v4750_v2  ;;  %v11407_v31 = vadd.f32 %v7585_v55, %v7584_v14  ;;  %v3417_v25 = vmax.f32 %v3415_v30, %v3416_v48  ;;  %v11435_v62 = vpop.permute.xlu0 %924  ;;  %v16447_v36 = vld [vmem:[#allocation6_spill] sm:$0xff] }
 0x387   :  { %16438 = vst [vmem:[#allocation76_spill] sm:$0xff] %v11397_v27  ;;  %v11405_v52 = vpop.eup %9424  ;;  %v4195_v59 = vsub.f32 %v11288_v4, %v11383_v51  ;;  %v11411_v29 = vadd.f32 %v7592_v61, %v7591_v23  ;;  %v6003_v21 = vcombine.high %v16442_v38, %v16442_v38  ;;  %v1491_v8 = vcombine.high %v11323_v20, %v11320_v34  ;;  %v9890_v23 = vld [vmem:[%s16037_s7] ss:$0 sm:$0xff]  ;;  %v16445_v61 = vld [vmem:[#allocation39_spill] sm:$0xff]  ;;  %v16446_v20 = vld [vmem:[#allocation41_spill] sm:$0xff] }
 0x388   :  { %16439 = vst [vmem:[#allocation77_spill] sm:$0xff] %v11405_v52  ;;  %16440 = vst [vmem:[#allocation78_spill] sm:$0xff] %v11407_v31  ;;  %v4196_v47 = vsub.f32 %v11292_v32, %v11388_v56  ;;  %v6005_v14 = vcombine.high %v16443_v3, %v16443_v3  ;;  %v3424_v2 = vmax.f32 %v3422_v63, %v3423_v54  ;;  %v3430_v30 = vrot.slane %v3429_v7, 4 }
 0x389   :  { %16441 = vst [vmem:[#allocation79_spill] sm:$0xff] %v11411_v29  ;;  %v11424_v55 = vadd.f32 %v9890_v23, %v9346_v60  ;;  %v1473_v48 = vrot.slane %v1459_v41, %v10351_v16  ;;  %v6004_v34 = vcombine.high %v16445_v61, %v16445_v61  ;;  %v6006_v33 = vcombine.high %v16446_v20, %v16446_v20  ;;  %v11437_v60 = vpop.permute.xlu1 %972 }
 0x38a   :  { %v4338_v18 = vmul.f32 1.442695, %v4194_v39  ;;  %v6711_v29 = vrot.slane %v16442_v38, %v10399_v58  ;;  %v3418_v63 = vrot.slane %v3417_v25, 2  ;;  %v4340_v54 = vmul.f32 1.442695, %v4195_v59 }
 0x38b   :  { %16444 = vst [vmem:[#allocation37_spill] sm:$0xff] %v11424_v55  ;;  %v1802_v31 = vcombine.low %v11368_v12, %v11395_v42  ;;  %800 = vrot.lane.b32.xlu1 %v11424_v55, %s9914_s13  ;;  %v6715_v41 = vrot.slane %v16443_v3, %v10399_v58  ;;  %v11444_v39 = vrot.slane %v6003_v21, %v10399_v58  ;;  %v4342_v40 = vmul.f32 1.442695, %v4196_v47 }
 0x38c   :  { %v1505_v38 = vrot.slane %v1491_v8, %v10351_v16  ;;  %848 = vrot.lane.b32.xlu0 %v11424_v55, %s9913_s12  ;;  %v11450_v59 = vrot.slane %v6005_v14, %v10399_v58  ;;  %v3425_v10 = vrot.slane %v3424_v2, 2  ;;  %v3431_v22 = vmax.f32 %v3429_v7, %v3430_v30  ;;  %v745_v30 = vpop.f32.mrf.mxu0 }
 0x38d   :  { %v1786_v43 = vcombine.low %v16447_v36, %v11393_v13  ;;  %v6727_v3 = vrot.slane %v16445_v61, %v10399_v58  ;;  %v6731_v21 = vrot.slane %v16446_v20, %v10399_v58  ;;  %v11459_v8 = vrot.slane %v6004_v34, %v10399_v58 }
 0x38e   :  { %9432 = vpow2.f32 %v4338_v18  ;;  %v3419_v47 = vmax.f32 %v3417_v25, %v3418_v63  ;;  %v1803_v14 = vcombine.high %v11368_v12, %v11395_v42  ;;  %v1810_v7 = vrot.slane %v1802_v31, %v10322_v1  ;;  %v11484_v25 = vpop.permute.xlu0 %1020 }
 0x38f   :  { %9434 = vpow2.f32 %v4340_v54  ;;  %896 = vrot.lane.b32.xlu1 %v11424_v55, %s9915_s14  ;;  %v11467_v61 = vrot.slane %v6006_v33, %v10399_v58  ;;  %vm11470_vm14 = vcmp.eq.s32.totalorder %v6711_v29, %v10309_v57  ;;  %v11474_v18 = vcombine.low %v1473_v48, %v1505_v38  ;;  %v11486_v29 = vpop.permute.xlu1 %1068 }
 0x390   :  { %9436 = vpow2.f32 %v4342_v40  ;;  %944 = vrot.lane.b32.xlu0 %v11424_v55, %s9916_s2  ;;  %vm11479_vm15 = vcmp.eq.s32.totalorder %v6715_v41, %v10309_v57  ;;  %v3426_v42 = vmax.f32 %v3424_v2, %v3425_v10  ;;  %v3432_v31 = vrot.slane %v3431_v22, 2 }
 0x391   :  { %16450 = vst [vmem:[#allocation40_spill] sm:$0xff] %v11474_v18  ;;  %v1794_v33 = vrot.slane %v1786_v43, %v10322_v1  ;;  %v9427_v34 = vpop.eup %9426  ;;  %vm7174_vm2 = vcmp.eq.s32.totalorder %v11444_v39, %v10309_v57  ;;  %v11490_v40 = vcombine.high %v1473_v48, %v1505_v38  ;;  %v1787_v63 = vcombine.high %v16447_v36, %v11393_v13 }
 0x392   :  { %v11494_v54 = vadd.f32 %v9890_v23, %v745_v30  ;;  %v9429_v41 = vpop.eup %9428  ;;  %vm7175_vm3 = vcmp.eq.s32.totalorder %v11450_v59, %v10309_v57  ;;  %v3420_v10 = vrot.slane %v3419_v47, 1  ;;  %v11499_v43 = vrot.slane %v1803_v14, %v10322_v1 }
 0x393   :  { %16453 = vst [vmem:[#allocation39_spill] sm:$0xff] %v11490_v40  ;;  %v1850_v2 = vcombine.low %v1794_v33, %v1810_v7  ;;  %992 = vrot.lane.b32.xlu1 %v11424_v55, %s9917_s15  ;;  %v9431_v19 = vpop.eup %9430  ;;  %v3436_v48 = vsel %vm55_vm0, %v11474_v18, -inf  ;;  %v1851_v38 = vcombine.high %v1794_v33, %v1810_v7  ;;  %v1818_v36 = vcombine.low %v11435_v62, %v11484_v25 }
 0x394   :  { %16454 = vst [vmem:[#allocation41_spill] sm:$0xff] %v11494_v54  ;;  %v1834_v13 = vcombine.low %v11437_v60, %v11486_v29  ;;  %798 = vrot.lane.b32.xlu0 %v11494_v54, %s9914_s13  ;;  %vm11512_vm4 = vcmp.eq.s32.totalorder %v6727_v3, %v10309_v57  ;;  %vm11517_vm5 = vcmp.eq.s32.totalorder %v6731_v21, %v10309_v57  ;;  %v3427_v7 = vrot.slane %v3426_v42, 1 }
 0x395   :  { %v3433_v30 = vmax.f32 %v3431_v22, %v3432_v31  ;;  %v5507_v33 = vmul.f32 0.6931472, %v9427_v34  ;;  %v5509_v6 = vmul.f32 0.6931472, %v9429_v41  ;;  %v11523_v52 = vsel %vm55_vm0, %v11490_v40, -inf }
 0x396   :  { %16459 = vst [vmem:[#allocation6_spill] sm:$0xff] %v11523_v52  ;;  %v11526_v27 = vrot.slane %v1787_v63, %v10322_v1  ;;  %v5511_v3 = vmul.f32 0.6931472, %v9431_v19  ;;  %v11528_v53 = vmax.f32 %v3419_v47, %v3420_v10  ;;  %v3437_v24 = vrot.slane %v3436_v48, 4 }
 0x397   :  { %v1858_v21 = vrot.slane %v1850_v2, %v10351_v16  ;;  %894 = vrot.lane.b32.xlu1 %v11494_v54, %s9915_s14  ;;  %vm7178_vm1 = vcmp.eq.s32.totalorder %v11459_v8, %v10309_v57  ;;  %vm7179_vm6 = vcmp.eq.s32.totalorder %v11467_v61, %v10309_v57  ;;  %v1865_v22 = vrot.slane %v1851_v38, %v10351_v16 }
 0x398   :  { %16460 = vst [vmem:[#allocation80_spill] sm:$0xff] %v11528_v53  ;;  %v1826_v19 = vrot.slane %v1818_v36, %v10322_v1  ;;  %v1842_v47 = vrot.slane %v1834_v13, %v10322_v1  ;;  %846 = vrot.lane.b32.xlu0 %v11494_v54, %s9913_s12  ;;  %v11544_v34 = vmax.f32 %v3426_v42, %v3427_v7  ;;  %v3434_v63 = vrot.slane %v3433_v30, 1 }
 0x399   :  { %v11550_v2 = vadd.f32 %v5507_v33, %v11103_v37  ;;  %v11553_v38 = vadd.f32 %v5509_v6, %v11105_v45  ;;  %v11556_v26 = vadd.f32 %v5511_v3, %v11110_v17  ;;  %v11558_v42 = vmax.f32 %v3436_v48, %v3437_v24 }
 0x39a   :  { %16461 = vst [vmem:[#allocation81_spill] sm:$0xff] %v11544_v34  ;;  %v1882_v36 = vcombine.low %v1826_v19, %v1842_v47  ;;  %v1883_v31 = vcombine.high %v1826_v19, %v1842_v47  ;;  %v4197_v7 = vsub.f32 %v11358_v0, %v11528_v53  ;;  %v7300_v41 = vsel %vm11470_vm14, %v11286_v5, 0.0 }
 0x39b   :  { %16462 = vst [vmem:[#allocation82_spill] sm:$0xff] %v11550_v2  ;;  %16463 = vst [vmem:[#allocation83_spill] sm:$0xff] %v11553_v38  ;;  %v9433_v13 = vpop.eup %9432  ;;  %990 = vrot.lane.b32.xlu1 %v11494_v54, %s9917_s15  ;;  %v7301_v45 = vsel %vm11479_vm15, %v11288_v4, 0.0  ;;  %v7302_v17 = vsel %vm7174_vm2, %v11292_v32, 0.0  ;;  %v7303_v6 = vsel %vm7175_vm3, %v11358_v0, 0.0  ;;  %v11581_v20 = vmax.f32 %v3433_v30, %v3434_v63 }
 0x39c   :  { %16464 = vst [vmem:[#allocation84_spill] sm:$0xff] %v11556_v26  ;;  %16465 = vst [vmem:[#allocation85_spill] sm:$0xff] %v11558_v42  ;;  %v9435_v37 = vpop.eup %9434  ;;  %v1890_v5 = vrot.slane %v1882_v36, %v10351_v16  ;;  %942 = vrot.lane.b32.xlu0 %v11494_v54, %s9916_s2  ;;  %v4198_v4 = vsub.f32 %v11364_v49, %v11544_v34  ;;  %v7304_v32 = vsel %vm11512_vm4, %v11364_v49, 0.0  ;;  %v4674_v59 = vsel %vm55_vm0, %v9433_v13, 0.0 }
 0x39d   :  { %v9437_v24 = vpop.eup %9436  ;;  %16466 = vst [vmem:[#allocation86_spill] sm:$0xff] %v11581_v20  ;;  %v1897_v39 = vrot.slane %v1883_v31, %v10351_v16  ;;  %v1835_v0 = vcombine.high %v11437_v60, %v11486_v29  ;;  %v4344_v30 = vmul.f32 1.442695, %v4197_v7  ;;  %v4681_v33 = vsel %vm55_vm0, %v9435_v37, 0.0 }
 0x39e   :  { %v11592_v12 = vcombine.low %v1858_v21, %v1890_v5  ;;  %v11594_v48 = vcombine.high %v1858_v21, %v1890_v5  ;;  %v7305_v3 = vsel %vm11517_vm5, %v11377_v28, 0.0  ;;  %v7524_v49 = vsel %vm55_vm0, %v7300_v41, 0.0 }
 0x39f   :  { %1086 = vrot.lane.b32.xlu1 %v11494_v54, %s9919_s17  ;;  %v4688_v23 = vsel %vm55_vm0, %v9437_v24, 0.0  ;;  %v1819_v60 = vcombine.high %v11435_v62, %v11484_v25  ;;  %v4675_v14 = vrot.slane %v4674_v59, 4  ;;  %v11612_v31 = vcombine.low %v1865_v22, %v1897_v39 }
 0x3a0   :  { %v3562_v29 = vsel %vm55_vm0, %v11592_v12, -inf  ;;  %v3569_v21 = vsel %vm55_vm0, %v11594_v48, -inf  ;;  %1038 = vrot.lane.b32.xlu0 %v11494_v54, %s9918_s16  ;;  %v4199_v63 = vsub.f32 %v11377_v28, %v11581_v20  ;;  %v4682_v41 = vrot.slane %v4681_v33, 4 }
 0x3a1   :  { %v3563_v19 = vrot.slane %v3562_v29, 4  ;;  %v3570_v47 = vrot.slane %v3569_v21, 4  ;;  %v7531_v62 = vsel %vm55_vm0, %v7301_v45, 0.0  ;;  %v1849_v25 = vrot.slane %v1835_v0, %v10322_v1 }
 0x3a2   :  { %v4689_v36 = vrot.slane %v4688_v23, 4  ;;  %v11622_v13 = vsel %vm7178_vm1, %v11474_v18, 0.0  ;;  %v11628_v7 = vsel %vm7179_vm6, %v11490_v40, 0.0  ;;  %v11630_v37 = vcombine.high %v1865_v22, %v1897_v39 }
 0x3a3   :  { %16467 = vst [vmem:[#allocation87_spill] sm:$0xff] %v11628_v7  ;;  %1088 = vrot.lane.b32.xlu1 %v11424_v55, %s9919_s17  ;;  %v4346_v28 = vmul.f32 1.442695, %v4198_v4  ;;  %v7525_v45 = vrot.slane %v7524_v49, 4  ;;  %v1833_v5 = vrot.slane %v1819_v60, %v10322_v1  ;;  %v3564_v24 = vmax.f32 %v3562_v29, %v3563_v19 }
 0x3a4   :  { %1040 = vrot.lane.b32.xlu0 %v11424_v55, %s9918_s16  ;;  %v4676_v8 = vadd.f32 %v4675_v14, %v4674_v59  ;;  %v7532_v0 = vrot.slane %v7531_v62, 4  ;;  %v3571_v10 = vmax.f32 %v3569_v21, %v3570_v47  ;;  %v3576_v61 = vsel %vm55_vm0, %v11612_v31, -inf }
 0x3a5   :  { %9438 = vpow2.f32 %v4344_v30  ;;  %v4348_v22 = vmul.f32 1.442695, %v4199_v63  ;;  %v4683_v39 = vadd.f32 %v4682_v41, %v4681_v33  ;;  %v1898_v54 = vcombine.low %v1833_v5, %v1849_v25 }
 0x3a6   :  { %v4690_v20 = vadd.f32 %v4689_v36, %v4688_v23  ;;  %v7538_v4 = vsel %vm55_vm0, %v7302_v17, 0.0  ;;  %v7545_v34 = vsel %vm55_vm0, %v7303_v6, 0.0  ;;  %v3583_v60 = vsel %vm55_vm0, %v11630_v37, -inf }
 0x3a7   :  { %9440 = vpow2.f32 %v4346_v28  ;;  %v7552_v59 = vsel %vm55_vm0, %v7304_v32, 0.0  ;;  %v3565_v29 = vrot.slane %v3564_v24, 2  ;;  %v3577_v21 = vrot.slane %v3576_v61, 4 }
 0x3a8   :  { %v4677_v14 = vrot.slane %v4676_v8, 2  ;;  %v7526_v19 = vadd.f32 %v7525_v45, %v7524_v49  ;;  %v7533_v47 = vadd.f32 %v7532_v0, %v7531_v62  ;;  %v3572_v30 = vrot.slane %v3571_v10, 2 }
 0x3a9   :  { %v4684_v63 = vrot.slane %v4683_v39, 2  ;;  %v7539_v33 = vrot.slane %v7538_v4, 4  ;;  %v1906_v23 = vrot.slane %v1898_v54, %v10351_v16  ;;  %v3584_v41 = vrot.slane %v3583_v60, 4 }
 0x3aa   :  { %9442 = vpow2.f32 %v4348_v22  ;;  %v4691_v17 = vrot.slane %v4690_v20, 2  ;;  %v7546_v6 = vrot.slane %v7545_v34, 4  ;;  %v1899_v36 = vcombine.high %v1833_v5, %v1849_v25 }
 0x3ab   :  { %v7553_v55 = vrot.slane %v7552_v59, 4  ;;  %v16468_v32 = vcombine.low %v11526_v27, %v11499_v43  ;;  %v3566_v53 = vmax.f32 %v3564_v24, %v3565_v29  ;;  %v3578_v7 = vmax.f32 %v3576_v61, %v3577_v21 }
 0x3ac   :  { %v4678_v49 = vadd.f32 %v4677_v14, %v4676_v8  ;;  %v7527_v62 = vrot.slane %v7526_v19, 2  ;;  %v7559_v45 = vsel %vm55_vm0, %v7305_v3, 0.0  ;;  %v3573_v0 = vmax.f32 %v3571_v10, %v3572_v30  ;;  %v5847_v3 = vld [vmem:[%s16031_s1 + $0x28] sm:$0xff] }
 0x3ad   :  { %v1874_v28 = vrot.slane %v16468_v32, %v10351_v16  ;;  %v4685_v40 = vadd.f32 %v4684_v63, %v4683_v39  ;;  %v7534_v54 = vrot.slane %v7533_v47, 2  ;;  %v3585_v22 = vmax.f32 %v3583_v60, %v3584_v41 }
 0x3ae   :  { %v4692_v52 = vadd.f32 %v4691_v17, %v4690_v20  ;;  %v7540_v25 = vadd.f32 %v7539_v33, %v7538_v4  ;;  %v11653_v5 = vrot.slane %v1899_v36, %v10351_v16  ;;  %v11657_v32 = vadd.f32 %v7546_v6, %v7545_v34  ;;  %v16473_v33 = vld [vmem:[#allocation13_spill] sm:$0xff] }
 0x3af   :  { %v11650_v18 = vcombine.low %v1874_v28, %v1906_v23  ;;  %v11655_v42 = vcombine.high %v1874_v28, %v1906_v23  ;;  %v7560_v24 = vrot.slane %v7559_v45, 4  ;;  %v3567_v10 = vrot.slane %v3566_v53, 1 }
 0x3b0   :  { %v3579_v8 = vrot.slane %v3578_v7, 2  ;;  %v4679_v61 = vrot.slane %v4678_v49, 1  ;;  %v11662_v39 = vadd.f32 %v7553_v55, %v7552_v59  ;;  %v16470_v20 = vcombine.high %v11526_v27, %v11499_v43 }
 0x3b1   :  { %v3574_v60 = vrot.slane %v3573_v0, 1  ;;  %v4686_v29 = vrot.slane %v4685_v40, 1  ;;  %v11672_v34 = vsel %vm55_vm0, %v11622_v13, 0.0  ;;  %v3586_v21 = vrot.slane %v3585_v22, 2 }
 0x3b2   :  { %16469 = vst [vmem:[#allocation88_spill] sm:$0xff] %v11662_v39  ;;  %v11668_v4 = vrot.slane %v16470_v20, %v10351_v16  ;;  %16471 = vst [vmem:[#allocation89_spill] sm:$0xff] %v11672_v34  ;;  %v3590_v14 = vsel %vm55_vm0, %v11650_v18, -inf  ;;  %v11676_v30 = vpop.eup %9438  ;;  %v4693_v55 = vrot.slane %v4692_v52, 1  ;;  %v6105_v59 = vcombine.high %v5847_v3, %v5847_v3 }
 0x3b3   :  { %16472 = vst [vmem:[#allocation90_spill] sm:$0xff] %v11676_v30  ;;  %v3597_v27 = vsel %vm55_vm0, %v11655_v42, -inf  ;;  %v7528_v43 = vadd.f32 %v7527_v62, %v7526_v19  ;;  %v6112_v23 = vrot.slane %v5847_v3, %v16473_v33  ;;  %v11685_v13 = vmax.f32 %v3566_v53, %v3567_v10 }
 0x3b4   :  { %v11680_v63 = vcombine.low %v11668_v4, %v11653_v5  ;;  %v3580_v41 = vmax.f32 %v3578_v7, %v3579_v8  ;;  %v11687_v17 = vpop.eup %9440  ;;  %v4680_v6 = vadd.f32 %v4679_v61, %v4678_v49  ;;  %v7535_v36 = vadd.f32 %v7534_v54, %v7533_v47 }
 0x3b5   :  { %16474 = vst [vmem:[#allocation91_spill] sm:$0xff] %v11687_v17  ;;  %v11689_v28 = vmax.f32 %v3573_v0, %v3574_v60  ;;  %v3591_v20 = vrot.slane %v3590_v14, 4  ;;  %v4687_v30 = vadd.f32 %v4686_v29, %v4685_v40  ;;  %v7541_v26 = vrot.slane %v7540_v25, 2  ;;  %v11701_v0 = vpop.permute.xlu0 %778 }
 0x3b6   :  { %v3587_v38 = vmax.f32 %v3585_v22, %v3586_v21  ;;  %v3598_v2 = vrot.slane %v3597_v27, 4  ;;  %v4694_v11 = vadd.f32 %v4693_v55, %v4692_v52  ;;  %v11691_v44 = vadd.f32 %v7560_v24, %v7559_v45 }
 0x3b7   :  { %v6119_v19 = vrot.slane %v6105_v59, %v16473_v33  ;;  %v3604_v53 = vsel %vm55_vm0, %v11680_v63, -inf  ;;  %v11696_v7 = vpop.eup %9442  ;;  %v7548_v49 = vrot.slane %v11657_v32, 2  ;;  %v6120_v47 = vcombine.high %v6112_v23, %v6112_v23  ;;  %v11710_v59 = vpop.permute.xlu1 %874 }
 0x3b8   :  { %16475 = vst [vmem:[#allocation92_spill] sm:$0xff] %v11691_v44  ;;  %16476 = vst [vmem:[#allocation93_spill] sm:$0xff] %v11696_v7  ;;  %v3581_v62 = vrot.slane %v3580_v41, 1  ;;  %v4218_v40 = vsub.f32 %v11592_v12, %v11685_v13  ;;  %9444 = vlog2.f32 %v4680_v6  ;;  %v3592_v45 = vmax.f32 %v3590_v14, %v3591_v20 }
 0x3b9   :  { %v4219_v54 = vsub.f32 %v11594_v48, %v11689_v28  ;;  %9446 = vlog2.f32 %v4687_v30  ;;  %v3588_v22 = vrot.slane %v3587_v38, 1  ;;  %v3599_v24 = vmax.f32 %v3597_v27, %v3598_v2 }
 0x3ba   :  { %v3605_v3 = vrot.slane %v3604_v53, 4  ;;  %9448 = vlog2.f32 %v4694_v11  ;;  %v7529_v10 = vrot.slane %v7528_v43, 1  ;;  %v7536_v8 = vrot.slane %v7535_v36, 1 }
 0x3bb   :  { %v6121_v61 = vcombine.high %v6119_v19, %v6119_v19  ;;  %v6128_v60 = vrot.slane %v6112_v23, %v16473_v33  ;;  %v6142_v29 = vrot.slane %v6120_v47, %v16473_v33  ;;  %v11708_v21 = vmax.f32 %v3580_v41, %v3581_v62  ;;  %v11718_v23 = vpop.permute.xlu0 %826 }
 0x3bc   :  { %v4386_v55 = vmul.f32 1.442695, %v4218_v40  ;;  %v11712_v14 = vadd.f32 %v7541_v26, %v7540_v25  ;;  %v3593_v6 = vrot.slane %v3592_v45, 2  ;;  %v4388_v2 = vmul.f32 1.442695, %v4219_v54 }
 0x3bd   :  { %v6135_v11 = vrot.slane %v6119_v19, %v16473_v33  ;;  %v11716_v27 = vmax.f32 %v3587_v38, %v3588_v22  ;;  %v3600_v20 = vrot.slane %v3599_v24, 2  ;;  %v3606_v52 = vmax.f32 %v3604_v53, %v3605_v3 }
 0x3be   :  { %16477 = vst [vmem:[#allocation94_spill] sm:$0xff] %v11712_v14  ;;  %v11720_v47 = vadd.f32 %v7529_v10, %v7528_v43  ;;  %v11722_v41 = vadd.f32 %v7536_v8, %v7535_v36  ;;  %v11725_v62 = vadd.f32 %v7548_v49, %v11657_v32  ;;  %v6149_v26 = vrot.slane %v6121_v61, %v16473_v33  ;;  %v11735_v49 = vpop.permute.xlu1 %970 }
 0x3bf   :  { %v6150_v25 = vcombine.high %v6128_v60, %v6128_v60  ;;  %v6152_v40 = vcombine.high %v6142_v29, %v6142_v29  ;;  %v4220_v19 = vsub.f32 %v11612_v31, %v11708_v21  ;;  %9450 = vpow2.f32 %v4386_v55 }
 0x3c0   :  { %16478 = vst [vmem:[#allocation95_spill] sm:$0xff] %v11720_v47  ;;  %16479 = vst [vmem:[#allocation96_spill] sm:$0xff] %v11722_v41  ;;  %v3594_v53 = vmax.f32 %v3592_v45, %v3593_v6  ;;  %9452 = vpow2.f32 %v4388_v2  ;;  %v1666_v43 = vcombine.low %v11701_v0, %v11710_v59  ;;  %v6151_v36 = vcombine.high %v6135_v11, %v6135_v11  ;;  %v11746_v2 = vpop.permute.xlu0 %922 }
 0x3c1   :  { %16480 = vst [vmem:[#allocation97_spill] sm:$0xff] %v11725_v62  ;;  %v3601_v54 = vmax.f32 %v3599_v24, %v3600_v20  ;;  %v3607_v22 = vrot.slane %v3606_v52, 2  ;;  %v4221_v32 = vsub.f32 %v11630_v37, %v11716_v27  ;;  %v6153_v3 = vcombine.high %v6149_v26, %v6149_v26 }
 0x3c2   :  { %v6807_v10 = vrot.slane %v6128_v60, %v10399_v58  ;;  %v6811_v8 = vrot.slane %v6142_v29, %v10399_v58  ;;  %v11741_v45 = vcombine.high %v11668_v4, %v11653_v5  ;;  %v6815_v61 = vrot.slane %v6150_v25, %v10399_v58  ;;  %v16482_v29 = vld [vmem:[#allocation7_spill] sm:$0xff] }
 0x3c3   :  { %v6819_v55 = vrot.slane %v6152_v40, %v10399_v58  ;;  %v6823_v24 = vrot.slane %v6135_v11, %v10399_v58  ;;  %v4390_v6 = vmul.f32 1.442695, %v4220_v19  ;;  %v6827_v20 = vrot.slane %v6149_v26, %v10399_v58 }
 0x3c4   :  { %16481 = vst [vmem:[#allocation98_spill] sm:$0xff] %v11741_v45  ;;  %v3595_v38 = vrot.slane %v3594_v53, 1  ;;  %v1667_v60 = vcombine.high %v11701_v0, %v11710_v59  ;;  %v1650_v30 = vcombine.low %v16482_v29, %v11718_v23  ;;  %v11754_v4 = vrot.slane %v6151_v36, %v10399_v58  ;;  %v11792_v41 = vpop.permute.xlu0 %1018 }
 0x3c5   :  { %v9445_v5 = vpop.eup %9444  ;;  %v3602_v25 = vrot.slane %v3601_v54, 1  ;;  %v3608_v40 = vmax.f32 %v3606_v52, %v3607_v22  ;;  %v4392_v39 = vmul.f32 1.442695, %v4221_v32  ;;  %v11757_v19 = vrot.slane %v6153_v3, %v10399_v58  ;;  %v11778_v22 = vpop.permute.xlu1 %1066 }
 0x3c6   :  { %v9447_v11 = vpop.eup %9446  ;;  %vm11760_vm7 = vcmp.eq.s32.totalorder %v6807_v10, %v10309_v57  ;;  %vm11765_vm8 = vcmp.eq.s32.totalorder %v6811_v8, %v10309_v57  ;;  %v3611_v59 = vsel %vm55_vm0, %v11741_v45, -inf  ;;  %vm7198_vm9 = vcmp.eq.s32.totalorder %v6815_v61, %v10309_v57 }
 0x3c7   :  { %v9449_v36 = vpop.eup %9448  ;;  %vm7199_vm10 = vcmp.eq.s32.totalorder %v6819_v55, %v10309_v57  ;;  %vm11774_vm11 = vcmp.eq.s32.totalorder %v6823_v24, %v10309_v57  ;;  %9454 = vpow2.f32 %v4390_v6  ;;  %v11780_v32 = vmax.f32 %v3594_v53, %v3595_v38 }
 0x3c8   :  { %v11783_v3 = vrot.slane %v1666_v43, %v10322_v1  ;;  %v1651_v10 = vcombine.high %v16482_v29, %v11718_v23  ;;  %v11788_v8 = vrot.slane %v1650_v30, %v10322_v1  ;;  %v11790_v62 = vmax.f32 %v3601_v54, %v3602_v25 }
 0x3c9   :  { %16489 = vst [vmem:[#allocation7_spill] sm:$0xff] %v11780_v32  ;;  %v3609_v24 = vrot.slane %v3608_v40, 1  ;;  %v3612_v14 = vrot.slane %v3611_v59, 4  ;;  %9456 = vpow2.f32 %v4392_v39  ;;  %v5491_v6 = vmul.f32 0.6931472, %v9445_v5 }
 0x3ca   :  { %16490 = vst [vmem:[#allocation99_spill] sm:$0xff] %v11790_v62  ;;  %v5493_v47 = vmul.f32 0.6931472, %v9447_v11  ;;  %v5495_v38 = vmul.f32 0.6931472, %v9449_v36  ;;  %v1698_v53 = vcombine.low %v11735_v49, %v11778_v22  ;;  %vm11797_vm12 = vcmp.eq.s32.totalorder %v6827_v20, %v10309_v57 }
 0x3cb   :  { %vm7202_vm13 = vcmp.eq.s32.totalorder %v11754_v4, %v10309_v57  ;;  %vm7203_vm14 = vcmp.eq.s32.totalorder %v11757_v19, %v10309_v57  ;;  %v11806_v39 = vrot.slane %v1667_v60, %v10322_v1  ;;  %v4222_v23 = vsub.f32 %v11650_v18, %v11780_v32 }
 0x3cc   :  { %v9451_v30 = vpop.eup %9450  ;;  %v11811_v54 = vrot.slane %v1651_v10, %v10322_v1  ;;  %v1714_v20 = vcombine.low %v11788_v8, %v11783_v3  ;;  %v1682_v29 = vcombine.low %v11746_v2, %v11792_v41  ;;  %v11817_v25 = vmax.f32 %v3608_v40, %v3609_v24 }
 0x3cd   :  { %v9453_v5 = vpop.eup %9452  ;;  %v11819_v11 = vmax.f32 %v3611_v59, %v3612_v14  ;;  %v4223_v60 = vsub.f32 %v11655_v42, %v11790_v62  ;;  %v1715_v36 = vcombine.high %v11788_v8, %v11783_v3  ;;  %v11826_v10 = vadd.f32 %v5491_v6, %v11379_v50 }
 0x3ce   :  { %16493 = vst [vmem:[#allocation100_spill] sm:$0xff] %v11817_v25  ;;  %v11829_v32 = vadd.f32 %v5493_v47, %v11383_v51  ;;  %v11832_v34 = vadd.f32 %v5495_v38, %v11388_v56  ;;  %v1706_v40 = vrot.slane %v1698_v53, %v10322_v1  ;;  %v7324_v14 = vsel %vm11760_vm7, %v11592_v12, 0.0 }
 0x3cf   :  { %16494 = vst [vmem:[#allocation101_spill] sm:$0xff] %v11819_v11  ;;  %16495 = vst [vmem:[#allocation102_spill] sm:$0xff] %v11826_v10  ;;  %v7325_v59 = vsel %vm11765_vm8, %v11594_v48, 0.0  ;;  %v7326_v50 = vsel %vm7198_vm9, %v11612_v31, 0.0  ;;  %v7327_v51 = vsel %vm7199_vm10, %v11630_v37, 0.0  ;;  %v4842_v47 = vsel %vm55_vm0, %v9451_v30, 0.0 }
 0x3d0   :  { %16496 = vst [vmem:[#allocation103_spill] sm:$0xff] %v11829_v32  ;;  %16497 = vst [vmem:[#allocation104_spill] sm:$0xff] %v11832_v34  ;;  %v4394_v56 = vmul.f32 1.442695, %v4222_v23  ;;  %v4849_v3 = vsel %vm55_vm0, %v9453_v5, 0.0  ;;  %v1690_v26 = vrot.slane %v1682_v29, %v10322_v1  ;;  %v4224_v12 = vsub.f32 %v11680_v63, %v11817_v25  ;;  %v5846_v34 = vld [vmem:[%s16031_s1 + $0x20] sm:$0xff] }
 0x3d1   :  { %v4396_v0 = vmul.f32 1.442695, %v4223_v60  ;;  %v7328_v48 = vsel %vm11774_vm11, %v11650_v18, 0.0  ;;  %v7329_v31 = vsel %vm11797_vm12, %v11655_v42, 0.0  ;;  %v7692_v37 = vsel %vm55_vm0, %v7324_v14, 0.0 }
 0x3d2   :  { %v7699_v61 = vsel %vm55_vm0, %v7325_v59, 0.0  ;;  %v1746_v55 = vcombine.low %v1690_v26, %v1706_v40  ;;  %v1747_v8 = vcombine.high %v1690_v26, %v1706_v40  ;;  %v4843_v24 = vrot.slane %v4842_v47, 4 }
 0x3d3   :  { %v4850_v6 = vrot.slane %v4849_v3, 4  ;;  %v7330_v38 = vsel %vm7202_vm13, %v11680_v63, 0.0  ;;  %v7706_v52 = vsel %vm55_vm0, %v7326_v50, 0.0  ;;  %9458 = vpow2.f32 %v4394_v56 }
 0x3d4   :  { %v9455_v18 = vpop.eup %9454  ;;  %v11869_v42 = vsel %vm7203_vm14, %v11741_v45, 0.0  ;;  %v1722_v53 = vrot.slane %v1714_v20, %v10351_v16  ;;  %v1754_v43 = vrot.slane %v1746_v55, %v10351_v16  ;;  %9460 = vpow2.f32 %v4396_v0 }
 0x3d5   :  { %16498 = vst [vmem:[#allocation105_spill] sm:$0xff] %v11869_v42  ;;  %v4398_v30 = vmul.f32 1.442695, %v4224_v12  ;;  %v7693_v23 = vrot.slane %v7692_v37, 4  ;;  %v7700_v29 = vrot.slane %v7699_v61, 4  ;;  %v7707_v63 = vrot.slane %v7706_v52, 4 }
 0x3d6   :  { %v9457_v4 = vpop.eup %9456  ;;  %v1761_v5 = vrot.slane %v1747_v8, %v10351_v16  ;;  %v11874_v60 = vcombine.low %v1722_v53, %v1754_v43  ;;  %v11876_v40 = vcombine.high %v1722_v53, %v1754_v43  ;;  %v4844_v14 = vadd.f32 %v4843_v24, %v4842_v47 }
 0x3d7   :  { %v4851_v19 = vadd.f32 %v4850_v6, %v4849_v3  ;;  %v4856_v59 = vsel %vm55_vm0, %v9455_v18, 0.0  ;;  %v1729_v20 = vrot.slane %v1715_v36, %v10351_v16  ;;  %v1699_v50 = vcombine.high %v11735_v49, %v11778_v22 }
 0x3d8   :  { %v1683_v56 = vcombine.high %v11746_v2, %v11792_v41  ;;  %v3506_v26 = vsel %vm55_vm0, %v11874_v60, -inf  ;;  %v3513_v12 = vsel %vm55_vm0, %v11876_v40, -inf  ;;  %v4863_v0 = vsel %vm55_vm0, %v9457_v4, 0.0 }
 0x3d9   :  { %v7694_v47 = vadd.f32 %v7693_v23, %v7692_v37  ;;  %v7713_v3 = vsel %vm55_vm0, %v7327_v51, 0.0  ;;  %v7720_v55 = vsel %vm55_vm0, %v7328_v48, 0.0  ;;  %9462 = vpow2.f32 %v4398_v30 }
 0x3da   :  { %v7727_v36 = vsel %vm55_vm0, %v7329_v31, 0.0  ;;  %v11892_v49 = vcombine.low %v1729_v20, %v1761_v5  ;;  %v3507_v22 = vrot.slane %v3506_v26, 4  ;;  %v4845_v41 = vrot.slane %v4844_v14, 2 }
 0x3db   :  { %v4857_v2 = vrot.slane %v4856_v59, 4  ;;  %v11894_v8 = vcombine.high %v1729_v20, %v1761_v5  ;;  %v3514_v24 = vrot.slane %v3513_v12, 4  ;;  %v4852_v6 = vrot.slane %v4851_v19, 2 }
 0x3dc   :  { %v4864_v18 = vrot.slane %v4863_v0, 4  ;;  %v1713_v53 = vrot.slane %v1699_v50, %v10322_v1  ;;  %v1697_v37 = vrot.slane %v1683_v56, %v10322_v1  ;;  %v7695_v51 = vrot.slane %v7694_v47, 2 }
 0x3dd   :  { %v7701_v43 = vadd.f32 %v7700_v29, %v7699_v61  ;;  %v7708_v48 = vadd.f32 %v7707_v63, %v7706_v52  ;;  %v7714_v30 = vrot.slane %v7713_v3, 4  ;;  %v7721_v23 = vrot.slane %v7720_v55, 4 }
 0x3de   :  { %v7734_v31 = vsel %vm55_vm0, %v7330_v38, 0.0  ;;  %v3508_v4 = vmax.f32 %v3506_v26, %v3507_v22  ;;  %v3520_v25 = vsel %vm55_vm0, %v11892_v49, -inf  ;;  %v4846_v5 = vadd.f32 %v4845_v41, %v4844_v14 }
 0x3df   :  { %v4858_v20 = vadd.f32 %v4857_v2, %v4856_v59  ;;  %v3515_v62 = vmax.f32 %v3513_v12, %v3514_v24  ;;  %v3527_v42 = vsel %vm55_vm0, %v11894_v8, -inf  ;;  %v4853_v50 = vadd.f32 %v4852_v6, %v4851_v19 }
 0x3e0   :  { %v4865_v45 = vadd.f32 %v4864_v18, %v4863_v0  ;;  %v7728_v56 = vrot.slane %v7727_v36, 4  ;;  %v1762_v11 = vcombine.low %v1697_v37, %v1713_v53  ;;  %v11903_v61 = vpop.eup %9458  ;;  %v7702_v52 = vrot.slane %v7701_v43, 2 }
 0x3e1   :  { %16499 = vst [vmem:[#allocation106_spill] sm:$0xff] %v11903_v61  ;;  %v7709_v29 = vrot.slane %v7708_v48, 2  ;;  %v11905_v63 = vadd.f32 %v7714_v30, %v7713_v3  ;;  %v3521_v38 = vrot.slane %v3520_v25, 4  ;;  %v11907_v26 = vpop.eup %9460  ;;  %v7735_v22 = vrot.slane %v7734_v31, 4 }
 0x3e2   :  { %16500 = vst [vmem:[#allocation107_spill] sm:$0xff] %v11907_v26  ;;  %v1730_v14 = vcombine.low %v11811_v54, %v11806_v39  ;;  %v3509_v59 = vrot.slane %v3508_v4, 2  ;;  %v3528_v12 = vrot.slane %v3527_v42, 4  ;;  %v4847_v41 = vrot.slane %v4846_v5, 1 }
 0x3e3   :  { %v4859_v19 = vrot.slane %v4858_v20, 2  ;;  %v11911_v0 = vadd.f32 %v7695_v51, %v7694_v47  ;;  %v3516_v2 = vrot.slane %v3515_v62, 2  ;;  %v4854_v24 = vrot.slane %v4853_v50, 1 }
 0x3e4   :  { %v4866_v6 = vrot.slane %v4865_v45, 2  ;;  %v11913_v18 = vadd.f32 %v7721_v23, %v7720_v55  ;;  %v1770_v3 = vrot.slane %v1762_v11, %v10351_v16  ;;  %v11916_v30 = vadd.f32 %v7702_v52, %v7701_v43 }
 0x3e5   :  { %v11918_v26 = vadd.f32 %v7709_v29, %v7708_v48  ;;  %v11920_v61 = vadd.f32 %v7728_v56, %v7727_v36  ;;  %v3522_v32 = vmax.f32 %v3520_v25, %v3521_v38  ;;  %v1738_v47 = vrot.slane %v1730_v14, %v10351_v16 }
 0x3e6   :  { %v1763_v51 = vcombine.high %v1697_v37, %v1713_v53  ;;  %v3510_v10 = vmax.f32 %v3508_v4, %v3509_v59  ;;  %v3529_v44 = vmax.f32 %v3527_v42, %v3528_v12  ;;  %v11926_v55 = vpop.eup %9462  ;;  %v4848_v23 = vadd.f32 %v4847_v41, %v4846_v5 }
 0x3e7   :  { %16501 = vst [vmem:[#allocation108_spill] sm:$0xff] %v11920_v61  ;;  %16502 = vst [vmem:[#allocation109_spill] sm:$0xff] %v11926_v55  ;;  %v4860_v11 = vadd.f32 %v4859_v19, %v4858_v20  ;;  %v1731_v43 = vcombine.high %v11811_v54, %v11806_v39  ;;  %v3517_v48 = vmax.f32 %v3515_v62, %v3516_v2  ;;  %v7716_v25 = vrot.slane %v11905_v63, 2 }
 0x3e8   :  { %v4855_v36 = vadd.f32 %v4854_v24, %v4853_v50  ;;  %v4867_v56 = vadd.f32 %v4866_v6, %v4865_v45  ;;  %v6056_v52 = vcombine.high %v5846_v34, %v5846_v34  ;;  %v11930_v29 = vcombine.low %v1738_v47, %v1770_v3 }
 0x3e9   :  { %v11933_v38 = vadd.f32 %v7735_v22, %v7734_v31  ;;  %v11935_v53 = vcombine.high %v1738_v47, %v1770_v3  ;;  %v3523_v42 = vrot.slane %v3522_v32, 2  ;;  %v6063_v37 = vrot.slane %v5846_v34, %v16473_v33 }
 0x3ea   :  { %v11939_v4 = vrot.slane %v1763_v51, %v10351_v16  ;;  %v3511_v5 = vrot.slane %v3510_v10, 1  ;;  %v3530_v39 = vrot.slane %v3529_v44, 2  ;;  %v4861_v62 = vrot.slane %v4860_v11, 1 }
 0x3eb   :  { %16503 = vst [vmem:[#allocation110_spill] sm:$0xff] %v11933_v38  ;;  %9464 = vlog2.f32 %v4848_v23  ;;  %v11942_v45 = vrot.slane %v1731_v43, %v10351_v16  ;;  %v3518_v54 = vrot.slane %v3517_v48, 1  ;;  %v4868_v20 = vrot.slane %v4867_v56, 1 }
 0x3ec   :  { %9466 = vlog2.f32 %v4855_v36  ;;  %v6070_v31 = vrot.slane %v6056_v52, %v16473_v33  ;;  %v3534_v50 = vsel %vm55_vm0, %v11930_v29, -inf  ;;  %v7697_v34 = vrot.slane %v11911_v0, 1 }
 0x3ed   :  { %v7723_v22 = vrot.slane %v11913_v18, 2  ;;  %v3524_v14 = vmax.f32 %v3522_v32, %v3523_v42  ;;  %v3541_v59 = vsel %vm55_vm0, %v11935_v53, -inf  ;;  %v6071_v12 = vcombine.high %v6063_v37, %v6063_v37 }
 0x3ee   :  { %v11953_v41 = vcombine.low %v11942_v45, %v11939_v4  ;;  %v11955_v19 = vmax.f32 %v3510_v10, %v3511_v5  ;;  %v3531_v2 = vmax.f32 %v3529_v44, %v3530_v39  ;;  %v4862_v24 = vadd.f32 %v4861_v62, %v4860_v11  ;;  %v11966_v44 = vpop.permute.xlu1 %784 }
 0x3ef   :  { %v11958_v3 = vmax.f32 %v3517_v48, %v3518_v54  ;;  %v3535_v47 = vrot.slane %v3534_v50, 4  ;;  %v4869_v51 = vadd.f32 %v4868_v20, %v4867_v56  ;;  %v7704_v32 = vrot.slane %v11916_v30, 1 }
 0x3f0   :  { %v6072_v23 = vcombine.high %v6070_v31, %v6070_v31  ;;  %v3542_v43 = vrot.slane %v3541_v59, 4  ;;  %v7711_v36 = vrot.slane %v11918_v26, 1  ;;  %v11963_v52 = vadd.f32 %v7716_v25, %v11905_v63 }
 0x3f1   :  { %v6079_v10 = vrot.slane %v6063_v37, %v16473_v33  ;;  %v3525_v42 = vrot.slane %v3524_v14, 1  ;;  %v6093_v11 = vrot.slane %v6071_v12, %v16473_v33  ;;  %v3532_v48 = vrot.slane %v3531_v2, 1 }
 0x3f2   :  { %16504 = vst [vmem:[#allocation111_spill] sm:$0xff] %v11963_v52  ;;  %v3548_v56 = vsel %vm55_vm0, %v11953_v41, -inf  ;;  %v4210_v5 = vsub.f32 %v11874_v60, %v11955_v19  ;;  %9468 = vlog2.f32 %v4862_v24  ;;  %v6086_v39 = vrot.slane %v6070_v31, %v16473_v33 }
 0x3f3   :  { %v3536_v62 = vmax.f32 %v3534_v50, %v3535_v47  ;;  %v4211_v63 = vsub.f32 %v11876_v40, %v11958_v3  ;;  %9470 = vlog2.f32 %v4869_v51  ;;  %v11977_v25 = vadd.f32 %v7697_v34, %v11911_v0 }
 0x3f4   :  { %v6100_v37 = vrot.slane %v6072_v23, %v16473_v33  ;;  %v3543_v54 = vmax.f32 %v3541_v59, %v3542_v43  ;;  %v11981_v20 = vadd.f32 %v7723_v22, %v11913_v18  ;;  %v6101_v12 = vcombine.high %v6079_v10, %v6079_v10  ;;  %v833_v43 = vpop.permute.xlu0 %832  ;;  %v881_v18 = vpop.permute.xlu1 %880 }
 0x3f5   :  { %v11983_v6 = vmax.f32 %v3524_v14, %v3525_v42  ;;  %v3549_v24 = vrot.slane %v3548_v56, 4  ;;  %v11986_v31 = vadd.f32 %v7704_v32, %v11916_v30  ;;  %v6103_v50 = vcombine.high %v6093_v11, %v6093_v11 }
 0x3f6   :  { %16505 = vst [vmem:[#allocation112_spill] sm:$0xff] %v11981_v20  ;;  %v11988_v47 = vmax.f32 %v3531_v2, %v3532_v48  ;;  %v4370_v51 = vmul.f32 1.442695, %v4210_v5  ;;  %v11991_v0 = vadd.f32 %v7711_v36, %v11918_v26  ;;  %v6102_v34 = vcombine.high %v6086_v39, %v6086_v39 }
 0x3f7   :  { %v3537_v23 = vrot.slane %v3536_v62, 2  ;;  %v4372_v59 = vmul.f32 1.442695, %v4211_v63  ;;  %v6104_v42 = vcombine.high %v6100_v37, %v6100_v37  ;;  %v6775_v20 = vrot.slane %v6079_v10, %v10399_v58 }
 0x3f8   :  { %16506 = vst [vmem:[#allocation113_spill] sm:$0xff] %v11991_v0  ;;  %v9465_v22 = vpop.eup %9464  ;;  %v3544_v30 = vrot.slane %v3543_v54, 2  ;;  %v6779_v2 = vrot.slane %v6093_v11, %v10399_v58  ;;  %v11997_v48 = vrot.slane %v6101_v12, %v10399_v58  ;;  %v3550_v26 = vmax.f32 %v3548_v56, %v3549_v24  ;;  %v12020_v38 = vpop.permute.xlu0 %928 }
 0x3f9   :  { %v9467_v32 = vpop.eup %9466  ;;  %v4212_v36 = vsub.f32 %v11892_v49, %v11983_v6  ;;  %v12002_v5 = vrot.slane %v6103_v50, %v10399_v58  ;;  %v6791_v63 = vrot.slane %v6086_v39, %v10399_v58  ;;  %v4213_v14 = vsub.f32 %v11894_v8, %v11988_v47 }
 0x3fa   :  { %9472 = vpow2.f32 %v4370_v51  ;;  %v6795_v10 = vrot.slane %v6100_v37, %v10399_v58  ;;  %v12009_v11 = vrot.slane %v6102_v34, %v10399_v58  ;;  %v3538_v12 = vmax.f32 %v3536_v62, %v3537_v23  ;;  %v12022_v34 = vpop.permute.xlu1 %976 }
 0x3fb   :  { %9474 = vpow2.f32 %v4372_v59  ;;  %v5539_v56 = vmul.f32 0.6931472, %v9465_v22  ;;  %v5541_v24 = vmul.f32 0.6931472, %v9467_v32  ;;  %v12012_v52 = vrot.slane %v6104_v42, %v10399_v58  ;;  %v16512_v22 = vld [vmem:[#allocation8_spill] sm:$0xff] }
 0x3fc   :  { %v3545_v50 = vmax.f32 %v3543_v54, %v3544_v30  ;;  %vm12015_vm15 = vcmp.eq.s32.totalorder %v6775_v20, %v10309_v57  ;;  %v3551_v0 = vrot.slane %v3550_v26, 2  ;;  %v4374_v51 = vmul.f32 1.442695, %v4212_v36 }
 0x3fd   :  { %v2074_v37 = vcombine.low %v11966_v44, %v881_v18  ;;  %vm12025_vm2 = vcmp.eq.s32.totalorder %v6779_v2, %v10309_v57  ;;  %vm7190_vm3 = vcmp.eq.s32.totalorder %v11997_v48, %v10309_v57  ;;  %v12033_v54 = vcombine.high %v11942_v45, %v11939_v4 }
 0x3fe   :  { %v4376_v20 = vmul.f32 1.442695, %v4213_v14  ;;  %v2075_v23 = vcombine.high %v11966_v44, %v881_v18  ;;  %vm7191_vm4 = vcmp.eq.s32.totalorder %v12002_v5, %v10309_v57  ;;  %v3539_v59 = vrot.slane %v3538_v12, 1 }
 0x3ff   :  { %16511 = vst [vmem:[#allocation114_spill] sm:$0xff] %v12033_v54  ;;  %v2058_v42 = vcombine.low %v16512_v22, %v833_v43  ;;  %v2059_v30 = vcombine.high %v16512_v22, %v833_v43  ;;  %v9469_v32 = vpop.eup %9468  ;;  %v5754_v2 = vadd.f32 %v5539_v56, %v11685_v13  ;;  %v5755_v36 = vadd.f32 %v5541_v24, %v11689_v28  ;;  %v12072_v24 = vpop.permute.xlu1 %1072 }
 0x400   :  { %vm12043_vm5 = vcmp.eq.s32.totalorder %v6791_v63, %v10309_v57  ;;  %v3546_v45 = vrot.slane %v3545_v50, 1  ;;  %v9471_v44 = vpop.eup %9470  ;;  %vm12048_vm1 = vcmp.eq.s32.totalorder %v6795_v10, %v10309_v57  ;;  %v3552_v14 = vmax.f32 %v3550_v26, %v3551_v0  ;;  %v12070_v26 = vpop.permute.xlu0 %1024 }
 0x401   :  { %9476 = vpow2.f32 %v4374_v51  ;;  %v12053_v43 = vrot.slane %v2074_v37, %v10322_v1  ;;  %vm7194_vm6 = vcmp.eq.s32.totalorder %v12009_v11, %v10309_v57  ;;  %v3555_v13 = vsel %vm55_vm0, %v12033_v54, -inf }
 0x402   :  { %9478 = vpow2.f32 %v4376_v20  ;;  %v12060_v28 = vrot.slane %v2075_v23, %v10322_v1  ;;  %v5543_v63 = vmul.f32 0.6931472, %v9469_v32  ;;  %v12062_v10 = vmax.f32 %v3538_v12, %v3539_v59 }
 0x403   :  { %v12065_v56 = vrot.slane %v2058_v42, %v10322_v1  ;;  %v12068_v0 = vrot.slane %v2059_v30, %v10322_v1  ;;  %v5545_v51 = vmul.f32 0.6931472, %v9471_v44  ;;  %v8348_v37 = vsub.f32 %v11977_v25, %v5754_v2 }
 0x404   :  { %16517 = vst [vmem:[#allocation8_spill] sm:$0xff] %v12062_v10  ;;  %v8349_v20 = vsub.f32 %v11986_v31, %v5755_v36  ;;  %v12076_v23 = vmax.f32 %v3545_v50, %v3546_v45  ;;  %vm7195_vm7 = vcmp.eq.s32.totalorder %v12012_v52, %v10309_v57  ;;  %v3553_v12 = vrot.slane %v3552_v14, 1 }
 0x405   :  { %v3556_v59 = vrot.slane %v3555_v13, 4  ;;  %v2122_v22 = vcombine.low %v12065_v56, %v12053_v43  ;;  %v2123_v42 = vcombine.high %v12065_v56, %v12053_v43  ;;  %v2090_v25 = vcombine.low %v12020_v38, %v12070_v26 }
 0x406   :  { %16518 = vst [vmem:[#allocation115_spill] sm:$0xff] %v12076_v23  ;;  %v2106_v31 = vcombine.low %v12022_v34, %v12072_v24  ;;  %v12091_v32 = vadd.f32 %v5543_v63, %v11708_v21  ;;  %v4214_v2 = vsub.f32 %v11930_v29, %v12062_v10  ;;  %v7316_v36 = vsel %vm12015_vm15, %v11874_v60, 0.0 }
 0x407   :  { %v9473_v50 = vpop.eup %9472  ;;  %v12101_v43 = vadd.f32 %v5545_v51, %v11716_v27  ;;  %v12103_v56 = vmax.f32 %v8348_v37, -11.512925  ;;  %v12105_v30 = vmax.f32 %v8349_v20, -11.512925  ;;  %v4215_v21 = vsub.f32 %v11935_v53, %v12076_v23 }
 0x408   :  { %16519 = vst [vmem:[#allocation116_spill] sm:$0xff] %v12091_v32  ;;  %v9475_v44 = vpop.eup %9474  ;;  %v12109_v63 = vmax.f32 %v3552_v14, %v3553_v12  ;;  %v12111_v10 = vmax.f32 %v3555_v13, %v3556_v59  ;;  %v7317_v60 = vsel %vm12025_vm2, %v11876_v40, 0.0  ;;  %v7318_v27 = vsel %vm7190_vm3, %v11892_v49, 0.0 }
 0x409   :  { %16520 = vst [vmem:[#allocation117_spill] sm:$0xff] %v12101_v43  ;;  %16521 = vst [vmem:[#allocation118_spill] sm:$0xff] %v12103_v56  ;;  %v7319_v39 = vsel %vm7191_vm4, %v11894_v8, 0.0  ;;  %v7636_v51 = vsel %vm55_vm0, %v7316_v36, 0.0  ;;  %v2098_v14 = vrot.slane %v2090_v25, %v10322_v1  ;;  %v2114_v13 = vrot.slane %v2106_v31, %v10322_v1 }
 0x40a   :  { %16522 = vst [vmem:[#allocation119_spill] sm:$0xff] %v12105_v30  ;;  %16523 = vst [vmem:[#allocation120_spill] sm:$0xff] %v12109_v63  ;;  %v4378_v37 = vmul.f32 1.442695, %v4214_v2  ;;  %v4786_v62 = vsel %vm55_vm0, %v9473_v50, 0.0  ;;  %v4793_v40 = vsel %vm55_vm0, %v9475_v44, 0.0  ;;  %v4216_v12 = vsub.f32 %v11953_v41, %v12109_v63 }
 0x40b   :  { %16524 = vst [vmem:[#allocation121_spill] sm:$0xff] %v12111_v10  ;;  %v7320_v49 = vsel %vm12043_vm5, %v11930_v29, 0.0  ;;  %v4380_v48 = vmul.f32 1.442695, %v4215_v21  ;;  %v7321_v8 = vsel %vm12048_vm1, %v11935_v53, 0.0  ;;  %v7643_v5 = vsel %vm55_vm0, %v7317_v60, 0.0 }
 0x40c   :  { %v2154_v20 = vcombine.low %v2098_v14, %v2114_v13  ;;  %v7322_v59 = vsel %vm7194_vm6, %v11953_v41, 0.0  ;;  %v7637_v25 = vrot.slane %v7636_v51, 4  ;;  %v2155_v31 = vcombine.high %v2098_v14, %v2114_v13 }
 0x40d   :  { %v4787_v29 = vrot.slane %v4786_v62, 4  ;;  %v4794_v50 = vrot.slane %v4793_v40, 4  ;;  %v2130_v2 = vrot.slane %v2122_v22, %v10351_v16  ;;  %9480 = vpow2.f32 %v4378_v37 }
 0x40e   :  { %v9477_v4 = vpop.eup %9476  ;;  %v2162_v53 = vrot.slane %v2154_v20, %v10351_v16  ;;  %v12148_v36 = vsel %vm7195_vm7, %v12033_v54, 0.0  ;;  %v7644_v44 = vrot.slane %v7643_v5, 4  ;;  %v7650_v41 = vsel %vm55_vm0, %v7318_v27, 0.0 }
 0x40f   :  { %v9479_v18 = vpop.eup %9478  ;;  %16525 = vst [vmem:[#allocation122_spill] sm:$0xff] %v12148_v36  ;;  %9482 = vpow2.f32 %v4380_v48  ;;  %v7657_v11 = vsel %vm55_vm0, %v7319_v39, 0.0  ;;  %v4382_v22 = vmul.f32 1.442695, %v4216_v12  ;;  %v7638_v14 = vadd.f32 %v7637_v25, %v7636_v51 }
 0x410   :  { %v12152_v21 = vcombine.low %v2130_v2, %v2162_v53  ;;  %v12154_v60 = vcombine.high %v2130_v2, %v2162_v53  ;;  %v2107_v13 = vcombine.high %v12022_v34, %v12072_v24  ;;  %v2169_v37 = vrot.slane %v2155_v31, %v10351_v16 }
 0x411   :  { %v4788_v52 = vadd.f32 %v4787_v29, %v4786_v62  ;;  %v4795_v20 = vadd.f32 %v4794_v50, %v4793_v40  ;;  %v4800_v45 = vsel %vm55_vm0, %v9477_v4, 0.0  ;;  %v4807_v27 = vsel %vm55_vm0, %v9479_v18, 0.0 }
 0x412   :  { %v2137_v48 = vrot.slane %v2123_v42, %v10351_v16  ;;  %v2091_v39 = vcombine.high %v12020_v38, %v12070_v26  ;;  %v3674_v12 = vsel %vm55_vm0, %v12152_v21, -inf  ;;  %v3681_v51 = vsel %vm55_vm0, %v12154_v60, -inf }
 0x413   :  { %v7645_v34 = vadd.f32 %v7644_v44, %v7643_v5  ;;  %v7651_v24 = vrot.slane %v7650_v41, 4  ;;  %v7658_v25 = vrot.slane %v7657_v11, 4  ;;  %v7664_v62 = vsel %vm55_vm0, %v7320_v49, 0.0 }
 0x414   :  { %v4801_v40 = vrot.slane %v4800_v45, 4  ;;  %v2121_v31 = vrot.slane %v2107_v13, %v10322_v1  ;;  %v12170_v4 = vcombine.low %v2137_v48, %v2169_v37  ;;  %v3675_v42 = vrot.slane %v3674_v12, 4 }
 0x415   :  { %v4789_v29 = vrot.slane %v4788_v52, 2  ;;  %v4808_v50 = vrot.slane %v4807_v27, 4  ;;  %v12172_v38 = vcombine.high %v2137_v48, %v2169_v37  ;;  %v3682_v26 = vrot.slane %v3681_v51, 4 }
 0x416   :  { %9484 = vpow2.f32 %v4382_v22  ;;  %v4796_v2 = vrot.slane %v4795_v20, 2  ;;  %v7671_v53 = vsel %vm55_vm0, %v7321_v8, 0.0  ;;  %v2105_v5 = vrot.slane %v2091_v39, %v10322_v1 }
 0x417   :  { %v7639_v18 = vrot.slane %v7638_v14, 2  ;;  %v7646_v44 = vrot.slane %v7645_v34, 2  ;;  %v7652_v49 = vadd.f32 %v7651_v24, %v7650_v41  ;;  %v7665_v63 = vrot.slane %v7664_v62, 4 }
 0x418   :  { %v4802_v23 = vadd.f32 %v4801_v40, %v4800_v45  ;;  %v2170_v13 = vcombine.low %v2105_v5, %v2121_v31  ;;  %v3676_v36 = vmax.f32 %v3674_v12, %v3675_v42  ;;  %v3688_v54 = vsel %vm55_vm0, %v12170_v4, -inf }
 0x419   :  { %v4790_v10 = vadd.f32 %v4789_v29, %v4788_v52  ;;  %v4809_v37 = vadd.f32 %v4808_v50, %v4807_v27  ;;  %v3683_v48 = vmax.f32 %v3681_v51, %v3682_v26  ;;  %v3695_v22 = vsel %vm55_vm0, %v12172_v38, -inf }
 0x41a   :  { %v4797_v30 = vadd.f32 %v4796_v2, %v4795_v20  ;;  %v7659_v8 = vadd.f32 %v7658_v25, %v7657_v11  ;;  %v7672_v56 = vrot.slane %v7671_v53, 4  ;;  %v7678_v39 = vsel %vm55_vm0, %v7322_v59, 0.0  ;;  %v12181_v43 = vpop.eup %9480 }
 0x41b   :  { %16526 = vst [vmem:[#allocation123_spill] sm:$0xff] %v12181_v43  ;;  %v12183_v41 = vadd.f32 %v7639_v18, %v7638_v14  ;;  %v7653_v45 = vrot.slane %v7652_v49, 2  ;;  %v12185_v12 = vadd.f32 %v7665_v63, %v7664_v62  ;;  %v3689_v24 = vrot.slane %v3688_v54, 4  ;;  %v5849_v62 = vld [vmem:[%s16031_s1 + $0x38] sm:$0xff] }
 0x41c   :  { %v12187_v40 = vpop.eup %9482  ;;  %v4803_v52 = vrot.slane %v4802_v23, 2  ;;  %v2178_v27 = vrot.slane %v2170_v13, %v10351_v16  ;;  %v3677_v51 = vrot.slane %v3676_v36, 2  ;;  %v3696_v42 = vrot.slane %v3695_v22, 4 }
 0x41d   :  { %16527 = vst [vmem:[#allocation124_spill] sm:$0xff] %v12187_v40  ;;  %v4791_v20 = vrot.slane %v4790_v10, 1  ;;  %v4810_v11 = vrot.slane %v4809_v37, 2  ;;  %v7679_v25 = vrot.slane %v7678_v39, 4  ;;  %v3684_v29 = vrot.slane %v3683_v48, 2 }
 0x41e   :  { %v4798_v59 = vrot.slane %v4797_v30, 1  ;;  %v12190_v50 = vadd.f32 %v7646_v44, %v7645_v34  ;;  %v16528_v63 = vcombine.low %v12068_v0, %v12060_v28  ;;  %v2171_v26 = vcombine.high %v2105_v5, %v2121_v31 }
 0x41f   :  { %v7641_v2 = vrot.slane %v12183_v41, 1  ;;  %v7660_v18 = vrot.slane %v7659_v8, 2  ;;  %v12200_v13 = vadd.f32 %v7672_v56, %v7671_v53  ;;  %v3690_v40 = vmax.f32 %v3688_v54, %v3689_v24 }
 0x420   :  { %v2146_v14 = vrot.slane %v16528_v63, %v10351_v16  ;;  %v4804_v43 = vadd.f32 %v4803_v52, %v4802_v23  ;;  %v3678_v34 = vmax.f32 %v3676_v36, %v3677_v51  ;;  %v3697_v44 = vmax.f32 %v3695_v22, %v3696_v42 }
 0x421   :  { %16529 = vst [vmem:[#allocation125_spill] sm:$0xff] %v12200_v13  ;;  %v4792_v61 = vadd.f32 %v4791_v20, %v4790_v10  ;;  %v4811_v55 = vadd.f32 %v4810_v11, %v4809_v37  ;;  %v6203_v7 = vcombine.high %v5849_v62, %v5849_v62  ;;  %v3685_v63 = vmax.f32 %v3683_v48, %v3684_v29 }
 0x422   :  { %v12202_v32 = vcombine.low %v2146_v14, %v2178_v27  ;;  %v4799_v17 = vadd.f32 %v4798_v59, %v4797_v30  ;;  %v7654_v46 = vadd.f32 %v7653_v45, %v7652_v49  ;;  %v6210_v15 = vrot.slane %v5849_v62, %v16473_v33 }
 0x423   :  { %v12206_v31 = vrot.slane %v2171_v26, %v10351_v16  ;;  %v12208_v5 = vpop.eup %9484  ;;  %v7667_v54 = vrot.slane %v12185_v12, 2  ;;  %v16531_v23 = vcombine.high %v12068_v0, %v12060_v28  ;;  %v12217_v10 = vcombine.high %v2146_v14, %v2178_v27 }
 0x424   :  { %16530 = vst [vmem:[#allocation126_spill] sm:$0xff] %v12208_v5  ;;  %v3691_v36 = vrot.slane %v3690_v40, 2  ;;  %v4805_v30 = vrot.slane %v4804_v43, 1  ;;  %v3679_v53 = vrot.slane %v3678_v34, 1  ;;  %v3698_v49 = vrot.slane %v3697_v44, 2 }
 0x425   :  { %v12215_v56 = vrot.slane %v16531_v23, %v10351_v16  ;;  %v3702_v37 = vsel %vm55_vm0, %v12202_v32, -inf  ;;  %v4812_v48 = vrot.slane %v4811_v55, 1  ;;  %9486 = vlog2.f32 %v4792_v61 }
 0x426   :  { %v6217_v22 = vrot.slane %v6203_v7, %v16473_v33  ;;  %v3686_v45 = vrot.slane %v3685_v63, 1  ;;  %9488 = vlog2.f32 %v4799_v17  ;;  %v12222_v24 = vadd.f32 %v7679_v25, %v7678_v39 }
 0x427   :  { %v6218_v28 = vcombine.high %v6210_v15, %v6210_v15  ;;  %v12226_v0 = vcombine.low %v12215_v56, %v12206_v31  ;;  %v7648_v52 = vrot.slane %v12190_v50, 1  ;;  %v3692_v27 = vmax.f32 %v3690_v40, %v3691_v36 }
 0x428   :  { %16532 = vst [vmem:[#allocation127_spill] sm:$0xff] %v12222_v24  ;;  %v3703_v51 = vrot.slane %v3702_v37, 4  ;;  %v3709_v42 = vsel %vm55_vm0, %v12217_v10, -inf  ;;  %v4806_v20 = vadd.f32 %v4805_v30, %v4804_v43  ;;  %v12231_v61 = vadd.f32 %v7660_v18, %v7659_v8  ;;  %v12249_v18 = vpop.permute.xlu0 %782 }
 0x429   :  { %v12233_v7 = vmax.f32 %v3678_v34, %v3679_v53  ;;  %v3699_v17 = vmax.f32 %v3697_v44, %v3698_v49  ;;  %v4813_v39 = vadd.f32 %v4812_v48, %v4811_v55  ;;  %v6219_v25 = vcombine.high %v6217_v22, %v6217_v22 }
 0x42a   :  { %16533 = vst [vmem:[#allocation128_spill] sm:$0xff] %v12231_v61  ;;  %v12236_v29 = vmax.f32 %v3685_v63, %v3686_v45  ;;  %v12239_v59 = vrot.slane %v6210_v15, %v16473_v33  ;;  %v12242_v40 = vrot.slane %v6218_v28, %v16473_v33  ;;  %v3710_v14 = vrot.slane %v3709_v42, 4  ;;  %v879_v45 = vpop.permute.xlu1 %878 }
 0x42b   :  { %v3716_v43 = vsel %vm55_vm0, %v12226_v0, -inf  ;;  %v12247_v8 = vadd.f32 %v7641_v2, %v12183_v41  ;;  %v7655_v62 = vrot.slane %v7654_v46, 1  ;;  %v3693_v55 = vrot.slane %v3692_v27, 1 }
 0x42c   :  { %v3704_v26 = vmax.f32 %v3702_v37, %v3703_v51  ;;  %9490 = vlog2.f32 %v4806_v20  ;;  %v12252_v34 = vrot.slane %v6217_v22, %v16473_v33  ;;  %v3700_v15 = vrot.slane %v3699_v17, 1 }
 0x42d   :  { %v4234_v44 = vsub.f32 %v12152_v21, %v12233_v7  ;;  %9492 = vlog2.f32 %v4813_v39  ;;  %v12257_v63 = vrot.slane %v6219_v25, %v16473_v33  ;;  %v3717_v23 = vrot.slane %v3716_v43, 4  ;;  %v831_v39 = vpop.permute.xlu0 %830 }
 0x42e   :  { %v4235_v41 = vsub.f32 %v12154_v60, %v12236_v29  ;;  %v12262_v2 = vadd.f32 %v7648_v52, %v12190_v50  ;;  %v6248_v36 = vcombine.high %v12239_v59, %v12239_v59  ;;  %v6250_v30 = vcombine.high %v12242_v40, %v12242_v40  ;;  %v12305_v37 = vpop.permute.xlu1 %974 }
 0x42f   :  { %v3711_v53 = vmax.f32 %v3709_v42, %v3710_v14  ;;  %v12268_v49 = vadd.f32 %v7655_v62, %v7654_v46  ;;  %v12271_v48 = vmax.f32 %v3692_v27, %v3693_v55  ;;  %v3705_v22 = vrot.slane %v3704_v26, 2 }
 0x430   :  { %v12274_v28 = vadd.f32 %v7667_v54, %v12185_v12  ;;  %v6249_v50 = vcombine.high %v12252_v34, %v12252_v34  ;;  %v12278_v52 = vmax.f32 %v3699_v17, %v3700_v15  ;;  %v4418_v51 = vmul.f32 1.442695, %v4234_v44 }
 0x431   :  { %16534 = vst [vmem:[#allocation129_spill] sm:$0xff] %v12268_v49  ;;  %v6251_v42 = vcombine.high %v12257_v63, %v12257_v63  ;;  %v6871_v46 = vrot.slane %v12239_v59, %v10399_v58  ;;  %v3718_v20 = vmax.f32 %v3716_v43, %v3717_v23  ;;  %v4420_v27 = vmul.f32 1.442695, %v4235_v41  ;;  %v16536_v23 = vld [vmem:[#allocation9_spill] sm:$0xff]  ;;  %v12316_v61 = vpop.permute.xlu0 %926 }
 0x432   :  { %16535 = vst [vmem:[#allocation130_spill] sm:$0xff] %v12274_v28  ;;  %v9487_v25 = vpop.eup %9486  ;;  %v6875_v12 = vrot.slane %v12242_v40, %v10399_v58  ;;  %v12287_v54 = vrot.slane %v6248_v36, %v10399_v58  ;;  %v12290_v17 = vrot.slane %v6250_v30, %v10399_v58  ;;  %v3712_v14 = vrot.slane %v3711_v53, 2 }
 0x433   :  { %v9489_v62 = vpop.eup %9488  ;;  %v6887_v55 = vrot.slane %v12252_v34, %v10399_v58  ;;  %v6891_v59 = vrot.slane %v12257_v63, %v10399_v58  ;;  %v3706_v43 = vmax.f32 %v3704_v26, %v3705_v22  ;;  %v4236_v15 = vsub.f32 %v12170_v4, %v12271_v48 }
 0x434   :  { %v4237_v40 = vsub.f32 %v12172_v38, %v12278_v52  ;;  %9494 = vpow2.f32 %v4418_v51  ;;  %v1938_v44 = vcombine.low %v12249_v18, %v879_v45  ;;  %v1922_v41 = vcombine.low %v16536_v23, %v831_v39 }
 0x435   :  { %v5523_v36 = vmul.f32 0.6931472, %v9487_v25  ;;  %v12303_v30 = vrot.slane %v6249_v50, %v10399_v58  ;;  %v3719_v34 = vrot.slane %v3718_v20, 2  ;;  %9496 = vpow2.f32 %v4420_v27 }
 0x436   :  { %v5525_v26 = vmul.f32 0.6931472, %v9489_v62  ;;  %v12308_v63 = vrot.slane %v6251_v42, %v10399_v58  ;;  %v3713_v22 = vmax.f32 %v3711_v53, %v3712_v14  ;;  %v1939_v11 = vcombine.high %v12249_v18, %v879_v45 }
 0x437   :  { %v12313_v51 = vcombine.high %v12215_v56, %v12206_v31  ;;  %v3707_v28 = vrot.slane %v3706_v43, 1  ;;  %v4422_v25 = vmul.f32 1.442695, %v4236_v15  ;;  %v1923_v50 = vcombine.high %v16536_v23, %v831_v39 }
 0x438   :  { %vm12319_vm8 = vcmp.eq.s32.totalorder %v6871_v46, %v10309_v57  ;;  %vm12324_vm9 = vcmp.eq.s32.totalorder %v6875_v12, %v10309_v57  ;;  %v4424_v18 = vmul.f32 1.442695, %v4237_v40  ;;  %v1946_v31 = vrot.slane %v1938_v44, %v10322_v1  ;;  %v12351_v44 = vpop.permute.xlu1 %1070 }
 0x439   :  { %16537 = vst [vmem:[#allocation9_spill] sm:$0xff] %v12313_v51  ;;  %v1930_v56 = vrot.slane %v1922_v41, %v10322_v1  ;;  %v9491_v45 = vpop.eup %9490  ;;  %v5746_v42 = vadd.f32 %v5523_v36, %v11955_v19  ;;  %vm7214_vm10 = vcmp.eq.s32.totalorder %v12287_v54, %v10309_v57  ;;  %vm7215_vm11 = vcmp.eq.s32.totalorder %v12290_v17, %v10309_v57  ;;  %v12359_v36 = vpop.permute.xlu0 %1022 }
 0x43a   :  { %v3720_v46 = vmax.f32 %v3718_v20, %v3719_v34  ;;  %v9493_v39 = vpop.eup %9492  ;;  %v5747_v12 = vadd.f32 %v5525_v26, %v11958_v3  ;;  %vm12337_vm12 = vcmp.eq.s32.totalorder %v6887_v55, %v10309_v57  ;;  %v3714_v62 = vrot.slane %v3713_v22, 1 }
 0x43b   :  { %v12342_v15 = vrot.slane %v1939_v11, %v10322_v1  ;;  %v12344_v19 = vmax.f32 %v3706_v43, %v3707_v28  ;;  %v3723_v40 = vsel %vm55_vm0, %v12313_v51, -inf  ;;  %9498 = vpow2.f32 %v4422_v25 }
 0x43c   :  { %v12349_v20 = vrot.slane %v1923_v50, %v10322_v1  ;;  %vm12354_vm13 = vcmp.eq.s32.totalorder %v6891_v59, %v10309_v57  ;;  %9500 = vpow2.f32 %v4424_v18  ;;  %v1986_v55 = vcombine.low %v1930_v56, %v1946_v31 }
 0x43d   :  { %16544 = vst [vmem:[#allocation131_spill] sm:$0xff] %v12344_v19  ;;  %v1987_v11 = vcombine.high %v1930_v56, %v1946_v31  ;;  %v5527_v23 = vmul.f32 0.6931472, %v9491_v45  ;;  %v5529_v28 = vmul.f32 0.6931472, %v9493_v39  ;;  %v8340_v43 = vsub.f32 %v12247_v8, %v5746_v42 }
 0x43e   :  { %v3721_v41 = vrot.slane %v3720_v46, 1  ;;  %v8341_v34 = vsub.f32 %v12262_v2, %v5747_v12  ;;  %v12362_v26 = vmax.f32 %v3713_v22, %v3714_v62  ;;  %v3724_v25 = vrot.slane %v3723_v40, 4 }
 0x43f   :  { %v1970_v59 = vcombine.low %v12305_v37, %v12351_v44  ;;  %vm7218_vm14 = vcmp.eq.s32.totalorder %v12303_v30, %v10309_v57  ;;  %vm7219_vm15 = vcmp.eq.s32.totalorder %v12308_v63, %v10309_v57  ;;  %v4238_v8 = vsub.f32 %v12202_v32, %v12344_v19 }
 0x440   :  { %16547 = vst [vmem:[#allocation132_spill] sm:$0xff] %v12362_v26  ;;  %v1994_v2 = vrot.slane %v1986_v55, %v10351_v16  ;;  %v2001_v22 = vrot.slane %v1987_v11, %v10351_v16  ;;  %v1954_v31 = vcombine.low %v12316_v61, %v12359_v36  ;;  %v12381_v45 = vadd.f32 %v5527_v23, %v11983_v6 }
 0x441   :  { %v9495_v56 = vpop.eup %9494  ;;  %v12384_v42 = vadd.f32 %v5529_v28, %v11988_v47  ;;  %v12386_v39 = vmax.f32 %v8340_v43, -11.512925  ;;  %v12388_v12 = vmax.f32 %v3720_v46, %v3721_v41  ;;  %v12390_v55 = vmax.f32 %v8341_v34, -11.512925 }
 0x442   :  { %16548 = vst [vmem:[#allocation133_spill] sm:$0xff] %v12381_v45  ;;  %v9497_v62 = vpop.eup %9496  ;;  %v12392_v11 = vmax.f32 %v3723_v40, %v3724_v25  ;;  %v4239_v18 = vsub.f32 %v12217_v10, %v12362_v26  ;;  %v1978_v50 = vrot.slane %v1970_v59, %v10322_v1  ;;  %v4426_v19 = vmul.f32 1.442695, %v4238_v8  ;;  %v12534_v45 = vpop.permute.xlu0 %836 }
 0x443   :  { %16549 = vst [vmem:[#allocation134_spill] sm:$0xff] %v12384_v42  ;;  %16550 = vst [vmem:[#allocation135_spill] sm:$0xff] %v12386_v39  ;;  %v7340_v6 = vsel %vm12319_vm8, %v12152_v21, 0.0  ;;  %v7341_v47 = vsel %vm12324_vm9, %v12154_v60, 0.0  ;;  %v7342_v46 = vsel %vm7214_vm10, %v12170_v4, 0.0  ;;  %v4954_v40 = vsel %vm55_vm0, %v9495_v56, 0.0 }
 0x444   :  { %16551 = vst [vmem:[#allocation136_spill] sm:$0xff] %v12388_v12  ;;  %16552 = vst [vmem:[#allocation137_spill] sm:$0xff] %v12390_v55  ;;  %v7343_v23 = vsel %vm7215_vm11, %v12172_v38, 0.0  ;;  %v7344_v21 = vsel %vm12337_vm12, %v12202_v32, 0.0  ;;  %v1962_v27 = vrot.slane %v1954_v31, %v10322_v1  ;;  %v4240_v60 = vsub.f32 %v12226_v0, %v12388_v12 }
 0x445   :  { %16553 = vst [vmem:[#allocation138_spill] sm:$0xff] %v12392_v11  ;;  %v4961_v53 = vsel %vm55_vm0, %v9497_v62, 0.0  ;;  %v7345_v4 = vsel %vm12354_vm13, %v12217_v10, 0.0  ;;  %v7346_v38 = vsel %vm7218_vm14, %v12226_v0, 0.0  ;;  %v4428_v54 = vmul.f32 1.442695, %v4239_v18 }
 0x446   :  { %v7804_v17 = vsel %vm55_vm0, %v7340_v6, 0.0  ;;  %v2018_v32 = vcombine.low %v1962_v27, %v1978_v50  ;;  %v2019_v14 = vcombine.high %v1962_v27, %v1978_v50  ;;  %9502 = vpow2.f32 %v4426_v19 }
 0x447   :  { %v4955_v28 = vrot.slane %v4954_v40, 4  ;;  %v12431_v43 = vsel %vm7219_vm15, %v12313_v51, 0.0  ;;  %v7811_v10 = vsel %vm55_vm0, %v7341_v47, 0.0  ;;  %v4962_v41 = vrot.slane %v4961_v53, 4 }
 0x448   :  { %16554 = vst [vmem:[#allocation139_spill] sm:$0xff] %v12431_v43  ;;  %v9499_v3 = vpop.eup %9498  ;;  %v7818_v30 = vsel %vm55_vm0, %v7342_v46, 0.0  ;;  %v2026_v0 = vrot.slane %v2018_v32, %v10351_v16  ;;  %v2033_v34 = vrot.slane %v2019_v14, %v10351_v16  ;;  %v4430_v59 = vmul.f32 1.442695, %v4240_v60 }
 0x449   :  { %v9501_v25 = vpop.eup %9500  ;;  %v7805_v19 = vrot.slane %v7804_v17, 4  ;;  %v1971_v8 = vcombine.high %v12305_v37, %v12351_v44  ;;  %v1955_v63 = vcombine.high %v12316_v61, %v12359_v36  ;;  %9504 = vpow2.f32 %v4428_v54 }
 0x44a   :  { %v7812_v50 = vrot.slane %v7811_v10, 4  ;;  %v12441_v18 = vcombine.low %v1994_v2, %v2026_v0  ;;  %v12443_v31 = vcombine.high %v1994_v2, %v2026_v0  ;;  %v4956_v56 = vadd.f32 %v4955_v28, %v4954_v40 }
 0x44b   :  { %v4968_v62 = vsel %vm55_vm0, %v9499_v3, 0.0  ;;  %v7819_v6 = vrot.slane %v7818_v30, 4  ;;  %v7825_v47 = vsel %vm55_vm0, %v7343_v23, 0.0  ;;  %v4963_v46 = vadd.f32 %v4962_v41, %v4961_v53 }
 0x44c   :  { %v4975_v27 = vsel %vm55_vm0, %v9501_v25, 0.0  ;;  %v12448_v60 = vcombine.low %v2001_v22, %v2033_v34  ;;  %v3618_v61 = vsel %vm55_vm0, %v12441_v18, -inf  ;;  %v7832_v37 = vsel %vm55_vm0, %v7344_v21, 0.0 }
 0x44d   :  { %v1985_v44 = vrot.slane %v1971_v8, %v10322_v1  ;;  %v1969_v36 = vrot.slane %v1955_v63, %v10322_v1  ;;  %v3625_v2 = vsel %vm55_vm0, %v12443_v31, -inf  ;;  %9506 = vpow2.f32 %v4430_v59 }
 0x44e   :  { %v4969_v40 = vrot.slane %v4968_v62, 4  ;;  %v7806_v23 = vadd.f32 %v7805_v19, %v7804_v17  ;;  %v12457_v53 = vcombine.high %v2001_v22, %v2033_v34  ;;  %v4957_v54 = vrot.slane %v4956_v56, 2 }
 0x44f   :  { %v4976_v32 = vrot.slane %v4975_v27, 4  ;;  %v7813_v14 = vadd.f32 %v7812_v50, %v7811_v10  ;;  %v3619_v28 = vrot.slane %v3618_v61, 4  ;;  %v4964_v3 = vrot.slane %v4963_v46, 2 }
 0x450   :  { %v7826_v41 = vrot.slane %v7825_v47, 4  ;;  %v3626_v0 = vrot.slane %v3625_v2, 4  ;;  %v3632_v21 = vsel %vm55_vm0, %v12448_v60, -inf  ;;  %v7820_v25 = vadd.f32 %v7819_v6, %v7818_v30 }
 0x451   :  { %v7833_v8 = vrot.slane %v7832_v37, 4  ;;  %v7839_v63 = vsel %vm55_vm0, %v7345_v4, 0.0  ;;  %v2034_v12 = vcombine.low %v1969_v36, %v1985_v44  ;;  %v4970_v59 = vadd.f32 %v4969_v40, %v4968_v62 }
 0x452   :  { %v7807_v26 = vrot.slane %v7806_v23, 2  ;;  %v12463_v22 = vsel %vm55_vm0, %v7346_v38, 0.0  ;;  %v3639_v17 = vsel %vm55_vm0, %v12457_v53, -inf  ;;  %v4958_v10 = vadd.f32 %v4957_v54, %v4956_v56 }
 0x453   :  { %v4977_v34 = vadd.f32 %v4976_v32, %v4975_v27  ;;  %v3620_v19 = vmax.f32 %v3618_v61, %v3619_v28  ;;  %v3633_v50 = vrot.slane %v3632_v21, 4  ;;  %v12467_v43 = vpop.eup %9502  ;;  %v4965_v51 = vadd.f32 %v4964_v3, %v4963_v46 }
 0x454   :  { %16555 = vst [vmem:[#allocation140_spill] sm:$0xff] %v12467_v43  ;;  %v7814_v30 = vrot.slane %v7813_v14, 2  ;;  %v12469_v6 = vadd.f32 %v7826_v41, %v7825_v47  ;;  %v3627_v4 = vmax.f32 %v3625_v2, %v3626_v0  ;;  %v7821_v11 = vrot.slane %v7820_v25, 2  ;;  %v5848_v2 = vld [vmem:[%s16031_s1 + $0x30] sm:$0xff] }
 0x455   :  { %v7840_v62 = vrot.slane %v7839_v63, 4  ;;  %v2042_v40 = vrot.slane %v2034_v12, %v10351_v16  ;;  %v3640_v38 = vrot.slane %v3639_v17, 4  ;;  %v4971_v55 = vrot.slane %v4970_v59, 2 }
 0x456   :  { %v12472_v39 = vadd.f32 %v7833_v8, %v7832_v37  ;;  %v16556_v56 = vcombine.low %v12349_v20, %v12342_v15  ;;  %v2035_v61 = vcombine.high %v1969_v36, %v1985_v44  ;;  %v12478_v54 = vpop.eup %9504  ;;  %v4959_v46 = vrot.slane %v4958_v10, 1 }
 0x457   :  { %16557 = vst [vmem:[#allocation141_spill] sm:$0xff] %v12478_v54  ;;  %v4978_v47 = vrot.slane %v4977_v34, 2  ;;  %v3621_v32 = vrot.slane %v3620_v19, 2  ;;  %v3634_v12 = vmax.f32 %v3632_v21, %v3633_v50  ;;  %v4966_v28 = vrot.slane %v4965_v51, 1 }
 0x458   :  { %v2010_v27 = vrot.slane %v16556_v56, %v10351_v16  ;;  %v12483_v3 = vadd.f32 %v7807_v26, %v7806_v23  ;;  %v7847_v37 = vrot.slane %v12463_v22, 4  ;;  %v3628_v41 = vrot.slane %v3627_v4, 2 }
 0x459   :  { %v12486_v0 = vadd.f32 %v7814_v30, %v7813_v14  ;;  %v7828_v44 = vrot.slane %v12469_v6, 2  ;;  %v3641_v8 = vmax.f32 %v3639_v17, %v3640_v38  ;;  %v4972_v56 = vadd.f32 %v4971_v55, %v4970_v59 }
 0x45a   :  { %v12489_v36 = vcombine.low %v2010_v27, %v2042_v40  ;;  %v6154_v54 = vcombine.high %v5848_v2, %v5848_v2  ;;  %v12492_v43 = vrot.slane %v2035_v61, %v10351_v16  ;;  %v12494_v42 = vcombine.high %v2010_v27, %v2042_v40  ;;  %v12496_v21 = vpop.eup %9506 }
 0x45b   :  { %16558 = vst [vmem:[#allocation142_spill] sm:$0xff] %v12496_v21  ;;  %v4960_v26 = vadd.f32 %v4959_v46, %v4958_v10  ;;  %v4979_v23 = vadd.f32 %v4978_v47, %v4977_v34  ;;  %v3622_v50 = vmax.f32 %v3620_v19, %v3621_v32  ;;  %v3635_v49 = vrot.slane %v3634_v12, 2 }
 0x45c   :  { %v4967_v14 = vadd.f32 %v4966_v28, %v4965_v51  ;;  %v12498_v30 = vadd.f32 %v7840_v62, %v7839_v63  ;;  %v16560_v17 = vcombine.high %v12349_v20, %v12342_v15  ;;  %v3629_v59 = vmax.f32 %v3627_v4, %v3628_v41 }
 0x45d   :  { %v7822_v38 = vadd.f32 %v7821_v11, %v7820_v25  ;;  %v6161_v40 = vrot.slane %v5848_v2, %v16473_v33  ;;  %v3642_v27 = vrot.slane %v3641_v8, 2  ;;  %v3646_v10 = vsel %vm55_vm0, %v12489_v36, -inf }
 0x45e   :  { %16559 = vst [vmem:[#allocation143_spill] sm:$0xff] %v12498_v30  ;;  %v12504_v55 = vrot.slane %v16560_v17, %v10351_v16  ;;  %v4973_v34 = vrot.slane %v4972_v56, 1  ;;  %v6168_v19 = vrot.slane %v6154_v54, %v16473_v33  ;;  %v3653_v15 = vsel %vm55_vm0, %v12494_v42, -inf }
 0x45f   :  { %v4980_v20 = vrot.slane %v4979_v23, 1  ;;  %9508 = vlog2.f32 %v4960_v26  ;;  %v3623_v63 = vrot.slane %v3622_v50, 1  ;;  %v3636_v11 = vmax.f32 %v3634_v12, %v3635_v49 }
 0x460   :  { %v12512_v51 = vcombine.low %v12504_v55, %v12492_v43  ;;  %9510 = vlog2.f32 %v4967_v14  ;;  %v7835_v25 = vrot.slane %v12472_v39, 2  ;;  %v3630_v4 = vrot.slane %v3629_v59, 1 }
 0x461   :  { %v3647_v62 = vrot.slane %v3646_v10, 4  ;;  %v7809_v61 = vrot.slane %v12483_v3, 1  ;;  %v12519_v54 = vadd.f32 %v7847_v37, %v12463_v22  ;;  %v3643_v46 = vmax.f32 %v3641_v8, %v3642_v27 }
 0x462   :  { %v3654_v47 = vrot.slane %v3653_v15, 4  ;;  %v4974_v2 = vadd.f32 %v4973_v34, %v4972_v56  ;;  %v7816_v32 = vrot.slane %v12486_v0, 1  ;;  %v6169_v28 = vcombine.high %v6161_v40, %v6161_v40 }
 0x463   :  { %16561 = vst [vmem:[#allocation144_spill] sm:$0xff] %v12519_v54  ;;  %v3660_v41 = vsel %vm55_vm0, %v12512_v51, -inf  ;;  %v4981_v49 = vadd.f32 %v4980_v20, %v4979_v23  ;;  %v6170_v12 = vcombine.high %v6168_v19, %v6168_v19  ;;  %v12524_v26 = vmax.f32 %v3622_v50, %v3623_v63  ;;  %v12532_v54 = vpop.permute.xlu1 %788 }
 0x464   :  { %v3637_v14 = vrot.slane %v3636_v11, 1  ;;  %v7823_v17 = vrot.slane %v7822_v38, 1  ;;  %v12527_v21 = vadd.f32 %v7828_v44, %v12469_v6  ;;  %v12529_v22 = vmax.f32 %v3629_v59, %v3630_v4 }
 0x465   :  { %v3648_v37 = vmax.f32 %v3646_v10, %v3647_v62  ;;  %v6177_v8 = vrot.slane %v6161_v40, %v16473_v33  ;;  %v3644_v56 = vrot.slane %v3643_v46, 1  ;;  %v3655_v27 = vmax.f32 %v3653_v15, %v3654_v47 }
 0x466   :  { %16562 = vst [vmem:[#allocation145_spill] sm:$0xff] %v12527_v21  ;;  %v3661_v34 = vrot.slane %v3660_v41, 4  ;;  %9512 = vlog2.f32 %v4974_v2  ;;  %v12537_v23 = vadd.f32 %v7835_v25, %v12472_v39  ;;  %v6184_v50 = vrot.slane %v6168_v19, %v16473_v33 }
 0x467   :  { %v6191_v6 = vrot.slane %v6169_v28, %v16473_v33  ;;  %9514 = vlog2.f32 %v4981_v49  ;;  %v6198_v44 = vrot.slane %v6170_v12, %v16473_v33  ;;  %v12542_v59 = vmax.f32 %v3636_v11, %v3637_v14  ;;  %v12562_v28 = vpop.permute.xlu1 %884  ;;  %v12564_v49 = vpop.permute.xlu0 %932 }
 0x468   :  { %16563 = vst [vmem:[#allocation146_spill] sm:$0xff] %v12537_v23  ;;  %v4226_v40 = vsub.f32 %v12441_v18, %v12524_v26  ;;  %v12547_v10 = vadd.f32 %v7809_v61, %v12483_v3  ;;  %v12550_v15 = vadd.f32 %v7816_v32, %v12486_v0  ;;  %v3649_v39 = vrot.slane %v3648_v37, 2 }
 0x469   :  { %v4227_v19 = vsub.f32 %v12443_v31, %v12529_v22  ;;  %v6199_v20 = vcombine.high %v6177_v8, %v6177_v8  ;;  %v12554_v63 = vmax.f32 %v3643_v46, %v3644_v56  ;;  %v3656_v25 = vrot.slane %v3655_v27, 2 }
 0x46a   :  { %v3662_v4 = vmax.f32 %v3660_v41, %v3661_v34  ;;  %v12556_v11 = vadd.f32 %v7823_v17, %v7822_v38  ;;  %v6200_v47 = vcombine.high %v6184_v50, %v6184_v50  ;;  %v6201_v2 = vcombine.high %v6191_v6, %v6191_v6 }
 0x46b   :  { %v6202_v61 = vcombine.high %v6198_v44, %v6198_v44  ;;  %v4228_v0 = vsub.f32 %v12448_v60, %v12542_v59  ;;  %v4402_v32 = vmul.f32 1.442695, %v4226_v40  ;;  %v6839_v41 = vrot.slane %v6177_v8, %v10399_v58 }
 0x46c   :  { %16564 = vst [vmem:[#allocation147_spill] sm:$0xff] %v12556_v11  ;;  %v9509_v46 = vpop.eup %9508  ;;  %v6843_v38 = vrot.slane %v6191_v6, %v10399_v58  ;;  %v3650_v12 = vmax.f32 %v3648_v37, %v3649_v39  ;;  %v4404_v14 = vmul.f32 1.442695, %v4227_v19  ;;  %v12569_v56 = vrot.slane %v6199_v20, %v10399_v58 }
 0x46d   :  { %v9511_v17 = vpop.eup %9510  ;;  %v3657_v34 = vmax.f32 %v3655_v27, %v3656_v25  ;;  %v3663_v62 = vrot.slane %v3662_v4, 2  ;;  %v4229_v40 = vsub.f32 %v12457_v53, %v12554_v63  ;;  %v12574_v3 = vrot.slane %v6201_v2, %v10399_v58 }
 0x46e   :  { %v6855_v21 = vrot.slane %v6184_v50, %v10399_v58  ;;  %v6859_v8 = vrot.slane %v6198_v44, %v10399_v58  ;;  %v12579_v6 = vrot.slane %v6200_v47, %v10399_v58  ;;  %v5571_v37 = vmul.f32 0.6931472, %v9509_v46 }
 0x46f   :  { %v12582_v39 = vrot.slane %v6202_v61, %v10399_v58  ;;  %9516 = vpow2.f32 %v4402_v32  ;;  %v4406_v27 = vmul.f32 1.442695, %v4228_v0  ;;  %v5573_v19 = vmul.f32 0.6931472, %v9511_v17  ;;  %v12600_v0 = vpop.permute.xlu1 %980  ;;  %v1029_v32 = vpop.permute.xlu0 %1028 }
 0x470   :  { %vm12585_vm2 = vcmp.eq.s32.totalorder %v6839_v41, %v10309_v57  ;;  %vm12590_vm3 = vcmp.eq.s32.totalorder %v6843_v38, %v10309_v57  ;;  %v3651_v44 = vrot.slane %v3650_v12, 1  ;;  %9518 = vpow2.f32 %v4404_v14  ;;  %v16572_v41 = vld [vmem:[#allocation10_spill] sm:$0xff] }
 0x471   :  { %vm7206_vm4 = vcmp.eq.s32.totalorder %v12569_v56, %v10309_v57  ;;  %v12598_v25 = vcombine.high %v12504_v55, %v12492_v43  ;;  %v3658_v47 = vrot.slane %v3657_v34, 1  ;;  %v3664_v2 = vmax.f32 %v3662_v4, %v3663_v62 }
 0x472   :  { %v4408_v61 = vmul.f32 1.442695, %v4229_v40  ;;  %vm7207_vm5 = vcmp.eq.s32.totalorder %v12574_v3, %v10309_v57  ;;  %vm12605_vm1 = vcmp.eq.s32.totalorder %v6855_v21, %v10309_v57  ;;  %v2330_v38 = vcombine.low %v16572_v41, %v12534_v45 }
 0x473   :  { %16569 = vst [vmem:[#allocation148_spill] sm:$0xff] %v12598_v25  ;;  %v2346_v43 = vcombine.low %v12532_v54, %v12562_v28  ;;  %v9513_v55 = vpop.eup %9512  ;;  %v5770_v4 = vadd.f32 %v5571_v37, %v12233_v7  ;;  %vm12615_vm6 = vcmp.eq.s32.totalorder %v6859_v8, %v10309_v57  ;;  %9520 = vpow2.f32 %v4406_v27 }
 0x474   :  { %v2331_v21 = vcombine.high %v16572_v41, %v12534_v45  ;;  %v2347_v14 = vcombine.high %v12532_v54, %v12562_v28  ;;  %v9515_v17 = vpop.eup %9514  ;;  %v5771_v40 = vadd.f32 %v5573_v19, %v12236_v29  ;;  %v12624_v23 = vmax.f32 %v3650_v12, %v3651_v44 }
 0x475   :  { %v2362_v30 = vcombine.low %v12564_v49, %v1029_v32  ;;  %v2363_v7 = vcombine.high %v12564_v49, %v1029_v32  ;;  %v12628_v8 = vmax.f32 %v3657_v34, %v3658_v47  ;;  %v3665_v37 = vrot.slane %v3664_v2, 1  ;;  %v12642_v34 = vpop.permute.xlu1 %1076 }
 0x476   :  { %16575 = vst [vmem:[#allocation10_spill] sm:$0xff] %v12624_v23  ;;  %v3667_v27 = vsel %vm55_vm0, %v12598_v25, -inf  ;;  %9522 = vpow2.f32 %v4408_v61  ;;  %v5575_v45 = vmul.f32 0.6931472, %v9513_v55  ;;  %vm7210_vm7 = vcmp.eq.s32.totalorder %v12579_v6, %v10309_v57 }
 0x477   :  { %16576 = vst [vmem:[#allocation149_spill] sm:$0xff] %v12628_v8  ;;  %vm7211_vm8 = vcmp.eq.s32.totalorder %v12582_v39, %v10309_v57  ;;  %v2354_v29 = vrot.slane %v2346_v43, %v10322_v1  ;;  %v5577_v54 = vmul.f32 0.6931472, %v9515_v17  ;;  %v8364_v28 = vsub.f32 %v12547_v10, %v5770_v4 }
 0x478   :  { %v2338_v49 = vrot.slane %v2330_v38, %v10322_v1  ;;  %v12640_v12 = vrot.slane %v2331_v21, %v10322_v1  ;;  %v8365_v19 = vsub.f32 %v12550_v15, %v5771_v40  ;;  %v3668_v44 = vrot.slane %v3667_v27, 4 }
 0x479   :  { %v4230_v47 = vsub.f32 %v12489_v36, %v12624_v23  ;;  %v12648_v61 = vrot.slane %v2347_v14, %v10322_v1  ;;  %v12650_v32 = vmax.f32 %v3664_v2, %v3665_v37  ;;  %v4231_v10 = vsub.f32 %v12494_v42, %v12628_v8 }
 0x47a   :  { %v2370_v41 = vrot.slane %v2362_v30, %v10322_v1  ;;  %v12656_v38 = vrot.slane %v2363_v7, %v10322_v1  ;;  %v12659_v43 = vadd.f32 %v5575_v45, %v12271_v48  ;;  %v2394_v15 = vcombine.low %v2338_v49, %v2354_v29 }
 0x47b   :  { %16577 = vst [vmem:[#allocation150_spill] sm:$0xff] %v12650_v32  ;;  %v2395_v55 = vcombine.high %v2338_v49, %v2354_v29  ;;  %v2378_v4 = vcombine.low %v12600_v0, %v12642_v34  ;;  %v12664_v21 = vadd.f32 %v5577_v54, %v12278_v52  ;;  %v12666_v2 = vmax.f32 %v8364_v28, -11.512925 }
 0x47c   :  { %16578 = vst [vmem:[#allocation151_spill] sm:$0xff] %v12659_v43  ;;  %v7332_v30 = vsel %vm12585_vm2, %v12441_v18, 0.0  ;;  %v7333_v14 = vsel %vm12590_vm3, %v12443_v31, 0.0  ;;  %v9517_v48 = vpop.eup %9516  ;;  %v12674_v17 = vmax.f32 %v8365_v19, -11.512925  ;;  %v12676_v40 = vmax.f32 %v3667_v27, %v3668_v44 }
 0x47d   :  { %16579 = vst [vmem:[#allocation152_spill] sm:$0xff] %v12664_v21  ;;  %16580 = vst [vmem:[#allocation153_spill] sm:$0xff] %v12666_v2  ;;  %v4410_v7 = vmul.f32 1.442695, %v4230_v47  ;;  %v7334_v52 = vsel %vm7206_vm4, %v12448_v60, 0.0  ;;  %v9519_v37 = vpop.eup %9518  ;;  %v4232_v20 = vsub.f32 %v12512_v51, %v12650_v32  ;;  %v7335_v31 = vsel %vm7207_vm5, %v12457_v53, 0.0 }
 0x47e   :  { %16581 = vst [vmem:[#allocation154_spill] sm:$0xff] %v12674_v17  ;;  %16582 = vst [vmem:[#allocation155_spill] sm:$0xff] %v12676_v40  ;;  %v4412_v18 = vmul.f32 1.442695, %v4231_v10  ;;  %v7336_v50 = vsel %vm12605_vm1, %v12489_v36, 0.0  ;;  %v7337_v27 = vsel %vm12615_vm6, %v12494_v42, 0.0  ;;  %v2386_v45 = vrot.slane %v2378_v4, %v10322_v1 }
 0x47f   :  { %v7748_v60 = vsel %vm55_vm0, %v7332_v30, 0.0  ;;  %v7755_v56 = vsel %vm55_vm0, %v7333_v14, 0.0  ;;  %v4898_v29 = vsel %vm55_vm0, %v9517_v48, 0.0  ;;  %v7338_v53 = vsel %vm7210_vm7, %v12512_v51, 0.0 }
 0x480   :  { %v12706_v36 = vsel %vm7211_vm8, %v12598_v25, 0.0  ;;  %v7762_v42 = vsel %vm55_vm0, %v7334_v52, 0.0  ;;  %v9521_v3 = vpop.eup %9520  ;;  %9524 = vpow2.f32 %v4410_v7  ;;  %v4905_v46 = vsel %vm55_vm0, %v9519_v37, 0.0 }
 0x481   :  { %16583 = vst [vmem:[#allocation156_spill] sm:$0xff] %v12706_v36  ;;  %v2426_v62 = vcombine.low %v2370_v41, %v2386_v45  ;;  %v2427_v54 = vcombine.high %v2370_v41, %v2386_v45  ;;  %9526 = vpow2.f32 %v4412_v18  ;;  %v4414_v28 = vmul.f32 1.442695, %v4232_v20 }
 0x482   :  { %v7749_v49 = vrot.slane %v7748_v60, 4  ;;  %v7756_v19 = vrot.slane %v7755_v56, 4  ;;  %v4899_v51 = vrot.slane %v4898_v29, 4  ;;  %v2402_v44 = vrot.slane %v2394_v15, %v10351_v16 }
 0x483   :  { %v9523_v6 = vpop.eup %9522  ;;  %v2434_v39 = vrot.slane %v2426_v62, %v10351_v16  ;;  %v2441_v47 = vrot.slane %v2427_v54, %v10351_v16  ;;  %v4906_v10 = vrot.slane %v4905_v46, 4  ;;  %v4912_v4 = vsel %vm55_vm0, %v9521_v3, 0.0 }
 0x484   :  { %v7763_v30 = vrot.slane %v7762_v42, 4  ;;  %v2409_v14 = vrot.slane %v2395_v55, %v10351_v16  ;;  %v7769_v41 = vsel %vm55_vm0, %v7335_v31, 0.0  ;;  %v7776_v48 = vsel %vm55_vm0, %v7336_v50, 0.0 }
 0x485   :  { %v12717_v7 = vcombine.low %v2402_v44, %v2434_v39  ;;  %v12719_v52 = vcombine.high %v2402_v44, %v2434_v39  ;;  %9528 = vpow2.f32 %v4414_v28  ;;  %v4919_v15 = vsel %vm55_vm0, %v9523_v6, 0.0 }
 0x486   :  { %v12722_v37 = vcombine.low %v2409_v14, %v2441_v47  ;;  %v12724_v20 = vcombine.high %v2409_v14, %v2441_v47  ;;  %v4900_v18 = vadd.f32 %v4899_v51, %v4898_v29  ;;  %v4913_v45 = vrot.slane %v4912_v4, 4 }
 0x487   :  { %v7750_v3 = vadd.f32 %v7749_v49, %v7748_v60  ;;  %v7757_v62 = vadd.f32 %v7756_v19, %v7755_v56  ;;  %v4907_v55 = vadd.f32 %v4906_v10, %v4905_v46  ;;  %v7770_v54 = vrot.slane %v7769_v41, 4 }
 0x488   :  { %v3786_v31 = vsel %vm55_vm0, %v12717_v7, -inf  ;;  %v3793_v50 = vsel %vm55_vm0, %v12719_v52, -inf  ;;  %v4920_v44 = vrot.slane %v4919_v15, 4  ;;  %v2379_v28 = vcombine.high %v12600_v0, %v12642_v34 }
 0x489   :  { %v3787_v6 = vrot.slane %v3786_v31, 4  ;;  %v3794_v39 = vrot.slane %v3793_v50, 4  ;;  %v12732_v47 = vadd.f32 %v7763_v30, %v7762_v42  ;;  %v7777_v29 = vrot.slane %v7776_v48, 4 }
 0x48a   :  { %v3800_v60 = vsel %vm55_vm0, %v12722_v37, -inf  ;;  %v3807_v56 = vsel %vm55_vm0, %v12724_v20, -inf  ;;  %v4901_v46 = vrot.slane %v4900_v18, 2  ;;  %v4914_v49 = vadd.f32 %v4913_v45, %v4912_v4 }
 0x48b   :  { %v3788_v19 = vmax.f32 %v3786_v31, %v3787_v6  ;;  %v3795_v51 = vmax.f32 %v3793_v50, %v3794_v39  ;;  %v4908_v10 = vrot.slane %v4907_v55, 2  ;;  %v7783_v14 = vsel %vm55_vm0, %v7337_v27, 0.0 }
 0x48c   :  { %v3801_v32 = vrot.slane %v3800_v60, 4  ;;  %v3808_v0 = vrot.slane %v3807_v56, 4  ;;  %v4921_v34 = vadd.f32 %v4920_v44, %v4919_v15  ;;  %v2393_v42 = vrot.slane %v2379_v28, %v10322_v1 }
 0x48d   :  { %v3789_v30 = vrot.slane %v3788_v19, 2  ;;  %v3796_v8 = vrot.slane %v3795_v51, 2  ;;  %v12740_v23 = vpop.eup %9524  ;;  %v7751_v36 = vrot.slane %v7750_v3, 2  ;;  %v12743_v25 = vsel %vm55_vm0, %v7338_v53, 0.0 }
 0x48e   :  { %16584 = vst [vmem:[#allocation157_spill] sm:$0xff] %v12740_v23  ;;  %v3802_v40 = vmax.f32 %v3800_v60, %v3801_v32  ;;  %v3809_v4 = vmax.f32 %v3807_v56, %v3808_v0  ;;  %v12745_v45 = vpop.eup %9526  ;;  %v4902_v31 = vadd.f32 %v4901_v46, %v4900_v18  ;;  %v4915_v50 = vrot.slane %v4914_v49, 2 }
 0x48f   :  { %16585 = vst [vmem:[#allocation158_spill] sm:$0xff] %v12745_v45  ;;  %v7758_v27 = vrot.slane %v7757_v62, 2  ;;  %v3790_v6 = vmax.f32 %v3788_v19, %v3789_v30  ;;  %v4909_v39 = vadd.f32 %v4908_v10, %v4907_v55  ;;  %v12747_v15 = vadd.f32 %v7770_v54, %v7769_v41  ;;  %v5851_v41 = vld [vmem:[%s16031_s1 + $0x48] sm:$0xff] }
 0x490   :  { %v3797_v44 = vmax.f32 %v3795_v51, %v3796_v8  ;;  %v3803_v28 = vrot.slane %v3802_v40, 2  ;;  %v4922_v17 = vrot.slane %v4921_v34, 2  ;;  %v7784_v2 = vrot.slane %v7783_v14, 4 }
 0x491   :  { %v2442_v23 = vcombine.low %v12656_v38, %v2393_v42  ;;  %v3810_v21 = vrot.slane %v3809_v4, 2  ;;  %v7765_v53 = vrot.slane %v12732_v47, 2  ;;  %v12751_v32 = vadd.f32 %v7777_v29, %v7776_v48 }
 0x492   :  { %v7791_v60 = vrot.slane %v12743_v25, 4  ;;  %v3804_v18 = vmax.f32 %v3802_v40, %v3803_v28  ;;  %v12754_v56 = vpop.eup %9528  ;;  %v4903_v46 = vrot.slane %v4902_v31, 1  ;;  %v4916_v55 = vadd.f32 %v4915_v50, %v4914_v49 }
 0x493   :  { %16586 = vst [vmem:[#allocation159_spill] sm:$0xff] %v12754_v56  ;;  %v2410_v8 = vcombine.low %v12640_v12, %v12648_v61  ;;  %v3791_v54 = vrot.slane %v3790_v6, 1  ;;  %v4910_v19 = vrot.slane %v4909_v39, 1  ;;  %v7752_v51 = vadd.f32 %v7751_v36, %v7750_v3 }
 0x494   :  { %v2443_v48 = vcombine.high %v12656_v38, %v2393_v42  ;;  %v3798_v29 = vrot.slane %v3797_v44, 1  ;;  %v4923_v10 = vadd.f32 %v4922_v17, %v4921_v34  ;;  %v12762_v0 = vadd.f32 %v7758_v27, %v7757_v62 }
 0x495   :  { %v2450_v40 = vrot.slane %v2442_v23, %v10351_v16  ;;  %v3811_v30 = vmax.f32 %v3809_v4, %v3810_v21  ;;  %v7772_v49 = vrot.slane %v12747_v15, 2  ;;  %v2411_v50 = vcombine.high %v12640_v12, %v12648_v61 }
 0x496   :  { %v6301_v28 = vcombine.high %v5851_v41, %v5851_v41  ;;  %v3805_v56 = vrot.slane %v3804_v18, 1  ;;  %v4904_v45 = vadd.f32 %v4903_v46, %v4902_v31  ;;  %v4917_v11 = vrot.slane %v4916_v55, 1 }
 0x497   :  { %v2418_v36 = vrot.slane %v2410_v8, %v10351_v16  ;;  %v12769_v3 = vmax.f32 %v3790_v6, %v3791_v54  ;;  %v4911_v38 = vadd.f32 %v4910_v19, %v4909_v39  ;;  %v6308_v17 = vrot.slane %v5851_v41, %v16473_v33  ;;  %v12812_v54 = vpop.permute.xlu1 %882 }
 0x498   :  { %v12773_v62 = vrot.slane %v2443_v48, %v10351_v16  ;;  %v12775_v23 = vmax.f32 %v3797_v44, %v3798_v29  ;;  %v4924_v21 = vrot.slane %v4923_v10, 1  ;;  %v3812_v61 = vrot.slane %v3811_v30, 1 }
 0x499   :  { %v12777_v34 = vcombine.low %v2418_v36, %v2450_v40  ;;  %v12779_v12 = vcombine.high %v2418_v36, %v2450_v40  ;;  %v7766_v42 = vadd.f32 %v7765_v53, %v12732_v47  ;;  %v12782_v4 = vadd.f32 %v7784_v2, %v7783_v14  ;;  %v12804_v53 = vpop.permute.xlu0 %786 }
 0x49a   :  { %v12785_v31 = vrot.slane %v2411_v50, %v10351_v16  ;;  %v12787_v27 = vmax.f32 %v3804_v18, %v3805_v56  ;;  %v4918_v6 = vadd.f32 %v4917_v11, %v4916_v55  ;;  %9530 = vlog2.f32 %v4904_v45 }
 0x49b   :  { %16587 = vst [vmem:[#allocation160_spill] sm:$0xff] %v12782_v4  ;;  %v6315_v39 = vrot.slane %v6301_v28, %v16473_v33  ;;  %v4250_v44 = vsub.f32 %v12717_v7, %v12769_v3  ;;  %9532 = vlog2.f32 %v4911_v38  ;;  %v6316_v46 = vcombine.high %v6308_v17, %v6308_v17  ;;  %v12833_v43 = vpop.permute.xlu1 %978 }
 0x49c   :  { %v12794_v8 = vcombine.low %v12785_v31, %v12773_v62  ;;  %v4251_v2 = vsub.f32 %v12719_v52, %v12775_v23  ;;  %v4925_v47 = vadd.f32 %v4924_v21, %v4923_v10  ;;  %v12798_v14 = vmax.f32 %v3811_v30, %v3812_v61 }
 0x49d   :  { %v3814_v11 = vsel %vm55_vm0, %v12777_v34, -inf  ;;  %v3821_v45 = vsel %vm55_vm0, %v12779_v12, -inf  ;;  %v7753_v18 = vrot.slane %v7752_v51, 1  ;;  %v7779_v56 = vrot.slane %v12751_v32, 2 }
 0x49e   :  { %v12808_v55 = vadd.f32 %v7791_v60, %v12743_v25  ;;  %v4252_v41 = vsub.f32 %v12722_v37, %v12787_v27  ;;  %9534 = vlog2.f32 %v4918_v6  ;;  %v7760_v19 = vrot.slane %v12762_v0, 1 }
 0x49f   :  { %v6317_v48 = vcombine.high %v6315_v39, %v6315_v39  ;;  %v4450_v29 = vmul.f32 1.442695, %v4250_v44  ;;  %v3815_v10 = vrot.slane %v3814_v11, 4  ;;  %v3822_v40 = vrot.slane %v3821_v45, 4 }
 0x4a0   :  { %16588 = vst [vmem:[#allocation161_spill] sm:$0xff] %v12808_v55  ;;  %v3828_v30 = vsel %vm55_vm0, %v12794_v8, -inf  ;;  %v4452_v50 = vmul.f32 1.442695, %v4251_v2  ;;  %9536 = vlog2.f32 %v4925_v47  ;;  %v6324_v25 = vrot.slane %v6308_v17, %v16473_v33  ;;  %v835_v17 = vpop.permute.xlu0 %834 }
 0x4a1   :  { %v6338_v60 = vrot.slane %v6316_v46, %v16473_v33  ;;  %v4253_v28 = vsub.f32 %v12724_v20, %v12798_v14  ;;  %v7767_v36 = vrot.slane %v7766_v42, 1  ;;  %v12822_v38 = vadd.f32 %v7772_v49, %v12747_v15 }
 0x4a2   :  { %v12825_v21 = vadd.f32 %v7779_v56, %v12751_v32  ;;  %v4454_v61 = vmul.f32 1.442695, %v4252_v41  ;;  %v12827_v6 = vadd.f32 %v7753_v18, %v7752_v51  ;;  %v6331_v44 = vrot.slane %v6315_v39, %v16473_v33  ;;  %v16592_v56 = vld [vmem:[#allocation11_spill] sm:$0xff] }
 0x4a3   :  { %16589 = vst [vmem:[#allocation162_spill] sm:$0xff] %v12822_v38  ;;  %v3829_v2 = vrot.slane %v3828_v30, 4  ;;  %9538 = vpow2.f32 %v4450_v29  ;;  %v12831_v46 = vrot.slane %v6317_v48, %v16473_v33  ;;  %v3816_v47 = vmax.f32 %v3814_v11, %v3815_v10  ;;  %v12862_v38 = vpop.permute.xlu1 %1074 }
 0x4a4   :  { %16590 = vst [vmem:[#allocation163_spill] sm:$0xff] %v12825_v21  ;;  %v3823_v55 = vmax.f32 %v3821_v45, %v3822_v40  ;;  %9540 = vpow2.f32 %v4452_v50  ;;  %v12836_v15 = vadd.f32 %v7760_v19, %v12762_v0  ;;  %v6346_v32 = vcombine.high %v6324_v25, %v6324_v25  ;;  %v12860_v45 = vpop.permute.xlu0 %930 }
 0x4a5   :  { %v6348_v49 = vcombine.high %v6338_v60, %v6338_v60  ;;  %v4456_v51 = vmul.f32 1.442695, %v4253_v28  ;;  %v12838_v18 = vadd.f32 %v7767_v36, %v7766_v42  ;;  %9542 = vpow2.f32 %v4454_v61 }
 0x4a6   :  { %v2210_v39 = vcombine.low %v12804_v53, %v12812_v54  ;;  %v2194_v41 = vcombine.low %v16592_v56, %v835_v17  ;;  %v6347_v48 = vcombine.high %v6331_v44, %v6331_v44  ;;  %v3830_v29 = vmax.f32 %v3828_v30, %v3829_v2 }
 0x4a7   :  { %16591 = vst [vmem:[#allocation164_spill] sm:$0xff] %v12838_v18  ;;  %v9531_v10 = vpop.eup %9530  ;;  %v6349_v0 = vcombine.high %v12831_v46, %v12831_v46  ;;  %v6935_v19 = vrot.slane %v6324_v25, %v10399_v58  ;;  %v3817_v42 = vrot.slane %v3816_v47, 2  ;;  %v3824_v40 = vrot.slane %v3823_v55, 2 }
 0x4a8   :  { %v9533_v50 = vpop.eup %9532  ;;  %v6939_v28 = vrot.slane %v6338_v60, %v10399_v58  ;;  %v12850_v36 = vrot.slane %v6346_v32, %v10399_v58  ;;  %v12853_v61 = vrot.slane %v6348_v49, %v10399_v58  ;;  %9544 = vpow2.f32 %v4456_v51 }
 0x4a9   :  { %v2211_v30 = vcombine.high %v12804_v53, %v12812_v54  ;;  %v2218_v2 = vrot.slane %v2210_v39, %v10322_v1  ;;  %v2195_v11 = vcombine.high %v16592_v56, %v835_v17  ;;  %v2202_v25 = vrot.slane %v2194_v41, %v10322_v1 }
 0x4aa   :  { %v5555_v60 = vmul.f32 0.6931472, %v9531_v10  ;;  %v6951_v32 = vrot.slane %v6331_v44, %v10399_v58  ;;  %v6955_v49 = vrot.slane %v12831_v46, %v10399_v58  ;;  %v3831_v51 = vrot.slane %v3830_v29, 2 }
 0x4ab   :  { %v9535_v21 = vpop.eup %9534  ;;  %v5557_v18 = vmul.f32 0.6931472, %v9533_v50  ;;  %v12868_v53 = vrot.slane %v6347_v48, %v10399_v58  ;;  %v3818_v54 = vmax.f32 %v3816_v47, %v3817_v42  ;;  %v3825_v17 = vmax.f32 %v3823_v55, %v3824_v40  ;;  %v12908_v50 = vpop.permute.xlu0 %1026 }
 0x4ac   :  { %v12871_v39 = vrot.slane %v6349_v0, %v10399_v58  ;;  %vm12874_vm9 = vcmp.eq.s32.totalorder %v6935_v19, %v10309_v57  ;;  %vm12879_vm10 = vcmp.eq.s32.totalorder %v6939_v28, %v10309_v57  ;;  %v2242_v46 = vcombine.low %v12833_v43, %v12862_v38 }
 0x4ad   :  { %v9537_v41 = vpop.eup %9536  ;;  %v12887_v55 = vcombine.high %v12785_v31, %v12773_v62  ;;  %v12890_v47 = vrot.slane %v2211_v30, %v10322_v1  ;;  %v12893_v48 = vrot.slane %v2195_v11, %v10322_v1  ;;  %v2258_v10 = vcombine.low %v2202_v25, %v2218_v2 }
 0x4ae   :  { %v5762_v0 = vadd.f32 %v5555_v60, %v12524_v26  ;;  %vm7230_vm11 = vcmp.eq.s32.totalorder %v12850_v36, %v10309_v57  ;;  %vm7231_vm12 = vcmp.eq.s32.totalorder %v12853_v61, %v10309_v57  ;;  %v3832_v19 = vmax.f32 %v3830_v29, %v3831_v51 }
 0x4af   :  { %16597 = vst [vmem:[#allocation11_spill] sm:$0xff] %v12887_v55  ;;  %v5763_v62 = vadd.f32 %v5557_v18, %v12529_v22  ;;  %vm12902_vm13 = vcmp.eq.s32.totalorder %v6951_v32, %v10309_v57  ;;  %v3819_v11 = vrot.slane %v3818_v54, 1  ;;  %v3826_v40 = vrot.slane %v3825_v17, 1 }
 0x4b0   :  { %v9539_v42 = vpop.eup %9538  ;;  %v5559_v30 = vmul.f32 0.6931472, %v9535_v21  ;;  %v5561_v60 = vmul.f32 0.6931472, %v9537_v41  ;;  %v2259_v4 = vcombine.high %v2202_v25, %v2218_v2  ;;  %v12911_v29 = vrot.slane %v2242_v46, %v10322_v1 }
 0x4b1   :  { %v9541_v28 = vpop.eup %9540  ;;  %vm12914_vm14 = vcmp.eq.s32.totalorder %v6955_v49, %v10309_v57  ;;  %v3835_v18 = vsel %vm55_vm0, %v12887_v55, -inf  ;;  %v12921_v32 = vrot.slane %v2258_v10, %v10351_v16  ;;  %v8356_v25 = vsub.f32 %v12827_v6, %v5762_v0 }
 0x4b2   :  { %v9543_v2 = vpop.eup %9542  ;;  %vm7234_vm15 = vcmp.eq.s32.totalorder %v12868_v53, %v10309_v57  ;;  %vm7235_vm2 = vcmp.eq.s32.totalorder %v12871_v39, %v10309_v57  ;;  %v3833_v49 = vrot.slane %v3832_v19, 1  ;;  %v5066_v46 = vsel %vm55_vm0, %v9539_v42, 0.0 }
 0x4b3   :  { %v2226_v41 = vcombine.low %v12860_v45, %v12908_v50  ;;  %v8357_v10 = vsub.f32 %v12836_v15, %v5763_v62  ;;  %v12936_v51 = vmax.f32 %v3818_v54, %v3819_v11  ;;  %v12938_v21 = vmax.f32 %v3825_v17, %v3826_v40 }
 0x4b4   :  { %v5073_v6 = vsel %vm55_vm0, %v9541_v28, 0.0  ;;  %v12942_v0 = vadd.f32 %v5559_v30, %v12542_v59  ;;  %v12945_v26 = vadd.f32 %v5561_v60, %v12554_v63  ;;  %v3836_v24 = vrot.slane %v3835_v18, 4 }
 0x4b5   :  { %16602 = vst [vmem:[#allocation165_spill] sm:$0xff] %v12936_v51  ;;  %16603 = vst [vmem:[#allocation166_spill] sm:$0xff] %v12938_v21  ;;  %v12948_v42 = vrot.slane %v2259_v4, %v10351_v16  ;;  %v9545_v13 = vpop.eup %9544  ;;  %v5067_v5 = vrot.slane %v5066_v46, 4  ;;  %v5080_v15 = vsel %vm55_vm0, %v9543_v2, 0.0  ;;  %v7356_v54 = vsel %vm12874_vm9, %v12717_v7, 0.0 }
 0x4b6   :  { %16604 = vst [vmem:[#allocation167_spill] sm:$0xff] %v12942_v0  ;;  %16605 = vst [vmem:[#allocation168_spill] sm:$0xff] %v12945_v26  ;;  %v7357_v59 = vsel %vm12879_vm10, %v12719_v52, 0.0  ;;  %v12957_v17 = vmax.f32 %v3832_v19, %v3833_v49  ;;  %v5074_v63 = vrot.slane %v5073_v6, 4  ;;  %v7358_v4 = vsel %vm7230_vm11, %v12722_v37, 0.0 }
 0x4b7   :  { %v12964_v62 = vrot.slane %v2226_v41, %v10322_v1  ;;  %v12966_v11 = vmax.f32 %v8356_v25, -11.512925  ;;  %v12968_v40 = vmax.f32 %v8357_v10, -11.512925  ;;  %v4254_v7 = vsub.f32 %v12777_v34, %v12936_v51 }
 0x4b8   :  { %16606 = vst [vmem:[#allocation169_spill] sm:$0xff] %v12957_v17  ;;  %v4255_v52 = vsub.f32 %v12779_v12, %v12938_v21  ;;  %v5081_v56 = vrot.slane %v5080_v15, 4  ;;  %v5087_v44 = vsel %vm55_vm0, %v9545_v13, 0.0  ;;  %v7916_v19 = vsel %vm55_vm0, %v7356_v54, 0.0 }
 0x4b9   :  { %16607 = vst [vmem:[#allocation170_spill] sm:$0xff] %v12966_v11  ;;  %16608 = vst [vmem:[#allocation171_spill] sm:$0xff] %v12968_v40  ;;  %v7923_v37 = vsel %vm55_vm0, %v7357_v59, 0.0  ;;  %v12977_v36 = vmax.f32 %v3835_v18, %v3836_v24  ;;  %v5068_v28 = vadd.f32 %v5067_v5, %v5066_v46  ;;  %v7359_v30 = vsel %vm7231_vm12, %v12724_v20, 0.0 }
 0x4ba   :  { %v7930_v60 = vsel %vm55_vm0, %v7358_v4, 0.0  ;;  %v4256_v2 = vsub.f32 %v12794_v8, %v12957_v17  ;;  %v5075_v25 = vadd.f32 %v5074_v63, %v5073_v6  ;;  %v7360_v13 = vsel %vm12902_vm13, %v12777_v34, 0.0 }
 0x4bb   :  { %16609 = vst [vmem:[#allocation172_spill] sm:$0xff] %v12977_v36  ;;  %v2290_v24 = vcombine.low %v12964_v62, %v12911_v29  ;;  %v4458_v18 = vmul.f32 1.442695, %v4254_v7  ;;  %v5088_v5 = vrot.slane %v5087_v44, 4  ;;  %v7917_v49 = vrot.slane %v7916_v19, 4 }
 0x4bc   :  { %v7924_v46 = vrot.slane %v7923_v37, 4  ;;  %v4460_v41 = vmul.f32 1.442695, %v4255_v52  ;;  %v5082_v61 = vadd.f32 %v5081_v56, %v5080_v15  ;;  %v7361_v20 = vsel %vm12914_vm14, %v12779_v12, 0.0 }
 0x4bd   :  { %v7931_v10 = vrot.slane %v7930_v60, 4  ;;  %v5069_v54 = vrot.slane %v5068_v28, 2  ;;  %v7362_v34 = vsel %vm7234_vm15, %v12794_v8, 0.0  ;;  %v13002_v31 = vsel %vm7235_vm2, %v12887_v55, 0.0 }
 0x4be   :  { %16610 = vst [vmem:[#allocation173_spill] sm:$0xff] %v13002_v31  ;;  %v7937_v6 = vsel %vm55_vm0, %v7359_v30, 0.0  ;;  %v4462_v15 = vmul.f32 1.442695, %v4256_v2  ;;  %v5076_v59 = vrot.slane %v5075_v25, 2  ;;  %v7944_v22 = vsel %vm55_vm0, %v7360_v13, 0.0 }
 0x4bf   :  { %v2298_v12 = vrot.slane %v2290_v24, %v10351_v16  ;;  %9546 = vpow2.f32 %v4458_v18  ;;  %v5089_v63 = vadd.f32 %v5088_v5, %v5087_v44  ;;  %v7918_v4 = vadd.f32 %v7917_v49, %v7916_v19 }
 0x4c0   :  { %v7925_v7 = vadd.f32 %v7924_v46, %v7923_v37  ;;  %9548 = vpow2.f32 %v4460_v41  ;;  %v5083_v8 = vrot.slane %v5082_v61, 2  ;;  %v7932_v53 = vadd.f32 %v7931_v10, %v7930_v60 }
 0x4c1   :  { %v7938_v52 = vrot.slane %v7937_v6, 4  ;;  %v5070_v56 = vadd.f32 %v5069_v54, %v5068_v28  ;;  %v7945_v39 = vrot.slane %v7944_v22, 4  ;;  %v7951_v17 = vsel %vm55_vm0, %v7361_v20, 0.0 }
 0x4c2   :  { %v2227_v30 = vcombine.high %v12860_v45, %v12908_v50  ;;  %9550 = vpow2.f32 %v4462_v15  ;;  %v5077_v2 = vadd.f32 %v5076_v59, %v5075_v25  ;;  %v2291_v13 = vcombine.high %v12964_v62, %v12911_v29  ;;  %v5850_v29 = vld [vmem:[%s16031_s1 + $0x40] sm:$0xff] }
 0x4c3   :  { %v13013_v44 = vcombine.low %v12921_v32, %v2298_v12  ;;  %v5090_v19 = vrot.slane %v5089_v63, 2  ;;  %v7919_v37 = vrot.slane %v7918_v4, 2  ;;  %v7926_v24 = vrot.slane %v7925_v7, 2 }
 0x4c4   :  { %v7958_v60 = vsel %vm55_vm0, %v7362_v34, 0.0  ;;  %v5084_v28 = vadd.f32 %v5083_v8, %v5082_v61  ;;  %v7933_v18 = vrot.slane %v7932_v53, 2  ;;  %v7939_v5 = vadd.f32 %v7938_v52, %v7937_v6 }
 0x4c5   :  { %v7952_v49 = vrot.slane %v7951_v17, 4  ;;  %v5071_v46 = vrot.slane %v5070_v56, 1  ;;  %v7946_v41 = vadd.f32 %v7945_v39, %v7944_v22  ;;  %v16611_v45 = vcombine.high %v12833_v43, %v12862_v38 }
 0x4c6   :  { %v2241_v62 = vrot.slane %v2227_v30, %v10322_v1  ;;  %v5078_v25 = vrot.slane %v5077_v2, 1  ;;  %v7959_v20 = vrot.slane %v7958_v60, 4  ;;  %v2305_v61 = vrot.slane %v2291_v13, %v10351_v16 }
 0x4c7   :  { %v2257_v50 = vrot.slane %v16611_v45, %v10322_v1  ;;  %v3730_v10 = vsel %vm55_vm0, %v13013_v44, -inf  ;;  %v5091_v54 = vadd.f32 %v5090_v19, %v5089_v63  ;;  %v7920_v34 = vadd.f32 %v7919_v37, %v7918_v4 }
 0x4c8   :  { %v16612_v43 = vcombine.low %v12893_v48, %v12890_v47  ;;  %v13032_v6 = vcombine.high %v12921_v32, %v2298_v12  ;;  %v5085_v15 = vrot.slane %v5084_v28, 1  ;;  %v7927_v59 = vadd.f32 %v7926_v24, %v7925_v7 }
 0x4c9   :  { %v7940_v22 = vrot.slane %v7939_v5, 2  ;;  %v6252_v8 = vcombine.high %v5850_v29, %v5850_v29  ;;  %v5072_v52 = vadd.f32 %v5071_v46, %v5070_v56  ;;  %v13034_v39 = vadd.f32 %v7952_v49, %v7951_v17 }
 0x4ca   :  { %v2282_v38 = vrot.slane %v16612_v43, %v10351_v16  ;;  %v2306_v30 = vcombine.low %v2241_v62, %v2257_v50  ;;  %v3731_v13 = vrot.slane %v3730_v10, 4  ;;  %v5079_v45 = vadd.f32 %v5078_v25, %v5077_v2 }
 0x4cb   :  { %16613 = vst [vmem:[#allocation174_spill] sm:$0xff] %v13034_v39  ;;  %v7934_v63 = vadd.f32 %v7933_v18, %v7932_v53  ;;  %v6259_v4 = vrot.slane %v5850_v29, %v16473_v33  ;;  %v13038_v19 = vcombine.low %v12948_v42, %v2305_v61  ;;  %v5092_v37 = vrot.slane %v5091_v54, 1  ;;  %v16625_v39 = vld [vmem:[#allocation63_spill] sm:$0xff] }
 0x4cc   :  { %v7947_v43 = vrot.slane %v7946_v41, 2  ;;  %v13040_v32 = vadd.f32 %v7959_v20, %v7958_v60  ;;  %v3737_v12 = vsel %vm55_vm0, %v13032_v6, -inf  ;;  %v13044_v7 = vpop.eup %9546  ;;  %v5086_v17 = vadd.f32 %v5085_v15, %v5084_v28 }
 0x4cd   :  { %16615 = vst [vmem:[#allocation176_spill] sm:$0xff] %v13044_v7  ;;  %v7921_v56 = vrot.slane %v7920_v34, 1  ;;  %v16616_v53 = vcombine.high %v12893_v48, %v12890_v47  ;;  %v6266_v24 = vrot.slane %v6252_v8, %v16473_v33  ;;  %v13053_v18 = vpop.eup %9548  ;;  %9552 = vlog2.f32 %v5072_v52 }
 0x4ce   :  { %16614 = vst [vmem:[#allocation175_spill] sm:$0xff] %v13040_v32  ;;  %16617 = vst [vmem:[#allocation177_spill] sm:$0xff] %v13053_v18  ;;  %v2314_v60 = vrot.slane %v2306_v30, %v10351_v16  ;;  %v13057_v49 = vcombine.high %v12948_v42, %v2305_v61  ;;  %v3732_v46 = vmax.f32 %v3730_v10, %v3731_v13  ;;  %9554 = vlog2.f32 %v5079_v45 }
 0x4cf   :  { %v13050_v2 = vrot.slane %v16616_v53, %v10351_v16  ;;  %v6267_v28 = vcombine.high %v6259_v4, %v6259_v4  ;;  %v3738_v29 = vrot.slane %v3737_v12, 4  ;;  %v3744_v25 = vsel %vm55_vm0, %v13038_v19, -inf  ;;  %v13061_v47 = vpop.eup %9550 }
 0x4d0   :  { %16618 = vst [vmem:[#allocation178_spill] sm:$0xff] %v13061_v47  ;;  %v5093_v48 = vadd.f32 %v5092_v37, %v5091_v54  ;;  %v7928_v20 = vrot.slane %v7927_v59, 1  ;;  %v13063_v15 = vadd.f32 %v7940_v22, %v7939_v5  ;;  %v2307_v8 = vcombine.high %v2241_v62, %v2257_v50 }
 0x4d1   :  { %9556 = vlog2.f32 %v5086_v17  ;;  %v7935_v52 = vrot.slane %v7934_v63, 1  ;;  %v6268_v30 = vcombine.high %v6266_v24, %v6266_v24  ;;  %v13066_v42 = vrot.slane %v6259_v4, %v16473_v33 }
 0x4d2   :  { %16619 = vst [vmem:[#allocation179_spill] sm:$0xff] %v13063_v15  ;;  %v13068_v61 = vcombine.low %v2282_v38, %v2314_v60  ;;  %v3733_v10 = vrot.slane %v3732_v46, 2  ;;  %v3745_v13 = vrot.slane %v3744_v25, 4  ;;  %v3751_v45 = vsel %vm55_vm0, %v13057_v49, -inf }
 0x4d3   :  { %v13072_v53 = vadd.f32 %v7921_v56, %v7920_v34  ;;  %v13074_v54 = vadd.f32 %v7947_v43, %v7946_v41  ;;  %v13077_v5 = vrot.slane %v6267_v28, %v16473_v33  ;;  %v3739_v50 = vmax.f32 %v3737_v12, %v3738_v29 }
 0x4d4   :  { %9558 = vlog2.f32 %v5093_v48  ;;  %v13079_v62 = vadd.f32 %v7928_v20, %v7927_v59  ;;  %v13082_v22 = vrot.slane %v6266_v24, %v16473_v33  ;;  %v2321_v4 = vrot.slane %v2307_v8, %v10351_v16 }
 0x4d5   :  { %16620 = vst [vmem:[#allocation180_spill] sm:$0xff] %v13074_v54  ;;  %v13087_v17 = vrot.slane %v6268_v30, %v16473_v33  ;;  %v13089_v34 = vcombine.high %v2282_v38, %v2314_v60  ;;  %v3752_v41 = vrot.slane %v3751_v45, 4  ;;  %v6297_v43 = vcombine.high %v13066_v42, %v13066_v42 }
 0x4d6   :  { %v3734_v12 = vmax.f32 %v3732_v46, %v3733_v10  ;;  %v3746_v56 = vmax.f32 %v3744_v25, %v3745_v13  ;;  %v3758_v59 = vsel %vm55_vm0, %v13068_v61, -inf  ;;  %v13095_v24 = vadd.f32 %v7935_v52, %v7934_v63 }
 0x4d7   :  { %v6299_v28 = vcombine.high %v13077_v5, %v13077_v5  ;;  %v3740_v29 = vrot.slane %v3739_v50, 2  ;;  %v3327_v48 = vrot.slane %v11029_v35, 2  ;;  %v6298_v60 = vcombine.high %v13082_v22, %v13082_v22 }
 0x4d8   :  { %16621 = vst [vmem:[#allocation181_spill] sm:$0xff] %v13095_v24  ;;  %v6903_v46 = vrot.slane %v13066_v42, %v10399_v58  ;;  %v13106_v25 = vcombine.low %v13050_v2, %v2321_v4  ;;  %v6300_v63 = vcombine.high %v13087_v17, %v13087_v17  ;;  %v3753_v20 = vmax.f32 %v3751_v45, %v3752_v41 }
 0x4d9   :  { %v3759_v8 = vrot.slane %v3758_v59, 4  ;;  %v3765_v52 = vsel %vm55_vm0, %v13089_v34, -inf  ;;  %v6907_v30 = vrot.slane %v13077_v5, %v10399_v58  ;;  %v13115_v10 = vrot.slane %v6297_v43, %v10399_v58 }
 0x4da   :  { %v3735_v13 = vrot.slane %v3734_v12, 1  ;;  %v3747_v37 = vrot.slane %v3746_v56, 2  ;;  %v9553_v42 = vpop.eup %9552  ;;  %v13118_v38 = vrot.slane %v6299_v28, %v10399_v58  ;;  %v6919_v21 = vrot.slane %v13082_v22, %v10399_v58 }
 0x4db   :  { %v3741_v45 = vmax.f32 %v3739_v50, %v3740_v29  ;;  %v3328_v41 = vmax.f32 %v11029_v35, %v3327_v48  ;;  %v9555_v51 = vpop.eup %9554  ;;  %v3766_v5 = vrot.slane %v3765_v52, 4  ;;  %v3772_v43 = vsel %vm55_vm0, %v13106_v25, -inf  ;;  %v16623_v50 = vld [vmem:[#allocation61_spill] sm:$0xff] }
 0x4dc   :  { %v16622_v24 = vrot.slane %v11011_v9, 4  ;;  %v13131_v28 = vrot.slane %v6298_v60, %v10399_v58  ;;  %v3754_v32 = vrot.slane %v3753_v20, 2  ;;  %v3760_v22 = vmax.f32 %v3758_v59, %v3759_v8 }
 0x4dd   :  { %v4583_v35 = vsel %vm55_vm0, %v16623_v50, 0.0  ;;  %v5603_v48 = vmul.f32 0.6931472, %v9553_v42  ;;  %v13135_v31 = vmax.f32 %v3734_v12, %v3735_v13  ;;  %v3748_v15 = vmax.f32 %v3746_v56, %v3747_v37 }
 0x4de   :  { %v3333_v54 = vmax.f32 %v11011_v9, %v16622_v24  ;;  %v9557_v29 = vpop.eup %9556  ;;  %v4590_v55 = vsel %vm55_vm0, %v16625_v39, 0.0  ;;  %v5605_v47 = vmul.f32 0.6931472, %v9555_v51  ;;  %v3742_v18 = vrot.slane %v3741_v45, 1 }
 0x4df   :  { %16624 = vst [vmem:[#allocation61_spill] sm:$0xff] %v13135_v31  ;;  %v3773_v7 = vrot.slane %v3772_v43, 4  ;;  %v3329_v9 = vrot.slane %v3328_v41, 1  ;;  %v13140_v24 = vrot.slane %v6300_v63, %v10399_v58  ;;  %v3767_v60 = vmax.f32 %v3765_v52, %v3766_v5 }
 0x4e0   :  { %v3334_v59 = vrot.slane %v3333_v54, 2  ;;  %v4584_v8 = vrot.slane %v4583_v35, 4  ;;  %v13143_v50 = vcombine.high %v13050_v2, %v2321_v4  ;;  %v3755_v12 = vmax.f32 %v3753_v20, %v3754_v32 }
 0x4e1   :  { %v9559_v36 = vpop.eup %9558  ;;  %v3761_v13 = vrot.slane %v3760_v22, 2  ;;  %v4591_v37 = vrot.slane %v4590_v55, 4  ;;  %v5607_v56 = vmul.f32 0.6931472, %v9557_v29  ;;  %v13146_v39 = vadd.f32 %v5603_v48, %v12769_v3  ;;  %v16627_v3 = vld [vmem:[#allocation58_spill] sm:$0xff] }
 0x4e2   :  { %16626 = vst [vmem:[#allocation63_spill] sm:$0xff] %v13143_v50  ;;  %v3749_v51 = vrot.slane %v3748_v15, 1  ;;  %v4242_v42 = vsub.f32 %v13013_v44, %v13135_v31  ;;  %v5787_v63 = vadd.f32 %v5605_v47, %v12775_v23  ;;  %v13151_v52 = vmax.f32 %v3741_v45, %v3742_v18 }
 0x4e3   :  { %v3774_v5 = vmax.f32 %v3772_v43, %v3773_v7  ;;  %v13153_v40 = vmax.f32 %v3328_v41, %v3329_v9  ;;  %v5609_v2 = vmul.f32 0.6931472, %v9559_v36  ;;  %v3768_v4 = vrot.slane %v3767_v60, 2  ;;  %v16647_v7 = vld [vmem:[#allocation65_spill] sm:$0xff] }
 0x4e4   :  { %v3335_v32 = vmax.f32 %v3333_v54, %v3334_v59  ;;  %v4585_v20 = vadd.f32 %v4584_v8, %v4583_v35  ;;  %v3756_v11 = vrot.slane %v3755_v12, 1  ;;  %v3762_v29 = vmax.f32 %v3760_v22, %v3761_v13 }
 0x4e5   :  { %v4184_v48 = vsub.f32 %v16627_v3, %v13153_v40  ;;  %v4592_v26 = vadd.f32 %v4591_v37, %v4590_v55  ;;  %v13157_v0 = vmax.f32 %v3748_v15, %v3749_v51  ;;  %v4434_v33 = vmul.f32 1.442695, %v4242_v42 }
 0x4e6   :  { %v3336_v31 = vrot.slane %v3335_v32, 1  ;;  %v4586_v23 = vrot.slane %v4585_v20, 2  ;;  %vm13160_vm3 = vcmp.eq.s32.totalorder %v6903_v46, %v10309_v57  ;;  %vm13165_vm4 = vcmp.eq.s32.totalorder %v6907_v30, %v10309_v57 }
 0x4e7   :  { %v3775_v18 = vrot.slane %v3774_v5, 2  ;;  %v4243_v47 = vsub.f32 %v13032_v6, %v13151_v52  ;;  %v4318_v55 = vmul.f32 1.442695, %v4184_v48  ;;  %v4593_v15 = vrot.slane %v4592_v26, 2 }
 0x4e8   :  { %vm7222_vm5 = vcmp.eq.s32.totalorder %v13115_v10, %v10309_v57  ;;  %v3769_v54 = vmax.f32 %v3767_v60, %v3768_v4  ;;  %v3779_v46 = vsel %vm55_vm0, %v13143_v50, -inf  ;;  %v13175_v45 = vmax.f32 %v3335_v32, %v3336_v31 }
 0x4e9   :  { %v4587_v41 = vadd.f32 %v4586_v23, %v4585_v20  ;;  %vm7223_vm1 = vcmp.eq.s32.totalorder %v13118_v38, %v10309_v57  ;;  %vm13180_vm6 = vcmp.eq.s32.totalorder %v6919_v21, %v10309_v57  ;;  %v13184_v43 = vmax.f32 %v3755_v12, %v3756_v11  ;;  %v16637_v21 = vld [vmem:[#allocation60_spill] sm:$0xff]  ;;  %v16638_v12 = vld [vmem:[#allocation19_spill] sm:$0xff] }
 0x4ea   :  { %v3763_v22 = vrot.slane %v3762_v29, 1  ;;  %9560 = vpow2.f32 %v4318_v55  ;;  %v4594_v35 = vadd.f32 %v4593_v15, %v4592_v26  ;;  %v16634_v9 = vrot.slane %v13087_v17, %v10399_v58 }
 0x4eb   :  { %v4244_v60 = vsub.f32 %v13038_v19, %v13157_v0  ;;  %9562 = vpow2.f32 %v4434_v33  ;;  %v4185_v59 = vsub.f32 %v16637_v21, %v13175_v45  ;;  %v4588_v11 = vrot.slane %v4587_v41, 1  ;;  %v16649_v21 = vld [vmem:[#allocation21_spill] sm:$0xff] }
 0x4ec   :  { %vm13190_vm7 = vcmp.eq.s32.totalorder %v16634_v9, %v10309_v57  ;;  %vm7226_vm8 = vcmp.eq.s32.totalorder %v13131_v28, %v10309_v57  ;;  %vm7227_vm9 = vcmp.eq.s32.totalorder %v13140_v24, %v10309_v57  ;;  %v3776_v26 = vmax.f32 %v3774_v5, %v3775_v18 }
 0x4ed   :  { %v4436_v17 = vmul.f32 1.442695, %v4243_v47  ;;  %v4595_v8 = vrot.slane %v4594_v35, 1  ;;  %v4597_v13 = vsel %vm55_vm0, %v16638_v12, 0.0  ;;  %v8380_v37 = vsub.f32 %v13072_v53, %v13146_v39  ;;  %v16651_v12 = vld [vmem:[#allocation64_spill] sm:$0xff] }
 0x4ee   :  { %v8381_v33 = vsub.f32 %v13079_v62, %v5787_v63  ;;  %v3770_v51 = vrot.slane %v3769_v54, 1  ;;  %v4320_v42 = vmul.f32 1.442695, %v4185_v59  ;;  %v13207_v4 = vmax.f32 %v3762_v29, %v3763_v22 }
 0x4ef   :  { %v4245_v32 = vsub.f32 %v13057_v49, %v13184_v43  ;;  %v4589_v20 = vadd.f32 %v4588_v11, %v4587_v41  ;;  %v4598_v3 = vrot.slane %v4597_v13, 4  ;;  %v13212_v5 = vadd.f32 %v5607_v56, %v12787_v27 }
 0x4f0   :  { %16639 = vst [vmem:[#allocation58_spill] sm:$0xff] %v13207_v4  ;;  %v13215_v48 = vadd.f32 %v5609_v2, %v12798_v14  ;;  %v3780_v23 = vrot.slane %v3779_v46, 4  ;;  %v4596_v18 = vadd.f32 %v4595_v8, %v4594_v35  ;;  %v3777_v53 = vrot.slane %v3776_v26, 1 }
 0x4f1   :  { %16640 = vst [vmem:[#allocation60_spill] sm:$0xff] %v13212_v5  ;;  %9564 = vpow2.f32 %v4436_v17  ;;  %v4438_v62 = vmul.f32 1.442695, %v4244_v60  ;;  %v4599_v39 = vadd.f32 %v4598_v3, %v4597_v13  ;;  %v13217_v63 = vmax.f32 %v8380_v37, -11.512925 }
 0x4f2   :  { %16641 = vst [vmem:[#allocation19_spill] sm:$0xff] %v13215_v48  ;;  %v13219_v29 = vmax.f32 %v8381_v33, -11.512925  ;;  %v13221_v47 = vmax.f32 %v3769_v54, %v3770_v51  ;;  %9566 = vpow2.f32 %v4320_v42  ;;  %v4246_v27 = vsub.f32 %v13068_v61, %v13207_v4  ;;  %v16653_v42 = vld [vmem:[#allocation49_spill] sm:$0xff] }
 0x4f3   :  { %16642 = vst [vmem:[#allocation182_spill] sm:$0xff] %v13217_v63  ;;  %v4440_v56 = vmul.f32 1.442695, %v4245_v32  ;;  %v4600_v55 = vrot.slane %v4599_v39, 2  ;;  %9568 = vlog2.f32 %v4589_v20  ;;  %v13225_v14 = vmax.f32 %v3779_v46, %v3780_v23  ;;  %v16654_v23 = vld [vmem:[#allocation5_spill] sm:$0xff] }
 0x4f4   :  { %16643 = vst [vmem:[#allocation183_spill] sm:$0xff] %v13219_v29  ;;  %16644 = vst [vmem:[#allocation184_spill] sm:$0xff] %v13221_v47  ;;  %v7348_v2 = vsel %vm13160_vm3, %v13013_v44, 0.0  ;;  %v7349_v15 = vsel %vm13165_vm4, %v13032_v6, 0.0  ;;  %9570 = vlog2.f32 %v4596_v18  ;;  %v13233_v54 = vmax.f32 %v3776_v26, %v3777_v53 }
 0x4f5   :  { %16645 = vst [vmem:[#allocation185_spill] sm:$0xff] %v13225_v14  ;;  %9572 = vpow2.f32 %v4438_v62  ;;  %v7350_v41 = vsel %vm7222_vm5, %v13038_v19, 0.0  ;;  %v4601_v22 = vadd.f32 %v4600_v55, %v4599_v39  ;;  %v4247_v46 = vsub.f32 %v13089_v34, %v13221_v47 }
 0x4f6   :  { %16646 = vst [vmem:[#allocation186_spill] sm:$0xff] %v13233_v54  ;;  %v13245_v44 = vsel %vm7223_vm1, %v13057_v49, 0.0  ;;  %v7450_v36 = vrot.slane %v16647_v7, 2  ;;  %9574 = vpow2.f32 %v4440_v56  ;;  %v4442_v35 = vmul.f32 1.442695, %v4246_v27  ;;  %v16655_v27 = vld [vmem:[#allocation22_spill] sm:$0xff] }
 0x4f7   :  { %v4602_v10 = vrot.slane %v4601_v22, 1  ;;  %v9561_v9 = vpop.eup %9560  ;;  %v13258_v49 = vsel %vm7226_vm8, %v13106_v25, 0.0  ;;  %v13264_v38 = vsel %vm7227_vm9, %v13143_v50, 0.0  ;;  %v13267_v60 = vsel %vm55_vm0, %v7348_v2, 0.0  ;;  %v16656_v56 = vld [vmem:[#allocation20_spill] sm:$0xff]  ;;  %v16657_v2 = vld [vmem:[#allocation27_spill] sm:$0xff] }
 0x4f8   :  { %16648 = vst [vmem:[#allocation65_spill] sm:$0xff] %v13264_v38  ;;  %v16650_v59 = vrot.slane %v16649_v21, 2  ;;  %v9563_v26 = vpop.eup %9562  ;;  %v4604_v8 = vsel %vm55_vm0, %v9561_v9, 0.0  ;;  %v16652_v13 = vrot.slane %v16651_v12, 4  ;;  %v13278_v37 = vmul.f32 1.442695, %v4247_v46 }
 0x4f9   :  { %v4603_v28 = vadd.f32 %v4602_v10, %v4601_v22  ;;  %v4605_v33 = vrot.slane %v4604_v8, 4  ;;  %v7451_v51 = vadd.f32 %v7450_v36, %v16647_v7  ;;  %v7461_v32 = vsel %vm55_vm0, %v16653_v42, 0.0 }
 0x4fa   :  { %v7444_v11 = vadd.f32 %v16650_v59, %v16649_v21  ;;  %v7456_v24 = vadd.f32 %v16652_v13, %v16651_v12  ;;  %v13285_v3 = vsel %vm55_vm0, %v7349_v15, 0.0  ;;  %v7438_v18 = vrot.slane %v16654_v23, 1  ;;  %v16659_v59 = vld [vmem:[#allocation46_spill] sm:$0xff] }
 0x4fb   :  { %9576 = vlog2.f32 %v4603_v28  ;;  %v13289_v53 = vsel %vm55_vm0, %v9563_v26, 0.0  ;;  %v4606_v62 = vadd.f32 %v4605_v33, %v4604_v8  ;;  %v8308_v55 = vsub.f32 %v16656_v56, %v16655_v27  ;;  %v16660_v26 = vld [vmem:[#allocation67_spill] sm:$0xff] }
 0x4fc   :  { %v7445_v39 = vrot.slane %v7444_v11, 1  ;;  %9578 = vpow2.f32 %v4442_v35  ;;  %v16658_v22 = vrot.slane %v16657_v2, 1  ;;  %v7457_v7 = vrot.slane %v7456_v24, 2  ;;  %v16661_v33 = vld [vmem:[#allocation31_spill] sm:$0xff] }
 0x4fd   :  { %v7462_v36 = vrot.slane %v7461_v32, 4  ;;  %v4607_v9 = vrot.slane %v4606_v62, 2  ;;  %v7452_v21 = vrot.slane %v7451_v51, 1  ;;  %v8309_v28 = vsub.f32 %v16660_v26, %v16659_v59 }
 0x4fe   :  { %v7432_v46 = vadd.f32 %v16658_v22, %v16657_v2  ;;  %v13296_v15 = vpop.eup %9564  ;;  %v13303_v35 = vsel %vm55_vm0, %v7350_v41, 0.0  ;;  %v7439_v13 = vadd.f32 %v7438_v18, %v16654_v23  ;;  %v13308_v22 = vadd.f32 %v7445_v39, %v7444_v11 }
 0x4ff   :  { %v9567_v8 = vpop.eup %9566  ;;  %v4608_v56 = vadd.f32 %v4607_v9, %v4606_v62  ;;  %v8436_v19 = vmax.f32 %v8308_v55, -11.512925  ;;  %v13310_v26 = vadd.f32 %v7457_v7, %v7456_v24  ;;  %v7463_v20 = vadd.f32 %v7462_v36, %v7461_v32  ;;  %v16662_v9 = vld [vmem:[#allocation68_spill] sm:$0xff]  ;;  %v16665_v7 = vld [vmem:[#allocation73_spill] sm:$0xff] }
 0x500   :  { %v8310_v42 = vsub.f32 %v7432_v46, %v16661_v33  ;;  %v9569_v27 = vpop.eup %9568  ;;  %v4611_v2 = vsel %vm55_vm0, %v9567_v8, 0.0  ;;  %v13314_v12 = vadd.f32 %v7452_v21, %v7451_v51  ;;  %v8437_v23 = vmax.f32 %v8309_v28, -11.512925  ;;  %v16663_v33 = vld [vmem:[#allocation66_spill] sm:$0xff] }
 0x501   :  { %v9571_v6 = vpop.eup %9570  ;;  %v4612_v10 = vrot.slane %v4611_v2, 4  ;;  %v5465_v59 = vmul.f32 0.6931472, %v9569_v27  ;;  %v4609_v41 = vrot.slane %v4608_v56, 1  ;;  %vm8820_vm10 = vcmask 1041409   ;;  %v16666_v21 = vld [vmem:[#allocation18_spill] sm:$0xff] }
 0x502   :  { %v13312_v17 = vpop.eup %9572  ;;  %v5467_v62 = vmul.f32 0.6931472, %v9571_v6  ;;  %v8438_v46 = vmax.f32 %v8310_v42, -11.512925  ;;  %v3495_v11 = vrot.slane %v16662_v9, 2  ;;  %v16664_v24 = vrot.slane %v16663_v33, 4 }
 0x503   :  { %v4613_v18 = vadd.f32 %v4612_v10, %v4611_v2  ;;  %v13317_v39 = vpop.eup %9574  ;;  %v4610_v55 = vadd.f32 %v4609_v41, %v4608_v56  ;;  %v8564_v8 = vmin.f32 %v8436_v19, -1.000005e-05  ;;  %v4751_v36 = vsel %vm55_vm0, %v16665_v7, 0.0  ;;  %v16667_v2 = vld [vmem:[#allocation76_spill] sm:$0xff] }
 0x504   :  { %v3501_v32 = vmax.f32 %v16663_v33, %v16664_v24  ;;  %v5717_v28 = vadd.f32 %v5465_v59, %v16666_v21  ;;  %v3496_v10 = vmax.f32 %v16662_v9, %v3495_v11  ;;  %v4752_v6 = vrot.slane %v4751_v36, 4  ;;  %v16668_v41 = vld [vmem:[#allocation24_spill] sm:$0xff] }
 0x505   :  { %v4614_v51 = vrot.slane %v4613_v18, 2  ;;  %9580 = vlog2.f32 %v4610_v55  ;;  %v8565_v42 = vmin.f32 %v8437_v23, -1.000005e-05  ;;  %v4758_v56 = vsel %vm55_vm0, %v16667_v2, 0.0 }
 0x506   :  { %v3502_v27 = vrot.slane %v3501_v32, 2  ;;  %v5718_v47 = vadd.f32 %v5467_v62, %v16668_v41  ;;  %v3497_v4 = vrot.slane %v3496_v10, 1  ;;  %v4753_v33 = vadd.f32 %v4752_v6, %v4751_v36 }
 0x507   :  { %v4615_v19 = vadd.f32 %v4614_v51, %v4613_v18  ;;  %v7464_v38 = vrot.slane %v7463_v20, 2  ;;  %v8566_v7 = vmin.f32 %v8438_v46, -1.000005e-05  ;;  %v4759_v14 = vrot.slane %v4758_v56, 4  ;;  %v16670_v18 = vld [vmem:[#allocation77_spill] sm:$0xff] }
 0x508   :  { %v9577_v24 = vpop.eup %9576  ;;  %v3503_v50 = vmax.f32 %v3501_v32, %v3502_v27  ;;  %v8311_v9 = vsub.f32 %v7439_v13, %v5717_v28  ;;  %v13329_v11 = vmax.f32 %v3496_v10, %v3497_v4  ;;  %v4754_v29 = vrot.slane %v4753_v33, 2  ;;  %v16671_v32 = vld [vmem:[#allocation62_spill] sm:$0xff]  ;;  %v16672_v27 = vld [vmem:[#allocation25_spill] sm:$0xff] }
 0x509   :  { %v4616_v59 = vrot.slane %v4615_v19, 1  ;;  %v5469_v21 = vmul.f32 0.6931472, %v9577_v24  ;;  %v13331_v23 = vpop.eup %9578  ;;  %v4760_v2 = vadd.f32 %v4759_v14, %v4758_v56  ;;  %v4765_v62 = vsel %vm55_vm0, %v16670_v18, 0.0 }
 0x50a   :  { %16669 = vst [vmem:[#allocation21_spill] sm:$0xff] %v13331_v23  ;;  %v3504_v55 = vrot.slane %v3503_v50, 1  ;;  %v8312_v36 = vsub.f32 %v13308_v22, %v5718_v47  ;;  %v8821_v46 = vsel %vm8820_vm10, %v8565_v42, %v8564_v8  ;;  %v4208_v6 = vsub.f32 %v16671_v32, %v13329_v11 }
 0x50b   :  { %v4617_v51 = vadd.f32 %v4616_v59, %v4615_v19  ;;  %v5719_v13 = vadd.f32 %v5469_v21, %v16672_v27  ;;  %v4755_v28 = vadd.f32 %v4754_v29, %v4753_v33  ;;  %v4761_v10 = vrot.slane %v4760_v2, 2  ;;  %v16673_v19 = vld [vmem:[#allocation28_spill] sm:$0xff] }
 0x50c   :  { %v13340_v4 = vmax.f32 %v3503_v50, %v3504_v55  ;;  %v8439_v41 = vmax.f32 %v8311_v9, -11.512925  ;;  %v4366_v14 = vmul.f32 1.442695, %v4208_v6  ;;  %v4766_v56 = vrot.slane %v4765_v62, 4  ;;  %v16674_v6 = vld [vmem:[#allocation48_spill] sm:$0xff] }
 0x50d   :  { %9582 = vlog2.f32 %v4617_v51  ;;  %vm8822_vm11 = vcmask 1042434   ;;  %v4756_v47 = vrot.slane %v4755_v28, 1  ;;  %v4762_v22 = vadd.f32 %v4761_v10, %v4760_v2 }
 0x50e   :  { %v4209_v24 = vsub.f32 %v16673_v19, %v13340_v4  ;;  %v7465_v8 = vadd.f32 %v7464_v38, %v7463_v20  ;;  %v8823_v42 = vsel %vm8822_vm11, %v8566_v7, %v8821_v46  ;;  %9584 = vpow2.f32 %v4366_v14  ;;  %v16677_v14 = vld [vmem:[#allocation75_spill] sm:$0xff] }
 0x50f   :  { %v4767_v59 = vadd.f32 %v4766_v56, %v4765_v62  ;;  %v8313_v50 = vsub.f32 %v13314_v12, %v5719_v13  ;;  %v4757_v29 = vadd.f32 %v4756_v47, %v4755_v28  ;;  %v4763_v33 = vrot.slane %v4762_v22, 1  ;;  %v16676_v13 = vld [vmem:[#allocation74_spill] sm:$0xff] }
 0x510   :  { %v4368_v21 = vmul.f32 1.442695, %v4209_v24  ;;  %v7459_v9 = vrot.slane %v13310_v26, 1  ;;  %v8440_v55 = vmax.f32 %v8312_v36, -11.512925  ;;  %vm8824_vm12 = vcmask 1043459  }
 0x511   :  { %v8567_v18 = vmin.f32 %v8439_v41, -1.000005e-05  ;;  %v4768_v51 = vrot.slane %v4767_v59, 2  ;;  %v4764_v32 = vadd.f32 %v4763_v33, %v4762_v22  ;;  %v16675_v38 = vrot.slane %v16674_v6, 2  ;;  %v16679_v33 = vld [vmem:[#allocation47_spill] sm:$0xff] }
 0x512   :  { %9586 = vpow2.f32 %v4368_v21  ;;  %v9581_v7 = vpop.eup %9580  ;;  %v7466_v2 = vrot.slane %v7465_v8, 1  ;;  %v8441_v27 = vmax.f32 %v8313_v50, -11.512925  ;;  %v7618_v36 = vrot.slane %v16676_v13, 2 }
 0x513   :  { %v7612_v20 = vadd.f32 %v16675_v38, %v16674_v6  ;;  %v8825_v62 = vsel %vm8824_vm12, %v8567_v18, %v8823_v42  ;;  %v4769_v12 = vadd.f32 %v4768_v51, %v4767_v59  ;;  %9588 = vlog2.f32 %v4757_v29  ;;  %v16678_v59 = vld [vmem:[#allocation35_spill] sm:$0xff] }
 0x514   :  { %v5471_v46 = vmul.f32 0.6931472, %v9581_v7  ;;  %9590 = vlog2.f32 %v4764_v32  ;;  %v7460_v28 = vadd.f32 %v7459_v9, %v13310_v26  ;;  %v8568_v10 = vmin.f32 %v8440_v55, -1.000005e-05  ;;  %v16683_v32 = vld [vmem:[#allocation44_spill] sm:$0xff] }
 0x515   :  { %v4770_v41 = vrot.slane %v4769_v12, 1  ;;  %v7606_v56 = vrot.slane %v16677_v14, 1  ;;  %vm8826_vm13 = vcmask 1044484   ;;  %vm8828_vm14 = vcmask 1045509  }
 0x516   :  { %v5720_v19 = vadd.f32 %v5471_v46, %v13153_v40  ;;  %v7613_v24 = vrot.slane %v7612_v20, 1  ;;  %v7467_v47 = vadd.f32 %v7466_v2, %v7465_v8  ;;  %v8827_v22 = vsel %vm8826_vm13, %v8568_v10, %v8825_v62  ;;  %v16681_v40 = vld [vmem:[#allocation72_spill] sm:$0xff]  ;;  %v16685_v46 = vld [vmem:[#allocation78_spill] sm:$0xff] }
 0x517   :  { %v4771_v42 = vadd.f32 %v4770_v41, %v4769_v12  ;;  %v7629_v50 = vsel %vm55_vm0, %v16678_v59, 0.0  ;;  %v8569_v29 = vmin.f32 %v8441_v27, -1.000005e-05  ;;  %v13359_v26 = vadd.f32 %v7618_v36, %v16676_v13  ;;  %v16684_v12 = vld [vmem:[#allocation82_spill] sm:$0xff]  ;;  %v16686_v36 = vld [vmem:[#allocation83_spill] sm:$0xff] }
 0x518   :  { %v8314_v21 = vsub.f32 %v7460_v28, %v5720_v19  ;;  %v16680_v9 = vrot.slane %v16679_v33, 4  ;;  %vm8830_vm15 = vcmask 1046534   ;;  %v16682_v8 = vrot.slane %v16681_v40, 1  ;;  %v16687_v28 = vld [vmem:[#allocation79_spill] sm:$0xff]  ;;  %v16688_v19 = vld [vmem:[#allocation36_spill] sm:$0xff] }
 0x519   :  { %9592 = vlog2.f32 %v4771_v42  ;;  %v13370_v51 = vadd.f32 %v7606_v56, %v16677_v14  ;;  %v3383_v6 = vrot.slane %v16683_v32, 2  ;;  %v8829_v7 = vsel %vm8828_vm14, %v8569_v29, %v8827_v22  ;;  %v16690_v22 = vld [vmem:[#allocation52_spill] sm:$0xff] }
 0x51a   :  { %v13364_v55 = vadd.f32 %v16680_v9, %v16679_v33  ;;  %v7600_v18 = vadd.f32 %v16682_v8, %v16681_v40  ;;  %v9583_v38 = vpop.eup %9582  ;;  %v13374_v2 = vadd.f32 %v7613_v24, %v7612_v20  ;;  %v7630_v62 = vrot.slane %v7629_v50, 4  ;;  %v16691_v40 = vld [vmem:[#allocation84_spill] sm:$0xff] }
 0x51b   :  { %v8332_v27 = vsub.f32 %v16685_v46, %v16684_v12  ;;  %v5473_v13 = vmul.f32 0.6931472, %v9583_v38  ;;  %v8333_v10 = vsub.f32 %v16687_v28, %v16686_v36  ;;  %v3384_v41 = vmax.f32 %v16683_v32, %v3383_v6  ;;  %v9585_v42 = vpop.eup %9584 }
 0x51c   :  { %v16689_v14 = vrot.slane %v16688_v19, 4  ;;  %v8442_v59 = vmax.f32 %v8314_v21, -11.512925  ;;  %vm8832_vm2 = vcmask 1047559   ;;  %v4639_v29 = vsel %vm55_vm0, %v16690_v22, 0.0 }
 0x51d   :  { %v5721_v33 = vadd.f32 %v5473_v13, %v13175_v45  ;;  %v4772_v9 = vsel %vm55_vm0, %v9585_v42, 0.0  ;;  %v8334_v8 = vsub.f32 %v7600_v18, %v16691_v40  ;;  %v3385_v32 = vrot.slane %v3384_v41, 1 }
 0x51e   :  { %v3389_v56 = vmax.f32 %v16688_v19, %v16689_v14  ;;  %v4773_v6 = vrot.slane %v4772_v9, 4  ;;  %v13391_v38 = vadd.f32 %v7630_v62, %v7629_v50  ;;  %v8460_v12 = vmax.f32 %v8332_v27, -11.512925  ;;  %v16692_v50 = vld [vmem:[#allocation33_spill] sm:$0xff] }
 0x51f   :  { %v9587_v46 = vpop.eup %9586  ;;  %v8315_v36 = vsub.f32 %v7467_v47, %v5721_v33  ;;  %v8461_v28 = vmax.f32 %v8333_v10, -11.512925  ;;  %v13393_v19 = vmax.f32 %v3384_v41, %v3385_v32  ;;  %v4640_v14 = vrot.slane %v4639_v29, 4 }
 0x520   :  { %v3390_v21 = vrot.slane %v3389_v56, 2  ;;  %v9589_v24 = vpop.eup %9588  ;;  %v8570_v22 = vmin.f32 %v8442_v59, -1.000005e-05  ;;  %v4774_v20 = vadd.f32 %v4773_v6, %v4772_v9  ;;  %v4779_v45 = vsel %vm55_vm0, %v9587_v46, 0.0  ;;  %v16693_v59 = vld [vmem:[#allocation53_spill] sm:$0xff] }
 0x521   :  { %v9591_v42 = vpop.eup %9590  ;;  %v8443_v18 = vmax.f32 %v8315_v36, -11.512925  ;;  %v4780_v40 = vrot.slane %v4779_v45, 4  ;;  %v5513_v23 = vmul.f32 0.6931472, %v9589_v24  ;;  %v4192_v62 = vsub.f32 %v16692_v50, %v13393_v19  ;;  %v16694_v50 = vld [vmem:[#allocation69_spill] sm:$0xff] }
 0x522   :  { %v3391_v13 = vmax.f32 %v3389_v56, %v3390_v21  ;;  %v8831_v27 = vsel %vm8830_vm15, %v8570_v22, %v8829_v7  ;;  %v4775_v47 = vrot.slane %v4774_v20, 2  ;;  %v4641_v41 = vadd.f32 %v4640_v14, %v4639_v29 }
 0x523   :  { %v8571_v33 = vmin.f32 %v8443_v18, -1.000005e-05  ;;  %v4781_v32 = vadd.f32 %v4780_v40, %v4779_v45  ;;  %v4334_v63 = vmul.f32 1.442695, %v4192_v62  ;;  %v4646_v9 = vsel %vm55_vm0, %v16693_v59, 0.0  ;;  %v16695_v45 = vld [vmem:[#allocation34_spill] sm:$0xff] }
 0x524   :  { %v3392_v10 = vrot.slane %v3391_v13, 1  ;;  %v4776_v6 = vadd.f32 %v4775_v47, %v4774_v20  ;;  %v5515_v56 = vmul.f32 0.6931472, %v9591_v42  ;;  %v4642_v46 = vrot.slane %v4641_v41, 2 }
 0x525   :  { %v8833_v24 = vsel %vm8832_vm2, %v8571_v33, %v8831_v27  ;;  %v4782_v36 = vrot.slane %v4781_v32, 2  ;;  %v5741_v48 = vadd.f32 %v5513_v23, %v16694_v50  ;;  %9594 = vpow2.f32 %v4334_v63  ;;  %v16696_v23 = vld [vmem:[#allocation70_spill] sm:$0xff] }
 0x526   :  { %v13401_v21 = vmax.f32 %v3391_v13, %v3392_v10  ;;  %v9593_v7 = vpop.eup %9592  ;;  %v8955_v29 = vsel %vm55_vm0, %v8833_v24, 0.0  ;;  %v4777_v14 = vrot.slane %v4776_v6, 1  ;;  %v8462_v22 = vmax.f32 %v8334_v8, -11.512925 }
 0x527   :  { %8956 = vadd.xlane.f32.xlu0 %v8955_v29  ;;  %v4783_v20 = vadd.f32 %v4782_v36, %v4781_v32  ;;  %v8588_v42 = vmin.f32 %v8460_v12, -1.000005e-05  ;;  %v8589_v13 = vmin.f32 %v8461_v28, -1.000005e-05  ;;  %v4643_v40 = vadd.f32 %v4642_v46, %v4641_v41 }
 0x528   :  { %v4193_v18 = vsub.f32 %v16695_v45, %v13401_v21  ;;  %v4778_v62 = vadd.f32 %v4777_v14, %v4776_v6  ;;  %v5517_v47 = vmul.f32 0.6931472, %v9593_v7  ;;  %v4647_v10 = vrot.slane %v4646_v9, 4  ;;  %v16697_v45 = vld [vmem:[#allocation55_spill] sm:$0xff] }
 0x529   :  { %v4784_v33 = vrot.slane %v4783_v20, 1  ;;  %v5742_v63 = vadd.f32 %v5515_v56, %v16696_v23  ;;  %v8335_v59 = vsub.f32 %v13370_v51, %v5741_v48  ;;  %v4644_v24 = vrot.slane %v4643_v40, 1  ;;  %v16698_v6 = vld [vmem:[#allocation71_spill] sm:$0xff] }
 0x52a   :  { %v4336_v27 = vmul.f32 1.442695, %v4193_v18  ;;  %9596 = vlog2.f32 %v4778_v62  ;;  %v7632_v8 = vrot.slane %v13391_v38, 2  ;;  %v4648_v50 = vadd.f32 %v4647_v10, %v4646_v9 }
 0x52b   :  { %v4653_v32 = vsel %vm55_vm0, %v16697_v45, 0.0  ;;  %v4785_v12 = vadd.f32 %v4784_v33, %v4783_v20  ;;  %v8590_v28 = vmin.f32 %v8462_v22, -1.000005e-05  ;;  %v8848_v41 = vsel %vm8820_vm10, %v8589_v13, %v8588_v42 }
 0x52c   :  { %9598 = vpow2.f32 %v4336_v27  ;;  %v5743_v46 = vadd.f32 %v5517_v47, %v16698_v6  ;;  %v4645_v36 = vadd.f32 %v4644_v24, %v4643_v40  ;;  %v4649_v7 = vrot.slane %v4648_v50, 2  ;;  %v16702_v6 = vld [vmem:[#allocation57_spill] sm:$0xff] }
 0x52d   :  { %v4654_v56 = vrot.slane %v4653_v32, 4  ;;  %v5017_v48 = vsel %vm55_vm0, %v13296_v15, 0.0  ;;  %9600 = vlog2.f32 %v4785_v12  ;;  %v8336_v51 = vsub.f32 %v13374_v2, %v5742_v63 }
 0x52e   :  { %v8463_v9 = vmax.f32 %v8335_v59, -11.512925  ;;  %v16699_v29 = vrot.slane %v13359_v26, 1  ;;  %v16700_v22 = vrot.slane %v13364_v55, 2  ;;  %v4650_v20 = vadd.f32 %v4649_v7, %v4648_v50 }
 0x52f   :  { %v4655_v42 = vadd.f32 %v4654_v56, %v4653_v32  ;;  %v13426_v13 = vsel %vm55_vm0, %v13312_v17, 0.0  ;;  %v13430_v15 = vsel %vm55_vm0, %v13245_v44, 0.0  ;;  %v7633_v2 = vadd.f32 %v7632_v8, %v13391_v38 }
 0x530   :  { %v7621_v14 = vadd.f32 %v16699_v29, %v13359_v26  ;;  %v7626_v18 = vadd.f32 %v16700_v22, %v13364_v55  ;;  %v8849_v40 = vsel %vm8822_vm11, %v8590_v28, %v8848_v41  ;;  %v4651_v26 = vrot.slane %v4650_v20, 1 }
 0x531   :  { %v4656_v47 = vrot.slane %v4655_v42, 2  ;;  %9602 = vlog2.f32 %v4645_v36  ;;  %v16701_v55 = vrot.slane %v13289_v53, 4  ;;  %v5018_v10 = vrot.slane %v5017_v48, 4  ;;  %v16703_v36 = vld [vmem:[#allocation54_spill] sm:$0xff] }
 0x532   :  { %v8337_v62 = vsub.f32 %v7621_v14, %v5743_v46  ;;  %v8464_v17 = vmax.f32 %v8336_v51, -11.512925  ;;  %v8591_v33 = vmin.f32 %v8463_v9, -1.000005e-05  ;;  %v9595_v23 = vpop.eup %9594  ;;  %v5025_v44 = vrot.slane %v13426_v13, 4 }
 0x533   :  { %v13437_v27 = vadd.f32 %v16701_v55, %v13289_v53  ;;  %v7627_v63 = vrot.slane %v7626_v18, 1  ;;  %v4652_v59 = vadd.f32 %v4651_v26, %v4650_v20  ;;  %v4657_v38 = vadd.f32 %v4656_v47, %v4655_v42  ;;  %v16704_v20 = vld [vmem:[#allocation56_spill] sm:$0xff] }
 0x534   :  { %v13442_v24 = vsel %vm55_vm0, %v13317_v39, 0.0  ;;  %v7634_v8 = vrot.slane %v7633_v2, 1  ;;  %v8850_v50 = vsel %vm8824_vm12, %v8591_v33, %v8849_v40  ;;  %v4660_v45 = vsel %vm55_vm0, %v9595_v23, 0.0  ;;  %v16708_v23 = vld [vmem:[#allocation51_spill] sm:$0xff] }
 0x535   :  { %v8465_v53 = vmax.f32 %v8337_v62, -11.512925  ;;  %v4658_v32 = vrot.slane %v4657_v38, 1  ;;  %v4661_v12 = vrot.slane %v4660_v45, 4  ;;  %9604 = vlog2.f32 %v4652_v59 }
 0x536   :  { %v13446_v28 = vadd.f32 %v5018_v10, %v5017_v48  ;;  %v8592_v41 = vmin.f32 %v8464_v17, -1.000005e-05  ;;  %v7494_v46 = vrot.slane %v16702_v6, 1  ;;  %v7506_v7 = vrot.slane %v16703_v36, 2  ;;  %v16706_v48 = vld [vmem:[#allocation50_spill] sm:$0xff] }
 0x537   :  { %v7628_v39 = vadd.f32 %v7627_v63, %v7626_v18  ;;  %v4659_v51 = vadd.f32 %v4658_v32, %v4657_v38  ;;  %v4662_v9 = vadd.f32 %v4661_v12, %v4660_v45  ;;  %v9597_v29 = vpop.eup %9596  ;;  %v7635_v14 = vadd.f32 %v7634_v8, %v7633_v2  ;;  %v16710_v32 = vld [vmem:[#allocation45_spill] sm:$0xff] }
 0x538   :  { %v8851_v22 = vsel %vm8826_vm13, %v8592_v41, %v8850_v50  ;;  %v16705_v42 = vrot.slane %v16704_v20, 1  ;;  %v16707_v62 = vrot.slane %v16706_v48, 2  ;;  %v5519_v55 = vmul.f32 0.6931472, %v9597_v29  ;;  %v16712_v29 = vld [vmem:[#allocation59_spill] sm:$0xff] }
 0x539   :  { %v9599_v47 = vpop.eup %9598  ;;  %v8593_v10 = vmin.f32 %v8465_v53, -1.000005e-05  ;;  %v4663_v17 = vrot.slane %v4662_v9, 2  ;;  %9606 = vlog2.f32 %v4659_v51  ;;  %v13460_v33 = vadd.f32 %v7494_v46, %v16702_v6  ;;  %v16711_v51 = vld [vmem:[#allocation26_spill] sm:$0xff]  ;;  %v16713_v46 = vld [vmem:[#allocation29_spill] sm:$0xff] }
 0x53a   :  { %v7488_v40 = vadd.f32 %v16705_v42, %v16704_v20  ;;  %v7500_v26 = vadd.f32 %v16707_v62, %v16706_v48  ;;  %v4667_v18 = vsel %vm55_vm0, %v9599_v47, 0.0  ;;  %v7507_v2 = vadd.f32 %v7506_v7, %v16703_v36  ;;  %v9601_v38 = vpop.eup %9600  ;;  %v16714_v20 = vld [vmem:[#allocation17_spill] sm:$0xff] }
 0x53b   :  { %v16709_v63 = vrot.slane %v16708_v23, 4  ;;  %v5744_v8 = vadd.f32 %v5519_v55, %v13329_v11  ;;  %v4664_v50 = vadd.f32 %v4663_v17, %v4662_v9  ;;  %v4668_v45 = vrot.slane %v4667_v18, 4 }
 0x53c   :  { %v7517_v53 = vsel %vm55_vm0, %v16710_v32, 0.0  ;;  %v5521_v12 = vmul.f32 0.6931472, %v9601_v38  ;;  %v7501_v41 = vrot.slane %v7500_v26, 1  ;;  %v8316_v6 = vsub.f32 %v16712_v29, %v16711_v51  ;;  %v16715_v32 = vld [vmem:[#allocation30_spill] sm:$0xff] }
 0x53d   :  { %v7512_v59 = vadd.f32 %v16709_v63, %v16708_v23  ;;  %v8317_v36 = vsub.f32 %v16714_v20, %v16713_v46  ;;  %v8338_v7 = vsub.f32 %v7628_v39, %v5744_v8  ;;  %v8852_v42 = vsel %vm8828_vm14, %v8593_v10, %v8851_v22 }
 0x53e   :  { %v4665_v48 = vrot.slane %v4664_v50, 1  ;;  %v4669_v62 = vadd.f32 %v4668_v45, %v4667_v18  ;;  %v9603_v47 = vpop.eup %9602  ;;  %v5745_v11 = vadd.f32 %v5521_v12, %v13340_v4  ;;  %v7508_v9 = vrot.slane %v7507_v2, 1 }
 0x53f   :  { %v7513_v55 = vrot.slane %v7512_v59, 2  ;;  %v7518_v17 = vrot.slane %v7517_v53, 4  ;;  %v8466_v23 = vmax.f32 %v8338_v7, -11.512925  ;;  %v8318_v56 = vsub.f32 %v7488_v40, %v16715_v32 }
 0x540   :  { %v4666_v63 = vadd.f32 %v4665_v48, %v4664_v50  ;;  %v4670_v38 = vrot.slane %v4669_v62, 2  ;;  %v8339_v51 = vsub.f32 %v7635_v14, %v5745_v11  ;;  %v13476_v29 = vadd.f32 %v7501_v41, %v7500_v26  ;;  %v16716_v41 = vld [vmem:[#allocation85_spill] sm:$0xff] }
 0x541   :  { %v8444_v46 = vmax.f32 %v8316_v6, -11.512925  ;;  %v8445_v39 = vmax.f32 %v8317_v36, -11.512925  ;;  %v8594_v8 = vmin.f32 %v8466_v23, -1.000005e-05  ;;  %v13478_v4 = vadd.f32 %v7508_v9, %v7507_v2 }
 0x542   :  { %v4671_v22 = vadd.f32 %v4670_v38, %v4669_v62  ;;  %v5481_v10 = vmul.f32 0.6931472, %v9603_v47  ;;  %9608 = vlog2.f32 %v4666_v63  ;;  %v9605_v18 = vpop.eup %9604  ;;  %v8467_v45 = vmax.f32 %v8339_v51, -11.512925  ;;  %v16717_v36 = vld [vmem:[#allocation6_spill] sm:$0xff] }
 0x543   :  { %v7514_v12 = vadd.f32 %v7513_v55, %v7512_v59  ;;  %v7519_v20 = vadd.f32 %v7518_v17, %v7517_v53  ;;  %v8853_v50 = vsel %vm8830_vm15, %v8594_v8, %v8852_v42  ;;  %v5483_v48 = vmul.f32 0.6931472, %v9605_v18  ;;  %v16719_v23 = vld [vmem:[#allocation38_spill] sm:$0xff] }
 0x544   :  { %v4672_v7 = vrot.slane %v4671_v22, 1  ;;  %v8446_v40 = vmax.f32 %v8318_v56, -11.512925  ;;  %v8595_v14 = vmin.f32 %v8467_v45, -1.000005e-05  ;;  %v3439_v6 = vrot.slane %v16716_v41, 2 }
 0x545   :  { %v8572_v26 = vmin.f32 %v8444_v46, -1.000005e-05  ;;  %v16718_v11 = vrot.slane %v16717_v36, 4  ;;  %v5725_v63 = vadd.f32 %v5481_v10, %v16719_v23  ;;  %v8573_v2 = vmin.f32 %v8445_v39, -1.000005e-05  ;;  %v16720_v9 = vld [vmem:[#allocation90_spill] sm:$0xff] }
 0x546   :  { %v4673_v47 = vadd.f32 %v4672_v7, %v4671_v22  ;;  %v4695_v59 = vsel %vm55_vm0, %v16720_v9, 0.0  ;;  %v9607_v53 = vpop.eup %9606  ;;  %v8854_v42 = vsel %vm8832_vm2, %v8595_v14, %v8853_v50  ;;  %v3440_v56 = vmax.f32 %v16716_v41, %v3439_v6  ;;  %v16721_v51 = vld [vmem:[#allocation42_spill] sm:$0xff]  ;;  %v16722_v7 = vld [vmem:[#allocation91_spill] sm:$0xff]  ;;  %v16723_v14 = vld [vmem:[#allocation93_spill] sm:$0xff] }
 0x547   :  { %v3445_v62 = vmax.f32 %v16717_v36, %v16718_v11  ;;  %v4696_v17 = vrot.slane %v4695_v59, 4  ;;  %v8964_v38 = vsel %vm55_vm0, %v8854_v42, 0.0  ;;  %v5485_v32 = vmul.f32 0.6931472, %v9607_v53 }
 0x548   :  { %9610 = vlog2.f32 %v4673_v47  ;;  %v5726_v46 = vadd.f32 %v5483_v48, %v16721_v51  ;;  %8965 = vadd.xlane.f32.xlu0 %v8964_v38  ;;  %v7520_v8 = vrot.slane %v7519_v20, 2  ;;  %v3441_v22 = vrot.slane %v3440_v56, 1  ;;  %v16724_v48 = vld [vmem:[#allocation43_spill] sm:$0xff] }
 0x549   :  { %v3446_v55 = vrot.slane %v3445_v62, 2  ;;  %v4697_v10 = vadd.f32 %v4696_v17, %v4695_v59  ;;  %v8319_v18 = vsub.f32 %v13460_v33, %v5725_v63  ;;  %v8574_v45 = vmin.f32 %v8446_v40, -1.000005e-05  ;;  %v16725_v40 = vld [vmem:[#allocation40_spill] sm:$0xff] }
 0x54a   :  { %v4702_v50 = vsel %vm55_vm0, %v16722_v7, 0.0  ;;  %v4709_v41 = vsel %vm55_vm0, %v16723_v14, 0.0  ;;  %v13497_v6 = vmax.f32 %v3440_v56, %v3441_v22  ;;  %v5727_v23 = vadd.f32 %v5485_v32, %v16724_v48  ;;  %v16726_v32 = vld [vmem:[#allocation39_spill] sm:$0xff] }
 0x54b   :  { %v3447_v39 = vmax.f32 %v3445_v62, %v3446_v55  ;;  %v4698_v11 = vrot.slane %v4697_v10, 2  ;;  %v4703_v47 = vrot.slane %v4702_v50, 4  ;;  %v8320_v9 = vsub.f32 %v13476_v29, %v5726_v46 }
 0x54c   :  { %v8834_v62 = vsel %vm8820_vm10, %v8573_v2, %v8572_v26  ;;  %v4710_v59 = vrot.slane %v4709_v41, 4  ;;  %v4200_v63 = vsub.f32 %v16725_v40, %v13497_v6  ;;  %v7515_v55 = vrot.slane %v7514_v12, 1 }
 0x54d   :  { %v3448_v36 = vrot.slane %v3447_v39, 1  ;;  %v4699_v53 = vadd.f32 %v4698_v11, %v4697_v10  ;;  %v4704_v42 = vadd.f32 %v4703_v47, %v4702_v50  ;;  %v7521_v56 = vadd.f32 %v7520_v8, %v7519_v20 }
 0x54e   :  { %v8447_v17 = vmax.f32 %v8319_v18, -11.512925  ;;  %v4711_v38 = vadd.f32 %v4710_v59, %v4709_v41  ;;  %v8835_v22 = vsel %vm8822_vm11, %v8574_v45, %v8834_v62  ;;  %v4350_v46 = vmul.f32 1.442695, %v4200_v63 }
 0x54f   :  { %v13502_v33 = vmax.f32 %v3447_v39, %v3448_v36  ;;  %v9609_v51 = vpop.eup %9608  ;;  %v4705_v26 = vrot.slane %v4704_v42, 2  ;;  %v8321_v39 = vsub.f32 %v13478_v4, %v5727_v23  ;;  %v4700_v7 = vrot.slane %v4699_v53, 1 }
 0x550   :  { %v5487_v2 = vmul.f32 0.6931472, %v9609_v51  ;;  %v4712_v14 = vrot.slane %v4711_v38, 2  ;;  %v8448_v36 = vmax.f32 %v8320_v9, -11.512925  ;;  %9612 = vpow2.f32 %v4350_v46  ;;  %v13527_v51 = vpop.permute.xlu1 %792 }
 0x551   :  { %v4201_v29 = vsub.f32 %v16726_v32, %v13502_v33  ;;  %v4706_v50 = vadd.f32 %v4705_v26, %v4704_v42  ;;  %v7516_v8 = vadd.f32 %v7515_v55, %v7514_v12  ;;  %v8575_v18 = vmin.f32 %v8447_v17, -1.000005e-05 }
 0x552   :  { %v5728_v20 = vadd.f32 %v5487_v2, %v13393_v19  ;;  %v4713_v41 = vadd.f32 %v4712_v14, %v4711_v38  ;;  %v5013_v45 = vrot.slane %v13437_v27, 2  ;;  %v7522_v11 = vrot.slane %v7521_v56, 1 }
 0x553   :  { %v4352_v10 = vmul.f32 1.442695, %v4201_v29  ;;  %v4707_v47 = vrot.slane %v4706_v50, 1  ;;  %v8449_v62 = vmax.f32 %v8321_v39, -11.512925  ;;  %v8836_v4 = vsel %vm8824_vm12, %v8575_v18, %v8835_v22 }
 0x554   :  { %v8322_v48 = vsub.f32 %v7516_v8, %v5728_v20  ;;  %v4701_v23 = vadd.f32 %v4700_v7, %v4699_v53  ;;  %v5020_v9 = vrot.slane %v13446_v28, 2  ;;  %v5026_v19 = vadd.f32 %v5025_v44, %v13426_v13  ;;  %v13555_v8 = vpop.permute.xlu0 %840 }
 0x555   :  { %9614 = vpow2.f32 %v4352_v10  ;;  %v9611_v59 = vpop.eup %9610  ;;  %v8576_v12 = vmin.f32 %v8448_v36, -1.000005e-05  ;;  %v4714_v40 = vrot.slane %v4713_v41, 1  ;;  %v16727_v63 = vsub.f32 %v13106_v25, %v13233_v54 }
 0x556   :  { %9616 = vpow2.f32 %v13278_v37  ;;  %v16728_v55 = vrot.slane %v13442_v24, 4  ;;  %v5489_v17 = vmul.f32 0.6931472, %v9611_v59  ;;  %v5014_v38 = vadd.f32 %v5013_v45, %v13437_v27  ;;  %v13558_v45 = vpop.permute.xlu1 %888 }
 0x557   :  { %v13521_v42 = vmul.f32 1.442695, %v16727_v63  ;;  %v8450_v22 = vmax.f32 %v8322_v48, -11.512925  ;;  %v8837_v13 = vsel %vm8826_vm13, %v8576_v12, %v8836_v4  ;;  %v4708_v44 = vadd.f32 %v4707_v47, %v4706_v50 }
 0x558   :  { %v5033_v53 = vadd.f32 %v16728_v55, %v13442_v24  ;;  %v5729_v37 = vadd.f32 %v5489_v17, %v13401_v21  ;;  %v7523_v32 = vadd.f32 %v7522_v11, %v7521_v56  ;;  %v8577_v29 = vmin.f32 %v8449_v62, -1.000005e-05 }
 0x559   :  { %9618 = vlog2.f32 %v4701_v23  ;;  %v5021_v25 = vadd.f32 %v5020_v9, %v13446_v28  ;;  %v5027_v46 = vrot.slane %v5026_v19, 2  ;;  %v16729_v24 = vrot.slane %v13267_v60, 4 }
 0x55a   :  { %v4715_v2 = vadd.f32 %v4714_v40, %v4713_v41  ;;  %v16730_v27 = vrot.slane %v13285_v3, 4  ;;  %v7875_v7 = vrot.slane %v13303_v35, 4  ;;  %v8323_v14 = vsub.f32 %v7523_v32, %v5729_v37 }
 0x55b   :  { %v7862_v26 = vadd.f32 %v16729_v24, %v13267_v60  ;;  %v8838_v21 = vsel %vm8828_vm14, %v8577_v29, %v8837_v13  ;;  %v7882_v56 = vrot.slane %v13430_v15, 4  ;;  %v16731_v28 = vsel %vm13180_vm6, %v13068_v61, 0.0 }
 0x55c   :  { %v13538_v39 = vadd.f32 %v16730_v27, %v13285_v3  ;;  %v7888_v36 = vsel %vm55_vm0, %v16731_v28, 0.0  ;;  %v8578_v60 = vmin.f32 %v8450_v22, -1.000005e-05  ;;  %9620 = vlog2.f32 %v4708_v44  ;;  %v13580_v44 = vpop.permute.xlu0 %936 }
 0x55d   :  { %v5015_v10 = vrot.slane %v5014_v38, 1  ;;  %v5034_v50 = vrot.slane %v5033_v53, 2  ;;  %v16732_v3 = vsel %vm13190_vm7, %v13089_v34, 0.0  ;;  %v8451_v18 = vmax.f32 %v8323_v14, -11.512925  ;;  %v9613_v11 = vpop.eup %9612 }
 0x55e   :  { %v13553_v20 = vsel %vm55_vm0, %v16732_v3, 0.0  ;;  %v5022_v41 = vrot.slane %v5021_v25, 1  ;;  %v5028_v30 = vadd.f32 %v5027_v46, %v5026_v19  ;;  %v8839_v61 = vsel %vm8830_vm15, %v8578_v60, %v8838_v21 }
 0x55f   :  { %9622 = vlog2.f32 %v4715_v2  ;;  %v7863_v47 = vrot.slane %v7862_v26, 2  ;;  %v13561_v48 = vadd.f32 %v7875_v7, %v13303_v35  ;;  %v7889_v31 = vrot.slane %v7888_v36, 4 }
 0x560   :  { %v8579_v34 = vmin.f32 %v8451_v18, -1.000005e-05  ;;  %v13565_v4 = vadd.f32 %v7882_v56, %v13430_v15  ;;  %v4716_v59 = vsel %vm55_vm0, %v9613_v11, 0.0  ;;  %v5016_v19 = vadd.f32 %v5015_v10, %v5014_v38  ;;  %v16735_v56 = vld [vmem:[#allocation92_spill] sm:$0xff]  ;;  %v16736_v10 = vld [vmem:[#allocation89_spill] sm:$0xff]  ;;  %v16738_v18 = vld [vmem:[#allocation87_spill] sm:$0xff] }
 0x561   :  { %v13569_v12 = vadd.f32 %v5034_v50, %v5033_v53  ;;  %v4717_v63 = vrot.slane %v4716_v59, 4  ;;  %v5023_v35 = vadd.f32 %v5022_v41, %v5021_v25  ;;  %v5029_v55 = vrot.slane %v5028_v30, 1  ;;  %v16734_v25 = vld [vmem:[#allocation14_spill] sm:$0xff] }
 0x562   :  { %v9615_v9 = vpop.eup %9614  ;;  %v8840_v40 = vsel %vm8832_vm2, %v8579_v34, %v8839_v61  ;;  %v13574_v13 = vadd.f32 %v7863_v47, %v7862_v26  ;;  %v13578_v15 = vsel %vm55_vm0, %v13258_v49, 0.0  ;;  %v13585_v29 = vadd.f32 %v7889_v31, %v7888_v36  ;;  %v13591_v26 = vpop.permute.xlu1 %984  ;;  %v16739_v11 = vld [vmem:[#allocation102_spill] sm:$0xff]  ;;  %v16740_v47 = vld [vmem:[#allocation95_spill] sm:$0xff] }
 0x563   :  { %v8958_v17 = vsel %vm55_vm0, %v8840_v40, 0.0  ;;  %v4723_v22 = vsel %vm55_vm0, %v9615_v9, 0.0  ;;  %v4718_v53 = vadd.f32 %v4717_v63, %v4716_v59  ;;  %v13582_v37 = vpop.eup %9616  ;;  %v2602_v46 = vcombine.low %v16734_v25, %v13555_v8  ;;  %v16741_v34 = vld [vmem:[#allocation103_spill] sm:$0xff]  ;;  %v16742_v59 = vld [vmem:[#allocation96_spill] sm:$0xff] }
 0x564   :  { %8959 = vadd.xlane.f32.xlu1 %v8958_v17  ;;  %v4724_v38 = vrot.slane %v4723_v22, 4  ;;  %16733 = vst [vmem:[#allocation64_spill] sm:$0xff] %v13582_v37  ;;  %v2618_v24 = vcombine.low %v13527_v51, %v13558_v45  ;;  %9624 = vlog2.f32 %v5016_v19  ;;  %v13594_v14 = vadd.f32 %v5029_v55, %v5028_v30  ;;  %v16743_v55 = vld [vmem:[#allocation94_spill] sm:$0xff] }
 0x565   :  { %v4719_v2 = vrot.slane %v4718_v53, 2  ;;  %9626 = vlog2.f32 %v5023_v35  ;;  %v7562_v28 = vrot.slane %v16735_v56, 2  ;;  %v16737_v50 = vrot.slane %v16736_v10, 4 }
 0x566   :  { %v4725_v27 = vadd.f32 %v4724_v38, %v4723_v22  ;;  %v9619_v7 = vpop.eup %9618  ;;  %v7573_v41 = vsel %vm55_vm0, %v16738_v18, 0.0  ;;  %v2610_v61 = vrot.slane %v2602_v46, %v10322_v1  ;;  %v2626_v30 = vrot.slane %v2618_v24, %v10322_v1  ;;  %v16745_v38 = vld [vmem:[#allocation97_spill] sm:$0xff] }
 0x567   :  { %v4720_v36 = vadd.f32 %v4719_v2, %v4718_v53  ;;  %v7568_v3 = vadd.f32 %v16737_v50, %v16736_v10  ;;  %v8324_v31 = vsub.f32 %v16740_v47, %v16739_v11  ;;  %v8325_v9 = vsub.f32 %v16742_v59, %v16741_v34  ;;  %v13613_v53 = vpop.permute.xlu0 %1032  ;;  %v16746_v2 = vld [vmem:[#allocation88_spill] sm:$0xff]  ;;  %v13620_v11 = vpop.permute.xlu1 %1080 }
 0x568   :  { %v4726_v60 = vrot.slane %v4725_v27, 2  ;;  %v5497_v35 = vmul.f32 0.6931472, %v9619_v7  ;;  %v16744_v17 = vrot.slane %v16743_v55, 1  ;;  %v7550_v46 = vrot.slane %v16745_v38, 1  ;;  %v16748_v34 = vld [vmem:[#allocation104_spill] sm:$0xff] }
 0x569   :  { %v9621_v19 = vpop.eup %9620  ;;  %v4721_v40 = vrot.slane %v4720_v36, 1  ;;  %v16747_v24 = vrot.slane %v16746_v2, 2  ;;  %v7563_v50 = vadd.f32 %v7562_v28, %v16735_v56  ;;  %v7574_v18 = vrot.slane %v7573_v41, 4 }
 0x56a   :  { %v4727_v63 = vadd.f32 %v4726_v60, %v4725_v27  ;;  %v7544_v22 = vadd.f32 %v16744_v17, %v16743_v55  ;;  %v7569_v60 = vrot.slane %v7568_v3, 2  ;;  %v5499_v55 = vmul.f32 0.6931472, %v9621_v19 }
 0x56b   :  { %v7556_v10 = vadd.f32 %v16747_v24, %v16746_v2  ;;  %v4722_v27 = vadd.f32 %v4721_v40, %v4720_v36  ;;  %v8452_v17 = vmax.f32 %v8324_v31, -11.512925  ;;  %v8453_v32 = vmax.f32 %v8325_v9, -11.512925  ;;  %v16749_v2 = vld [vmem:[#allocation80_spill] sm:$0xff]  ;;  %v16750_v9 = vld [vmem:[#allocation81_spill] sm:$0xff] }
 0x56c   :  { %v9623_v47 = vpop.eup %9622  ;;  %v4728_v7 = vrot.slane %v4727_v63, 1  ;;  %v8326_v59 = vsub.f32 %v7544_v22, %v16748_v34  ;;  %v2634_v23 = vcombine.low %v13580_v44, %v13613_v53  ;;  %v5733_v24 = vadd.f32 %v5497_v35, %v16749_v2 }
 0x56d   :  { %9628 = vlog2.f32 %v4722_v27  ;;  %v2650_v56 = vcombine.low %v13591_v26, %v13620_v11  ;;  %v2666_v28 = vcombine.low %v2610_v61, %v2626_v30  ;;  %v5501_v21 = vmul.f32 0.6931472, %v9623_v47 }
 0x56e   :  { %v4729_v62 = vadd.f32 %v4728_v7, %v4727_v63  ;;  %v7557_v36 = vrot.slane %v7556_v10, 1  ;;  %v7575_v40 = vadd.f32 %v7574_v18, %v7573_v41  ;;  %v2667_v49 = vcombine.high %v2610_v61, %v2626_v30 }
 0x56f   :  { %v7551_v19 = vadd.f32 %v7550_v46, %v16745_v38  ;;  %v7564_v31 = vrot.slane %v7563_v50, 1  ;;  %v5734_v22 = vadd.f32 %v5499_v55, %v16750_v9  ;;  %v7570_v34 = vadd.f32 %v7569_v60, %v7568_v3 }
 0x570   :  { %9630 = vlog2.f32 %v4729_v62  ;;  %v8454_v54 = vmax.f32 %v8326_v59, -11.512925  ;;  %v8580_v63 = vmin.f32 %v8452_v17, -1.000005e-05  ;;  %v8581_v7 = vmin.f32 %v8453_v32, -1.000005e-05 }
 0x571   :  { %v8327_v27 = vsub.f32 %v7551_v19, %v5733_v24  ;;  %v2642_v35 = vrot.slane %v2634_v23, %v10322_v1  ;;  %v2658_v2 = vrot.slane %v2650_v56, %v10322_v1  ;;  %v13632_v37 = vpop.eup %9624  ;;  %v2619_v41 = vcombine.high %v13527_v51, %v13558_v45  ;;  %v16751_v62 = vld [vmem:[#allocation86_spill] sm:$0xff] }
 0x572   :  { %v5735_v61 = vadd.f32 %v5501_v21, %v16751_v62  ;;  %v7558_v30 = vadd.f32 %v7557_v36, %v7556_v10  ;;  %v7576_v38 = vrot.slane %v7575_v40, 2  ;;  %v13637_v46 = vpop.eup %9626  ;;  %v2674_v3 = vrot.slane %v2666_v28, %v10351_v16 }
 0x573   :  { %v2681_v18 = vrot.slane %v2667_v49, %v10351_v16  ;;  %v2698_v32 = vcombine.low %v2642_v35, %v2658_v2  ;;  %v2699_v47 = vcombine.high %v2642_v35, %v2658_v2  ;;  %v7565_v23 = vadd.f32 %v7564_v31, %v7563_v50 }
 0x574   :  { %v7571_v60 = vrot.slane %v7570_v34, 1  ;;  %v8328_v59 = vsub.f32 %v7558_v30, %v5734_v22  ;;  %v8582_v55 = vmin.f32 %v8454_v54, -1.000005e-05  ;;  %v8455_v17 = vmax.f32 %v8327_v27, -11.512925 }
 0x575   :  { %v8841_v24 = vsel %vm8820_vm10, %v8581_v7, %v8580_v63  ;;  %v2706_v51 = vrot.slane %v2698_v32, %v10351_v16  ;;  %v2713_v45 = vrot.slane %v2699_v47, %v10351_v16  ;;  %v7577_v21 = vadd.f32 %v7576_v38, %v7575_v40 }
 0x576   :  { %v8329_v10 = vsub.f32 %v7565_v23, %v5735_v61  ;;  %v2635_v56 = vcombine.high %v13580_v44, %v13613_v53  ;;  %v2651_v49 = vcombine.high %v13591_v26, %v13620_v11  ;;  %v13657_v19 = vrot.slane %v2619_v41, %v10322_v1 }
 0x577   :  { %v13648_v28 = vcombine.low %v2674_v3, %v2706_v51  ;;  %v13650_v50 = vcombine.high %v2674_v3, %v2706_v51  ;;  %v13652_v54 = vcombine.low %v2681_v18, %v2713_v45  ;;  %v13654_v36 = vcombine.high %v2681_v18, %v2713_v45 }
 0x578   :  { %v7572_v31 = vadd.f32 %v7571_v60, %v7570_v34  ;;  %v8456_v40 = vmax.f32 %v8328_v59, -11.512925  ;;  %v8842_v9 = vsel %vm8822_vm11, %v8582_v55, %v8841_v24  ;;  %v8583_v22 = vmin.f32 %v8455_v17, -1.000005e-05 }
 0x579   :  { %v3898_v44 = vsel %vm55_vm0, %v13648_v28, -inf  ;;  %v3905_v26 = vsel %vm55_vm0, %v13650_v50, -inf  ;;  %v3912_v53 = vsel %vm55_vm0, %v13652_v54, -inf  ;;  %v13667_v63 = vrot.slane %v2651_v49, %v10322_v1 }
 0x57a   :  { %v9629_v11 = vpop.eup %9628  ;;  %v3899_v27 = vrot.slane %v3898_v44, 4  ;;  %v3906_v7 = vrot.slane %v3905_v26, 4  ;;  %v3919_v34 = vsel %vm55_vm0, %v13654_v36, -inf  ;;  %v7578_v2 = vrot.slane %v7577_v21, 1 }
 0x57b   :  { %v5503_v35 = vmul.f32 0.6931472, %v9629_v11  ;;  %v8457_v41 = vmax.f32 %v8329_v10, -11.512925  ;;  %v13672_v62 = vrot.slane %v2635_v56, %v10322_v1  ;;  %v8584_v30 = vmin.f32 %v8456_v40, -1.000005e-05 }
 0x57c   :  { %v8843_v38 = vsel %vm8824_vm12, %v8583_v22, %v8842_v9  ;;  %v3900_v3 = vmax.f32 %v3898_v44, %v3899_v27  ;;  %v3913_v18 = vrot.slane %v3912_v53, 4  ;;  %v3907_v23 = vmax.f32 %v3905_v26, %v3906_v7 }
 0x57d   :  { %v9631_v61 = vpop.eup %9630  ;;  %v5736_v47 = vadd.f32 %v5503_v35, %v13497_v6  ;;  %v3920_v60 = vrot.slane %v3919_v34, 4  ;;  %v16752_v59 = vrot.slane %v13569_v12, 1  ;;  %9632 = vlog2.f32 %v13594_v14 }
 0x57e   :  { %v5505_v32 = vmul.f32 0.6931472, %v9631_v61  ;;  %v16753_v17 = vcombine.high %v16734_v25, %v13555_v8  ;;  %v2714_v51 = vcombine.low %v13672_v62, %v13667_v63  ;;  %v7579_v6 = vadd.f32 %v7578_v2, %v7577_v21 }
 0x57f   :  { %v5037_v55 = vadd.f32 %v16752_v59, %v13569_v12  ;;  %v8330_v10 = vsub.f32 %v7572_v31, %v5736_v47  ;;  %v8844_v56 = vsel %vm8826_vm13, %v8584_v30, %v8843_v38  ;;  %v8585_v49 = vmin.f32 %v8457_v41, -1.000005e-05 }
 0x580   :  { %v13684_v24 = vrot.slane %v16753_v17, %v10322_v1  ;;  %v5737_v45 = vadd.f32 %v5505_v32, %v13502_v33  ;;  %v3901_v14 = vrot.slane %v3900_v3, 2  ;;  %v3914_v40 = vmax.f32 %v3912_v53, %v3913_v18 }
 0x581   :  { %v8458_v22 = vmax.f32 %v8330_v10, -11.512925  ;;  %v3908_v8 = vrot.slane %v3907_v23, 2  ;;  %v3921_v25 = vmax.f32 %v3919_v34, %v3920_v60  ;;  %9634 = vlog2.f32 %v5037_v55 }
 0x582   :  { %v2682_v12 = vcombine.low %v13684_v24, %v13657_v19  ;;  %v8331_v9 = vsub.f32 %v7579_v6, %v5737_v45  ;;  %v7903_v44 = vrot.slane %v13578_v15, 4  ;;  %v8845_v26 = vsel %vm8828_vm14, %v8585_v49, %v8844_v56 }
 0x583   :  { %v2722_v33 = vrot.slane %v2714_v51, %v10351_v16  ;;  %v16754_v21 = vrot.slane %v13538_v39, 2  ;;  %v7884_v11 = vrot.slane %v13565_v4, 2  ;;  %v8586_v7 = vmin.f32 %v8458_v22, -1.000005e-05  ;;  %v16760_v22 = vld [vmem:[#allocation106_spill] sm:$0xff] }
 0x584   :  { %v8459_v27 = vmax.f32 %v8331_v9, -11.512925  ;;  %v16755_v53 = vrot.slane %v13553_v20, 4  ;;  %v2690_v34 = vrot.slane %v2682_v12, %v10351_v16  ;;  %v3902_v2 = vmax.f32 %v3900_v3, %v3901_v14 }
 0x585   :  { %v7871_v31 = vadd.f32 %v16754_v21, %v13538_v39  ;;  %v3915_v41 = vrot.slane %v3914_v40, 2  ;;  %v8846_v30 = vsel %vm8830_vm15, %v8586_v7, %v8845_v26  ;;  %v3909_v38 = vmax.f32 %v3907_v23, %v3908_v8 }
 0x586   :  { %v13702_v35 = vadd.f32 %v16755_v53, %v13553_v20  ;;  %v8587_v61 = vmin.f32 %v8459_v27, -1.000005e-05  ;;  %v3922_v18 = vrot.slane %v3921_v25, 2  ;;  %v7865_v39 = vrot.slane %v13574_v13, 1 }
 0x587   :  { %v16757_v32 = vrot.slane %v13561_v48, 2  ;;  %v13710_v60 = vcombine.low %v2690_v34, %v2722_v33  ;;  %v13712_v59 = vcombine.high %v2690_v34, %v2722_v33  ;;  %9636 = vpow2.f32 %v13521_v42  ;;  %v16761_v33 = vld [vmem:[#allocation101_spill] sm:$0xff] }
 0x588   :  { %16756 = vst [vmem:[#allocation49_spill] sm:$0xff] %v13702_v35  ;;  %v7872_v20 = vrot.slane %v7871_v31, 1  ;;  %v7891_v3 = vrot.slane %v13585_v29, 2  ;;  %v8847_v55 = vsel %vm8832_vm2, %v8587_v61, %v8846_v30  ;;  %v13718_v23 = vadd.f32 %v7884_v11, %v13565_v4 }
 0x589   :  { %v7878_v47 = vadd.f32 %v16757_v32, %v13561_v48  ;;  %v8961_v17 = vsel %vm55_vm0, %v8847_v55, 0.0  ;;  %v3903_v51 = vrot.slane %v3902_v2, 1  ;;  %v3916_v45 = vmax.f32 %v3914_v40, %v3915_v41  ;;  %v16765_v55 = vld [vmem:[#allocation61_spill] sm:$0xff] }
 0x58a   :  { %16758 = vst [vmem:[#allocation5_spill] sm:$0xff] %v13718_v23  ;;  %v13723_v6 = vadd.f32 %v7903_v44, %v13578_v15  ;;  %8962 = vadd.xlane.f32.xlu0 %v8961_v17  ;;  %v3910_v10 = vrot.slane %v3909_v38, 1  ;;  %v3923_v42 = vmax.f32 %v3921_v25, %v3922_v18  ;;  %v13726_v56 = vadd.f32 %v7865_v39, %v13574_v13  ;;  %v9633_v14 = vpop.eup %9632  ;;  %v5853_v25 = vld [vmem:[%s16031_s1 + $0x58] sm:$0xff] }
 0x58b   :  { %v7879_v12 = vrot.slane %v7878_v47, 1  ;;  %v3926_v4 = vsel %vm55_vm0, %v13710_v60, -inf  ;;  %v3933_v49 = vsel %vm55_vm0, %v13712_v59, -inf  ;;  %v13732_v40 = vadd.f32 %v7872_v20, %v7871_v31  ;;  %v16764_v18 = vld [vmem:[#allocation107_spill] sm:$0xff] }
 0x58c   :  { %16759 = vst [vmem:[#allocation22_spill] sm:$0xff] %v13723_v6  ;;  %v2683_v15 = vcombine.high %v13684_v24, %v13657_v19  ;;  %v2715_v9 = vcombine.high %v13672_v62, %v13667_v63  ;;  %v4870_v13 = vsel %vm55_vm0, %v16760_v22, 0.0  ;;  %v13744_v44 = vmax.f32 %v3902_v2, %v3903_v51 }
 0x58d   :  { %v3917_v26 = vrot.slane %v3916_v45, 1  ;;  %v3614_v21 = vrot.slane %v16761_v33, 2  ;;  %v13747_v31 = vmax.f32 %v3909_v38, %v3910_v10  ;;  %v3924_v19 = vrot.slane %v3923_v42, 1 }
 0x58e   :  { %v3927_v24 = vrot.slane %v3926_v4, 4  ;;  %v3934_v11 = vrot.slane %v3933_v49, 4  ;;  %v5587_v63 = vmul.f32 0.6931472, %v13632_v37  ;;  %v13750_v62 = vadd.f32 %v7879_v12, %v7878_v47  ;;  %v9635_v53 = vpop.eup %9634 }
 0x58f   :  { %v13753_v27 = vadd.f32 %v7891_v3, %v13585_v29  ;;  %v4871_v7 = vrot.slane %v4870_v13, 4  ;;  %v5589_v34 = vmul.f32 0.6931472, %v13637_v46  ;;  %v2697_v2 = vrot.slane %v2683_v15, %v10351_v16 }
 0x590   :  { %16762 = vst [vmem:[#allocation20_spill] sm:$0xff] %v13750_v62  ;;  %v6399_v41 = vcombine.high %v5853_v25, %v5853_v25  ;;  %v2729_v61 = vrot.slane %v2715_v9, %v10351_v16  ;;  %v13758_v30 = vmax.f32 %v3916_v45, %v3917_v26  ;;  %v4266_v38 = vsub.f32 %v13648_v28, %v13744_v44  ;;  %v16766_v45 = vld [vmem:[#allocation13_spill] sm:$0xff] }
 0x591   :  { %16763 = vst [vmem:[#allocation27_spill] sm:$0xff] %v13753_v27  ;;  %v3615_v37 = vmax.f32 %v16761_v33, %v3614_v21  ;;  %v4877_v29 = vsel %vm55_vm0, %v16764_v18, 0.0  ;;  %v13765_v39 = vmax.f32 %v3923_v42, %v3924_v19  ;;  %v3928_v32 = vmax.f32 %v3926_v4, %v3927_v24  ;;  %v16767_v9 = vld [vmem:[#allocation109_spill] sm:$0xff] }
 0x592   :  { %v3935_v47 = vmax.f32 %v3933_v49, %v3934_v11  ;;  %v4267_v46 = vsub.f32 %v13650_v50, %v13747_v31  ;;  %v5591_v20 = vmul.f32 0.6931472, %v9633_v14  ;;  %v5593_v3 = vmul.f32 0.6931472, %v9635_v53 }
 0x593   :  { %v5778_v17 = vadd.f32 %v5587_v63, %v16765_v55  ;;  %v4872_v51 = vadd.f32 %v4871_v7, %v4870_v13  ;;  %v6406_v10 = vrot.slane %v5853_v25, %v16766_v45  ;;  %v6413_v12 = vrot.slane %v6399_v41, %v16766_v45 }
 0x594   :  { %v13772_v15 = vcombine.low %v2697_v2, %v2729_v61  ;;  %v4884_v42 = vsel %vm55_vm0, %v16767_v9, 0.0  ;;  %v13776_v22 = vpop.eup %9636  ;;  %v4268_v4 = vsub.f32 %v13652_v54, %v13758_v30  ;;  %v4482_v49 = vmul.f32 1.442695, %v4266_v38 }
 0x595   :  { %16768 = vst [vmem:[#allocation46_spill] sm:$0xff] %v13776_v22  ;;  %v3616_v14 = vrot.slane %v3615_v37, 1  ;;  %v4878_v26 = vrot.slane %v4877_v29, 4  ;;  %v3929_v33 = vrot.slane %v3928_v32, 2  ;;  %v3936_v21 = vrot.slane %v3935_v47, 2 }
 0x596   :  { %v4269_v13 = vsub.f32 %v13654_v36, %v13765_v39  ;;  %v4484_v25 = vmul.f32 1.442695, %v4267_v46  ;;  %v5779_v19 = vadd.f32 %v5589_v34, %v13151_v52  ;;  %v13784_v24 = vadd.f32 %v5591_v20, %v13157_v0 }
 0x597   :  { %v4873_v11 = vrot.slane %v4872_v51, 2  ;;  %v4885_v63 = vrot.slane %v4884_v42, 4  ;;  %v8372_v7 = vsub.f32 %v13726_v56, %v5778_v17  ;;  %v6414_v53 = vcombine.high %v6406_v10, %v6406_v10 }
 0x598   :  { %16769 = vst [vmem:[#allocation67_spill] sm:$0xff] %v13784_v24  ;;  %v6415_v41 = vcombine.high %v6413_v12, %v6413_v12  ;;  %v3940_v38 = vsel %vm55_vm0, %v13772_v15, -inf  ;;  %9638 = vpow2.f32 %v4482_v49  ;;  %v4486_v18 = vmul.f32 1.442695, %v4268_v4  ;;  %v16799_v24 = vld [vmem:[#allocation118_spill] sm:$0xff] }
 0x599   :  { %v13789_v55 = vmax.f32 %v3615_v37, %v3616_v14  ;;  %v4879_v9 = vadd.f32 %v4878_v26, %v4877_v29  ;;  %v3930_v46 = vmax.f32 %v3928_v32, %v3929_v33  ;;  %v3937_v48 = vmax.f32 %v3935_v47, %v3936_v21  ;;  %v16772_v47 = vld [vmem:[#allocation98_spill] sm:$0xff] }
 0x59a   :  { %9640 = vpow2.f32 %v4484_v25  ;;  %v4488_v52 = vmul.f32 1.442695, %v4269_v13  ;;  %v13792_v0 = vadd.f32 %v5593_v3, %v13184_v43  ;;  %v3941_v34 = vrot.slane %v3940_v38, 4 }
 0x59b   :  { %v4874_v20 = vadd.f32 %v4873_v11, %v4872_v51  ;;  %v4886_v56 = vadd.f32 %v4885_v63, %v4884_v42  ;;  %v8373_v17 = vsub.f32 %v13732_v40, %v5779_v19  ;;  %v6422_v8 = vrot.slane %v6406_v10, %v16766_v45 }
 0x59c   :  { %16770 = vst [vmem:[#allocation31_spill] sm:$0xff] %v13792_v0  ;;  %v6429_v49 = vrot.slane %v6413_v12, %v16766_v45  ;;  %v6436_v37 = vrot.slane %v6414_v53, %v16766_v45  ;;  %v6443_v29 = vrot.slane %v6415_v41, %v16766_v45  ;;  %v13799_v32 = vcombine.high %v2697_v2, %v2729_v61 }
 0x59d   :  { %9642 = vpow2.f32 %v4486_v18  ;;  %v4225_v43 = vsub.f32 %v16772_v47, %v13789_v55  ;;  %v3931_v3 = vrot.slane %v3930_v46, 1  ;;  %v3938_v4 = vrot.slane %v3937_v48, 1 }
 0x59e   :  { %16771 = vst [vmem:[#allocation68_spill] sm:$0xff] %v13799_v32  ;;  %9644 = vpow2.f32 %v4488_v52  ;;  %v4880_v51 = vrot.slane %v4879_v9, 2  ;;  %v3942_v42 = vmax.f32 %v3940_v38, %v3941_v34  ;;  %v4875_v14 = vrot.slane %v4874_v20, 1 }
 0x59f   :  { %v4400_v40 = vmul.f32 1.442695, %v4225_v43  ;;  %v4887_v10 = vrot.slane %v4886_v56, 2  ;;  %v13803_v26 = vmax.f32 %v8372_v7, -11.512925  ;;  %v6444_v12 = vcombine.high %v6422_v8, %v6422_v8  ;;  %v13886_v43 = vpop.permute.xlu1 %886 }
 0x5a0   :  { %v6446_v33 = vcombine.high %v6436_v37, %v6436_v37  ;;  %v4881_v21 = vadd.f32 %v4880_v51, %v4879_v9  ;;  %v6445_v13 = vcombine.high %v6429_v49, %v6429_v49  ;;  %v6447_v2 = vcombine.high %v6443_v29, %v6443_v29 }
 0x5a1   :  { %16773 = vst [vmem:[#allocation66_spill] sm:$0xff] %v13803_v26  ;;  %9646 = vpow2.f32 %v4400_v40  ;;  %v4888_v61 = vadd.f32 %v4887_v10, %v4886_v56  ;;  %v6999_v25 = vrot.slane %v6422_v8, %v10399_v58  ;;  %v7003_v19 = vrot.slane %v6436_v37, %v10399_v58 }
 0x5a2   :  { %v3947_v11 = vsel %vm55_vm0, %v13799_v32, -inf  ;;  %v4882_v63 = vrot.slane %v4881_v21, 1  ;;  %v13809_v53 = vmax.f32 %v3930_v46, %v3931_v3  ;;  %v13811_v41 = vmax.f32 %v3937_v48, %v3938_v4 }
 0x5a3   :  { %v3943_v7 = vrot.slane %v3942_v42, 2  ;;  %v4876_v38 = vadd.f32 %v4875_v14, %v4874_v20  ;;  %v7007_v18 = vrot.slane %v6444_v12, %v10399_v58  ;;  %v7011_v9 = vrot.slane %v6446_v33, %v10399_v58 }
 0x5a4   :  { %16774 = vst [vmem:[#allocation73_spill] sm:$0xff] %v13809_v53  ;;  %16775 = vst [vmem:[#allocation18_spill] sm:$0xff] %v13811_v41  ;;  %v7015_v52 = vrot.slane %v6429_v49, %v10399_v58  ;;  %v7019_v8 = vrot.slane %v6443_v29, %v10399_v58  ;;  %v13817_v34 = vmax.f32 %v8373_v17, -11.512925  ;;  %v7023_v56 = vrot.slane %v6445_v13, %v10399_v58 }
 0x5a5   :  { %v4883_v37 = vadd.f32 %v4882_v63, %v4881_v21  ;;  %v4889_v47 = vrot.slane %v4888_v61, 1  ;;  %v9639_v46 = vpop.eup %9638  ;;  %v7027_v48 = vrot.slane %v6447_v2, %v10399_v58  ;;  %vm13822_vm3 = vcmp.eq.s32.totalorder %v6999_v25, %v10309_v57 }
 0x5a6   :  { %16776 = vst [vmem:[#allocation76_spill] sm:$0xff] %v13817_v34  ;;  %vm13827_vm4 = vcmp.eq.s32.totalorder %v7003_v19, %v10309_v57  ;;  %v3948_v49 = vrot.slane %v3947_v11, 4  ;;  %v3944_v29 = vmax.f32 %v3942_v42, %v3943_v7  ;;  %v4270_v3 = vsub.f32 %v13710_v60, %v13809_v53  ;;  %v16796_v34 = vld [vmem:[#allocation112_spill] sm:$0xff] }
 0x5a7   :  { %v9641_v17 = vpop.eup %9640  ;;  %v4271_v4 = vsub.f32 %v13712_v59, %v13811_v41  ;;  %9648 = vlog2.f32 %v4876_v38  ;;  %vm7246_vm5 = vcmp.eq.s32.totalorder %v7007_v18, %v10309_v57  ;;  %vm7247_vm1 = vcmp.eq.s32.totalorder %v7011_v9, %v10309_v57 }
 0x5a8   :  { %vm13838_vm6 = vcmp.eq.s32.totalorder %v7015_v52, %v10309_v57  ;;  %vm13843_vm7 = vcmp.eq.s32.totalorder %v7019_v8, %v10309_v57  ;;  %v5178_v42 = vsel %vm55_vm0, %v9639_v46, 0.0  ;;  %v7372_v14 = vsel %vm13822_vm3, %v13648_v28, 0.0  ;;  %v13859_v28 = vpop.permute.xlu0 %790 }
 0x5a9   :  { %v4890_v10 = vadd.f32 %v4889_v47, %v4888_v61  ;;  %9650 = vlog2.f32 %v4883_v37  ;;  %vm7250_vm8 = vcmp.eq.s32.totalorder %v7023_v56, %v10309_v57  ;;  %vm7251_vm9 = vcmp.eq.s32.totalorder %v7027_v48, %v10309_v57 }
 0x5aa   :  { %v9643_v12 = vpop.eup %9642  ;;  %v13853_v33 = vmax.f32 %v3947_v11, %v3948_v49  ;;  %v5185_v21 = vsel %vm55_vm0, %v9641_v17, 0.0  ;;  %v3945_v2 = vrot.slane %v3944_v29, 1  ;;  %v4490_v25 = vmul.f32 1.442695, %v4270_v3 }
 0x5ab   :  { %v9645_v13 = vpop.eup %9644  ;;  %v4492_v19 = vmul.f32 1.442695, %v4271_v4  ;;  %v7373_v63 = vsel %vm13827_vm4, %v13650_v50, 0.0  ;;  %v5179_v61 = vrot.slane %v5178_v42, 4  ;;  %v7374_v7 = vsel %vm7246_vm5, %v13652_v54, 0.0 }
 0x5ac   :  { %16785 = vst [vmem:[#allocation24_spill] sm:$0xff] %v13853_v33  ;;  %v7375_v11 = vsel %vm7247_vm1, %v13654_v36, 0.0  ;;  %v8028_v38 = vsel %vm55_vm0, %v7372_v14, 0.0  ;;  %v5186_v52 = vrot.slane %v5185_v21, 4  ;;  %v5192_v8 = vsel %vm55_vm0, %v9643_v12, 0.0  ;;  %v13893_v51 = vpop.permute.xlu0 %838  ;;  %v16798_v33 = vld [vmem:[#allocation7_spill] sm:$0xff] }
 0x5ad   :  { %v7376_v50 = vsel %vm13838_vm6, %v13710_v60, 0.0  ;;  %9652 = vlog2.f32 %v4890_v10  ;;  %v5199_v47 = vsel %vm55_vm0, %v9645_v13, 0.0  ;;  %v7377_v54 = vsel %vm13843_vm7, %v13712_v59, 0.0 }
 0x5ae   :  { %v9647_v37 = vpop.eup %9646  ;;  %v13879_v36 = vsel %vm7250_vm8, %v13772_v15, 0.0  ;;  %v8035_v18 = vsel %vm55_vm0, %v7373_v63, 0.0  ;;  %v13882_v9 = vmax.f32 %v3944_v29, %v3945_v2  ;;  %v8029_v46 = vrot.slane %v8028_v38, 4  ;;  %v16788_v63 = vld [vmem:[#allocation105_spill] sm:$0xff] }
 0x5af   :  { %v8042_v60 = vsel %vm55_vm0, %v7374_v7, 0.0  ;;  %v4891_v20 = vsel %vm55_vm0, %v9647_v37, 0.0  ;;  %v5180_v49 = vadd.f32 %v5179_v61, %v5178_v42  ;;  %v5193_v17 = vrot.slane %v5192_v8, 4  ;;  %v13913_v37 = vpop.permute.xlu1 %982 }
 0x5b0   :  { %16786 = vst [vmem:[#allocation77_spill] sm:$0xff] %v13882_v9  ;;  %v13891_v59 = vsel %vm7251_vm9, %v13799_v32, 0.0  ;;  %v4892_v56 = vrot.slane %v4891_v20, 4  ;;  %9654 = vpow2.f32 %v4490_v25  ;;  %v5187_v3 = vadd.f32 %v5186_v52, %v5185_v21 }
 0x5b1   :  { %16787 = vst [vmem:[#allocation62_spill] sm:$0xff] %v13891_v59  ;;  %v5200_v4 = vrot.slane %v5199_v47, 4  ;;  %v8036_v29 = vrot.slane %v8035_v18, 4  ;;  %9656 = vpow2.f32 %v4492_v19  ;;  %v8043_v40 = vrot.slane %v8042_v60, 4 }
 0x5b2   :  { %v13896_v14 = vsel %vm55_vm0, %v7375_v11, 0.0  ;;  %v4893_v10 = vadd.f32 %v4892_v56, %v4891_v20  ;;  %v13900_v12 = vadd.f32 %v8029_v46, %v8028_v38  ;;  %v13903_v48 = vsel %vm55_vm0, %v7376_v50, 0.0  ;;  %v16789_v20 = vld [vmem:[#allocation108_spill] sm:$0xff]  ;;  %v13924_v38 = vpop.permute.xlu0 %934 }
 0x5b3   :  { %v13906_v21 = vsel %vm55_vm0, %v7377_v54, 0.0  ;;  %v5181_v2 = vrot.slane %v5180_v49, 2  ;;  %v5194_v25 = vadd.f32 %v5193_v17, %v5192_v8  ;;  %v7741_v61 = vsel %vm55_vm0, %v16788_v63, 0.0  ;;  %v16791_v17 = vld [vmem:[#allocation110_spill] sm:$0xff]  ;;  %v13934_v27 = vpop.permute.xlu1 %1078 }
 0x5b4   :  { %v9649_v13 = vpop.eup %9648  ;;  %v4894_v19 = vrot.slane %v4893_v10, 2  ;;  %v5188_v7 = vrot.slane %v5187_v3, 2  ;;  %v5201_v11 = vadd.f32 %v5200_v4, %v5199_v47  ;;  %v13910_v52 = vadd.f32 %v8036_v29, %v8035_v18  ;;  %v16792_v18 = vld [vmem:[#allocation116_spill] sm:$0xff]  ;;  %v16793_v4 = vld [vmem:[#allocation113_spill] sm:$0xff] }
 0x5b5   :  { %v13915_v46 = vadd.f32 %v8043_v40, %v8042_v60  ;;  %v16790_v56 = vrot.slane %v16789_v20, 2  ;;  %v7737_v42 = vrot.slane %v16791_v17, 2  ;;  %v5547_v41 = vmul.f32 0.6931472, %v9649_v13  ;;  %v16794_v40 = vld [vmem:[#allocation111_spill] sm:$0xff] }
 0x5b6   :  { %v9651_v50 = vpop.eup %9650  ;;  %v4895_v54 = vadd.f32 %v4894_v19, %v4893_v10  ;;  %v7742_v47 = vrot.slane %v7741_v61, 4  ;;  %v8350_v29 = vsub.f32 %v16793_v4, %v16792_v18  ;;  %v5182_v53 = vadd.f32 %v5181_v2, %v5180_v49  ;;  %v16797_v18 = vld [vmem:[#allocation117_spill] sm:$0xff] }
 0x5b7   :  { %v7731_v8 = vadd.f32 %v16790_v56, %v16789_v20  ;;  %v5195_v59 = vrot.slane %v5194_v25, 2  ;;  %v16795_v10 = vrot.slane %v16794_v40, 1  ;;  %v5189_v32 = vadd.f32 %v5188_v7, %v5187_v3  ;;  %v16800_v3 = vld [vmem:[#allocation119_spill] sm:$0xff] }
 0x5b8   :  { %v4896_v60 = vrot.slane %v4895_v54, 1  ;;  %v5202_v20 = vrot.slane %v5201_v11, 2  ;;  %v5549_v56 = vmul.f32 0.6931472, %v9651_v50  ;;  %v7725_v26 = vrot.slane %v16796_v34, 1 }
 0x5b9   :  { %v7719_v19 = vadd.f32 %v16795_v10, %v16794_v40  ;;  %v7732_v0 = vrot.slane %v7731_v8, 1  ;;  %v7738_v35 = vadd.f32 %v7737_v42, %v16791_v17  ;;  %v5758_v49 = vadd.f32 %v5547_v41, %v16798_v33  ;;  %v16802_v40 = vld [vmem:[#allocation99_spill] sm:$0xff]  ;;  %v13943_v33 = vpop.permute.xlu0 %1030 }
 0x5ba   :  { %v9653_v63 = vpop.eup %9652  ;;  %v4897_v13 = vadd.f32 %v4896_v60, %v4895_v54  ;;  %v7743_v2 = vadd.f32 %v7742_v47, %v7741_v61  ;;  %v8478_v62 = vmax.f32 %v8350_v29, -11.512925  ;;  %v8604_v6 = vmin.f32 %v16799_v24, -1.000005e-05  ;;  %v16801_v54 = vld [vmem:[#allocation16_spill] sm:$0xff] }
 0x5bb   :  { %v8351_v4 = vsub.f32 %v7719_v19, %v16797_v18  ;;  %v8605_v7 = vmin.f32 %v16800_v3, -1.000005e-05  ;;  %v2482_v50 = vcombine.low %v13859_v28, %v13886_v43  ;;  %v2466_v60 = vcombine.low %v16801_v54, %v13893_v51 }
 0x5bc   :  { %9658 = vlog2.f32 %v4897_v13  ;;  %v5183_v42 = vrot.slane %v5182_v53, 1  ;;  %v5551_v17 = vmul.f32 0.6931472, %v9653_v63  ;;  %v5759_v10 = vadd.f32 %v5549_v56, %v16802_v40 }
 0x5bd   :  { %v7726_v41 = vadd.f32 %v7725_v26, %v16796_v34  ;;  %v13945_v24 = vpop.eup %9654  ;;  %v5196_v61 = vadd.f32 %v5195_v59, %v5194_v25  ;;  %v7733_v47 = vadd.f32 %v7732_v0, %v7731_v8  ;;  %v7739_v29 = vrot.slane %v7738_v35, 1  ;;  %v16805_v8 = vld [vmem:[#allocation100_spill] sm:$0xff] }
 0x5be   :  { %16803 = vst [vmem:[#allocation25_spill] sm:$0xff] %v13945_v24  ;;  %v2514_v19 = vcombine.low %v13913_v37, %v13934_v27  ;;  %v13949_v13 = vpop.eup %9656  ;;  %v7744_v18 = vrot.slane %v7743_v2, 2  ;;  %v8479_v23 = vmax.f32 %v8351_v4, -11.512925  ;;  %v8606_v63 = vmin.f32 %v8478_v62, -1.000005e-05 }
 0x5bf   :  { %16804 = vst [vmem:[#allocation28_spill] sm:$0xff] %v13949_v13  ;;  %v8352_v3 = vsub.f32 %v7726_v41, %v5758_v49  ;;  %v8862_v56 = vsel %vm8820_vm10, %v8605_v7, %v8604_v6  ;;  %v2490_v26 = vrot.slane %v2482_v50, %v10322_v1  ;;  %v2474_v34 = vrot.slane %v2466_v60, %v10322_v1 }
 0x5c0   :  { %v2498_v59 = vcombine.low %v13924_v38, %v13943_v33  ;;  %v5190_v0 = vrot.slane %v5189_v32, 1  ;;  %v5203_v25 = vadd.f32 %v5202_v20, %v5201_v11  ;;  %v5760_v40 = vadd.f32 %v5551_v17, %v16805_v8 }
 0x5c1   :  { %v8353_v24 = vsub.f32 %v7733_v47, %v5759_v10  ;;  %v5184_v22 = vadd.f32 %v5183_v42, %v5182_v53  ;;  %v5197_v13 = vrot.slane %v5196_v61, 1  ;;  %v8064_v49 = vrot.slane %v13906_v21, 4 }
 0x5c2   :  { %v2522_v62 = vrot.slane %v2514_v19, %v10322_v1  ;;  %v7740_v4 = vadd.f32 %v7739_v29, %v7738_v35  ;;  %v7745_v6 = vadd.f32 %v7744_v18, %v7743_v2  ;;  %v8480_v7 = vmax.f32 %v8352_v3, -11.512925 }
 0x5c3   :  { %v8863_v50 = vsel %vm8822_vm11, %v8606_v63, %v8862_v56  ;;  %v8607_v60 = vmin.f32 %v8479_v23, -1.000005e-05  ;;  %v2530_v41 = vcombine.low %v2474_v34, %v2490_v26  ;;  %v2531_v5 = vcombine.high %v2474_v34, %v2490_v26 }
 0x5c4   :  { %v2506_v57 = vrot.slane %v2498_v59, %v10322_v1  ;;  %v5191_v11 = vadd.f32 %v5190_v0, %v5189_v32  ;;  %v5204_v20 = vrot.slane %v5203_v25, 1  ;;  %v8354_v17 = vsub.f32 %v7740_v4, %v5760_v40 }
 0x5c5   :  { %v8481_v10 = vmax.f32 %v8353_v24, -11.512925  ;;  %v5198_v53 = vadd.f32 %v5197_v13, %v5196_v61  ;;  %v8864_v42 = vsel %vm8824_vm12, %v8607_v60, %v8863_v50  ;;  %9660 = vlog2.f32 %v5184_v22 }
 0x5c6   :  { %v2562_v47 = vcombine.low %v2506_v57, %v2522_v62  ;;  %v2563_v8 = vcombine.high %v2506_v57, %v2522_v62  ;;  %v7746_v35 = vrot.slane %v7745_v6, 1  ;;  %v8608_v2 = vmin.f32 %v8480_v7, -1.000005e-05 }
 0x5c7   :  { %v2515_v29 = vcombine.high %v13913_v37, %v13934_v27  ;;  %v2538_v23 = vrot.slane %v2530_v41, %v10351_v16  ;;  %v2545_v19 = vrot.slane %v2531_v5, %v10351_v16  ;;  %v8482_v61 = vmax.f32 %v8354_v17, -11.512925 }
 0x5c8   :  { %v2570_v32 = vrot.slane %v2562_v47, %v10351_v16  ;;  %v2577_v18 = vrot.slane %v2563_v8, %v10351_v16  ;;  %v8609_v13 = vmin.f32 %v8481_v10, -1.000005e-05  ;;  %v8865_v3 = vsel %vm8826_vm13, %v8608_v2, %v8864_v42 }
 0x5c9   :  { %v9659_v24 = vpop.eup %9658  ;;  %v2499_v57 = vcombine.high %v13924_v38, %v13943_v33  ;;  %v7747_v5 = vadd.f32 %v7746_v35, %v7745_v6  ;;  %v2483_v56 = vcombine.high %v13859_v28, %v13886_v43  ;;  %v2467_v26 = vcombine.high %v16801_v54, %v13893_v51 }
 0x5ca   :  { %v5553_v22 = vmul.f32 0.6931472, %v9659_v24  ;;  %v13971_v63 = vcombine.low %v2538_v23, %v2570_v32  ;;  %v13973_v27 = vcombine.high %v2538_v23, %v2570_v32  ;;  %v13975_v37 = vcombine.low %v2545_v19, %v2577_v18 }
 0x5cb   :  { %v13982_v34 = vrot.slane %v2515_v29, %v10322_v1  ;;  %v8866_v38 = vsel %vm8828_vm14, %v8609_v13, %v8865_v3  ;;  %v2513_v40 = vrot.slane %v2499_v57, %v10322_v1  ;;  %v13991_v62 = vcombine.high %v2545_v19, %v2577_v18 }
 0x5cc   :  { %v5761_v59 = vadd.f32 %v5553_v22, %v13789_v55  ;;  %v3842_v33 = vsel %vm55_vm0, %v13971_v63, -inf  ;;  %v3849_v0 = vsel %vm55_vm0, %v13973_v27, -inf  ;;  %v5205_v51 = vadd.f32 %v5204_v20, %v5203_v25 }
 0x5cd   :  { %v3843_v28 = vrot.slane %v3842_v33, 4  ;;  %v3850_v43 = vrot.slane %v3849_v0, 4  ;;  %v8610_v4 = vmin.f32 %v8482_v61, -1.000005e-05  ;;  %v3856_v55 = vsel %vm55_vm0, %v13975_v37, -inf }
 0x5ce   :  { %v8355_v54 = vsub.f32 %v7747_v5, %v5761_v59  ;;  %9662 = vlog2.f32 %v5191_v11  ;;  %v8031_v6 = vrot.slane %v13900_v12, 2  ;;  %v2497_v7 = vrot.slane %v2483_v56, %v10322_v1 }
 0x5cf   :  { %v2481_v50 = vrot.slane %v2467_v26, %v10322_v1  ;;  %9664 = vlog2.f32 %v5198_v53  ;;  %v8867_v41 = vsel %vm8830_vm15, %v8610_v4, %v8866_v38  ;;  %v3844_v17 = vmax.f32 %v3842_v33, %v3843_v28 }
 0x5d0   :  { %v8483_v60 = vmax.f32 %v8355_v54, -11.512925  ;;  %v2578_v10 = vcombine.low %v2513_v40, %v13982_v34  ;;  %v3851_v25 = vmax.f32 %v3849_v0, %v3850_v43  ;;  %v3857_v20 = vrot.slane %v3856_v55, 4 }
 0x5d1   :  { %v3863_v42 = vsel %vm55_vm0, %v13991_v62, -inf  ;;  %9666 = vlog2.f32 %v5205_v51  ;;  %v8038_v11 = vrot.slane %v13910_v52, 2  ;;  %v8045_v47 = vrot.slane %v13915_v46, 2 }
 0x5d2   :  { %v8611_v8 = vmin.f32 %v8483_v60, -1.000005e-05  ;;  %v16806_v53 = vsub.f32 %v13772_v15, %v13882_v9  ;;  %v16807_v2 = vrot.slane %v13896_v14, 4  ;;  %v8070_v23 = vsel %vm55_vm0, %v13879_v36, 0.0  ;;  %v9661_v32 = vpop.eup %9660 }
 0x5d3   :  { %v2546_v19 = vcombine.low %v2481_v50, %v2497_v7  ;;  %v16808_v18 = vrot.slane %v13903_v48, 4  ;;  %v3845_v13 = vrot.slane %v3844_v17, 2  ;;  %v3864_v3 = vrot.slane %v3863_v42, 4 }
 0x5d4   :  { %v4494_v35 = vmul.f32 1.442695, %v16806_v53  ;;  %v8051_v29 = vadd.f32 %v16807_v2, %v13896_v14  ;;  %v8868_v61 = vsel %vm8832_vm2, %v8611_v8, %v8867_v41  ;;  %v2586_v57 = vrot.slane %v2578_v10, %v10351_v16 }
 0x5d5   :  { %v8058_v24 = vadd.f32 %v16808_v18, %v13903_v48  ;;  %v8970_v15 = vsel %vm55_vm0, %v8868_v61, 0.0  ;;  %v3852_v22 = vrot.slane %v3851_v25, 2  ;;  %v3858_v5 = vmax.f32 %v3856_v55, %v3857_v20 }
 0x5d6   :  { %v8032_v14 = vadd.f32 %v8031_v6, %v13900_v12  ;;  %v8039_v36 = vadd.f32 %v8038_v11, %v13910_v52  ;;  %v8046_v56 = vadd.f32 %v8045_v47, %v13915_v46  ;;  %v14024_v48 = vadd.f32 %v8064_v49, %v13906_v21  ;;  %8971 = vadd.xlane.f32.xlu0 %v8970_v15  ;;  %v16815_v15 = vld [vmem:[#allocation123_spill] sm:$0xff] }
 0x5d7   :  { %9668 = vpow2.f32 %v4494_v35  ;;  %v8071_v26 = vrot.slane %v8070_v23, 4  ;;  %v2554_v59 = vrot.slane %v2546_v19, %v10351_v16  ;;  %v2579_v38 = vcombine.high %v2513_v40, %v13982_v34  ;;  %v16811_v40 = vld [vmem:[#allocation121_spill] sm:$0xff]  ;;  %v5852_v19 = vld [vmem:[%s16031_s1 + $0x50] sm:$0xff] }
 0x5d8   :  { %16809 = vst [vmem:[#allocation48_spill] sm:$0xff] %v14024_v48  ;;  %v8052_v33 = vrot.slane %v8051_v29, 2  ;;  %v8059_v0 = vrot.slane %v8058_v24, 2  ;;  %v3846_v28 = vmax.f32 %v3844_v17, %v3845_v13  ;;  %v3865_v12 = vmax.f32 %v3863_v42, %v3864_v3 }
 0x5d9   :  { %v2547_v43 = vcombine.high %v2481_v50, %v2497_v7  ;;  %v14028_v52 = vcombine.low %v2554_v59, %v2586_v57  ;;  %v3853_v46 = vmax.f32 %v3851_v25, %v3852_v22  ;;  %v3859_v51 = vrot.slane %v3858_v5, 2 }
 0x5da   :  { %v8033_v54 = vrot.slane %v8032_v14, 1  ;;  %v8040_v4 = vrot.slane %v8039_v36, 1  ;;  %v8047_v21 = vrot.slane %v8046_v56, 1  ;;  %v14031_v55 = vadd.f32 %v8071_v26, %v8070_v23 }
 0x5db   :  { %v14034_v6 = vrot.slane %v2579_v38, %v10351_v16  ;;  %v14036_v34 = vcombine.high %v2554_v59, %v2586_v57  ;;  %v3558_v60 = vrot.slane %v16811_v40, 2  ;;  %v9663_v41 = vpop.eup %9662  ;;  %v14039_v7 = vadd.f32 %v8052_v33, %v8051_v29 }
 0x5dc   :  { %16810 = vst [vmem:[#allocation74_spill] sm:$0xff] %v14031_v55  ;;  %v14041_v50 = vadd.f32 %v8059_v0, %v8058_v24  ;;  %v3847_v17 = vrot.slane %v3846_v28, 1  ;;  %v3866_v10 = vrot.slane %v3865_v12, 2  ;;  %v9665_v25 = vpop.eup %9664  ;;  %v14044_v20 = vrot.slane %v2547_v43, %v10351_v16 }
 0x5dd   :  { %16812 = vst [vmem:[#allocation75_spill] sm:$0xff] %v14039_v7  ;;  %v3854_v42 = vrot.slane %v3853_v46, 1  ;;  %v3860_v11 = vmax.f32 %v3858_v5, %v3859_v51  ;;  %v3870_v47 = vsel %vm55_vm0, %v14028_v52, -inf  ;;  %v5635_v8 = vmul.f32 0.6931472, %v9661_v32  ;;  %v16840_v5 = vld [vmem:[#allocation125_spill] sm:$0xff] }
 0x5de   :  { %16813 = vst [vmem:[#allocation35_spill] sm:$0xff] %v14041_v50  ;;  %v8034_v53 = vadd.f32 %v8033_v54, %v8032_v14  ;;  %v14048_v35 = vadd.f32 %v8040_v4, %v8039_v36  ;;  %v14050_v2 = vadd.f32 %v8047_v21, %v8046_v56  ;;  %v9667_v29 = vpop.eup %9666  ;;  %v5637_v23 = vmul.f32 0.6931472, %v9663_v41  ;;  %v16817_v4 = vld [vmem:[#allocation124_spill] sm:$0xff] }
 0x5df   :  { %v14057_v18 = vcombine.low %v14044_v20, %v14034_v6  ;;  %v3877_v24 = vsel %vm55_vm0, %v14036_v34, -inf  ;;  %v3559_v32 = vmax.f32 %v16811_v40, %v3558_v60  ;;  %v14062_v61 = vmax.f32 %v3846_v28, %v3847_v17  ;;  %v16899_v7 = vld [vmem:[#allocation132_spill] sm:$0xff] }
 0x5e0   :  { %16814 = vst [vmem:[#allocation47_spill] sm:$0xff] %v14050_v2  ;;  %v3867_v13 = vmax.f32 %v3865_v12, %v3866_v10  ;;  %v3871_v3 = vrot.slane %v3870_v47, 4  ;;  %v4814_v57 = vsel %vm55_vm0, %v16815_v15, 0.0  ;;  %v5639_v22 = vmul.f32 0.6931472, %v9665_v25  ;;  %v16820_v15 = vld [vmem:[#allocation114_spill] sm:$0xff] }
 0x5e1   :  { %v14067_v14 = vmax.f32 %v3853_v46, %v3854_v42  ;;  %v3861_v36 = vrot.slane %v3860_v11, 1  ;;  %v5641_v56 = vmul.f32 0.6931472, %v9667_v29  ;;  %v5802_v26 = vadd.f32 %v5635_v8, %v13744_v44  ;;  %v16851_v2 = vld [vmem:[#allocation137_spill] sm:$0xff] }
 0x5e2   :  { %v6350_v59 = vcombine.high %v5852_v19, %v5852_v19  ;;  %v3878_v38 = vrot.slane %v3877_v24, 4  ;;  %v14071_v33 = vadd.f32 %v5637_v23, %v13747_v31  ;;  %v3884_v0 = vsel %vm55_vm0, %v14057_v18, -inf }
 0x5e3   :  { %v3560_v28 = vrot.slane %v3559_v32, 1  ;;  %v4815_v12 = vrot.slane %v4814_v57, 4  ;;  %v3868_v51 = vrot.slane %v3867_v13, 1  ;;  %v3872_v54 = vmax.f32 %v3870_v47, %v3871_v3 }
 0x5e4   :  { %v14075_v43 = vpop.eup %9668  ;;  %v4258_v46 = vsub.f32 %v13971_v63, %v14062_v61  ;;  %v4821_v44 = vsel %vm55_vm0, %v16817_v4, 0.0  ;;  %v14082_v21 = vadd.f32 %v5639_v22, %v13758_v30  ;;  %v6357_v31 = vrot.slane %v5852_v19, %v16766_v45  ;;  %v16822_v4 = vld [vmem:[#allocation126_spill] sm:$0xff] }
 0x5e5   :  { %16816 = vst [vmem:[#allocation72_spill] sm:$0xff] %v14075_v43  ;;  %v14085_v40 = vmax.f32 %v3860_v11, %v3861_v36  ;;  %v4259_v60 = vsub.f32 %v13973_v27, %v14067_v14  ;;  %v8396_v41 = vsub.f32 %v8034_v53, %v5802_v26  ;;  %v6364_v17 = vrot.slane %v6350_v59, %v16766_v45 }
 0x5e6   :  { %16818 = vst [vmem:[#allocation44_spill] sm:$0xff] %v14082_v21  ;;  %v3879_v10 = vmax.f32 %v3877_v24, %v3878_v38  ;;  %v3885_v25 = vrot.slane %v3884_v0, 4  ;;  %v14091_v42 = vadd.f32 %v5641_v56, %v13765_v39  ;;  %v14093_v47 = vmax.f32 %v3559_v32, %v3560_v28 }
 0x5e7   :  { %v4816_v8 = vadd.f32 %v4815_v12, %v4814_v57  ;;  %v4822_v30 = vrot.slane %v4821_v44, 4  ;;  %v8397_v29 = vsub.f32 %v14048_v35, %v14071_v33  ;;  %v14097_v11 = vmax.f32 %v3867_v13, %v3868_v51  ;;  %v14154_v33 = vpop.permute.xlu1 %796 }
 0x5e8   :  { %16819 = vst [vmem:[#allocation82_spill] sm:$0xff] %v14091_v42  ;;  %v3873_v23 = vrot.slane %v3872_v54, 2  ;;  %v4466_v19 = vmul.f32 1.442695, %v4258_v46  ;;  %v6365_v3 = vcombine.high %v6357_v31, %v6357_v31  ;;  %v4260_v53 = vsub.f32 %v13975_v37, %v14085_v40 }
 0x5e9   :  { %v4468_v24 = vmul.f32 1.442695, %v4259_v60  ;;  %v4217_v39 = vsub.f32 %v16820_v15, %v14093_v47  ;;  %v6366_v22 = vcombine.high %v6364_v17, %v6364_v17  ;;  %v6373_v32 = vrot.slane %v6357_v31, %v16766_v45 }
 0x5ea   :  { %v3880_v57 = vrot.slane %v3879_v10, 2  ;;  %v3886_v36 = vmax.f32 %v3884_v0, %v3885_v25  ;;  %v6380_v56 = vrot.slane %v6364_v17, %v16766_v45  ;;  %v4817_v13 = vrot.slane %v4816_v8, 2 }
 0x5eb   :  { %v4384_v26 = vmul.f32 1.442695, %v4217_v39  ;;  %v4823_v59 = vadd.f32 %v4822_v30, %v4821_v44  ;;  %v14105_v38 = vmax.f32 %v8396_v41, -11.512925  ;;  %v3874_v28 = vmax.f32 %v3872_v54, %v3873_v23 }
 0x5ec   :  { %v4261_v12 = vsub.f32 %v13991_v62, %v14097_v11  ;;  %9670 = vpow2.f32 %v4466_v19  ;;  %v6387_v51 = vrot.slane %v6365_v3, %v16766_v45  ;;  %v4470_v46 = vmul.f32 1.442695, %v4260_v53 }
 0x5ed   :  { %16821 = vst [vmem:[#allocation78_spill] sm:$0xff] %v14105_v38  ;;  %9672 = vpow2.f32 %v4468_v24  ;;  %v4828_v31 = vsel %vm55_vm0, %v16822_v4, 0.0  ;;  %v6394_v0 = vrot.slane %v6366_v22, %v16766_v45  ;;  %v3881_v60 = vmax.f32 %v3879_v10, %v3880_v57  ;;  %v16849_v38 = vld [vmem:[#allocation134_spill] sm:$0xff] }
 0x5ee   :  { %v3887_v17 = vrot.slane %v3886_v36, 2  ;;  %9674 = vpow2.f32 %v4384_v26  ;;  %v6395_v44 = vcombine.high %v6373_v32, %v6373_v32  ;;  %v6396_v41 = vcombine.high %v6380_v56, %v6380_v56 }
 0x5ef   :  { %v4818_v25 = vadd.f32 %v4817_v13, %v4816_v8  ;;  %v4824_v54 = vrot.slane %v4823_v59, 2  ;;  %v14115_v30 = vcombine.high %v14044_v20, %v14034_v6  ;;  %v3875_v23 = vrot.slane %v3874_v28, 1 }
 0x5f0   :  { %v4472_v19 = vmul.f32 1.442695, %v4261_v12  ;;  %v4829_v3 = vrot.slane %v4828_v31, 4  ;;  %v6397_v53 = vcombine.high %v6387_v51, %v6387_v51  ;;  %9676 = vpow2.f32 %v4470_v46 }
 0x5f1   :  { %16823 = vst [vmem:[#allocation83_spill] sm:$0xff] %v14115_v30  ;;  %v4819_v24 = vrot.slane %v4818_v25, 1  ;;  %v4825_v15 = vadd.f32 %v4824_v54, %v4823_v59  ;;  %v6967_v39 = vrot.slane %v6373_v32, %v10399_v58  ;;  %v3882_v10 = vrot.slane %v3881_v60, 1 }
 0x5f2   :  { %v3888_v22 = vmax.f32 %v3886_v36, %v3887_v17  ;;  %v4830_v57 = vadd.f32 %v4829_v3, %v4828_v31  ;;  %v6398_v26 = vcombine.high %v6394_v0, %v6394_v0  ;;  %v6971_v8 = vrot.slane %v6387_v51, %v10399_v58 }
 0x5f3   :  { %v4820_v13 = vadd.f32 %v4819_v24, %v4818_v25  ;;  %v4826_v4 = vrot.slane %v4825_v15, 1  ;;  %v14119_v49 = vmax.f32 %v3874_v28, %v3875_v23  ;;  %v3891_v6 = vsel %vm55_vm0, %v14115_v30, -inf  ;;  %v16827_v23 = vld [vmem:[#allocation12_spill] sm:$0xff] }
 0x5f4   :  { %9678 = vpow2.f32 %v4472_v19  ;;  %v4831_v20 = vrot.slane %v4830_v57, 2  ;;  %v6975_v12 = vrot.slane %v6395_v44, %v10399_v58  ;;  %v6979_v59 = vrot.slane %v6397_v53, %v10399_v58 }
 0x5f5   :  { %16824 = vst [vmem:[#allocation79_spill] sm:$0xff] %v14119_v49  ;;  %v6983_v32 = vrot.slane %v6380_v56, %v10399_v58  ;;  %v4827_v36 = vadd.f32 %v4826_v4, %v4825_v15  ;;  %v14126_v46 = vmax.f32 %v3881_v60, %v3882_v10  ;;  %v3889_v31 = vrot.slane %v3888_v22, 1 }
 0x5f6   :  { %v4832_v51 = vadd.f32 %v4831_v20, %v4830_v57  ;;  %9680 = vlog2.f32 %v4820_v13  ;;  %v6987_v28 = vrot.slane %v6394_v0, %v10399_v58  ;;  %v6991_v17 = vrot.slane %v6396_v41, %v10399_v58  ;;  %v16839_v41 = vld [vmem:[#allocation122_spill] sm:$0xff] }
 0x5f7   :  { %16825 = vst [vmem:[#allocation36_spill] sm:$0xff] %v14126_v46  ;;  %v6995_v25 = vrot.slane %v6398_v26, %v10399_v58  ;;  %v3892_v54 = vrot.slane %v3891_v6, 4  ;;  %v14134_v44 = vmax.f32 %v8397_v29, -11.512925  ;;  %vm14137_vm3 = vcmp.eq.s32.totalorder %v6967_v39, %v16827_v23 }
 0x5f8   :  { %v4262_v60 = vsub.f32 %v14028_v52, %v14119_v49  ;;  %v4833_v19 = vrot.slane %v4832_v51, 1  ;;  %vm14144_vm4 = vcmp.eq.s32.totalorder %v6971_v8, %v16827_v23  ;;  %vm7238_vm5 = vcmp.eq.s32.totalorder %v6975_v12, %v16827_v23 }
 0x5f9   :  { %16826 = vst [vmem:[#allocation52_spill] sm:$0xff] %v14134_v44  ;;  %v9671_v0 = vpop.eup %9670  ;;  %vm14150_vm1 = vcmp.eq.s32.totalorder %v6983_v32, %v16827_v23  ;;  %9682 = vlog2.f32 %v4827_v36  ;;  %vm7239_vm6 = vcmp.eq.s32.totalorder %v6979_v59, %v16827_v23  ;;  %v14157_v3 = vmax.f32 %v3888_v22, %v3889_v31 }
 0x5fa   :  { %v9673_v29 = vpop.eup %9672  ;;  %v4263_v53 = vsub.f32 %v14036_v34, %v14126_v46  ;;  %v4834_v24 = vadd.f32 %v4833_v19, %v4832_v51  ;;  %vm14162_vm7 = vcmp.eq.s32.totalorder %v6987_v28, %v16827_v23  ;;  %vm7242_vm8 = vcmp.eq.s32.totalorder %v6991_v17, %v16827_v23  ;;  %v14198_v28 = vpop.permute.xlu1 %892 }
 0x5fb   :  { %16834 = vst [vmem:[#allocation84_spill] sm:$0xff] %v14157_v3  ;;  %v9675_v15 = vpop.eup %9674  ;;  %vm7243_vm9 = vcmp.eq.s32.totalorder %v6995_v25, %v16827_v23  ;;  %v14168_v10 = vmax.f32 %v3891_v6, %v3892_v54  ;;  %v4474_v57 = vmul.f32 1.442695, %v4262_v60  ;;  %v7364_v22 = vsel %vm14137_vm3, %v13971_v63, 0.0 }
 0x5fc   :  { %v4835_v26 = vsel %vm55_vm0, %v9675_v15, 0.0  ;;  %9684 = vlog2.f32 %v4834_v24  ;;  %v5122_v8 = vsel %vm55_vm0, %v9671_v0, 0.0  ;;  %v7365_v13 = vsel %vm14144_vm4, %v13973_v27, 0.0  ;;  %v16844_v15 = vld [vmem:[#allocation129_spill] sm:$0xff] }
 0x5fd   :  { %16837 = vst [vmem:[#allocation33_spill] sm:$0xff] %v14168_v10  ;;  %v7366_v4 = vsel %vm7238_vm5, %v13975_v37, 0.0  ;;  %v4836_v6 = vrot.slane %v4835_v26, 4  ;;  %v9677_v20 = vpop.eup %9676  ;;  %v4264_v32 = vsub.f32 %v14057_v18, %v14157_v3  ;;  %v4476_v36 = vmul.f32 1.442695, %v4263_v53 }
 0x5fe   :  { %v5129_v63 = vsel %vm55_vm0, %v9673_v29, 0.0  ;;  %v7367_v31 = vsel %vm7239_vm6, %v13991_v62, 0.0  ;;  %v7368_v27 = vsel %vm14150_vm1, %v14028_v52, 0.0  ;;  %v7369_v37 = vsel %vm14162_vm7, %v14036_v34, 0.0 }
 0x5ff   :  { %v14196_v12 = vsel %vm7242_vm8, %v14057_v18, 0.0  ;;  %v4837_v51 = vadd.f32 %v4836_v6, %v4835_v26  ;;  %v5123_v54 = vrot.slane %v5122_v8, 4  ;;  %v7972_v59 = vsel %vm55_vm0, %v7364_v22, 0.0  ;;  %v14208_v18 = vpop.permute.xlu0 %844 }
 0x600   :  { %v14202_v62 = vsel %vm55_vm0, %v7365_v13, 0.0  ;;  %v14205_v52 = vsel %vm55_vm0, %v7366_v4, 0.0  ;;  %9686 = vpow2.f32 %v4474_v57  ;;  %v5130_v34 = vrot.slane %v5129_v63, 4 }
 0x601   :  { %v9679_v56 = vpop.eup %9678  ;;  %v5136_v60 = vsel %vm55_vm0, %v9677_v20, 0.0  ;;  %v4838_v17 = vrot.slane %v4837_v51, 2  ;;  %9688 = vpow2.f32 %v4476_v36  ;;  %v14210_v19 = vmul.f32 1.442695, %v4264_v32  ;;  %v14228_v32 = vpop.permute.xlu1 %988 }
 0x602   :  { %v14215_v0 = vsel %vm7243_vm9, %v14115_v30, 0.0  ;;  %v7685_v35 = vsel %vm55_vm0, %v16839_v41, 0.0  ;;  %v7973_v53 = vrot.slane %v7972_v59, 4  ;;  %v7980_v24 = vrot.slane %v14202_v62, 4 }
 0x603   :  { %16838 = vst [vmem:[#allocation53_spill] sm:$0xff] %v14215_v0  ;;  %v9681_v29 = vpop.eup %9680  ;;  %v4839_v39 = vadd.f32 %v4838_v17, %v4837_v51  ;;  %v5124_v57 = vadd.f32 %v5123_v54, %v5122_v8  ;;  %v5137_v22 = vrot.slane %v5136_v60, 4  ;;  %v5143_v26 = vsel %vm55_vm0, %v9679_v56, 0.0  ;;  %v16842_v54 = vld [vmem:[#allocation127_spill] sm:$0xff]  ;;  %v16843_v56 = vld [vmem:[#allocation133_spill] sm:$0xff]  ;;  %v14241_v46 = vpop.permute.xlu0 %940  ;;  %v16845_v0 = vld [vmem:[#allocation128_spill] sm:$0xff] }
 0x604   :  { %v14223_v13 = vsel %vm55_vm0, %v7367_v31, 0.0  ;;  %v5131_v25 = vadd.f32 %v5130_v34, %v5129_v63  ;;  %v14226_v4 = vsel %vm55_vm0, %v7368_v27, 0.0  ;;  %v7686_v20 = vrot.slane %v7685_v35, 4 }
 0x605   :  { %v4840_v6 = vrot.slane %v4839_v39, 1  ;;  %v5531_v41 = vmul.f32 0.6931472, %v9681_v29  ;;  %v16841_v51 = vrot.slane %v16840_v5, 2  ;;  %v7681_v17 = vrot.slane %v16842_v54, 2 }
 0x606   :  { %v9683_v36 = vpop.eup %9682  ;;  %v8342_v31 = vsub.f32 %v16844_v15, %v16843_v56  ;;  %v5144_v3 = vrot.slane %v5143_v26, 4  ;;  %v14236_v63 = vadd.f32 %v7973_v53, %v7972_v59  ;;  %v14239_v27 = vsel %vm55_vm0, %v7369_v37, 0.0  ;;  %v16848_v53 = vld [vmem:[#allocation8_spill] sm:$0xff] }
 0x607   :  { %v7675_v8 = vadd.f32 %v16841_v51, %v16840_v5  ;;  %v4841_v34 = vadd.f32 %v4840_v6, %v4839_v39  ;;  %v5125_v49 = vrot.slane %v5124_v57, 2  ;;  %v5138_v29 = vadd.f32 %v5137_v22, %v5136_v60  ;;  %v16847_v51 = vld [vmem:[#allocation130_spill] sm:$0xff]  ;;  %v16850_v60 = vld [vmem:[#allocation135_spill] sm:$0xff] }
 0x608   :  { %v16846_v9 = vrot.slane %v16845_v0, 1  ;;  %v7669_v30 = vrot.slane %v16847_v51, 1  ;;  %v5132_v44 = vrot.slane %v5131_v25, 2  ;;  %v5533_v15 = vmul.f32 0.6931472, %v9683_v36 }
 0x609   :  { %v9685_v10 = vpop.eup %9684  ;;  %9690 = vlog2.f32 %v4841_v34  ;;  %v7687_v59 = vadd.f32 %v7686_v20, %v7685_v35  ;;  %v5750_v56 = vadd.f32 %v5531_v41, %v16848_v53  ;;  %v7676_v37 = vrot.slane %v7675_v8, 1  ;;  %v16852_v53 = vld [vmem:[#allocation115_spill] sm:$0xff] }
 0x60a   :  { %v7663_v5 = vadd.f32 %v16846_v9, %v16845_v0  ;;  %v7682_v39 = vadd.f32 %v7681_v17, %v16842_v54  ;;  %v8470_v6 = vmax.f32 %v8342_v31, -11.512925  ;;  %v8596_v22 = vmin.f32 %v16850_v60, -1.000005e-05  ;;  %v14254_v0 = vpop.permute.xlu1 %1084 }
 0x60b   :  { %v8597_v21 = vmin.f32 %v16851_v2, -1.000005e-05  ;;  %v2890_v9 = vcombine.low %v14154_v33, %v14198_v28  ;;  %v5126_v36 = vadd.f32 %v5125_v49, %v5124_v57  ;;  %v5145_v34 = vadd.f32 %v5144_v3, %v5143_v26 }
 0x60c   :  { %v8343_v42 = vsub.f32 %v7663_v5, %v16849_v38  ;;  %v5535_v35 = vmul.f32 0.6931472, %v9685_v10  ;;  %v7670_v20 = vadd.f32 %v7669_v30, %v16847_v51  ;;  %v5139_v41 = vrot.slane %v5138_v29, 2  ;;  %v16853_v38 = vld [vmem:[#allocation23_spill] sm:$0xff]  ;;  %v14260_v5 = vpop.permute.xlu0 %1036 }
 0x60d   :  { %v5751_v54 = vadd.f32 %v5533_v15, %v16852_v53  ;;  %v7688_v17 = vrot.slane %v7687_v59, 2  ;;  %v2874_v31 = vcombine.low %v16853_v38, %v14208_v18  ;;  %v14262_v2 = vpop.eup %9686  ;;  %v7683_v60 = vrot.slane %v7682_v39, 1  ;;  %v16856_v53 = vld [vmem:[#allocation120_spill] sm:$0xff] }
 0x60e   :  { %16854 = vst [vmem:[#allocation69_spill] sm:$0xff] %v14262_v2  ;;  %v8344_v55 = vsub.f32 %v7670_v20, %v5750_v56  ;;  %v8598_v50 = vmin.f32 %v8470_v6, -1.000005e-05  ;;  %v2922_v49 = vcombine.low %v14228_v32, %v14254_v0  ;;  %v14266_v3 = vpop.eup %9688  ;;  %v7677_v30 = vadd.f32 %v7676_v37, %v7675_v8 }
 0x60f   :  { %16855 = vst [vmem:[#allocation34_spill] sm:$0xff] %v14266_v3  ;;  %v8471_v10 = vmax.f32 %v8343_v42, -11.512925  ;;  %v8855_v57 = vsel %vm8820_vm10, %v8597_v21, %v8596_v22  ;;  %v2898_v26 = vrot.slane %v2890_v9, %v10322_v1  ;;  %v5133_v51 = vadd.f32 %v5132_v44, %v5131_v25 }
 0x610   :  { %v14271_v15 = vadd.f32 %v7980_v24, %v14202_v62  ;;  %v5752_v2 = vadd.f32 %v5535_v35, %v16856_v53  ;;  %v2906_v56 = vcombine.low %v14241_v46, %v14260_v5  ;;  %v5146_v6 = vrot.slane %v5145_v34, 2 }
 0x611   :  { %v7689_v20 = vadd.f32 %v7688_v17, %v7687_v59  ;;  %v8345_v48 = vsub.f32 %v7677_v30, %v5751_v54  ;;  %v2882_v3 = vrot.slane %v2874_v31, %v10322_v1  ;;  %v7684_v8 = vadd.f32 %v7683_v60, %v7682_v39 }
 0x612   :  { %v8472_v42 = vmax.f32 %v8344_v55, -11.512925  ;;  %v8856_v21 = vsel %vm8822_vm11, %v8598_v50, %v8855_v57  ;;  %v2930_v37 = vrot.slane %v2922_v49, %v10322_v1  ;;  %v5127_v44 = vrot.slane %v5126_v36, 1 }
 0x613   :  { %v5140_v25 = vadd.f32 %v5139_v41, %v5138_v29  ;;  %v8599_v62 = vmin.f32 %v8471_v10, -1.000005e-05  ;;  %v2938_v24 = vcombine.low %v2882_v3, %v2898_v26  ;;  %v5134_v22 = vrot.slane %v5133_v51, 1 }
 0x614   :  { %v7994_v9 = vrot.slane %v14223_v13, 4  ;;  %v8346_v35 = vsub.f32 %v7684_v8, %v5752_v2  ;;  %v2914_v53 = vrot.slane %v2906_v56, %v10322_v1  ;;  %v7690_v59 = vrot.slane %v7689_v20, 1 }
 0x615   :  { %v8473_v54 = vmax.f32 %v8345_v48, -11.512925  ;;  %v8857_v17 = vsel %vm8824_vm12, %v8599_v62, %v8856_v21  ;;  %v2939_v39 = vcombine.high %v2882_v3, %v2898_v26  ;;  %v5147_v31 = vadd.f32 %v5146_v6, %v5145_v34 }
 0x616   :  { %v9691_v55 = vpop.eup %9690  ;;  %v8600_v50 = vmin.f32 %v8472_v42, -1.000005e-05  ;;  %v2970_v60 = vcombine.low %v2914_v53, %v2930_v37  ;;  %v2971_v49 = vcombine.high %v2914_v53, %v2930_v37  ;;  %v5128_v30 = vadd.f32 %v5127_v44, %v5126_v36 }
 0x617   :  { %v5141_v29 = vrot.slane %v5140_v25, 1  ;;  %v5537_v41 = vmul.f32 0.6931472, %v9691_v55  ;;  %v2946_v10 = vrot.slane %v2938_v24, %v10351_v16  ;;  %v8474_v57 = vmax.f32 %v8346_v35, -11.512925 }
 0x618   :  { %v8858_v2 = vsel %vm8826_vm13, %v8600_v50, %v8857_v17  ;;  %v2978_v56 = vrot.slane %v2970_v60, %v10351_v16  ;;  %v2985_v48 = vrot.slane %v2971_v49, %v10351_v16  ;;  %v7691_v3 = vadd.f32 %v7690_v59, %v7689_v20 }
 0x619   :  { %v5753_v8 = vadd.f32 %v5537_v41, %v14093_v47  ;;  %v8601_v26 = vmin.f32 %v8473_v54, -1.000005e-05  ;;  %v2953_v34 = vrot.slane %v2939_v39, %v10351_v16  ;;  %v5135_v6 = vadd.f32 %v5134_v22, %v5133_v51 }
 0x61a   :  { %v16857_v36 = vrot.slane %v14205_v52, 4  ;;  %v14293_v21 = vcombine.low %v2946_v10, %v2978_v56  ;;  %v14295_v37 = vcombine.high %v2946_v10, %v2978_v56  ;;  %v5148_v44 = vrot.slane %v5147_v31, 1 }
 0x61b   :  { %v8347_v62 = vsub.f32 %v7691_v3, %v5753_v8  ;;  %v8859_v24 = vsel %vm8828_vm14, %v8601_v26, %v8858_v2  ;;  %v14298_v35 = vcombine.low %v2953_v34, %v2985_v48  ;;  %v5142_v47 = vadd.f32 %v5141_v29, %v5140_v25 }
 0x61c   :  { %v14291_v42 = vadd.f32 %v16857_v36, %v14205_v52  ;;  %9692 = vlog2.f32 %v5128_v30  ;;  %v8602_v20 = vmin.f32 %v8474_v57, -1.000005e-05  ;;  %v14300_v53 = vcombine.high %v2953_v34, %v2985_v48 }
 0x61d   :  { %v8475_v51 = vmax.f32 %v8347_v62, -11.512925  ;;  %v4010_v52 = vsel %vm55_vm0, %v14293_v21, -inf  ;;  %v4017_v22 = vsel %vm55_vm0, %v14295_v37, -inf  ;;  %v4024_v59 = vsel %vm55_vm0, %v14298_v35, -inf }
 0x61e   :  { %v8860_v54 = vsel %vm8830_vm15, %v8602_v20, %v8859_v24  ;;  %v2923_v17 = vcombine.high %v14228_v32, %v14254_v0  ;;  %v4011_v25 = vrot.slane %v4010_v52, 4  ;;  %v4018_v39 = vrot.slane %v4017_v22, 4 }
 0x61f   :  { %9694 = vlog2.f32 %v5135_v6  ;;  %v8603_v55 = vmin.f32 %v8475_v51, -1.000005e-05  ;;  %v2891_v50 = vcombine.high %v14154_v33, %v14198_v28  ;;  %v4025_v60 = vrot.slane %v4024_v59, 4 }
 0x620   :  { %v2907_v49 = vcombine.high %v14241_v46, %v14260_v5  ;;  %v4012_v30 = vmax.f32 %v4010_v52, %v4011_v25  ;;  %v4019_v29 = vmax.f32 %v4017_v22, %v4018_v39  ;;  %v4031_v41 = vsel %vm55_vm0, %v14300_v53, -inf  ;;  %v16859_v22 = vld [vmem:[#allocation138_spill] sm:$0xff] }
 0x621   :  { %v5149_v10 = vadd.f32 %v5148_v44, %v5147_v31  ;;  %9696 = vlog2.f32 %v5142_v47  ;;  %v8014_v32 = vsel %vm55_vm0, %v14196_v12, 0.0  ;;  %v8861_v0 = vsel %vm8832_vm2, %v8603_v55, %v8860_v54 }
 0x622   :  { %v8967_v57 = vsel %vm55_vm0, %v8861_v0, 0.0  ;;  %v2875_v33 = vcombine.high %v16853_v38, %v14208_v18  ;;  %v2937_v28 = vrot.slane %v2923_v17, %v10322_v1  ;;  %v4013_v46 = vrot.slane %v4012_v30, 2 }
 0x623   :  { %v8001_v5 = vrot.slane %v14226_v4, 4  ;;  %8968 = vadd.xlane.f32.xlu1 %v8967_v57  ;;  %v4020_v2 = vrot.slane %v4019_v29, 2  ;;  %v4026_v56 = vmax.f32 %v4024_v59, %v4025_v60  ;;  %v4032_v31 = vrot.slane %v4031_v41, 4 }
 0x624   :  { %v7975_v48 = vrot.slane %v14236_v63, 2  ;;  %v8008_v12 = vrot.slane %v14239_v27, 4  ;;  %v2905_v8 = vrot.slane %v2891_v50, %v10322_v1  ;;  %v2921_v3 = vrot.slane %v2907_v49, %v10322_v1 }
 0x625   :  { %v7982_v26 = vrot.slane %v14271_v15, 2  ;;  %v7989_v18 = vrot.slane %v14291_v42, 2  ;;  %v7995_v38 = vadd.f32 %v7994_v9, %v14223_v13  ;;  %v8015_v34 = vrot.slane %v8014_v32, 4 }
 0x626   :  { %9698 = vlog2.f32 %v5149_v10  ;;  %v2889_v6 = vrot.slane %v2875_v33, %v10322_v1  ;;  %v2986_v36 = vcombine.low %v2921_v3, %v2937_v28  ;;  %v4014_v44 = vmax.f32 %v4012_v30, %v4013_v46 }
 0x627   :  { %9700 = vpow2.f32 %v14210_v19  ;;  %v4021_v62 = vmax.f32 %v4019_v29, %v4020_v2  ;;  %v4027_v24 = vrot.slane %v4026_v56, 2  ;;  %v4033_v47 = vmax.f32 %v4031_v41, %v4032_v31  ;;  %v16888_v41 = vld [vmem:[#allocation151_spill] sm:$0xff] }
 0x628   :  { %v8002_v20 = vadd.f32 %v8001_v5, %v14226_v4  ;;  %v14338_v51 = vadd.f32 %v8008_v12, %v14239_v27  ;;  %v2954_v52 = vcombine.low %v2889_v6, %v2905_v8  ;;  %v3726_v59 = vrot.slane %v16859_v22, 2 }
 0x629   :  { %v9693_v13 = vpop.eup %9692  ;;  %v7976_v9 = vadd.f32 %v7975_v48, %v14236_v63  ;;  %v7983_v54 = vadd.f32 %v7982_v26, %v14271_v15  ;;  %v7990_v17 = vadd.f32 %v7989_v18, %v14291_v42  ;;  %v2987_v25 = vcombine.high %v2921_v3, %v2937_v28 }
 0x62a   :  { %16858 = vst [vmem:[#allocation70_spill] sm:$0xff] %v14338_v51  ;;  %v7996_v19 = vrot.slane %v7995_v38, 2  ;;  %v14344_v39 = vadd.f32 %v8015_v34, %v8014_v32  ;;  %v2994_v55 = vrot.slane %v2986_v36, %v10351_v16  ;;  %v4015_v4 = vrot.slane %v4014_v44, 1  ;;  %v5855_v36 = vld [vmem:[%s16031_s1 + $0x68] sm:$0xff] }
 0x62b   :  { %v2955_v50 = vcombine.high %v2889_v6, %v2905_v8  ;;  %v4022_v27 = vrot.slane %v4021_v62, 1  ;;  %v4028_v60 = vmax.f32 %v4026_v56, %v4027_v24  ;;  %v4034_v49 = vrot.slane %v4033_v47, 2 }
 0x62c   :  { %16860 = vst [vmem:[#allocation55_spill] sm:$0xff] %v14344_v39  ;;  %v9695_v30 = vpop.eup %9694  ;;  %v8003_v29 = vrot.slane %v8002_v20, 2  ;;  %v2962_v63 = vrot.slane %v2954_v52, %v10351_v16  ;;  %v3727_v15 = vmax.f32 %v16859_v22, %v3726_v59  ;;  %v7977_v42 = vrot.slane %v7976_v9, 1 }
 0x62d   :  { %v7984_v10 = vrot.slane %v7983_v54, 1  ;;  %v7991_v0 = vrot.slane %v7990_v17, 1  ;;  %v14351_v32 = vrot.slane %v2987_v25, %v10351_v16  ;;  %v5619_v33 = vmul.f32 0.6931472, %v9693_v13 }
 0x62e   :  { %v9697_v57 = vpop.eup %9696  ;;  %v14353_v28 = vcombine.low %v2962_v63, %v2994_v55  ;;  %v14355_v46 = vcombine.high %v2962_v63, %v2994_v55  ;;  %v14357_v5 = vmax.f32 %v4014_v44, %v4015_v4  ;;  %v14360_v2 = vrot.slane %v2955_v50, %v10351_v16 }
 0x62f   :  { %v14362_v56 = vmax.f32 %v4021_v62, %v4022_v27  ;;  %v4029_v31 = vrot.slane %v4028_v60, 1  ;;  %v4035_v48 = vmax.f32 %v4033_v47, %v4034_v49  ;;  %v5621_v12 = vmul.f32 0.6931472, %v9695_v30 }
 0x630   :  { %v14364_v8 = vadd.f32 %v7996_v19, %v7995_v38  ;;  %v14366_v3 = vadd.f32 %v8003_v29, %v8002_v20  ;;  %v3728_v26 = vrot.slane %v3727_v15, 1  ;;  %v7978_v18 = vadd.f32 %v7977_v42, %v7976_v9  ;;  %v16865_v19 = vld [vmem:[#allocation140_spill] sm:$0xff] }
 0x631   :  { %v7985_v34 = vadd.f32 %v7984_v10, %v7983_v54  ;;  %v14368_v6 = vadd.f32 %v7991_v0, %v7990_v17  ;;  %v14375_v44 = vcombine.low %v14360_v2, %v14351_v32  ;;  %v5623_v62 = vmul.f32 0.6931472, %v9697_v57 }
 0x632   :  { %16861 = vst [vmem:[#allocation71_spill] sm:$0xff] %v14364_v8  ;;  %16862 = vst [vmem:[#allocation57_spill] sm:$0xff] %v14366_v3  ;;  %v4038_v38 = vsel %vm55_vm0, %v14353_v28, -inf  ;;  %v4045_v24 = vsel %vm55_vm0, %v14355_v46, -inf  ;;  %v4282_v47 = vsub.f32 %v14293_v21, %v14357_v5  ;;  %v5794_v52 = vadd.f32 %v5619_v33, %v14062_v61  ;;  %v16867_v33 = vld [vmem:[#allocation9_spill] sm:$0xff]  ;;  %v16898_v3 = vld [vmem:[#allocation154_spill] sm:$0xff] }
 0x633   :  { %16863 = vst [vmem:[#allocation54_spill] sm:$0xff] %v14368_v6  ;;  %v9699_v20 = vpop.eup %9698  ;;  %v14384_v22 = vmax.f32 %v4028_v60, %v4029_v31  ;;  %v4036_v59 = vrot.slane %v4035_v48, 1  ;;  %v4283_v13 = vsub.f32 %v14295_v37, %v14362_v56  ;;  %v5795_v54 = vadd.f32 %v5621_v12, %v14067_v14 }
 0x634   :  { %v14388_v9 = vpop.eup %9700  ;;  %v6497_v17 = vcombine.high %v5855_v36, %v5855_v36  ;;  %v14391_v25 = vmax.f32 %v3727_v15, %v3728_v26  ;;  %v4982_v55 = vsel %vm55_vm0, %v16865_v19, 0.0  ;;  %v6504_v4 = vrot.slane %v5855_v36, %v16766_v45 }
 0x635   :  { %16864 = vst [vmem:[#allocation56_spill] sm:$0xff] %v14388_v9  ;;  %v4039_v50 = vrot.slane %v4038_v38, 4  ;;  %v4046_v61 = vrot.slane %v4045_v24, 4  ;;  %v4052_v27 = vsel %vm55_vm0, %v14375_v44, -inf  ;;  %v5625_v60 = vmul.f32 0.6931472, %v9699_v20 }
 0x636   :  { %v14399_v49 = vadd.f32 %v5623_v62, %v14085_v40  ;;  %v4514_v14 = vmul.f32 1.442695, %v4282_v47  ;;  %v14402_v29 = vmax.f32 %v4035_v48, %v4036_v59  ;;  %v4284_v63 = vsub.f32 %v14298_v35, %v14384_v22  ;;  %v16868_v47 = vld [vmem:[#allocation141_spill] sm:$0xff] }
 0x637   :  { %v4516_v15 = vmul.f32 1.442695, %v4283_v13  ;;  %v4983_v42 = vrot.slane %v4982_v55, 4  ;;  %v8388_v10 = vsub.f32 %v7978_v18, %v5794_v52  ;;  %v8389_v0 = vsub.f32 %v7985_v34, %v5795_v54 }
 0x638   :  { %16866 = vst [vmem:[#allocation50_spill] sm:$0xff] %v14399_v49  ;;  %v4053_v57 = vrot.slane %v4052_v27, 4  ;;  %v4241_v31 = vsub.f32 %v16867_v33, %v14391_v25  ;;  %v6511_v12 = vrot.slane %v6497_v17, %v16766_v45  ;;  %v6512_v40 = vcombine.high %v6504_v4, %v6504_v4  ;;  %v16897_v49 = vld [vmem:[#allocation153_spill] sm:$0xff] }
 0x639   :  { %v4040_v26 = vmax.f32 %v4038_v38, %v4039_v50  ;;  %v4047_v36 = vmax.f32 %v4045_v24, %v4046_v61  ;;  %v6520_v62 = vrot.slane %v6504_v4, %v16766_v45  ;;  %9702 = vpow2.f32 %v4514_v14 }
 0x63a   :  { %v4432_v48 = vmul.f32 1.442695, %v4241_v31  ;;  %v4989_v20 = vsel %vm55_vm0, %v16868_v47, 0.0  ;;  %v4285_v18 = vsub.f32 %v14300_v53, %v14402_v29  ;;  %9704 = vpow2.f32 %v4516_v15 }
 0x63b   :  { %v4518_v34 = vmul.f32 1.442695, %v4284_v63  ;;  %v4984_v52 = vadd.f32 %v4983_v42, %v4982_v55  ;;  %v14415_v59 = vadd.f32 %v5625_v60, %v14097_v11  ;;  %v14417_v13 = vmax.f32 %v8388_v10, -11.512925  ;;  %v16872_v11 = vld [vmem:[#allocation142_spill] sm:$0xff] }
 0x63c   :  { %v4054_v38 = vmax.f32 %v4052_v27, %v4053_v57  ;;  %9706 = vpow2.f32 %v4432_v48  ;;  %v14419_v24 = vmax.f32 %v8389_v0, -11.512925  ;;  %v6513_v54 = vcombine.high %v6511_v12, %v6511_v12 }
 0x63d   :  { %16869 = vst [vmem:[#allocation51_spill] sm:$0xff] %v14415_v59  ;;  %16870 = vst [vmem:[#allocation45_spill] sm:$0xff] %v14417_v13  ;;  %v4041_v17 = vrot.slane %v4040_v26, 2  ;;  %v4048_v19 = vrot.slane %v4047_v36, 2  ;;  %v6527_v4 = vrot.slane %v6511_v12, %v16766_v45  ;;  %v6534_v50 = vrot.slane %v6512_v40, %v16766_v45 }
 0x63e   :  { %16871 = vst [vmem:[#allocation26_spill] sm:$0xff] %v14419_v24  ;;  %v4985_v61 = vrot.slane %v4984_v52, 2  ;;  %v4990_v14 = vrot.slane %v4989_v20, 4  ;;  %v6542_v63 = vcombine.high %v6520_v62, %v6520_v62  ;;  %9708 = vpow2.f32 %v4518_v34 }
 0x63f   :  { %v4520_v55 = vmul.f32 1.442695, %v4285_v18  ;;  %v4996_v60 = vsel %vm55_vm0, %v16872_v11, 0.0  ;;  %v7063_v27 = vrot.slane %v6520_v62, %v10399_v58  ;;  %v4055_v15 = vrot.slane %v4054_v38, 2 }
 0x640   :  { %v4986_v42 = vadd.f32 %v4985_v61, %v4984_v52  ;;  %v4991_v10 = vadd.f32 %v4990_v14, %v4989_v20  ;;  %v6541_v0 = vrot.slane %v6513_v54, %v16766_v45  ;;  %v4042_v57 = vmax.f32 %v4040_v26, %v4041_v17 }
 0x641   :  { %v4049_v33 = vmax.f32 %v4047_v36, %v4048_v19  ;;  %v4997_v31 = vrot.slane %v4996_v60, 4  ;;  %v6543_v12 = vcombine.high %v6527_v4, %v6527_v4  ;;  %v6544_v40 = vcombine.high %v6534_v50, %v6534_v50 }
 0x642   :  { %v4987_v48 = vrot.slane %v4986_v42, 1  ;;  %v4992_v47 = vrot.slane %v4991_v10, 2  ;;  %v7067_v34 = vrot.slane %v6534_v50, %v10399_v58  ;;  %v14430_v18 = vcombine.high %v14360_v2, %v14351_v32 }
 0x643   :  { %9710 = vpow2.f32 %v4520_v55  ;;  %v4998_v62 = vadd.f32 %v4997_v31, %v4996_v60  ;;  %v7071_v52 = vrot.slane %v6542_v63, %v10399_v58  ;;  %v4056_v20 = vmax.f32 %v4054_v38, %v4055_v15 }
 0x644   :  { %16873 = vst [vmem:[#allocation59_spill] sm:$0xff] %v14430_v18  ;;  %v4988_v61 = vadd.f32 %v4987_v48, %v4986_v42  ;;  %v4993_v54 = vadd.f32 %v4992_v47, %v4991_v10  ;;  %v7079_v26 = vrot.slane %v6527_v4, %v10399_v58  ;;  %v4043_v36 = vrot.slane %v4042_v57, 1 }
 0x645   :  { %v4050_v17 = vrot.slane %v4049_v33, 1  ;;  %v4999_v19 = vrot.slane %v4998_v62, 2  ;;  %v6545_v14 = vcombine.high %v6541_v0, %v6541_v0  ;;  %v7083_v11 = vrot.slane %v6541_v0, %v10399_v58 }
 0x646   :  { %v4994_v50 = vrot.slane %v4993_v54, 1  ;;  %9712 = vlog2.f32 %v4988_v61  ;;  %v9703_v30 = vpop.eup %9702  ;;  %v7087_v32 = vrot.slane %v6543_v12, %v10399_v58  ;;  %vm14437_vm3 = vcmp.eq.s32.totalorder %v7063_v27, %v16827_v23 }
 0x647   :  { %v4059_v38 = vsel %vm55_vm0, %v14430_v18, -inf  ;;  %v5000_v4 = vadd.f32 %v4999_v19, %v4998_v62  ;;  %v9705_v63 = vpop.eup %9704  ;;  %v7075_v55 = vrot.slane %v6544_v40, %v10399_v58  ;;  %vm14445_vm4 = vcmp.eq.s32.totalorder %v7067_v34, %v16827_v23 }
 0x648   :  { %vm7262_vm5 = vcmp.eq.s32.totalorder %v7071_v52, %v16827_v23  ;;  %v4057_v15 = vrot.slane %v4056_v20, 1  ;;  %v14450_v27 = vmax.f32 %v4042_v57, %v4043_v36  ;;  %v14452_v10 = vmax.f32 %v4049_v33, %v4050_v17 }
 0x649   :  { %v9707_v42 = vpop.eup %9706  ;;  %v4995_v0 = vadd.f32 %v4994_v50, %v4993_v54  ;;  %v5001_v31 = vrot.slane %v5000_v4, 1  ;;  %v14455_v12 = vrot.slane %v6545_v14, %v10399_v58  ;;  %vm14458_vm1 = vcmp.eq.s32.totalorder %v7079_v26, %v16827_v23 }
 0x64a   :  { %16878 = vst [vmem:[#allocation29_spill] sm:$0xff] %v14450_v27  ;;  %16879 = vst [vmem:[#allocation17_spill] sm:$0xff] %v14452_v10  ;;  %v4060_v48 = vrot.slane %v4059_v38, 4  ;;  %v5003_v47 = vsel %vm55_vm0, %v9707_v42, 0.0  ;;  %vm14464_vm6 = vcmp.eq.s32.totalorder %v7083_v11, %v16827_v23  ;;  %v5290_v57 = vsel %vm55_vm0, %v9703_v30, 0.0 }
 0x64b   :  { %v5002_v33 = vadd.f32 %v5001_v31, %v5000_v4  ;;  %v5004_v62 = vrot.slane %v5003_v47, 4  ;;  %v9709_v61 = vpop.eup %9708  ;;  %vm7263_vm7 = vcmp.eq.s32.totalorder %v7075_v55, %v16827_v23  ;;  %vm7266_vm8 = vcmp.eq.s32.totalorder %v7087_v32, %v16827_v23 }
 0x64c   :  { %v14471_v54 = vmax.f32 %v4056_v20, %v4057_v15  ;;  %v5297_v26 = vsel %vm55_vm0, %v9705_v63, 0.0  ;;  %v4286_v36 = vsub.f32 %v14353_v28, %v14450_v27  ;;  %v4287_v17 = vsub.f32 %v14355_v46, %v14452_v10  ;;  %v14487_v63 = vpop.permute.xlu0 %794 }
 0x64d   :  { %v5005_v19 = vadd.f32 %v5004_v62, %v5003_v47  ;;  %9714 = vlog2.f32 %v4995_v0  ;;  %v14478_v30 = vmax.f32 %v4059_v38, %v4060_v48  ;;  %v5291_v14 = vrot.slane %v5290_v57, 4  ;;  %v16886_v0 = vld [vmem:[#allocation139_spill] sm:$0xff] }
 0x64e   :  { %16884 = vst [vmem:[#allocation30_spill] sm:$0xff] %v14471_v54  ;;  %v7388_v11 = vsel %vm14437_vm3, %v14293_v21, 0.0  ;;  %9716 = vlog2.f32 %v5002_v33  ;;  %v5298_v20 = vrot.slane %v5297_v26, 4  ;;  %v5304_v50 = vsel %vm55_vm0, %v9709_v61, 0.0 }
 0x64f   :  { %16885 = vst [vmem:[#allocation85_spill] sm:$0xff] %v14478_v30  ;;  %v7389_v4 = vsel %vm14445_vm4, %v14295_v37, 0.0  ;;  %v5006_v15 = vrot.slane %v5005_v19, 2  ;;  %v4288_v38 = vsub.f32 %v14375_v44, %v14471_v54  ;;  %v7390_v2 = vsel %vm7262_vm5, %v14298_v35, 0.0  ;;  %v16889_v35 = vld [vmem:[#allocation147_spill] sm:$0xff]  ;;  %v16893_v30 = vld [vmem:[#allocation145_spill] sm:$0xff] }
 0x650   :  { %v9711_v42 = vpop.eup %9710  ;;  %v14497_v21 = vsel %vm7263_vm7, %v14300_v53, 0.0  ;;  %v7853_v60 = vsel %vm55_vm0, %v16886_v0, 0.0  ;;  %v4522_v37 = vmul.f32 1.442695, %v4286_v36  ;;  %v14501_v31 = vmul.f32 1.442695, %v4287_v17  ;;  %v14513_v0 = vpop.permute.xlu1 %890 }
 0x651   :  { %v5007_v47 = vadd.f32 %v5006_v15, %v5005_v19  ;;  %v5292_v33 = vadd.f32 %v5291_v14, %v5290_v57  ;;  %v5305_v62 = vrot.slane %v5304_v50, 4  ;;  %v14510_v53 = vsel %vm55_vm0, %v7388_v11, 0.0  ;;  %v16887_v14 = vld [vmem:[#allocation144_spill] sm:$0xff]  ;;  %v14529_v27 = vpop.permute.xlu0 %842 }
 0x652   :  { %v5299_v55 = vadd.f32 %v5298_v20, %v5297_v26  ;;  %v5311_v61 = vsel %vm55_vm0, %v9711_v42, 0.0  ;;  %v7854_v17 = vrot.slane %v7853_v60, 4  ;;  %v14518_v57 = vsel %vm7266_vm8, %v14375_v44, 0.0  ;;  %v16890_v42 = vld [vmem:[#allocation143_spill] sm:$0xff] }
 0x653   :  { %v9713_v52 = vpop.eup %9712  ;;  %v5008_v36 = vrot.slane %v5007_v47, 1  ;;  %v7849_v15 = vrot.slane %v16887_v14, 2  ;;  %v8366_v11 = vsub.f32 %v16889_v35, %v16888_v41  ;;  %v14523_v48 = vmul.f32 1.442695, %v4288_v38 }
 0x654   :  { %v5579_v19 = vmul.f32 0.6931472, %v9713_v52  ;;  %v8141_v26 = vrot.slane %v14510_v53, 4  ;;  %v16891_v54 = vrot.slane %v16890_v42, 2  ;;  %v5293_v32 = vrot.slane %v5292_v33, 2  ;;  %v16892_v52 = vld [vmem:[#allocation146_spill] sm:$0xff]  ;;  %v14543_v51 = vpop.permute.xlu1 %986 }
 0x655   :  { %v5009_v20 = vadd.f32 %v5008_v36, %v5007_v47  ;;  %v5306_v44 = vadd.f32 %v5305_v62, %v5304_v50  ;;  %v5312_v24 = vrot.slane %v5311_v61, 4  ;;  %v7837_v13 = vrot.slane %v16892_v52, 1  ;;  %v16895_v36 = vld [vmem:[#allocation131_spill] sm:$0xff]  ;;  %v16896_v50 = vld [vmem:[#allocation152_spill] sm:$0xff] }
 0x656   :  { %v7843_v10 = vadd.f32 %v16891_v54, %v16890_v42  ;;  %v5300_v59 = vrot.slane %v5299_v55, 2  ;;  %v16894_v41 = vrot.slane %v16893_v30, 1  ;;  %v7855_v35 = vadd.f32 %v7854_v17, %v7853_v60 }
 0x657   :  { %9718 = vlog2.f32 %v5009_v20  ;;  %v14536_v47 = vsel %vm55_vm0, %v7389_v4, 0.0  ;;  %v5774_v8 = vadd.f32 %v5579_v19, %v16895_v36  ;;  %v7850_v54 = vadd.f32 %v7849_v15, %v16887_v14 }
 0x658   :  { %v7831_v38 = vadd.f32 %v16894_v41, %v16893_v30  ;;  %v8494_v42 = vmax.f32 %v8366_v11, -11.512925  ;;  %v7844_v6 = vrot.slane %v7843_v10, 1  ;;  %v8620_v39 = vmin.f32 %v16897_v49, -1.000005e-05 }
 0x659   :  { %v8621_v20 = vmin.f32 %v16898_v3, -1.000005e-05  ;;  %v5294_v30 = vadd.f32 %v5293_v32, %v5292_v33  ;;  %v5313_v60 = vadd.f32 %v5312_v24, %v5311_v61  ;;  %v14546_v4 = vsel %vm55_vm0, %v7390_v2, 0.0  ;;  %v16900_v32 = vld [vmem:[#allocation136_spill] sm:$0xff] }
 0x65a   :  { %v8367_v62 = vsub.f32 %v7831_v38, %v16896_v50  ;;  %v9715_v9 = vpop.eup %9714  ;;  %v7838_v17 = vadd.f32 %v7837_v13, %v16892_v52  ;;  %v5301_v14 = vadd.f32 %v5300_v59, %v5299_v55  ;;  %v5307_v15 = vrot.slane %v5306_v44, 2  ;;  %v14549_v38 = vpop.permute.xlu0 %938 }
 0x65b   :  { %v9717_v19 = vpop.eup %9716  ;;  %v5581_v11 = vmul.f32 0.6931472, %v9715_v9  ;;  %v7856_v41 = vrot.slane %v7855_v35, 2  ;;  %v7851_v36 = vrot.slane %v7850_v54, 1  ;;  %v8622_v50 = vmin.f32 %v8494_v42, -1.000005e-05 }
 0x65c   :  { %v5583_v49 = vmul.f32 0.6931472, %v9717_v19  ;;  %v8368_v3 = vsub.f32 %v7838_v17, %v5774_v8  ;;  %v7845_v33 = vadd.f32 %v7844_v6, %v7843_v10  ;;  %v8495_v24 = vmax.f32 %v8367_v62, -11.512925  ;;  %v14555_v19 = vpop.permute.xlu1 %1082 }
 0x65d   :  { %v5775_v43 = vadd.f32 %v5581_v11, %v16899_v7  ;;  %v8876_v2 = vsel %vm8820_vm10, %v8621_v20, %v8620_v39  ;;  %9720 = vpow2.f32 %v4522_v37  ;;  %v5295_v61 = vrot.slane %v5294_v30, 1 }
 0x65e   :  { %v5314_v13 = vrot.slane %v5313_v60, 2  ;;  %v5776_v59 = vadd.f32 %v5583_v49, %v16900_v32  ;;  %v5308_v55 = vadd.f32 %v5307_v15, %v5306_v44  ;;  %v8148_v9 = vrot.slane %v14536_v47, 4  ;;  %v14564_v62 = vpop.permute.xlu0 %1034 }
 0x65f   :  { %v7857_v52 = vadd.f32 %v7856_v41, %v7855_v35  ;;  %v8369_v58 = vsub.f32 %v7845_v33, %v5775_v43  ;;  %v8155_v8 = vrot.slane %v14546_v4, 4  ;;  %v7852_v42 = vadd.f32 %v7851_v36, %v7850_v54 }
 0x660   :  { %v8496_v7 = vmax.f32 %v8368_v3, -11.512925  ;;  %v8877_v6 = vsel %vm8822_vm11, %v8622_v50, %v8876_v2  ;;  %v5302_v10 = vrot.slane %v5301_v14, 1  ;;  %v14560_v39 = vadd.f32 %v8141_v26, %v14510_v53 }
 0x661   :  { %v8161_v37 = vsel %vm55_vm0, %v14497_v21, 0.0  ;;  %v8623_v44 = vmin.f32 %v8495_v24, -1.000005e-05  ;;  %v5296_v35 = vadd.f32 %v5295_v61, %v5294_v30  ;;  %v5315_v43 = vadd.f32 %v5314_v13, %v5313_v60  ;;  %v16901_v21 = vld [vmem:[#allocation32_spill] sm:$0xff] }
 0x662   :  { %v8370_v20 = vsub.f32 %v7852_v42, %v5776_v59  ;;  %v2786_v17 = vcombine.low %v14543_v51, %v14555_v19  ;;  %v5309_v54 = vrot.slane %v5308_v55, 1  ;;  %v7858_v15 = vrot.slane %v7857_v52, 1 }
 0x663   :  { %v8497_v11 = vmax.f32 %v8369_v58, -11.512925  ;;  %v8878_v41 = vsel %vm8824_vm12, %v8623_v44, %v8877_v6  ;;  %v8624_v53 = vmin.f32 %v8496_v7, -1.000005e-05  ;;  %v2754_v26 = vcombine.low %v14487_v63, %v14513_v0 }
 0x664   :  { %v9719_v49 = vpop.eup %9718  ;;  %v2738_v36 = vcombine.low %v16901_v21, %v14529_v27  ;;  %v2770_v30 = vcombine.low %v14549_v38, %v14564_v62  ;;  %v5303_v60 = vadd.f32 %v5302_v10, %v5301_v14  ;;  %v8162_v3 = vrot.slane %v8161_v37, 4 }
 0x665   :  { %v16902_v50 = vsel %vm14458_vm1, %v14353_v28, 0.0  ;;  %v5585_v33 = vmul.f32 0.6931472, %v9719_v49  ;;  %v5316_v24 = vrot.slane %v5315_v43, 1  ;;  %v8498_v2 = vmax.f32 %v8370_v20, -11.512925 }
 0x666   :  { %v8168_v58 = vsel %vm55_vm0, %v16902_v50, 0.0  ;;  %v8879_v61 = vsel %vm8826_vm13, %v8624_v53, %v8878_v41  ;;  %v2794_v13 = vrot.slane %v2786_v17, %v10322_v1  ;;  %v5310_v32 = vadd.f32 %v5309_v54, %v5308_v55 }
 0x667   :  { %v5777_v59 = vadd.f32 %v5585_v33, %v14391_v25  ;;  %v7859_v42 = vadd.f32 %v7858_v15, %v7857_v52  ;;  %v8625_v7 = vmin.f32 %v8497_v11, -1.000005e-05  ;;  %9722 = vlog2.f32 %v5296_v35 }
 0x668   :  { %v2762_v14 = vrot.slane %v2754_v26, %v10322_v1  ;;  %v2746_v40 = vrot.slane %v2738_v36, %v10322_v1  ;;  %v2778_v28 = vrot.slane %v2770_v30, %v10322_v1  ;;  %vm7267_vm9 = vcmp.eq.s32.totalorder %v14455_v12, %v16827_v23 }
 0x669   :  { %v8149_v6 = vadd.f32 %v8148_v9, %v14536_v47  ;;  %v16903_v55 = vsel %vm14464_vm6, %v14355_v46, 0.0  ;;  %v8371_v52 = vsub.f32 %v7859_v42, %v5777_v59  ;;  %v8880_v10 = vsel %vm8828_vm14, %v8625_v7, %v8879_v61 }
 0x66a   :  { %v8175_v25 = vsel %vm55_vm0, %v16903_v55, 0.0  ;;  %v5317_v44 = vadd.f32 %v5316_v24, %v5315_v43  ;;  %9724 = vlog2.f32 %v5303_v60  ;;  %v8626_v35 = vmin.f32 %v8498_v2, -1.000005e-05  ;;  %v14595_v17 = vpop.eup %9720 }
 0x66b   :  { %v2834_v20 = vcombine.low %v2778_v28, %v2794_v13  ;;  %16904 = vst [vmem:[#allocation6_spill] sm:$0xff] %v14595_v17  ;;  %9726 = vlog2.f32 %v5310_v32  ;;  %v8156_v54 = vadd.f32 %v8155_v8, %v14546_v4  ;;  %v8169_v15 = vrot.slane %v8168_v58, 4 }
 0x66c   :  { %v8499_v47 = vmax.f32 %v8371_v52, -11.512925  ;;  %v8143_v34 = vrot.slane %v14560_v39, 2  ;;  %v8163_v9 = vadd.f32 %v8162_v3, %v8161_v37  ;;  %v8881_v46 = vsel %vm8830_vm15, %v8626_v35, %v8880_v10 }
 0x66d   :  { %v2802_v11 = vcombine.low %v2746_v40, %v2762_v14  ;;  %v8176_v41 = vrot.slane %v8175_v25, 4  ;;  %v2787_v43 = vcombine.high %v14543_v51, %v14555_v19  ;;  %v2771_v53 = vcombine.high %v14549_v38, %v14564_v62 }
 0x66e   :  { %v8627_v49 = vmin.f32 %v8499_v47, -1.000005e-05  ;;  %9728 = vlog2.f32 %v5317_v44  ;;  %v8150_v26 = vrot.slane %v8149_v6, 2  ;;  %v8182_v4 = vsel %vm55_vm0, %v14518_v57, 0.0 }
 0x66f   :  { %v2842_v8 = vrot.slane %v2834_v20, %v10351_v16  ;;  %v8157_v36 = vrot.slane %v8156_v54, 2  ;;  %v2755_v30 = vcombine.high %v14487_v63, %v14513_v0  ;;  %v2739_v60 = vcombine.high %v16901_v21, %v14529_v27 }
 0x670   :  { %v8882_v37 = vsel %vm8832_vm2, %v8627_v49, %v8881_v46  ;;  %v8170_v51 = vadd.f32 %v8169_v15, %v8168_v58  ;;  %v2810_v38 = vrot.slane %v2802_v11, %v10351_v16  ;;  %v2835_v62 = vcombine.high %v2778_v28, %v2794_v13 }
 0x671   :  { %v8976_v19 = vsel %vm55_vm0, %v8882_v37, 0.0  ;;  %v8144_v3 = vadd.f32 %v8143_v34, %v14560_v39  ;;  %v8164_v57 = vrot.slane %v8163_v9, 2  ;;  %v2801_v50 = vrot.slane %v2787_v43, %v10322_v1  ;;  %v5854_v34 = vld [vmem:[%s16031_s1 + $0x60] sm:$0xff] }
 0x672   :  { %8977 = vadd.xlane.f32.xlu0 %v8976_v19  ;;  %v2785_v33 = vrot.slane %v2771_v53, %v10322_v1  ;;  %9730 = vpow2.f32 %v14501_v31  ;;  %v8151_v63 = vadd.f32 %v8150_v26, %v8149_v6  ;;  %v2803_v0 = vcombine.high %v2746_v40, %v2762_v14 }
 0x673   :  { %v14618_v24 = vcombine.low %v2810_v38, %v2842_v8  ;;  %v14620_v27 = vadd.f32 %v8176_v41, %v8175_v25  ;;  %v8183_v21 = vrot.slane %v8182_v4, 4  ;;  %v2769_v58 = vrot.slane %v2755_v30, %v10322_v1 }
 0x674   :  { %v2753_v2 = vrot.slane %v2739_v60, %v10322_v1  ;;  %9732 = vpow2.f32 %v14523_v48  ;;  %v14629_v39 = vsel %vm7267_vm9, %v14430_v18, 0.0  ;;  %v8158_v31 = vadd.f32 %v8157_v36, %v8156_v54  ;;  %v9723_v13 = vpop.eup %9722 }
 0x675   :  { %16905 = vst [vmem:[#allocation38_spill] sm:$0xff] %v14620_v27  ;;  %16906 = vst [vmem:[#allocation90_spill] sm:$0xff] %v14629_v39  ;;  %v2849_v61 = vrot.slane %v2835_v62, %v10351_v16  ;;  %v8145_v32 = vrot.slane %v8144_v3, 1  ;;  %v14632_v59 = vadd.f32 %v8164_v57, %v8163_v9  ;;  %v8171_v42 = vrot.slane %v8170_v51, 2 }
 0x676   :  { %v2850_v7 = vcombine.low %v2785_v33, %v2801_v50  ;;  %v8152_v14 = vrot.slane %v8151_v63, 1  ;;  %v2817_v40 = vrot.slane %v2803_v0, %v10351_v16  ;;  %v2851_v28 = vcombine.high %v2785_v33, %v2801_v50 }
 0x677   :  { %16907 = vst [vmem:[#allocation42_spill] sm:$0xff] %v14632_v59  ;;  %v3954_v48 = vsel %vm55_vm0, %v14618_v24, -inf  ;;  %v9725_v6 = vpop.eup %9724  ;;  %v14638_v55 = vadd.f32 %v8183_v21, %v8182_v4  ;;  %v2818_v25 = vcombine.low %v2753_v2, %v2769_v58  ;;  %v14640_v52 = vcombine.high %v2810_v38, %v2842_v8 }
 0x678   :  { %v9727_v10 = vpop.eup %9726  ;;  %v5667_v44 = vmul.f32 0.6931472, %v9723_v13  ;;  %v8159_v35 = vrot.slane %v8158_v31, 1  ;;  %v2819_v20 = vcombine.high %v2753_v2, %v2769_v58  ;;  %v14642_v54 = vcombine.low %v2817_v40, %v2849_v61 }
 0x679   :  { %16908 = vst [vmem:[#allocation91_spill] sm:$0xff] %v14638_v55  ;;  %v8146_v15 = vadd.f32 %v8145_v32, %v8144_v3  ;;  %v14644_v47 = vadd.f32 %v8171_v42, %v8170_v51  ;;  %v2858_v9 = vrot.slane %v2850_v7, %v10351_v16  ;;  %v3955_v46 = vrot.slane %v3954_v48, 4  ;;  %v16910_v3 = vld [vmem:[#allocation155_spill] sm:$0xff] }
 0x67a   :  { %v5669_v11 = vmul.f32 0.6931472, %v9725_v6  ;;  %v8153_v41 = vadd.f32 %v8152_v14, %v8151_v63  ;;  %v14652_v43 = vrot.slane %v2851_v28, %v10351_v16  ;;  %v5671_v26 = vmul.f32 0.6931472, %v9727_v10 }
 0x67b   :  { %16909 = vst [vmem:[#allocation93_spill] sm:$0xff] %v14644_v47  ;;  %v9729_v53 = vpop.eup %9728  ;;  %v2826_v4 = vrot.slane %v2818_v25, %v10351_v16  ;;  %v14655_v8 = vcombine.high %v2817_v40, %v2849_v61  ;;  %v3961_v36 = vsel %vm55_vm0, %v14640_v52, -inf  ;;  %v5818_v37 = vadd.f32 %v5667_v44, %v14357_v5  ;;  %v16912_v61 = vld [vmem:[#allocation157_spill] sm:$0xff] }
 0x67c   :  { %v14661_v30 = vrot.slane %v2819_v20, %v10351_v16  ;;  %v6448_v60 = vcombine.high %v5854_v34, %v5854_v34  ;;  %v3968_v51 = vsel %vm55_vm0, %v14642_v54, -inf  ;;  %v3956_v62 = vmax.f32 %v3954_v48, %v3955_v46 }
 0x67d   :  { %v14665_v19 = vcombine.low %v2826_v4, %v2858_v9  ;;  %v14667_v38 = vcombine.high %v2826_v4, %v2858_v9  ;;  %v3670_v57 = vrot.slane %v16910_v3, 2  ;;  %v5673_v50 = vmul.f32 0.6931472, %v9729_v53 }
 0x67e   :  { %v5819_v33 = vadd.f32 %v5669_v11, %v14362_v56  ;;  %v14673_v5 = vcombine.low %v14661_v30, %v14652_v43  ;;  %v3962_v63 = vrot.slane %v3961_v36, 4  ;;  %v6455_v21 = vrot.slane %v5854_v34, %v16766_v45  ;;  %v16917_v11 = vld [vmem:[#allocation158_spill] sm:$0xff] }
 0x67f   :  { %v14675_v0 = vpop.eup %9730  ;;  %v3969_v58 = vrot.slane %v3968_v51, 4  ;;  %v3975_v2 = vsel %vm55_vm0, %v14655_v8, -inf  ;;  %v4926_v13 = vsel %vm55_vm0, %v16912_v61, 0.0  ;;  %v14683_v32 = vadd.f32 %v5671_v26, %v14384_v22  ;;  %v16920_v61 = vld [vmem:[#allocation15_spill] sm:$0xff] }
 0x680   :  { %16911 = vst [vmem:[#allocation43_spill] sm:$0xff] %v14675_v0  ;;  %v14685_v56 = vadd.f32 %v8159_v35, %v8158_v31  ;;  %v8412_v42 = vsub.f32 %v8146_v15, %v5818_v37  ;;  %v6462_v7 = vrot.slane %v6448_v60, %v16766_v45  ;;  %v3957_v40 = vrot.slane %v3956_v62, 2 }
 0x681   :  { %16913 = vst [vmem:[#allocation40_spill] sm:$0xff] %v14683_v32  ;;  %v14688_v14 = vpop.eup %9732  ;;  %v3982_v28 = vsel %vm55_vm0, %v14665_v19, -inf  ;;  %v3989_v48 = vsel %vm55_vm0, %v14667_v38, -inf  ;;  %v3671_v6 = vmax.f32 %v16910_v3, %v3670_v57  ;;  %v3963_v25 = vmax.f32 %v3961_v36, %v3962_v63 }
 0x682   :  { %16914 = vst [vmem:[#allocation39_spill] sm:$0xff] %v14685_v56  ;;  %16915 = vst [vmem:[#allocation14_spill] sm:$0xff] %v14688_v14  ;;  %v3976_v10 = vrot.slane %v3975_v2, 4  ;;  %v3996_v22 = vsel %vm55_vm0, %v14673_v5, -inf  ;;  %v4927_v31 = vrot.slane %v4926_v13, 4  ;;  %v14698_v44 = vadd.f32 %v5673_v50, %v14402_v29 }
 0x683   :  { %v8413_v35 = vsub.f32 %v8153_v41, %v5819_v33  ;;  %v6463_v20 = vcombine.high %v6455_v21, %v6455_v21  ;;  %v3970_v15 = vmax.f32 %v3968_v51, %v3969_v58  ;;  %v14701_v34 = vrot.slane %v6455_v21, %v16766_v45 }
 0x684   :  { %16916 = vst [vmem:[#allocation92_spill] sm:$0xff] %v14698_v44  ;;  %v3983_v9 = vrot.slane %v3982_v28, 4  ;;  %v3990_v46 = vrot.slane %v3989_v48, 4  ;;  %v4933_v53 = vsel %vm55_vm0, %v16917_v11, 0.0  ;;  %v14705_v26 = vmax.f32 %v8412_v42, -11.512925 }
 0x685   :  { %v3958_v4 = vmax.f32 %v3956_v62, %v3957_v40  ;;  %v3997_v36 = vrot.slane %v3996_v22, 4  ;;  %v3672_v37 = vrot.slane %v3671_v6, 1  ;;  %v6464_v60 = vcombine.high %v6462_v7, %v6462_v7 }
 0x686   :  { %16918 = vst [vmem:[#allocation89_spill] sm:$0xff] %v14705_v26  ;;  %v3964_v3 = vrot.slane %v3963_v25, 2  ;;  %v3977_v29 = vmax.f32 %v3975_v2, %v3976_v10  ;;  %v4928_v57 = vadd.f32 %v4927_v31, %v4926_v13  ;;  %v14707_v41 = vmax.f32 %v8413_v35, -11.512925 }
 0x687   :  { %v14710_v51 = vrot.slane %v6462_v7, %v16766_v45  ;;  %v3971_v50 = vrot.slane %v3970_v15, 2  ;;  %v4934_v33 = vrot.slane %v4933_v53, 4  ;;  %v6485_v63 = vrot.slane %v6463_v20, %v16766_v45 }
 0x688   :  { %16919 = vst [vmem:[#allocation87_spill] sm:$0xff] %v14707_v41  ;;  %v6493_v21 = vcombine.high %v14701_v34, %v14701_v34  ;;  %v3984_v58 = vmax.f32 %v3982_v28, %v3983_v9  ;;  %v3991_v62 = vmax.f32 %v3989_v48, %v3990_v46  ;;  %v7031_v42 = vrot.slane %v14701_v34, %v16920_v61  ;;  %v16921_v28 = vld [vmem:[#allocation148_spill] sm:$0xff] }
 0x689   :  { %v3959_v40 = vrot.slane %v3958_v4, 1  ;;  %v3998_v2 = vmax.f32 %v3996_v22, %v3997_v36  ;;  %v14717_v13 = vmax.f32 %v3671_v6, %v3672_v37  ;;  %v14720_v10 = vrot.slane %v6464_v60, %v16766_v45 }
 0x68a   :  { %v3965_v7 = vmax.f32 %v3963_v25, %v3964_v3  ;;  %v3978_v31 = vrot.slane %v3977_v29, 2  ;;  %v4929_v35 = vrot.slane %v4928_v57, 2  ;;  %v6494_v20 = vcombine.high %v14710_v51, %v14710_v51 }
 0x68b   :  { %v3972_v11 = vmax.f32 %v3970_v15, %v3971_v50  ;;  %v4233_v48 = vsub.f32 %v16921_v28, %v14717_v13  ;;  %v4935_v9 = vadd.f32 %v4934_v33, %v4933_v53  ;;  %v6495_v46 = vcombine.high %v6485_v63, %v6485_v63  ;;  %v16922_v15 = vld [vmem:[#allocation159_spill] sm:$0xff] }
 0x68c   :  { %v7035_v34 = vrot.slane %v6485_v63, %v16920_v61  ;;  %v3985_v22 = vrot.slane %v3984_v58, 2  ;;  %v3992_v6 = vrot.slane %v3991_v62, 2  ;;  %v14728_v36 = vrot.slane %v6493_v21, %v16920_v61 }
 0x68d   :  { %v14730_v37 = vmax.f32 %v3958_v4, %v3959_v40  ;;  %v3999_v25 = vrot.slane %v3998_v2, 2  ;;  %v4416_v60 = vmul.f32 1.442695, %v4233_v48  ;;  %v3966_v3 = vrot.slane %v3965_v7, 1 }
 0x68e   :  { %v3979_v12 = vmax.f32 %v3977_v29, %v3978_v31  ;;  %v4930_v49 = vadd.f32 %v4929_v35, %v4928_v57  ;;  %v4940_v50 = vsel %vm55_vm0, %v16922_v15, 0.0  ;;  %v7047_v53 = vrot.slane %v14710_v51, %v16920_v61 }
 0x68f   :  { %v3973_v33 = vrot.slane %v3972_v11, 1  ;;  %9734 = vpow2.f32 %v4416_v60  ;;  %v4936_v63 = vrot.slane %v4935_v9, 2  ;;  %v6496_v21 = vcombine.high %v14720_v10, %v14720_v10 }
 0x690   :  { %v3986_v28 = vmax.f32 %v3984_v58, %v3985_v22  ;;  %v3993_v4 = vmax.f32 %v3991_v62, %v3992_v6  ;;  %v4931_v40 = vrot.slane %v4930_v49, 1  ;;  %v4000_v41 = vmax.f32 %v3998_v2, %v3999_v25 }
 0x691   :  { %v4274_v29 = vsub.f32 %v14618_v24, %v14730_v37  ;;  %v4937_v57 = vadd.f32 %v4936_v63, %v4935_v9  ;;  %v4941_v31 = vrot.slane %v4940_v50, 4  ;;  %v7043_v35 = vrot.slane %v6495_v46, %v16920_v61 }
 0x692   :  { %v14743_v51 = vcombine.high %v14661_v30, %v14652_v43  ;;  %v14745_v48 = vmax.f32 %v3965_v7, %v3966_v3  ;;  %v3980_v60 = vrot.slane %v3979_v12, 1  ;;  %v14747_v15 = vmax.f32 %v3972_v11, %v3973_v33 }
 0x693   :  { %v4932_v58 = vadd.f32 %v4931_v40, %v4930_v49  ;;  %v4938_v62 = vrot.slane %v4937_v57, 1  ;;  %v4942_v22 = vadd.f32 %v4941_v31, %v4940_v50  ;;  %v7051_v2 = vrot.slane %v14720_v10, %v16920_v61 }
 0x694   :  { %16923 = vst [vmem:[#allocation102_spill] sm:$0xff] %v14743_v51  ;;  %v7055_v9 = vrot.slane %v6494_v20, %v16920_v61  ;;  %vm14753_vm3 = vcmp.eq.s32.totalorder %v7031_v42, %v16827_v23  ;;  %v3987_v43 = vrot.slane %v3986_v28, 1  ;;  %v3994_v30 = vrot.slane %v3993_v4, 1 }
 0x695   :  { %v4001_v7 = vrot.slane %v4000_v41, 1  ;;  %v4498_v6 = vmul.f32 1.442695, %v4274_v29  ;;  %v4943_v25 = vrot.slane %v4942_v22, 2  ;;  %vm14758_vm4 = vcmp.eq.s32.totalorder %v7035_v34, %v16827_v23  ;;  %v14837_v29 = vpop.permute.xlu1 %800 }
 0x696   :  { %v4003_v10 = vsel %vm55_vm0, %v14743_v51, -inf  ;;  %v4275_v20 = vsub.f32 %v14640_v52, %v14745_v48  ;;  %v4939_v42 = vadd.f32 %v4938_v62, %v4937_v57  ;;  %v14766_v11 = vmax.f32 %v3979_v12, %v3980_v60 }
 0x697   :  { %v4276_v3 = vsub.f32 %v14642_v54, %v14747_v15  ;;  %v4944_v50 = vadd.f32 %v4943_v25, %v4942_v22  ;;  %9736 = vlog2.f32 %v4932_v58  ;;  %v7059_v33 = vrot.slane %v6496_v21, %v16920_v61 }
 0x698   :  { %vm7254_vm5 = vcmp.eq.s32.totalorder %v14728_v36, %v16827_v23  ;;  %vm7255_vm1 = vcmp.eq.s32.totalorder %v7043_v35, %v16827_v23  ;;  %v14774_v34 = vmax.f32 %v3986_v28, %v3987_v43  ;;  %v14776_v63 = vmax.f32 %v3993_v4, %v3994_v30 }
 0x699   :  { %v14778_v40 = vmax.f32 %v4000_v41, %v4001_v7  ;;  %9738 = vpow2.f32 %v4498_v6  ;;  %v4945_v12 = vrot.slane %v4944_v50, 1  ;;  %vm14781_vm6 = vcmp.eq.s32.totalorder %v7047_v53, %v16827_v23 }
 0x69a   :  { %16928 = vst [vmem:[#allocation95_spill] sm:$0xff] %v14774_v34  ;;  %16929 = vst [vmem:[#allocation103_spill] sm:$0xff] %v14776_v63  ;;  %v4004_v57 = vrot.slane %v4003_v10, 4  ;;  %v4500_v21 = vmul.f32 1.442695, %v4275_v20  ;;  %9740 = vlog2.f32 %v4939_v42  ;;  %v4277_v31 = vsub.f32 %v14655_v8, %v14766_v11 }
 0x69b   :  { %16930 = vst [vmem:[#allocation96_spill] sm:$0xff] %v14778_v40  ;;  %v4502_v60 = vmul.f32 1.442695, %v4276_v3  ;;  %v7380_v28 = vsel %vm14753_vm3, %v14618_v24, 0.0  ;;  %v7381_v41 = vsel %vm14758_vm4, %v14640_v52, 0.0  ;;  %vm14794_vm7 = vcmp.eq.s32.totalorder %v7051_v2, %v16827_v23 }
 0x69c   :  { %v9735_v4 = vpop.eup %9734  ;;  %vm7258_vm8 = vcmp.eq.s32.totalorder %v7055_v9, %v16827_v23  ;;  %v4278_v58 = vsub.f32 %v14665_v19, %v14774_v34  ;;  %v4946_v62 = vadd.f32 %v4945_v12, %v4944_v50  ;;  %vm7259_vm9 = vcmp.eq.s32.totalorder %v7059_v33, %v16827_v23  ;;  %v16936_v12 = vld [vmem:[#allocation156_spill] sm:$0xff] }
 0x69d   :  { %v4279_v24 = vsub.f32 %v14667_v38, %v14776_v63  ;;  %v4280_v52 = vsub.f32 %v14673_v5, %v14778_v40  ;;  %v4947_v22 = vsel %vm55_vm0, %v9735_v4, 0.0  ;;  %9742 = vpow2.f32 %v4500_v21  ;;  %v14863_v40 = vpop.permute.xlu1 %896  ;;  %v16948_v34 = vld [vmem:[#allocation168_spill] sm:$0xff] }
 0x69e   :  { %v8084_v2 = vsel %vm55_vm0, %v7380_v28, 0.0  ;;  %v8091_v46 = vsel %vm55_vm0, %v7381_v41, 0.0  ;;  %v4948_v43 = vrot.slane %v4947_v22, 4  ;;  %v14809_v30 = vmax.f32 %v4003_v10, %v4004_v57  ;;  %v14840_v41 = vpop.permute.xlu0 %848 }
 0x69f   :  { %9744 = vpow2.f32 %v4502_v60  ;;  %v4504_v7 = vmul.f32 1.442695, %v4277_v31  ;;  %v7382_v6 = vsel %vm7254_vm5, %v14642_v54, 0.0  ;;  %v4506_v25 = vmul.f32 1.442695, %v4278_v58 }
 0x6a0   :  { %16935 = vst [vmem:[#allocation94_spill] sm:$0xff] %v14809_v30  ;;  %v7383_v49 = vsel %vm7255_vm1, %v14655_v8, 0.0  ;;  %v4949_v20 = vadd.f32 %v4948_v43, %v4947_v22  ;;  %9746 = vlog2.f32 %v4946_v62  ;;  %v4508_v42 = vmul.f32 1.442695, %v4279_v24  ;;  %v16938_v62 = vld [vmem:[#allocation161_spill] sm:$0xff] }
 0x6a1   :  { %v8085_v3 = vrot.slane %v8084_v2, 4  ;;  %v8092_v50 = vrot.slane %v8091_v46, 4  ;;  %v7797_v10 = vsel %vm55_vm0, %v16936_v12, 0.0  ;;  %v4510_v57 = vmul.f32 1.442695, %v4280_v52  ;;  %v14886_v56 = vpop.permute.xlu1 %992 }
 0x6a2   :  { %v7384_v21 = vsel %vm14781_vm6, %v14665_v19, 0.0  ;;  %v7385_v54 = vsel %vm14794_vm7, %v14667_v38, 0.0  ;;  %v4950_v36 = vrot.slane %v4949_v20, 2  ;;  %9748 = vpow2.f32 %v4504_v7  ;;  %v16939_v7 = vld [vmem:[#allocation160_spill] sm:$0xff]  ;;  %16952 = vst [vmem:[#allocation104_spill] sm:$0xff] %v14886_v56 }
 0x6a3   :  { %v14829_v8 = vsel %vm7258_vm8, %v14673_v5, 0.0  ;;  %v14834_v35 = vsel %vm7259_vm9, %v14743_v51, 0.0  ;;  %v8098_v31 = vsel %vm55_vm0, %v7382_v6, 0.0  ;;  %9750 = vpow2.f32 %v4506_v25  ;;  %v16950_v51 = vld [vmem:[#allocation171_spill] sm:$0xff] }
 0x6a4   :  { %16937 = vst [vmem:[#allocation97_spill] sm:$0xff] %v14834_v35  ;;  %v9737_v19 = vpop.eup %9736  ;;  %v8105_v38 = vsel %vm55_vm0, %v7383_v49, 0.0  ;;  %v4951_v60 = vadd.f32 %v4950_v36, %v4949_v20  ;;  %v7798_v28 = vrot.slane %v7797_v10, 4  ;;  %9752 = vpow2.f32 %v4508_v42  ;;  %v16942_v49 = vld [vmem:[#allocation164_spill] sm:$0xff]  ;;  %v16943_v36 = vld [vmem:[#allocation163_spill] sm:$0xff] }
 0x6a5   :  { %v14842_v5 = vadd.f32 %v8085_v3, %v8084_v2  ;;  %v14844_v9 = vadd.f32 %v8092_v50, %v8091_v46  ;;  %v14847_v33 = vsel %vm55_vm0, %v7384_v21, 0.0  ;;  %9754 = vpow2.f32 %v4510_v57  ;;  %v16941_v2 = vld [vmem:[#allocation167_spill] sm:$0xff]  ;;  %v14909_v30 = vpop.permute.xlu1 %894 }
 0x6a6   :  { %v9739_v4 = vpop.eup %9738  ;;  %v8099_v53 = vrot.slane %v8098_v31, 4  ;;  %v4952_v58 = vrot.slane %v4951_v60, 1  ;;  %v7793_v24 = vrot.slane %v16938_v62, 2  ;;  %v8106_v22 = vrot.slane %v8105_v38, 4 }
 0x6a7   :  { %v9741_v52 = vpop.eup %9740  ;;  %v5563_v43 = vmul.f32 0.6931472, %v9737_v19  ;;  %v16940_v6 = vrot.slane %v16939_v7, 2  ;;  %v8358_v46 = vsub.f32 %v16942_v49, %v16941_v2  ;;  %v14857_v42 = vsel %vm55_vm0, %v7385_v54, 0.0 }
 0x6a8   :  { %v4953_v3 = vadd.f32 %v4952_v58, %v4951_v60  ;;  %v7799_v50 = vadd.f32 %v7798_v28, %v7797_v10  ;;  %v5234_v12 = vsel %vm55_vm0, %v9739_v4, 0.0  ;;  %v7781_v19 = vrot.slane %v16943_v36, 1  ;;  %v14869_v60 = vpop.permute.xlu0 %944  ;;  %v16947_v4 = vld [vmem:[#allocation10_spill] sm:$0xff] }
 0x6a9   :  { %v7787_v25 = vadd.f32 %v16940_v6, %v16939_v7  ;;  %v5565_v7 = vmul.f32 0.6931472, %v9741_v52  ;;  %v16944_v6 = vld [vmem:[#allocation162_spill] sm:$0xff]  ;;  %v7794_v54 = vadd.f32 %v7793_v24, %v16938_v62  ;;  %16946 = vst [vmem:[#allocation88_spill] sm:$0xff] %v14869_v60  ;;  %v14871_v28 = vadd.f32 %v8099_v53, %v8098_v31 }
 0x6aa   :  { %9756 = vlog2.f32 %v4953_v3  ;;  %v16945_v2 = vrot.slane %v16944_v6, 1  ;;  %v9743_v10 = vpop.eup %9742  ;;  %v5766_v58 = vadd.f32 %v5563_v43, %v16947_v4  ;;  %v8486_v57 = vmax.f32 %v8358_v46, -11.512925  ;;  %v16949_v3 = vld [vmem:[#allocation170_spill] sm:$0xff]  ;;  %v16951_v46 = vld [vmem:[#allocation149_spill] sm:$0xff] }
 0x6ab   :  { %v7788_v21 = vrot.slane %v7787_v25, 1  ;;  %v7800_v63 = vrot.slane %v7799_v50, 2  ;;  %v8612_v35 = vmin.f32 %v16949_v3, -1.000005e-05  ;;  %v8613_v26 = vmin.f32 %v16950_v51, -1.000005e-05 }
 0x6ac   :  { %v7775_v49 = vadd.f32 %v16945_v2, %v16944_v6  ;;  %v9745_v20 = vpop.eup %9744  ;;  %v5235_v2 = vrot.slane %v5234_v12, 4  ;;  %v14877_v62 = vadd.f32 %v8106_v22, %v8105_v38  ;;  %v7782_v31 = vadd.f32 %v7781_v19, %v16943_v36  ;;  %v14889_v36 = vpop.permute.xlu0 %798  ;;  %v16953_v19 = vld [vmem:[#allocation172_spill] sm:$0xff] }
 0x6ad   :  { %v9747_v6 = vpop.eup %9746  ;;  %v5241_v53 = vsel %vm55_vm0, %v9743_v10, 0.0  ;;  %v5767_v4 = vadd.f32 %v5565_v7, %v16951_v46  ;;  %v7795_v44 = vrot.slane %v7794_v54, 1  ;;  %v8614_v51 = vmin.f32 %v8486_v57, -1.000005e-05  ;;  %v16955_v46 = vld [vmem:[#allocation150_spill] sm:$0xff] }
 0x6ae   :  { %v8359_v52 = vsub.f32 %v7775_v49, %v16948_v34  ;;  %v5567_v43 = vmul.f32 0.6931472, %v9747_v6  ;;  %v14884_v34 = vsel %vm55_vm0, %v9745_v20, 0.0  ;;  %v7789_v49 = vadd.f32 %v7788_v21, %v7787_v25  ;;  %v16956_v21 = vld [vmem:[#allocation176_spill] sm:$0xff] }
 0x6af   :  { %v8360_v3 = vsub.f32 %v7782_v31, %v5766_v58  ;;  %v9749_v38 = vpop.eup %9748  ;;  %v7801_v22 = vadd.f32 %v7800_v63, %v7799_v50  ;;  %v8869_v24 = vsel %vm8820_vm10, %v8613_v26, %v8612_v35  ;;  %v3838_v10 = vrot.slane %v16953_v19, 2 }
 0x6b0   :  { %v8487_v32 = vmax.f32 %v8359_v52, -11.512925  ;;  %v14892_v6 = vpop.eup %9750  ;;  %v14894_v7 = vadd.f32 %v5235_v2, %v5234_v12  ;;  %v5242_v20 = vrot.slane %v5241_v53, 4  ;;  %v5768_v25 = vadd.f32 %v5567_v43, %v16955_v46 }
 0x6b1   :  { %16954 = vst [vmem:[#allocation80_spill] sm:$0xff] %v14892_v6  ;;  %v5094_v57 = vsel %vm55_vm0, %v16956_v21, 0.0  ;;  %v14899_v58 = vpop.eup %9752  ;;  %v5249_v63 = vrot.slane %v14884_v34, 4  ;;  %v7796_v50 = vadd.f32 %v7795_v44, %v7794_v54  ;;  %v8361_v26 = vsub.f32 %v7789_v49, %v5767_v4  ;;  %v16959_v6 = vld [vmem:[#allocation177_spill] sm:$0xff]  ;;  %v16960_v4 = vld [vmem:[#allocation178_spill] sm:$0xff] }
 0x6b2   :  { %16957 = vst [vmem:[#allocation81_spill] sm:$0xff] %v14899_v58  ;;  %v3839_v35 = vmax.f32 %v16953_v19, %v3838_v10  ;;  %v14903_v52 = vpop.eup %9754  ;;  %v8488_v31 = vmax.f32 %v8360_v3, -11.512925  ;;  %v8870_v12 = vsel %vm8822_vm11, %v8614_v51, %v8869_v24  ;;  %v5095_v2 = vrot.slane %v5094_v57, 4  ;;  %v14914_v51 = vpop.permute.xlu0 %846 }
 0x6b3   :  { %16958 = vst [vmem:[#allocation86_spill] sm:$0xff] %v14903_v52  ;;  %v5101_v43 = vsel %vm55_vm0, %v16959_v6, 0.0  ;;  %v5255_v46 = vsel %vm55_vm0, %v9749_v38, 0.0  ;;  %v7802_v21 = vrot.slane %v7801_v22, 1  ;;  %v8615_v27 = vmin.f32 %v8487_v32, -1.000005e-05 }
 0x6b4   :  { %v3840_v58 = vrot.slane %v3839_v35, 1  ;;  %v8362_v59 = vsub.f32 %v7796_v50, %v5768_v25  ;;  %v5096_v44 = vadd.f32 %v5095_v2, %v5094_v57  ;;  %v5102_v54 = vrot.slane %v5101_v43, 4  ;;  %v16961_v57 = vld [vmem:[#allocation11_spill] sm:$0xff] }
 0x6b5   :  { %v5108_v49 = vsel %vm55_vm0, %v16960_v4, 0.0  ;;  %v8489_v3 = vmax.f32 %v8361_v26, -11.512925  ;;  %v8871_v24 = vsel %vm8824_vm12, %v8615_v27, %v8870_v12  ;;  %v5243_v6 = vadd.f32 %v5242_v20, %v5241_v53 }
 0x6b6   :  { %v14916_v19 = vmax.f32 %v3839_v35, %v3840_v58  ;;  %v5109_v10 = vrot.slane %v5108_v49, 4  ;;  %v8616_v32 = vmin.f32 %v8488_v31, -1.000005e-05  ;;  %v5097_v52 = vrot.slane %v5096_v44, 2 }
 0x6b7   :  { %v9757_v38 = vpop.eup %9756  ;;  %v5103_v25 = vadd.f32 %v5102_v54, %v5101_v43  ;;  %v7803_v39 = vadd.f32 %v7802_v21, %v7801_v22  ;;  %v8490_v4 = vmax.f32 %v8362_v59, -11.512925  ;;  %v8617_v35 = vmin.f32 %v8489_v3, -1.000005e-05  ;;  %v14927_v21 = vpop.permute.xlu1 %990 }
 0x6b8   :  { %v5569_v50 = vmul.f32 0.6931472, %v9757_v38  ;;  %v4257_v2 = vsub.f32 %v16961_v57, %v14916_v19  ;;  %v5110_v55 = vadd.f32 %v5109_v10, %v5108_v49  ;;  %v8872_v26 = vsel %vm8826_vm13, %v8616_v32, %v8871_v24 }
 0x6b9   :  { %v5098_v27 = vadd.f32 %v5097_v52, %v5096_v44  ;;  %v5104_v12 = vrot.slane %v5103_v25, 2  ;;  %v5256_v53 = vrot.slane %v5255_v46, 4  ;;  %v16962_v20 = vrot.slane %v14847_v33, 4 }
 0x6ba   :  { %v5769_v58 = vadd.f32 %v5569_v50, %v14717_v13  ;;  %v4464_v47 = vmul.f32 1.442695, %v4257_v2  ;;  %v5111_v18 = vrot.slane %v5110_v55, 2  ;;  %v8126_v22 = vsel %vm55_vm0, %v14829_v8, 0.0  ;;  %v14930_v13 = vpop.permute.xlu0 %942 }
 0x6bb   :  { %v8114_v31 = vadd.f32 %v16962_v20, %v14847_v33  ;;  %v5105_v43 = vadd.f32 %v5104_v12, %v5103_v25  ;;  %v8873_v52 = vsel %vm8828_vm14, %v8617_v35, %v8872_v26  ;;  %v5099_v44 = vrot.slane %v5098_v27, 1  ;;  %v14949_v12 = vpop.permute.xlu1 %1086 }
 0x6bc   :  { %v8363_v59 = vsub.f32 %v7803_v39, %v5769_v58  ;;  %9758 = vpow2.f32 %v4464_v47  ;;  %v5237_v54 = vrot.slane %v14894_v7, 2  ;;  %v5250_v49 = vadd.f32 %v5249_v63, %v14884_v34 }
 0x6bd   :  { %v16963_v33 = vrot.slane %v14842_v5, 2  ;;  %v8618_v24 = vmin.f32 %v8490_v4, -1.000005e-05  ;;  %v5244_v8 = vrot.slane %v5243_v6, 2  ;;  %v5106_v38 = vrot.slane %v5105_v43, 1 }
 0x6be   :  { %v8491_v10 = vmax.f32 %v8363_v59, -11.512925  ;;  %v5112_v32 = vadd.f32 %v5111_v18, %v5110_v55  ;;  %v5257_v39 = vadd.f32 %v5256_v53, %v5255_v46  ;;  %v16964_v47 = vrot.slane %v14844_v9, 2  ;;  %v14952_v20 = vpop.permute.xlu0 %1038 }
 0x6bf   :  { %v8088_v3 = vadd.f32 %v16963_v33, %v14842_v5  ;;  %v8101_v50 = vrot.slane %v14871_v28, 2  ;;  %v8874_v57 = vsel %vm8830_vm15, %v8618_v24, %v8873_v52  ;;  %v8108_v34 = vrot.slane %v14877_v62, 2 }
 0x6c0   :  { %v8095_v25 = vadd.f32 %v16964_v47, %v14844_v9  ;;  %v16965_v63 = vrot.slane %v14857_v42, 4  ;;  %v8619_v2 = vmin.f32 %v8491_v10, -1.000005e-05  ;;  %v5100_v4 = vadd.f32 %v5099_v44, %v5098_v27  ;;  %v16967_v27 = vld [vmem:[#allocation41_spill] sm:$0xff] }
 0x6c1   :  { %v5238_v18 = vadd.f32 %v5237_v54, %v14894_v7  ;;  %v5251_v55 = vrot.slane %v5250_v49, 2  ;;  %v8115_v46 = vrot.slane %v8114_v31, 2  ;;  %v8127_v26 = vrot.slane %v8126_v22, 4 }
 0x6c2   :  { %v14946_v5 = vadd.f32 %v16965_v63, %v14857_v42  ;;  %v5245_v9 = vadd.f32 %v5244_v8, %v5243_v6  ;;  %v8875_v58 = vsel %vm8832_vm2, %v8619_v2, %v8874_v57  ;;  %v5107_v35 = vadd.f32 %v5106_v38, %v5105_v43 }
 0x6c3   :  { %v5113_v53 = vrot.slane %v5112_v32, 1  ;;  %v5258_v59 = vrot.slane %v5257_v39, 2  ;;  %v8089_v52 = vrot.slane %v8088_v3, 1  ;;  %v8096_v42 = vrot.slane %v8095_v25, 1 }
 0x6c4   :  { %16966 = vst [vmem:[#allocation106_spill] sm:$0xff] %v14946_v5  ;;  %v8973_v33 = vsel %vm55_vm0, %v8875_v58, 0.0  ;;  %v3026_v7 = vcombine.low %v14889_v36, %v14909_v30  ;;  %v3010_v44 = vcombine.low %v16967_v27, %v14914_v51  ;;  %9760 = vlog2.f32 %v5100_v4 }
 0x6c5   :  { %8974 = vadd.xlane.f32.xlu1 %v8973_v33  ;;  %v3058_v6 = vcombine.low %v14927_v21, %v14949_v12  ;;  %v5252_v43 = vadd.f32 %v5251_v55, %v5250_v49  ;;  %v14962_v54 = vadd.f32 %v8101_v50, %v14871_v28  ;;  %v3042_v8 = vcombine.low %v14930_v13, %v14952_v20 }
 0x6c6   :  { %v5239_v10 = vrot.slane %v5238_v18, 1  ;;  %v5246_v38 = vrot.slane %v5245_v9, 1  ;;  %v5114_v47 = vadd.f32 %v5113_v53, %v5112_v32  ;;  %9762 = vlog2.f32 %v5107_v35  ;;  %v16970_v35 = vld [vmem:[#allocation174_spill] sm:$0xff] }
 0x6c7   :  { %v5259_v57 = vadd.f32 %v5258_v59, %v5257_v39  ;;  %v14968_v63 = vadd.f32 %v8108_v34, %v14877_v62  ;;  %v14970_v2 = vadd.f32 %v8115_v46, %v8114_v31  ;;  %v14972_v4 = vadd.f32 %v8127_v26, %v8126_v22 }
 0x6c8   :  { %v3034_v28 = vrot.slane %v3026_v7, %v10322_v1  ;;  %v3018_v49 = vrot.slane %v3010_v44, %v10322_v1  ;;  %v3066_v50 = vrot.slane %v3058_v6, %v10322_v1  ;;  %v3050_v55 = vrot.slane %v3042_v8, %v10322_v1  ;;  %v16972_v7 = vld [vmem:[#allocation173_spill] sm:$0xff]  ;;  %v16973_v6 = vld [vmem:[#allocation175_spill] sm:$0xff] }
 0x6c9   :  { %16968 = vst [vmem:[#allocation101_spill] sm:$0xff] %v14970_v2  ;;  %16969 = vst [vmem:[#allocation107_spill] sm:$0xff] %v14972_v4  ;;  %v9759_v58 = vpop.eup %9758  ;;  %v5253_v33 = vrot.slane %v5252_v43, 1  ;;  %v14978_v32 = vadd.f32 %v8089_v52, %v8088_v3  ;;  %v14980_v39 = vadd.f32 %v8096_v42, %v8095_v25  ;;  %v5240_v31 = vadd.f32 %v5239_v10, %v5238_v18 }
 0x6ca   :  { %v5247_v34 = vadd.f32 %v5246_v38, %v5245_v9  ;;  %v5115_v22 = vsel %vm55_vm0, %v9759_v58, 0.0  ;;  %9764 = vlog2.f32 %v5114_v47  ;;  %v5260_v46 = vrot.slane %v5259_v57, 1  ;;  %v16974_v47 = vld [vmem:[#allocation180_spill] sm:$0xff] }
 0x6cb   :  { %v5116_v26 = vrot.slane %v5115_v22, 4  ;;  %v16971_v53 = vrot.slane %v16970_v35, 2  ;;  %v7965_v44 = vsel %vm55_vm0, %v16972_v7, 0.0  ;;  %v3027_v3 = vcombine.high %v14889_v36, %v14909_v30 }
 0x6cc   :  { %v3011_v25 = vcombine.high %v16967_v27, %v14914_v51  ;;  %v3074_v18 = vcombine.low %v3018_v49, %v3034_v28  ;;  %v3106_v9 = vcombine.low %v3050_v55, %v3066_v50  ;;  %v14993_v52 = vadd.f32 %v5253_v33, %v5252_v43  ;;  %v16976_v33 = vld [vmem:[#allocation181_spill] sm:$0xff] }
 0x6cd   :  { %v7955_v59 = vadd.f32 %v16971_v53, %v16970_v35  ;;  %v5117_v42 = vadd.f32 %v5116_v26, %v5115_v22  ;;  %v7961_v8 = vrot.slane %v16973_v6, 2  ;;  %v3107_v10 = vcombine.high %v3050_v55, %v3066_v50 }
 0x6ce   :  { %9766 = vlog2.f32 %v5240_v31  ;;  %v3075_v38 = vcombine.high %v3018_v49, %v3034_v28  ;;  %v7949_v58 = vrot.slane %v16974_v47, 1  ;;  %v7966_v35 = vrot.slane %v7965_v44, 4 }
 0x6cf   :  { %v14997_v53 = vadd.f32 %v5260_v46, %v5259_v57  ;;  %9768 = vlog2.f32 %v5247_v34  ;;  %v5118_v30 = vrot.slane %v5117_v42, 2  ;;  %v7956_v36 = vrot.slane %v7955_v59, 1  ;;  %v16975_v57 = vld [vmem:[#allocation60_spill] sm:$0xff]  ;;  %v16977_v46 = vld [vmem:[#allocation179_spill] sm:$0xff] }
 0x6d0   :  { %v15000_v51 = vrot.slane %v3027_v3, %v10322_v1  ;;  %v15003_v27 = vrot.slane %v3011_v25, %v10322_v1  ;;  %v3082_v43 = vrot.slane %v3074_v18, %v10351_v16  ;;  %v3114_v50 = vrot.slane %v3106_v9, %v10351_v16 }
 0x6d1   :  { %v9761_v55 = vpop.eup %9760  ;;  %v5119_v28 = vadd.f32 %v5118_v30, %v5117_v42  ;;  %v15008_v49 = vadd.f32 %v7961_v8, %v16973_v6  ;;  %v8382_v31 = vsub.f32 %v16976_v33, %v16975_v57  ;;  %v3121_v34 = vrot.slane %v3107_v10, %v10351_v16 }
 0x6d2   :  { %v3089_v22 = vrot.slane %v3075_v38, %v10351_v16  ;;  %v16978_v26 = vrot.slane %v16977_v46, 1  ;;  %v7950_v3 = vadd.f32 %v7949_v58, %v16974_v47  ;;  %v7967_v25 = vadd.f32 %v7966_v35, %v7965_v44  ;;  %v16979_v47 = vld [vmem:[#allocation19_spill] sm:$0xff] }
 0x6d3   :  { %v9763_v18 = vpop.eup %9762  ;;  %v5120_v9 = vrot.slane %v5119_v28, 1  ;;  %v15018_v42 = vadd.f32 %v7956_v36, %v7955_v59  ;;  %v3059_v6 = vcombine.high %v14927_v21, %v14949_v12  ;;  %v3043_v8 = vcombine.high %v14930_v13, %v14952_v20  ;;  %v16981_v20 = vld [vmem:[#allocation183_spill] sm:$0xff] }
 0x6d4   :  { %v7943_v7 = vadd.f32 %v16978_v26, %v16977_v46  ;;  %v5611_v10 = vmul.f32 0.6931472, %v9761_v55  ;;  %v15024_v30 = vcombine.low %v3082_v43, %v3114_v50  ;;  %v15026_v38 = vcombine.high %v3082_v43, %v3114_v50  ;;  %v16980_v46 = vld [vmem:[#allocation182_spill] sm:$0xff] }
 0x6d5   :  { %v15028_v57 = vcombine.low %v3089_v22, %v3121_v34  ;;  %v5121_v33 = vadd.f32 %v5120_v9, %v5119_v28  ;;  %v7963_v44 = vrot.slane %v15008_v49, 1  ;;  %v8510_v59 = vmax.f32 %v8382_v31, -11.512925  ;;  %v16982_v28 = vld [vmem:[#allocation165_spill] sm:$0xff] }
 0x6d6   :  { %v8383_v58 = vsub.f32 %v7943_v7, %v16979_v47  ;;  %v5613_v35 = vmul.f32 0.6931472, %v9763_v18  ;;  %v7968_v36 = vrot.slane %v7967_v25, 2  ;;  %v8636_v21 = vmin.f32 %v16980_v46, -1.000005e-05  ;;  %v16983_v46 = vld [vmem:[#allocation166_spill] sm:$0xff] }
 0x6d7   :  { %v15033_v12 = vcombine.high %v3089_v22, %v3121_v34  ;;  %v9765_v13 = vpop.eup %9764  ;;  %9770 = vlog2.f32 %v5121_v33  ;;  %v8637_v55 = vmin.f32 %v16981_v20, -1.000005e-05  ;;  %v3073_v43 = vrot.slane %v3059_v6, %v10322_v1 }
 0x6d8   :  { %v3057_v50 = vrot.slane %v3043_v8, %v10322_v1  ;;  %v5790_v26 = vadd.f32 %v5611_v10, %v16982_v28  ;;  %v4066_v7 = vsel %vm55_vm0, %v15024_v30, -inf  ;;  %v4073_v31 = vsel %vm55_vm0, %v15026_v38, -inf }
 0x6d9   :  { %v4080_v34 = vsel %vm55_vm0, %v15028_v57, -inf  ;;  %v8511_v22 = vmax.f32 %v8383_v58, -11.512925  ;;  %v4067_v18 = vrot.slane %v4066_v7, 4  ;;  %v4074_v9 = vrot.slane %v4073_v31, 4 }
 0x6da   :  { %v4081_v33 = vrot.slane %v4080_v34, 4  ;;  %v5615_v47 = vmul.f32 0.6931472, %v9765_v13  ;;  %v5791_v6 = vadd.f32 %v5613_v35, %v16983_v46  ;;  %v8638_v20 = vmin.f32 %v8510_v59, -1.000005e-05 }
 0x6db   :  { %v4087_v8 = vsel %vm55_vm0, %v15033_v12, -inf  ;;  %v15048_v10 = vpop.eup %9766  ;;  %v4068_v28 = vmax.f32 %v4066_v7, %v4067_v18  ;;  %v4075_v24 = vmax.f32 %v4073_v31, %v4074_v9  ;;  %v7969_v2 = vadd.f32 %v7968_v36, %v7967_v25  ;;  %v16984_v31 = vld [vmem:[#allocation169_spill] sm:$0xff] }
 0x6dc   :  { %v4082_v62 = vmax.f32 %v4080_v34, %v4081_v33  ;;  %v4088_v4 = vrot.slane %v4087_v8, 4  ;;  %v15050_v5 = vpop.eup %9768  ;;  %v8384_v58 = vsub.f32 %v7950_v3, %v5790_v26  ;;  %v8890_v14 = vsel %vm8820_vm10, %v8637_v55, %v8636_v21 }
 0x6dd   :  { %v3122_v0 = vcombine.low %v3057_v50, %v3073_v43  ;;  %v4069_v13 = vrot.slane %v4068_v28, 2  ;;  %v4076_v17 = vrot.slane %v4075_v24, 2  ;;  %v3090_v46 = vcombine.low %v15003_v27, %v15000_v51 }
 0x6de   :  { %v4083_v35 = vrot.slane %v4082_v62, 2  ;;  %v4089_v59 = vmax.f32 %v4087_v8, %v4088_v4  ;;  %v3091_v7 = vcombine.high %v15003_v27, %v15000_v51  ;;  %v5792_v34 = vadd.f32 %v5615_v47, %v16984_v31 }
 0x6df   :  { %v8385_v18 = vsub.f32 %v15018_v42, %v5791_v6  ;;  %v4070_v9 = vmax.f32 %v4068_v28, %v4069_v13  ;;  %v4077_v25 = vmax.f32 %v4075_v24, %v4076_v17  ;;  %v7964_v21 = vadd.f32 %v7963_v44, %v15008_v49 }
 0x6e0   :  { %v4084_v3 = vmax.f32 %v4082_v62, %v4083_v35  ;;  %v4090_v36 = vrot.slane %v4089_v59, 2  ;;  %v8512_v55 = vmax.f32 %v8384_v58, -11.512925  ;;  %v8891_v26 = vsel %vm8822_vm11, %v8638_v20, %v8890_v14 }
 0x6e1   :  { %v3123_v4 = vcombine.high %v3057_v50, %v3073_v43  ;;  %v7970_v33 = vrot.slane %v7969_v2, 1  ;;  %v8639_v8 = vmin.f32 %v8511_v22, -1.000005e-05  ;;  %v3130_v60 = vrot.slane %v3122_v0, %v10351_v16 }
 0x6e2   :  { %v4071_v56 = vrot.slane %v4070_v9, 1  ;;  %9772 = vlog2.f32 %v14993_v52  ;;  %v3098_v51 = vrot.slane %v3090_v46, %v10351_v16  ;;  %v8386_v27 = vsub.f32 %v7964_v21, %v5792_v34  ;;  %v16985_v46 = vld [vmem:[#allocation37_spill] sm:$0xff] }
 0x6e3   :  { %v4078_v42 = vrot.slane %v4077_v25, 1  ;;  %v8513_v17 = vmax.f32 %v8385_v18, -11.512925  ;;  %v8892_v24 = vsel %vm8824_vm12, %v8639_v8, %v8891_v26  ;;  %v4085_v62 = vrot.slane %v4084_v3, 1 }
 0x6e4   :  { %v4091_v49 = vmax.f32 %v4089_v59, %v4090_v36  ;;  %v9771_v44 = vpop.eup %9770  ;;  %9774 = vlog2.f32 %v14997_v53  ;;  %v8640_v14 = vmin.f32 %v8512_v55, -1.000005e-05  ;;  %v15067_v43 = vrot.slane %v3123_v4, %v10351_v16  ;;  %v5856_v36 = vld [vmem:[%s16031_s1 + $0x70] sm:$0xff] }
 0x6e5   :  { %v15069_v0 = vmax.f32 %v4070_v9, %v4071_v56  ;;  %v15072_v52 = vrot.slane %v3091_v7, %v10351_v16  ;;  %v5617_v50 = vmul.f32 0.6931472, %v9771_v44  ;;  %v7971_v22 = vadd.f32 %v7970_v33, %v7969_v2 }
 0x6e6   :  { %v15074_v47 = vcombine.low %v3098_v51, %v3130_v60  ;;  %v8514_v6 = vmax.f32 %v8386_v27, -11.512925  ;;  %v8893_v20 = vsel %vm8826_vm13, %v8640_v14, %v8892_v24  ;;  %v15077_v28 = vcombine.high %v3098_v51, %v3130_v60 }
 0x6e7   :  { %v15079_v58 = vmax.f32 %v4077_v25, %v4078_v42  ;;  %v5793_v53 = vadd.f32 %v5617_v50, %v14916_v19  ;;  %v8641_v13 = vmin.f32 %v8513_v17, -1.000005e-05  ;;  %v15082_v35 = vmax.f32 %v4084_v3, %v4085_v62 }
 0x6e8   :  { %v4092_v56 = vrot.slane %v4091_v49, 1  ;;  %v3146_v2 = vcombine.low %v16985_v46, %v14840_v41  ;;  %v15089_v7 = vcombine.low %v15072_v52, %v15067_v43  ;;  %v4290_v60 = vsub.f32 %v15024_v30, %v15069_v0 }
 0x6e9   :  { %v3162_v31 = vcombine.low %v14837_v29, %v14863_v40  ;;  %v8387_v19 = vsub.f32 %v7971_v22, %v5793_v53  ;;  %v8894_v34 = vsel %vm8828_vm14, %v8641_v13, %v8893_v20  ;;  %v4094_v18 = vsel %vm55_vm0, %v15074_v47, -inf }
 0x6ea   :  { %v3147_v9 = vcombine.high %v16985_v46, %v14840_v41  ;;  %v3163_v25 = vcombine.high %v14837_v29, %v14863_v40  ;;  %v8642_v3 = vmin.f32 %v8514_v6, -1.000005e-05  ;;  %v4291_v21 = vsub.f32 %v15026_v38, %v15079_v58 }
 0x6eb   :  { %v8515_v55 = vmax.f32 %v8387_v19, -11.512925  ;;  %v15107_v26 = vmax.f32 %v4091_v49, %v4092_v56  ;;  %v4101_v4 = vsel %vm55_vm0, %v15077_v28, -inf  ;;  %v4292_v41 = vsub.f32 %v15028_v57, %v15082_v35 }
 0x6ec   :  { %v8895_v33 = vsel %vm8830_vm15, %v8642_v3, %v8894_v34  ;;  %v4095_v40 = vrot.slane %v4094_v18, 4  ;;  %v4108_v29 = vsel %vm55_vm0, %v15089_v7, -inf  ;;  %v4530_v8 = vmul.f32 1.442695, %v4290_v60 }
 0x6ed   :  { %v3170_v51 = vrot.slane %v3162_v31, %v10322_v1  ;;  %v8643_v27 = vmin.f32 %v8515_v55, -1.000005e-05  ;;  %v6546_v42 = vcombine.high %v5856_v36, %v5856_v36  ;;  %v6553_v17 = vrot.slane %v5856_v36, %v16766_v45 }
 0x6ee   :  { %v5651_v24 = vmul.f32 0.6931472, %v15048_v10  ;;  %v3154_v62 = vrot.slane %v3146_v2, %v10322_v1  ;;  %v4102_v49 = vrot.slane %v4101_v4, 4  ;;  %v4532_v44 = vmul.f32 1.442695, %v4291_v21 }
 0x6ef   :  { %v9773_v14 = vpop.eup %9772  ;;  %v8896_v50 = vsel %vm8832_vm2, %v8643_v27, %v8895_v33  ;;  %v4109_v22 = vrot.slane %v4108_v29, 4  ;;  %v4293_v6 = vsub.f32 %v15033_v12, %v15107_v26  ;;  %v4534_v20 = vmul.f32 1.442695, %v4292_v41 }
 0x6f0   :  { %v5653_v53 = vmul.f32 0.6931472, %v15050_v5  ;;  %v8982_v13 = vsel %vm55_vm0, %v8896_v50, 0.0  ;;  %v4096_v56 = vmax.f32 %v4094_v18, %v4095_v40  ;;  %9776 = vpow2.f32 %v4530_v8 }
 0x6f1   :  { %v9775_v46 = vpop.eup %9774  ;;  %v3177_v10 = vrot.slane %v3163_v25, %v10322_v1  ;;  %v3210_v2 = vcombine.low %v3154_v62, %v3170_v51  ;;  %8983 = vadd.xlane.f32.xlu0 %v8982_v13  ;;  %v6560_v60 = vrot.slane %v6546_v42, %v16766_v45  ;;  %v6561_v31 = vcombine.high %v6553_v17, %v6553_v17 }
 0x6f2   :  { %v3161_v19 = vrot.slane %v3147_v9, %v10322_v1  ;;  %v3211_v34 = vcombine.high %v3154_v62, %v3170_v51  ;;  %v4103_v3 = vmax.f32 %v4101_v4, %v4102_v49  ;;  %9778 = vpow2.f32 %v4532_v44 }
 0x6f3   :  { %v6569_v36 = vrot.slane %v6553_v17, %v16766_v45  ;;  %v4110_v5 = vmax.f32 %v4108_v29, %v4109_v22  ;;  %9780 = vpow2.f32 %v4534_v20  ;;  %v4536_v21 = vmul.f32 1.442695, %v4293_v6 }
 0x6f4   :  { %v5810_v18 = vadd.f32 %v5651_v24, %v14730_v37  ;;  %v5811_v55 = vadd.f32 %v5653_v53, %v14745_v48  ;;  %v16986_v25 = vrot.slane %v14962_v54, 1  ;;  %v4097_v33 = vrot.slane %v4096_v56, 2 }
 0x6f5   :  { %v15137_v9 = vrot.slane %v3210_v2, %v10351_v16  ;;  %v3226_v4 = vcombine.low %v3161_v19, %v3177_v10  ;;  %v6562_v40 = vcombine.high %v6560_v60, %v6560_v60  ;;  %v6583_v8 = vrot.slane %v6561_v31, %v16766_v45 }
 0x6f6   :  { %v15134_v41 = vadd.f32 %v16986_v25, %v14962_v54  ;;  %v5655_v29 = vmul.f32 0.6931472, %v9773_v14  ;;  %v15141_v51 = vrot.slane %v3211_v34, %v10351_v16  ;;  %v3227_v37 = vcombine.high %v3161_v19, %v3177_v10  ;;  %v15166_v10 = vpop.permute.xlu1 %1088 }
 0x6f7   :  { %v4104_v27 = vrot.slane %v4103_v3, 2  ;;  %v5657_v48 = vmul.f32 0.6931472, %v9775_v46  ;;  %v6591_v42 = vcombine.high %v6569_v36, %v6569_v36  ;;  %v4111_v17 = vrot.slane %v4110_v5, 2 }
 0x6f8   :  { %16987 = vst [vmem:[#allocation61_spill] sm:$0xff] %v15134_v41  ;;  %9782 = vpow2.f32 %v4536_v21  ;;  %v8404_v54 = vsub.f32 %v14978_v32, %v5810_v18  ;;  %v8405_v24 = vsub.f32 %v14980_v39, %v5811_v55  ;;  %v6576_v62 = vrot.slane %v6560_v60, %v16766_v45 }
 0x6f9   :  { %v4098_v49 = vmax.f32 %v4096_v56, %v4097_v33  ;;  %v15147_v44 = vrot.slane %v3226_v4, %v10351_v16  ;;  %v6590_v14 = vrot.slane %v6562_v40, %v16766_v45  ;;  %v6593_v50 = vcombine.high %v6583_v8, %v6583_v8 }
 0x6fa   :  { %v7095_v22 = vrot.slane %v6569_v36, %v16920_v61  ;;  %v15152_v6 = vadd.f32 %v5655_v29, %v14747_v15  ;;  %v15155_v20 = vrot.slane %v3227_v37, %v10351_v16  ;;  %v15159_v32 = vcombine.high %v15072_v52, %v15067_v43 }
 0x6fb   :  { %v4105_v39 = vmax.f32 %v4103_v3, %v4104_v27  ;;  %v15162_v53 = vadd.f32 %v5657_v48, %v14766_v11  ;;  %v7099_v13 = vrot.slane %v6583_v8, %v16920_v61  ;;  %v7103_v56 = vrot.slane %v6591_v42, %v16920_v61 }
 0x6fc   :  { %16988 = vst [vmem:[#allocation13_spill] sm:$0xff] %v15159_v32  ;;  %v4112_v46 = vmax.f32 %v4110_v5, %v4111_v17  ;;  %v15168_v15 = vmax.f32 %v8404_v54, -11.512925  ;;  %v15170_v2 = vmax.f32 %v8405_v24, -11.512925  ;;  %v6592_v60 = vcombine.high %v6576_v62, %v6576_v62  ;;  %v16994_v5 = vld [vmem:[#allocation104_spill] sm:$0xff] }
 0x6fd   :  { %16989 = vst [vmem:[#allocation109_spill] sm:$0xff] %v15162_v53  ;;  %v4099_v31 = vrot.slane %v4098_v49, 1  ;;  %v9777_v19 = vpop.eup %9776  ;;  %v6594_v43 = vcombine.high %v6590_v14, %v6590_v14  ;;  %v7107_v52 = vrot.slane %v6593_v50, %v16920_v61  ;;  %v7111_v11 = vrot.slane %v6576_v62, %v16920_v61 }
 0x6fe   :  { %16990 = vst [vmem:[#allocation98_spill] sm:$0xff] %v15168_v15  ;;  %16991 = vst [vmem:[#allocation105_spill] sm:$0xff] %v15170_v2  ;;  %vm15175_vm3 = vcmp.eq.s32.totalorder %v7095_v22, %v16827_v23  ;;  %v4106_v3 = vrot.slane %v4105_v39, 1  ;;  %v4115_v36 = vsel %vm55_vm0, %v15159_v32, -inf  ;;  %v3194_v21 = vcombine.low %v16994_v5, %v15166_v10  ;;  %v17016_v2 = vld [vmem:[#allocation46_spill] sm:$0xff] }
 0x6ff   :  { %v9779_v55 = vpop.eup %9778  ;;  %v7115_v25 = vrot.slane %v6590_v14, %v16920_v61  ;;  %vm15187_vm4 = vcmp.eq.s32.totalorder %v7099_v13, %v16827_v23  ;;  %vm7270_vm5 = vcmp.eq.s32.totalorder %v7103_v56, %v16827_v23  ;;  %v4113_v4 = vrot.slane %v4112_v46, 1 }
 0x700   :  { %v9781_v40 = vpop.eup %9780  ;;  %v7119_v8 = vrot.slane %v6592_v60, %v16920_v61  ;;  %v15193_v29 = vmax.f32 %v4098_v49, %v4099_v31  ;;  %v5346_v37 = vsel %vm55_vm0, %v9777_v19, 0.0  ;;  %v7396_v27 = vsel %vm15175_vm3, %v15024_v30, 0.0  ;;  %v1041_v49 = vpop.permute.xlu0 %1040  ;;  %v17004_v19 = vld [vmem:[#allocation88_spill] sm:$0xff] }
 0x701   :  { %v15200_v48 = vrot.slane %v6594_v43, %v16920_v61  ;;  %vm7271_vm1 = vcmp.eq.s32.totalorder %v7107_v52, %v16827_v23  ;;  %vm15204_vm6 = vcmp.eq.s32.totalorder %v7111_v11, %v16827_v23  ;;  %v4116_v17 = vrot.slane %v4115_v36, 4 }
 0x702   :  { %16997 = vst [vmem:[#allocation108_spill] sm:$0xff] %v15193_v29  ;;  %v15208_v54 = vmax.f32 %v4105_v39, %v4106_v3  ;;  %v5353_v24 = vsel %vm55_vm0, %v9779_v55, 0.0  ;;  %v7397_v62 = vsel %vm15187_vm4, %v15026_v38, 0.0  ;;  %v7398_v30 = vsel %vm7270_vm5, %v15028_v57, 0.0 }
 0x703   :  { %v15215_v14 = vmax.f32 %v4112_v46, %v4113_v4  ;;  %v5347_v50 = vrot.slane %v5346_v37, 4  ;;  %v5360_v22 = vsel %vm55_vm0, %v9781_v40, 0.0  ;;  %v8196_v13 = vsel %vm55_vm0, %v7396_v27, 0.0 }
 0x704   :  { %17000 = vst [vmem:[#allocation110_spill] sm:$0xff] %v15208_v54  ;;  %vm15220_vm7 = vcmp.eq.s32.totalorder %v7115_v25, %v16827_v23  ;;  %vm7274_vm8 = vcmp.eq.s32.totalorder %v7119_v8, %v16827_v23  ;;  %v4294_v38 = vsub.f32 %v15074_v47, %v15193_v29  ;;  %v7399_v57 = vsel %vm7271_vm1, %v15033_v12, 0.0 }
 0x705   :  { %17001 = vst [vmem:[#allocation116_spill] sm:$0xff] %v15215_v14  ;;  %v9783_v56 = vpop.eup %9782  ;;  %v5354_v46 = vrot.slane %v5353_v24, 4  ;;  %v8203_v60 = vsel %vm55_vm0, %v7397_v62, 0.0  ;;  %v8210_v31 = vsel %vm55_vm0, %v7398_v30, 0.0  ;;  %v3178_v43 = vcombine.low %v17004_v19, %v1041_v49 }
 0x706   :  { %v4295_v11 = vsub.f32 %v15077_v28, %v15208_v54  ;;  %v5361_v34 = vrot.slane %v5360_v22, 4  ;;  %v7400_v3 = vsel %vm15204_vm6, %v15074_v47, 0.0  ;;  %v8197_v55 = vrot.slane %v8196_v13, 4 }
 0x707   :  { %vm7275_vm9 = vcmp.eq.s32.totalorder %v15200_v48, %v16827_v23  ;;  %v15240_v12 = vmax.f32 %v4115_v36, %v4116_v17  ;;  %v4296_v52 = vsub.f32 %v15089_v7, %v15215_v14  ;;  %v5348_v25 = vadd.f32 %v5347_v50, %v5346_v37 }
 0x708   :  { %v5367_v33 = vsel %vm55_vm0, %v9783_v56, 0.0  ;;  %v4538_v4 = vmul.f32 1.442695, %v4294_v38  ;;  %v8204_v40 = vrot.slane %v8203_v60, 4  ;;  %v8211_v27 = vrot.slane %v8210_v31, 4 }
 0x709   :  { %v8217_v62 = vsel %vm55_vm0, %v7399_v57, 0.0  ;;  %v5355_v30 = vadd.f32 %v5354_v46, %v5353_v24  ;;  %v8224_v47 = vsel %vm55_vm0, %v7400_v3, 0.0  ;;  %v3202_v42 = vrot.slane %v3194_v21, %v10322_v1 }
 0x70a   :  { %v3186_v59 = vrot.slane %v3178_v43, %v10322_v1  ;;  %v4540_v36 = vmul.f32 1.442695, %v4295_v11  ;;  %v5362_v17 = vadd.f32 %v5361_v34, %v5360_v22  ;;  %v5368_v18 = vrot.slane %v5367_v33, 4 }
 0x70b   :  { %v8198_v54 = vadd.f32 %v8197_v55, %v8196_v13  ;;  %v4542_v14 = vmul.f32 1.442695, %v4296_v52  ;;  %v5349_v37 = vrot.slane %v5348_v25, 2  ;;  %v7401_v50 = vsel %vm15220_vm7, %v15077_v28, 0.0 }
 0x70c   :  { %v7402_v24 = vsel %vm7274_vm8, %v15089_v7, 0.0  ;;  %v8205_v56 = vadd.f32 %v8204_v40, %v8203_v60  ;;  %v8212_v38 = vadd.f32 %v8211_v27, %v8210_v31  ;;  %v8218_v57 = vrot.slane %v8217_v62, 4 }
 0x70d   :  { %v8225_v21 = vrot.slane %v8224_v47, 4  ;;  %9784 = vpow2.f32 %v4538_v4  ;;  %v5356_v46 = vrot.slane %v5355_v30, 2  ;;  %v3179_v22 = vcombine.high %v17004_v19, %v1041_v49 }
 0x70e   :  { %v3242_v43 = vcombine.low %v3186_v59, %v3202_v42  ;;  %9786 = vpow2.f32 %v4540_v36  ;;  %v5363_v13 = vrot.slane %v5362_v17, 2  ;;  %v5369_v11 = vadd.f32 %v5368_v18, %v5367_v33 }
 0x70f   :  { %v8199_v34 = vrot.slane %v8198_v54, 2  ;;  %v5350_v3 = vadd.f32 %v5349_v37, %v5348_v25  ;;  %v8231_v28 = vsel %vm55_vm0, %v7401_v50, 0.0  ;;  %v8238_v39 = vsel %vm55_vm0, %v7402_v24, 0.0 }
 0x710   :  { %v3243_v8 = vcombine.high %v3186_v59, %v3202_v42  ;;  %v8206_v7 = vrot.slane %v8205_v56, 2  ;;  %v8213_v60 = vrot.slane %v8212_v38, 2  ;;  %v8219_v31 = vadd.f32 %v8218_v57, %v8217_v62 }
 0x711   :  { %v8226_v55 = vadd.f32 %v8225_v21, %v8224_v47  ;;  %v5357_v52 = vadd.f32 %v5356_v46, %v5355_v30  ;;  %v17005_v49 = vcombine.high %v16994_v5, %v15166_v10  ;;  %v3193_v4 = vrot.slane %v3179_v22, %v10322_v1  ;;  %v5857_v10 = vld [vmem:[%s16031_s1 + $0x78] sm:$0xff]  ;;  %s9923_s1 = smov [#allocation2]  }
 0x712   :  { %v3250_v18 = vrot.slane %v3242_v43, %v10351_v16  ;;  %9788 = vpow2.f32 %v4542_v14  ;;  %v5364_v25 = vadd.f32 %v5363_v13, %v5362_v17  ;;  %v5370_v33 = vrot.slane %v5369_v11, 2  ;;  %s9138_s23 = sshll.u32 %s9923_s1, 4  ;;  %s9139_s23 = int_to_ptr.vmem [resolvable:$true] %s9138_s23 }
 0x713   :  { %v3209_v19 = vrot.slane %v17005_v49, %v10322_v1  ;;  %v15268_v59 = vsel %vm7275_vm9, %v15159_v32, 0.0  ;;  %v5351_v40 = vrot.slane %v5350_v3, 1  ;;  %v8200_v27 = vadd.f32 %v8199_v34, %v8198_v54  ;;  %s9891_s24 = scalar_lea.vmem %s9139_s23, 16  ;;  %s9895_s25 = scalar_lea.vmem %s9139_s23, 32 }
 0x714   :  { %17006 = vst [vmem:[#allocation113_spill] sm:$0xff] %v15268_v59  ;;  %v8232_v62 = vrot.slane %v8231_v28, 4  ;;  %v3257_v1 = vrot.slane %v3243_v8, %v10351_v16  ;;  %v8207_v5 = vadd.f32 %v8206_v7, %v8205_v56  ;;  %v8214_v30 = vadd.f32 %v8213_v60, %v8212_v38  ;;  %p9892_p0 = scmp.ne.s32.totalorder %s9139_s23, %s9891_s24  ;;  %p9896_p1 = scmp.lt.s32.totalorder %s9139_s23, %s9139_s23 }
 0x715   :  { %v8220_v14 = vrot.slane %v8219_v31, 2  ;;  %v8239_v47 = vrot.slane %v8238_v39, 4  ;;  %v5358_v42 = vrot.slane %v5357_v52, 1  ;;  %v8227_v36 = vrot.slane %v8226_v55, 2  ;;  %p9897_p2 = scmp.lt.s32.totalorder %s9895_s25, %s9891_s24 }
 0x716   :  { %v3258_v17 = vcombine.low %v3193_v4, %v3209_v19  ;;  %v15275_v48 = vcombine.low %v15137_v9, %v3250_v18  ;;  %v5365_v37 = vrot.slane %v5364_v25, 1  ;;  %v5371_v50 = vadd.f32 %v5370_v33, %v5369_v11 }
 0x717   :  { %v6595_v54 = vcombine.high %v5857_v10, %v5857_v10  ;;  %v15278_v24 = vcombine.high %v15137_v9, %v3250_v18  ;;  %v5352_v57 = vadd.f32 %v5351_v40, %v5350_v3  ;;  %v8201_v21 = vrot.slane %v8200_v27, 1  ;;  %p9898_p3 = por %p9897_p2, %p9896_p1 }
 0x718   :  { %v6602_v46 = vrot.slane %v5857_v10, %v16766_v45  ;;  %v15282_v56 = vcombine.low %v15141_v51, %v3257_v1  ;;  %v8208_v38 = vrot.slane %v8207_v5, 1  ;;  %v8215_v22 = vrot.slane %v8214_v30, 1 }
 0x719   :  { %v15284_v43 = vadd.f32 %v8232_v62, %v8231_v28  ;;  %v15286_v13 = vadd.f32 %v8239_v47, %v8238_v39  ;;  %v5359_v34 = vadd.f32 %v5358_v42, %v5357_v52  ;;  %v3266_v11 = vrot.slane %v3258_v17, %v10351_v16  ;;  %p9899_p4 = pnand %p9898_p3, %p9892_p0 }
 0x71a   :  { %v15290_v8 = vcombine.high %v15141_v51, %v3257_v1  ;;  %v4122_v9 = vsel %vm55_vm0, %v15275_v48, -inf  ;;  %v15294_v3 = vpop.eup %9784  ;;  %v5366_v7 = vadd.f32 %v5365_v37, %v5364_v25  ;;  %v5372_v60 = vrot.slane %v5371_v50, 1 }
 0x71b   :  { %17007 = vst [vmem:[#allocation111_spill] sm:$0xff] %v15284_v43  ;;  %17008 = vst [vmem:[#allocation112_spill] sm:$0xff] %v15286_v13  ;;  %v6609_v49 = vrot.slane %v6595_v54, %v16766_v45  ;;  %v4129_v28 = vsel %vm55_vm0, %v15278_v24, -inf  ;;  %v15299_v39 = vpop.eup %9786  ;;  %9790 = vlog2.f32 %v5352_v57  ;;  %v6610_v52 = vcombine.high %v6602_v46, %v6602_v46 }
 0x71c   :  { %v3259_v18 = vcombine.high %v3193_v4, %v3209_v19  ;;  %v4136_v51 = vsel %vm55_vm0, %v15282_v56, -inf  ;;  %v15303_v33 = vadd.f32 %v8201_v21, %v8200_v27  ;;  %v15305_v40 = vadd.f32 %v8220_v14, %v8219_v31  ;;  %v17012_v14 = vld [vmem:[#allocation185_spill] sm:$0xff] }
 0x71d   :  { %v15307_v62 = vadd.f32 %v8227_v36, %v8226_v55  ;;  %v4123_v25 = vrot.slane %v4122_v9, 4  ;;  %9792 = vlog2.f32 %v5359_v34  ;;  %v15310_v10 = vcombine.low %v15147_v44, %v3266_v11 }
 0x71e   :  { %17009 = vst [vmem:[#allocation117_spill] sm:$0xff] %v15305_v40  ;;  %v4130_v1 = vrot.slane %v4129_v28, 4  ;;  %v4143_v47 = vsel %vm55_vm0, %v15290_v8, -inf  ;;  %v5373_v42 = vadd.f32 %v5372_v60, %v5371_v50  ;;  %9794 = vlog2.f32 %v5366_v7 }
 0x71f   :  { %17010 = vst [vmem:[#allocation7_spill] sm:$0xff] %v15307_v62  ;;  %v6611_v19 = vcombine.high %v6609_v49, %v6609_v49  ;;  %v4137_v4 = vrot.slane %v4136_v51, 4  ;;  %v15314_v17 = vpop.eup %9788  ;;  %v15317_v31 = vrot.slane %v6602_v46, %v16766_v45  ;;  %v15320_v55 = vrot.slane %v6610_v52, %v16766_v45 }
 0x720   :  { %17011 = vst [vmem:[#allocation118_spill] sm:$0xff] %v15314_v17  ;;  %v15323_v27 = vrot.slane %v3259_v18, %v10351_v16  ;;  %v3782_v36 = vrot.slane %v17012_v14, 2  ;;  %v15326_v37 = vadd.f32 %v8208_v38, %v8207_v5  ;;  %v15329_v50 = vcombine.high %v15147_v44, %v3266_v11 }
 0x721   :  { %v4124_v54 = vmax.f32 %v4122_v9, %v4123_v25  ;;  %v4144_v57 = vrot.slane %v4143_v47, 4  ;;  %v15331_v21 = vadd.f32 %v8215_v22, %v8214_v30  ;;  %v15334_v46 = vrot.slane %v6609_v49, %v16766_v45 }
 0x722   :  { %v4131_v34 = vmax.f32 %v4129_v28, %v4130_v1  ;;  %v4150_v7 = vsel %vm55_vm0, %v15310_v10, -inf  ;;  %9796 = vlog2.f32 %v5373_v42  ;;  %v15340_v5 = vrot.slane %v6611_v19, %v16766_v45  ;;  %v17014_v42 = vld [vmem:[#allocation21_spill] sm:$0xff] }
 0x723   :  { %17013 = vst [vmem:[#allocation119_spill] sm:$0xff] %v15331_v21  ;;  %v4138_v38 = vmax.f32 %v4136_v51, %v4137_v4  ;;  %v6640_v44 = vcombine.high %v15317_v31, %v15317_v31  ;;  %v6642_v30 = vcombine.high %v15320_v55, %v15320_v55  ;;  %v15348_v22 = vcombine.low %v15155_v20, %v15323_v27 }
 0x724   :  { %v3783_v11 = vmax.f32 %v17012_v14, %v3782_v36  ;;  %v4125_v9 = vrot.slane %v4124_v54, 2  ;;  %v4145_v60 = vmax.f32 %v4143_v47, %v4144_v57  ;;  %v4151_v49 = vrot.slane %v4150_v7, 4 }
 0x725   :  { %v4157_v45 = vsel %vm55_vm0, %v15329_v50, -inf  ;;  %v6641_v52 = vcombine.high %v15334_v46, %v15334_v46  ;;  %v7127_v18 = vrot.slane %v15317_v31, %v16920_v61  ;;  %v4132_v51 = vrot.slane %v4131_v34, 2 }
 0x726   :  { %v6643_v25 = vcombine.high %v15340_v5, %v15340_v5  ;;  %v7131_v1 = vrot.slane %v15320_v55, %v16920_v61  ;;  %v4139_v47 = vrot.slane %v4138_v38, 2  ;;  %v5038_v19 = vsel %vm55_vm0, %v17014_v42, 0.0 }
 0x727   :  { %v15365_v4 = vrot.slane %v6640_v44, %v16920_v61  ;;  %v15368_v14 = vrot.slane %v6642_v30, %v16920_v61  ;;  %v4158_v36 = vrot.slane %v4157_v45, 4  ;;  %v3784_v57 = vrot.slane %v3783_v11, 1 }
 0x728   :  { %v9791_v31 = vpop.eup %9790  ;;  %v4126_v16 = vmax.f32 %v4124_v54, %v4125_v9  ;;  %v4146_v28 = vrot.slane %v4145_v60, 2  ;;  %v4152_v29 = vmax.f32 %v4150_v7, %v4151_v49  ;;  %v4164_v62 = vsel %vm55_vm0, %v15348_v22, -inf  ;;  %v17015_v7 = vld [vmem:[#allocation64_spill] sm:$0xff] }
 0x729   :  { %v7143_v55 = vrot.slane %v15334_v46, %v16920_v61  ;;  %v7147_v42 = vrot.slane %v15340_v5, %v16920_v61  ;;  %v4133_v44 = vmax.f32 %v4131_v34, %v4132_v51  ;;  %v5039_v40 = vrot.slane %v5038_v19, 4 }
 0x72a   :  { %v9793_v43 = vpop.eup %9792  ;;  %v15377_v30 = vrot.slane %v6641_v52, %v16920_v61  ;;  %v15380_v21 = vrot.slane %v6643_v25, %v16920_v61  ;;  %v4140_v54 = vmax.f32 %v4138_v38, %v4139_v47  ;;  %v5045_v9 = vsel %vm55_vm0, %v17015_v7, 0.0  ;;  %v17017_v7 = vld [vmem:[#allocation5_spill] sm:$0xff] }
 0x72b   :  { %v9795_v49 = vpop.eup %9794  ;;  %v5683_v13 = vmul.f32 0.6931472, %v9791_v31  ;;  %v4159_v59 = vmax.f32 %v4157_v45, %v4158_v36  ;;  %v4165_v46 = vrot.slane %v4164_v62, 4  ;;  %v5052_v5 = vsel %vm55_vm0, %v17016_v2, 0.0 }
 0x72c   :  { %v4127_v34 = vrot.slane %v4126_v16, 1  ;;  %v4147_v51 = vmax.f32 %v4145_v60, %v4146_v28  ;;  %v4153_v15 = vrot.slane %v4152_v29, 2  ;;  %v15386_v32 = vmax.f32 %v3783_v11, %v3784_v57  ;;  %v17020_v57 = vld [vmem:[#allocation63_spill] sm:$0xff] }
 0x72d   :  { %v5685_v52 = vmul.f32 0.6931472, %v9793_v43  ;;  %v4134_v53 = vrot.slane %v4133_v44, 1  ;;  %v5040_v61 = vadd.f32 %v5039_v40, %v5038_v19  ;;  %v5046_v25 = vrot.slane %v5045_v9, 4 }
 0x72e   :  { %v5687_v38 = vmul.f32 0.6931472, %v9795_v49  ;;  %v4141_v47 = vrot.slane %v4140_v54, 1  ;;  %v5053_v17 = vrot.slane %v5052_v5, 4  ;;  %v17018_v31 = vrot.slane %v17017_v7, 1 }
 0x72f   :  { %v9797_v36 = vpop.eup %9796  ;;  %v5826_v2 = vadd.f32 %v5683_v13, %v15069_v0  ;;  %v15396_v60 = vcombine.high %v15155_v20, %v15323_v27  ;;  %v4160_v11 = vrot.slane %v4159_v59, 2  ;;  %v4166_v43 = vmax.f32 %v4164_v62, %v4165_v46 }
 0x730   :  { %v15391_v45 = vadd.f32 %v17018_v31, %v17017_v7  ;;  %v15398_v28 = vmax.f32 %v4126_v16, %v4127_v34  ;;  %v4148_v40 = vrot.slane %v4147_v51, 1  ;;  %v4154_v19 = vmax.f32 %v4152_v29, %v4153_v15  ;;  %v17037_v7 = vld [vmem:[#allocation65_spill] sm:$0xff] }
 0x731   :  { %v4249_v49 = vsub.f32 %v17020_v57, %v15386_v32  ;;  %v5827_v41 = vadd.f32 %v5685_v52, %v15079_v58  ;;  %vm15404_vm3 = vcmp.eq.s32.totalorder %v7127_v18, %v16827_v23  ;;  %v15408_v0 = vmax.f32 %v4133_v44, %v4134_v53 }
 0x732   :  { %17019 = vst [vmem:[#allocation16_spill] sm:$0xff] %v15398_v28  ;;  %v5041_v20 = vrot.slane %v5040_v61, 2  ;;  %v5047_v13 = vadd.f32 %v5046_v25, %v5045_v9  ;;  %v5689_v27 = vmul.f32 0.6931472, %v9797_v36  ;;  %v15411_v62 = vadd.f32 %v5687_v38, %v15082_v35 }
 0x733   :  { %17023 = vst [vmem:[#allocation99_spill] sm:$0xff] %v15408_v0  ;;  %vm15414_vm4 = vcmp.eq.s32.totalorder %v7131_v1, %v16827_v23  ;;  %vm7278_vm5 = vcmp.eq.s32.totalorder %v15365_v4, %v16827_v23  ;;  %v15420_v58 = vmax.f32 %v4140_v54, %v4141_v47  ;;  %v5054_v29 = vadd.f32 %v5053_v17, %v5052_v5  ;;  %v17039_v4 = vld [vmem:[#allocation27_spill] sm:$0xff] }
 0x734   :  { %v8420_v53 = vsub.f32 %v15303_v33, %v5826_v2  ;;  %vm7279_vm1 = vcmp.eq.s32.totalorder %v15368_v14, %v16827_v23  ;;  %v4161_v16 = vmax.f32 %v4159_v59, %v4160_v11  ;;  %v4167_v18 = vrot.slane %v4166_v43, 2  ;;  %v17040_v14 = vld [vmem:[#allocation22_spill] sm:$0xff] }
 0x735   :  { %17026 = vst [vmem:[#allocation100_spill] sm:$0xff] %v15420_v58  ;;  %v4171_v35 = vsel %vm55_vm0, %v15396_v60, -inf  ;;  %vm15428_vm6 = vcmp.eq.s32.totalorder %v7143_v55, %v16827_v23  ;;  %v15432_v44 = vmax.f32 %v4147_v51, %v4148_v40  ;;  %v4155_v54 = vrot.slane %v4154_v19, 1 }
 0x736   :  { %v4298_v17 = vsub.f32 %v15275_v48, %v15398_v28  ;;  %v4448_v33 = vmul.f32 1.442695, %v4249_v49  ;;  %v8421_v9 = vsub.f32 %v15326_v37, %v5827_v41  ;;  %vm15438_vm7 = vcmp.eq.s32.totalorder %v7147_v42, %v16827_v23 }
 0x737   :  { %17029 = vst [vmem:[#allocation121_spill] sm:$0xff] %v15432_v44  ;;  %v4299_v55 = vsub.f32 %v15278_v24, %v15408_v0  ;;  %v5042_v46 = vadd.f32 %v5041_v20, %v5040_v61  ;;  %v5048_v5 = vrot.slane %v5047_v13, 2  ;;  %vm7282_vm8 = vcmp.eq.s32.totalorder %v15377_v30, %v16827_v23 }
 0x738   :  { %vm7283_vm9 = vcmp.eq.s32.totalorder %v15380_v21, %v16827_v23  ;;  %v4172_v34 = vrot.slane %v4171_v35, 4  ;;  %v4300_v41 = vsub.f32 %v15282_v56, %v15420_v58  ;;  %9798 = vpow2.f32 %v4448_v33 }
 0x739   :  { %v5055_v37 = vrot.slane %v5054_v29, 2  ;;  %v4162_v42 = vrot.slane %v4161_v16, 1  ;;  %v4168_v51 = vmax.f32 %v4166_v43, %v4167_v18  ;;  %v5043_v52 = vrot.slane %v5042_v46, 1 }
 0x73a   :  { %v5049_v25 = vadd.f32 %v5048_v5, %v5047_v13  ;;  %v15450_v38 = vmax.f32 %v4154_v19, %v4155_v54  ;;  %v4301_v61 = vsub.f32 %v15290_v8, %v15432_v44  ;;  %v4546_v47 = vmul.f32 1.442695, %v4298_v17 }
 0x73b   :  { %v5056_v31 = vadd.f32 %v5055_v37, %v5054_v29  ;;  %v15454_v36 = vmax.f32 %v8420_v53, -11.512925  ;;  %v4548_v2 = vmul.f32 1.442695, %v4299_v55  ;;  %v5044_v11 = vadd.f32 %v5043_v52, %v5042_v46  ;;  %v17043_v52 = vld [vmem:[#allocation20_spill] sm:$0xff] }
 0x73c   :  { %17032 = vst [vmem:[#allocation123_spill] sm:$0xff] %v15450_v38  ;;  %v5050_v40 = vrot.slane %v5049_v25, 1  ;;  %v15457_v57 = vadd.f32 %v5689_v27, %v15107_v26  ;;  %v15459_v49 = vmax.f32 %v8421_v9, -11.512925  ;;  %v4550_v43 = vmul.f32 1.442695, %v4300_v41 }
 0x73d   :  { %17033 = vst [vmem:[#allocation124_spill] sm:$0xff] %v15454_v36  ;;  %v5057_v20 = vrot.slane %v5056_v31, 1  ;;  %v15461_v13 = vmax.f32 %v4161_v16, %v4162_v42  ;;  %v4169_v19 = vrot.slane %v4168_v51, 1  ;;  %v15463_v18 = vmax.f32 %v4171_v35, %v4172_v34 }
 0x73e   :  { %17034 = vst [vmem:[#allocation114_spill] sm:$0xff] %v15457_v57  ;;  %17035 = vst [vmem:[#allocation126_spill] sm:$0xff] %v15459_v49  ;;  %9800 = vlog2.f32 %v5044_v11  ;;  %v4302_v29 = vsub.f32 %v15310_v10, %v15450_v38  ;;  %v4552_v53 = vmul.f32 1.442695, %v4301_v61  ;;  %v7404_v26 = vsel %vm15404_vm3, %v15275_v48, 0.0  ;;  %v17044_v61 = vld [vmem:[#allocation24_spill] sm:$0xff] }
 0x73f   :  { %17036 = vst [vmem:[#allocation122_spill] sm:$0xff] %v15461_v13  ;;  %9802 = vpow2.f32 %v4546_v47  ;;  %v15477_v16 = vsel %vm7278_vm5, %v15282_v56, 0.0  ;;  %v5051_v35 = vadd.f32 %v5050_v40, %v5049_v25  ;;  %v15483_v54 = vsel %vm7279_vm1, %v15290_v8, 0.0  ;;  %v17045_v11 = vld [vmem:[#allocation25_spill] sm:$0xff]  ;;  %v17050_v56 = vld [vmem:[#allocation66_spill] sm:$0xff]  ;;  %v17096_v57 = vld [vmem:[#allocation79_spill] sm:$0xff] }
 0x740   :  { %9804 = vpow2.f32 %v4548_v2  ;;  %v5058_v48 = vadd.f32 %v5057_v20, %v5056_v31  ;;  %v7909_v17 = vsel %vm55_vm0, %v17037_v7, 0.0  ;;  %v15487_v33 = vmax.f32 %v4168_v51, %v4169_v19  ;;  %v17042_v51 = vld [vmem:[#allocation67_spill] sm:$0xff]  ;;  %v17046_v20 = vld [vmem:[#allocation49_spill] sm:$0xff] }
 0x741   :  { %9806 = vpow2.f32 %v4550_v43  ;;  %v4303_v9 = vsub.f32 %v15329_v50, %v15461_v13  ;;  %v7893_v55 = vrot.slane %v17039_v4, 1  ;;  %v15495_v46 = vmul.f32 1.442695, %v4302_v29 }
 0x742   :  { %17038 = vst [vmem:[#allocation125_spill] sm:$0xff] %v15487_v33  ;;  %9808 = vpow2.f32 %v4552_v53  ;;  %v7905_v5 = vrot.slane %v17040_v14, 2  ;;  %v15505_v34 = vsel %vm7282_vm8, %v15348_v22, 0.0  ;;  %v15511_v41 = vsel %vm7283_vm9, %v15396_v60, 0.0 }
 0x743   :  { %17041 = vst [vmem:[#allocation127_spill] sm:$0xff] %v15511_v41  ;;  %9810 = vlog2.f32 %v5051_v35  ;;  %v7910_v37 = vrot.slane %v7909_v17, 4  ;;  %v15514_v42 = vsel %vm55_vm0, %v7404_v26, 0.0  ;;  %v8374_v25 = vsub.f32 %v17043_v52, %v17042_v51 }
 0x744   :  { %9812 = vlog2.f32 %v5058_v48  ;;  %v3950_v47 = vrot.slane %v17044_v61, 2  ;;  %v15521_v2 = vmul.f32 1.442695, %v4303_v9  ;;  %v7894_v21 = vadd.f32 %v7893_v55, %v17039_v4  ;;  %v17048_v9 = vld [vmem:[#allocation28_spill] sm:$0xff]  ;;  %v17049_v4 = vld [vmem:[#allocation31_spill] sm:$0xff] }
 0x745   :  { %v9799_v30 = vpop.eup %9798  ;;  %v5206_v40 = vsel %vm55_vm0, %v17045_v11, 0.0  ;;  %v17047_v19 = vrot.slane %v17046_v20, 2  ;;  %v7906_v53 = vadd.f32 %v7905_v5, %v17040_v14  ;;  %v7911_v48 = vadd.f32 %v7910_v37, %v7909_v17 }
 0x746   :  { %v5059_v43 = vsel %vm55_vm0, %v9799_v30, 0.0  ;;  %v3951_v26 = vmax.f32 %v17044_v61, %v3950_v47  ;;  %v5207_v7 = vrot.slane %v5206_v40, 4  ;;  %v5213_v51 = vsel %vm55_vm0, %v17048_v9, 0.0  ;;  %v17052_v61 = vld [vmem:[#allocation76_spill] sm:$0xff] }
 0x747   :  { %v7899_v29 = vadd.f32 %v17047_v19, %v17046_v20  ;;  %v5060_v35 = vrot.slane %v5059_v43, 4  ;;  %v8375_v55 = vsub.f32 %v15391_v45, %v17049_v4  ;;  %v8502_v52 = vmax.f32 %v8374_v25, -11.512925  ;;  %v17051_v19 = vld [vmem:[#allocation72_spill] sm:$0xff] }
 0x748   :  { %v3952_v11 = vrot.slane %v3951_v26, 1  ;;  %v5214_v30 = vrot.slane %v5213_v51, 4  ;;  %v8628_v31 = vmin.f32 %v17050_v56, -1.000005e-05  ;;  %v5208_v20 = vadd.f32 %v5207_v7, %v5206_v40 }
 0x749   :  { %v5061_v8 = vadd.f32 %v5060_v35, %v5059_v43  ;;  %v5220_v14 = vsel %vm55_vm0, %v17051_v19, 0.0  ;;  %v8629_v17 = vmin.f32 %v17052_v61, -1.000005e-05  ;;  %v7912_v4 = vrot.slane %v7911_v48, 2  ;;  %v17053_v35 = vld [vmem:[#allocation68_spill] sm:$0xff] }
 0x74a   :  { %v15540_v37 = vmax.f32 %v3951_v26, %v3952_v11  ;;  %v5215_v47 = vadd.f32 %v5214_v30, %v5213_v51  ;;  %v5221_v9 = vrot.slane %v5220_v14, 4  ;;  %v5209_v23 = vrot.slane %v5208_v20, 2  ;;  %v17054_v11 = vld [vmem:[#allocation58_spill] sm:$0xff] }
 0x74b   :  { %v9801_v5 = vpop.eup %9800  ;;  %v5062_v45 = vrot.slane %v5061_v8, 2  ;;  %v7900_v56 = vrot.slane %v7899_v29, 1  ;;  %v8630_v40 = vmin.f32 %v8502_v52, -1.000005e-05  ;;  %v7907_v38 = vrot.slane %v7906_v53, 1 }
 0x74c   :  { %v15542_v27 = vpop.eup %9802  ;;  %v5595_v25 = vmul.f32 0.6931472, %v9801_v5  ;;  %v4273_v7 = vsub.f32 %v17053_v35, %v15540_v37  ;;  %v5216_v19 = vrot.slane %v5215_v47, 2  ;;  %v5210_v30 = vadd.f32 %v5209_v23, %v5208_v20 }
 0x74d   :  { %v15544_v43 = vpop.eup %9804  ;;  %v5063_v26 = vadd.f32 %v5062_v45, %v5061_v8  ;;  %v5222_v61 = vadd.f32 %v5221_v9, %v5220_v14  ;;  %v8503_v44 = vmax.f32 %v8375_v55, -11.512925  ;;  %v8883_v5 = vsel %vm8820_vm10, %v8629_v17, %v8628_v31 }
 0x74e   :  { %v15548_v13 = vpop.eup %9806  ;;  %v5782_v51 = vadd.f32 %v5595_v25, %v17054_v11  ;;  %v4496_v41 = vmul.f32 1.442695, %v4273_v7  ;;  %v7913_v28 = vadd.f32 %v7912_v4, %v7911_v48  ;;  %v7901_v36 = vadd.f32 %v7900_v56, %v7899_v29  ;;  %v17055_v11 = vld [vmem:[#allocation184_spill] sm:$0xff]  ;;  %v17056_v4 = vld [vmem:[#allocation186_spill] sm:$0xff]  ;;  %v17057_v56 = vld [vmem:[#allocation75_spill] sm:$0xff] }
 0x74f   :  { %v15552_v58 = vpop.eup %9808  ;;  %v5064_v0 = vrot.slane %v5063_v26, 1  ;;  %v5211_v8 = vrot.slane %v5210_v30, 1  ;;  %v5217_v45 = vadd.f32 %v5216_v19, %v5215_v47  ;;  %v8884_v55 = vsel %vm8822_vm11, %v8630_v40, %v8883_v5 }
 0x750   :  { %v8376_v35 = vsub.f32 %v7894_v21, %v5782_v51  ;;  %v9811_v49 = vpop.eup %9810  ;;  %9814 = vpow2.f32 %v4496_v41  ;;  %v5223_v14 = vrot.slane %v5222_v61, 2  ;;  %v7908_v17 = vadd.f32 %v7907_v38, %v7906_v53  ;;  %v17059_v38 = vld [vmem:[#allocation48_spill] sm:$0xff] }
 0x751   :  { %v9813_v25 = vpop.eup %9812  ;;  %v5065_v23 = vadd.f32 %v5064_v0, %v5063_v26  ;;  %v5597_v20 = vmul.f32 0.6931472, %v9811_v49  ;;  %v8631_v7 = vmin.f32 %v8503_v44, -1.000005e-05  ;;  %v7914_v48 = vrot.slane %v7913_v28, 1 }
 0x752   :  { %v5599_v31 = vmul.f32 0.6931472, %v9813_v25  ;;  %v8504_v9 = vmax.f32 %v8376_v35, -11.512925  ;;  %v5212_v21 = vadd.f32 %v5211_v8, %v5210_v30  ;;  %v5218_v47 = vrot.slane %v5217_v45, 1  ;;  %v17061_v30 = vld [vmem:[#allocation35_spill] sm:$0xff] }
 0x753   :  { %9816 = vlog2.f32 %v5065_v23  ;;  %v5783_v52 = vadd.f32 %v5597_v20, %v17055_v11  ;;  %v8885_v41 = vsel %vm8824_vm12, %v8631_v7, %v8884_v55  ;;  %v17058_v0 = vrot.slane %v17057_v56, 1  ;;  %v17062_v23 = vld [vmem:[#allocation74_spill] sm:$0xff] }
 0x754   :  { %v5784_v29 = vadd.f32 %v5599_v31, %v17056_v4  ;;  %v5224_v19 = vadd.f32 %v5223_v14, %v5222_v61  ;;  %9818 = vlog2.f32 %v5212_v21  ;;  %v17060_v44 = vrot.slane %v17059_v38, 2  ;;  %v17063_v55 = vld [vmem:[#allocation62_spill] sm:$0xff] }
 0x755   :  { %v8055_v49 = vadd.f32 %v17058_v0, %v17057_v56  ;;  %v8377_v40 = vsub.f32 %v7901_v36, %v5783_v52  ;;  %v8632_v51 = vmin.f32 %v8504_v9, -1.000005e-05  ;;  %v5219_v5 = vadd.f32 %v5218_v47, %v5217_v45  ;;  %v17065_v9 = vld [vmem:[#allocation47_spill] sm:$0xff]  ;;  %v17067_v0 = vld [vmem:[#allocation82_spill] sm:$0xff] }
 0x756   :  { %v8067_v53 = vadd.f32 %v17060_v44, %v17059_v38  ;;  %v8378_v26 = vsub.f32 %v7908_v17, %v5784_v29  ;;  %v8061_v35 = vrot.slane %v17061_v30, 1  ;;  %v5225_v25 = vrot.slane %v5224_v19, 1  ;;  %v17064_v17 = vld [vmem:[#allocation44_spill] sm:$0xff]  ;;  %v17068_v44 = vld [vmem:[#allocation78_spill] sm:$0xff] }
 0x757   :  { %v8505_v8 = vmax.f32 %v8377_v40, -11.512925  ;;  %v8073_v20 = vrot.slane %v17062_v23, 2  ;;  %v8077_v31 = vsel %vm55_vm0, %v17063_v55, 0.0  ;;  %v8886_v36 = vsel %vm8826_vm13, %v8632_v51, %v8885_v41 }
 0x758   :  { %v8506_v7 = vmax.f32 %v8378_v26, -11.512925  ;;  %9820 = vlog2.f32 %v5219_v5  ;;  %v8078_v61 = vrot.slane %v8077_v31, 4  ;;  %v5226_v14 = vadd.f32 %v5225_v25, %v5224_v19  ;;  %v17069_v26 = vld [vmem:[#allocation52_spill] sm:$0xff] }
 0x759   :  { %v8633_v52 = vmin.f32 %v8505_v8, -1.000005e-05  ;;  %v8068_v11 = vrot.slane %v8067_v53, 1  ;;  %v8398_v45 = vsub.f32 %v17065_v9, %v17064_v17  ;;  %9822 = vpow2.f32 %v15495_v46  ;;  %v17070_v8 = vld [vmem:[#allocation33_spill] sm:$0xff] }
 0x75a   :  { %v17066_v21 = vsel %vm15414_vm4, %v15278_v24, 0.0  ;;  %v8074_v29 = vadd.f32 %v8073_v20, %v17062_v23  ;;  %v8079_v41 = vadd.f32 %v8078_v61, %v8077_v31  ;;  %v8634_v47 = vmin.f32 %v8506_v7, -1.000005e-05  ;;  %v17071_v23 = vld [vmem:[#allocation69_spill] sm:$0xff] }
 0x75b   :  { %v15578_v4 = vsel %vm55_vm0, %v17066_v21, 0.0  ;;  %v8887_v56 = vsel %vm8828_vm14, %v8633_v52, %v8886_v36  ;;  %9824 = vlog2.f32 %v5226_v14  ;;  %v8399_v40 = vsub.f32 %v8055_v49, %v17067_v0  ;;  %v17072_v52 = vld [vmem:[#allocation34_spill] sm:$0xff] }
 0x75c   :  { %v7915_v19 = vadd.f32 %v7914_v48, %v7913_v28  ;;  %v8526_v38 = vmax.f32 %v8398_v45, -11.512925  ;;  %v8652_v46 = vmin.f32 %v17068_v44, -1.000005e-05  ;;  %v8653_v15 = vmin.f32 %v17069_v26, -1.000005e-05 }
 0x75d   :  { %v9815_v51 = vpop.eup %9814  ;;  %v8062_v24 = vadd.f32 %v8061_v35, %v17061_v30  ;;  %v15586_v5 = vadd.f32 %v8068_v11, %v8067_v53  ;;  %v3894_v25 = vrot.slane %v17070_v8, 2  ;;  %v5150_v20 = vsel %vm55_vm0, %v17071_v23, 0.0  ;;  %v17073_v11 = vld [vmem:[#allocation56_spill] sm:$0xff] }
 0x75e   :  { %v8888_v55 = vsel %vm8830_vm15, %v8634_v47, %v8887_v56  ;;  %v5227_v49 = vsel %vm55_vm0, %v9815_v51, 0.0  ;;  %v8075_v28 = vrot.slane %v8074_v29, 1  ;;  %v8080_v48 = vrot.slane %v8079_v41, 2 }
 0x75f   :  { %v5228_v31 = vrot.slane %v5227_v49, 4  ;;  %v15593_v7 = vmax.f32 %v8399_v40, -11.512925  ;;  %v3895_v36 = vmax.f32 %v17070_v8, %v3894_v25  ;;  %v5151_v61 = vrot.slane %v5150_v20, 4 }
 0x760   :  { %v9817_v30 = vpop.eup %9816  ;;  %v8654_v53 = vmin.f32 %v8526_v38, -1.000005e-05  ;;  %v8904_v35 = vsel %vm8820_vm10, %v8653_v15, %v8652_v46  ;;  %v5157_v14 = vsel %vm55_vm0, %v17072_v52, 0.0  ;;  %v5164_v17 = vsel %vm55_vm0, %v17073_v11, 0.0 }
 0x761   :  { %v5601_v9 = vmul.f32 0.6931472, %v9817_v30  ;;  %v5229_v45 = vadd.f32 %v5228_v31, %v5227_v49  ;;  %v3896_v21 = vrot.slane %v3895_v36, 1  ;;  %v5152_v47 = vadd.f32 %v5151_v61, %v5150_v20  ;;  %v9819_v56 = vpop.eup %9818  ;;  %v17074_v61 = vld [vmem:[#allocation73_spill] sm:$0xff] }
 0x762   :  { %v8076_v0 = vadd.f32 %v8075_v28, %v8074_v29  ;;  %v15601_v40 = vadd.f32 %v8080_v48, %v8079_v41  ;;  %v5158_v44 = vrot.slane %v5157_v14, 4  ;;  %v5165_v26 = vrot.slane %v5164_v17, 4  ;;  %v17075_v41 = vld [vmem:[#allocation83_spill] sm:$0xff] }
 0x763   :  { %v5785_v38 = vadd.f32 %v5601_v9, %v15386_v32  ;;  %v5230_v51 = vrot.slane %v5229_v45, 2  ;;  %v5643_v46 = vmul.f32 0.6931472, %v9819_v56  ;;  %v15604_v15 = vmax.f32 %v3895_v36, %v3896_v21 }
 0x764   :  { %v8905_v8 = vsel %vm8822_vm11, %v8654_v53, %v8904_v35  ;;  %v5153_v25 = vrot.slane %v5152_v47, 2  ;;  %v5159_v23 = vadd.f32 %v5158_v44, %v5157_v14  ;;  %v5166_v30 = vadd.f32 %v5165_v26, %v5164_v17  ;;  %v17076_v17 = vld [vmem:[#allocation18_spill] sm:$0xff] }
 0x765   :  { %v9821_v49 = vpop.eup %9820  ;;  %v8379_v31 = vsub.f32 %v7915_v19, %v5785_v38  ;;  %v5231_v20 = vadd.f32 %v5230_v51, %v5229_v45  ;;  %v5806_v29 = vadd.f32 %v5643_v46, %v17074_v61  ;;  %v4265_v28 = vsub.f32 %v17075_v41, %v15604_v15 }
 0x766   :  { %v5645_v48 = vmul.f32 0.6931472, %v9821_v49  ;;  %v5154_v52 = vadd.f32 %v5153_v25, %v5152_v47  ;;  %v5160_v32 = vrot.slane %v5159_v23, 2  ;;  %v5167_v11 = vrot.slane %v5166_v30, 2  ;;  %v15610_v9 = vpop.eup %9822 }
 0x767   :  { %v8507_v36 = vmax.f32 %v8379_v31, -11.512925  ;;  %v5232_v21 = vrot.slane %v5231_v20, 1  ;;  %v8400_v53 = vsub.f32 %v8062_v24, %v5806_v29  ;;  %v4480_v35 = vmul.f32 1.442695, %v4265_v28  ;;  %v17077_v24 = vld [vmem:[#allocation77_spill] sm:$0xff] }
 0x768   :  { %v9825_v14 = vpop.eup %9824  ;;  %v5807_v56 = vadd.f32 %v5645_v48, %v17076_v17  ;;  %v5155_v19 = vrot.slane %v5154_v52, 1  ;;  %v5161_v45 = vadd.f32 %v5160_v32, %v5159_v23  ;;  %v5168_v44 = vadd.f32 %v5167_v11, %v5166_v30 }
 0x769   :  { %v8635_v26 = vmin.f32 %v8507_v36, -1.000005e-05  ;;  %v5233_v38 = vadd.f32 %v5232_v21, %v5231_v20  ;;  %v5647_v51 = vmul.f32 0.6931472, %v9825_v14  ;;  %v8528_v46 = vmax.f32 %v8400_v53, -11.512925 }
 0x76a   :  { %v8401_v47 = vsub.f32 %v15586_v5, %v5807_v56  ;;  %9826 = vpow2.f32 %v4480_v35  ;;  %v5156_v25 = vadd.f32 %v5155_v19, %v5154_v52  ;;  %v5162_v49 = vrot.slane %v5161_v45, 1  ;;  %v17080_v53 = vld [vmem:[#allocation57_spill] sm:$0xff]  ;;  %v17082_v56 = vld [vmem:[#allocation55_spill] sm:$0xff] }
 0x76b   :  { %v8889_v31 = vsel %vm8832_vm2, %v8635_v26, %v8888_v55  ;;  %9828 = vlog2.f32 %v5233_v38  ;;  %v5808_v61 = vadd.f32 %v5647_v51, %v17077_v24  ;;  %v8655_v29 = vmin.f32 %v15593_v7, -1.000005e-05  ;;  %v17078_v55 = vld [vmem:[#allocation70_spill] sm:$0xff]  ;;  %v17086_v24 = vld [vmem:[#allocation71_spill] sm:$0xff] }
 0x76c   :  { %v8979_v23 = vsel %vm55_vm0, %v8889_v31, 0.0  ;;  %v5163_v30 = vadd.f32 %v5162_v49, %v5161_v45  ;;  %v5169_v20 = vrot.slane %v5168_v44, 1  ;;  %v8529_v48 = vmax.f32 %v8401_v47, -11.512925  ;;  %v17083_v26 = vld [vmem:[#allocation50_spill] sm:$0xff] }
 0x76d   :  { %8980 = vadd.xlane.f32.xlu1 %v8979_v23  ;;  %v8402_v28 = vsub.f32 %v8076_v0, %v5808_v61  ;;  %v8906_v5 = vsel %vm8824_vm12, %v8655_v29, %v8905_v8  ;;  %9830 = vlog2.f32 %v5156_v25  ;;  %v8656_v52 = vmin.f32 %v8528_v46, -1.000005e-05  ;;  %v17081_v0 = vld [vmem:[#allocation53_spill] sm:$0xff]  ;;  %v17084_v38 = vld [vmem:[#allocation54_spill] sm:$0xff] }
 0x76e   :  { %v5170_v32 = vadd.f32 %v5169_v20, %v5168_v44  ;;  %9832 = vlog2.f32 %v5163_v30  ;;  %v17079_v11 = vrot.slane %v17078_v55, 2  ;;  %v15625_v7 = vsel %vm55_vm0, %v15477_v16, 0.0  ;;  %v17088_v30 = vld [vmem:[#allocation85_spill] sm:$0xff] }
 0x76f   :  { %v8082_v21 = vrot.slane %v15601_v40, 1  ;;  %v8005_v35 = vrot.slane %v17080_v53, 1  ;;  %v8021_v14 = vsel %vm55_vm0, %v17081_v0, 0.0  ;;  %v8530_v8 = vmax.f32 %v8402_v28, -11.512925  ;;  %v17089_v28 = vld [vmem:[#allocation6_spill] sm:$0xff] }
 0x770   :  { %v8011_v36 = vadd.f32 %v17079_v11, %v17078_v55  ;;  %v8907_v17 = vsel %vm8826_vm13, %v8656_v52, %v8906_v5  ;;  %9834 = vlog2.f32 %v5170_v32  ;;  %v8017_v19 = vrot.slane %v17082_v56, 2 }
 0x771   :  { %v15635_v45 = vsel %vm55_vm0, %v15483_v54, 0.0  ;;  %v8657_v44 = vmin.f32 %v8529_v48, -1.000005e-05  ;;  %v8390_v51 = vsub.f32 %v17084_v38, %v17083_v26  ;;  %9836 = vpow2.f32 %v15521_v2  ;;  %v17094_v38 = vld [vmem:[#allocation26_spill] sm:$0xff] }
 0x772   :  { %v8012_v16 = vrot.slane %v8011_v36, 1  ;;  %v17085_v46 = vsub.f32 %v15348_v22, %v15487_v33  ;;  %v15647_v25 = vsel %vm55_vm0, %v15542_v27, 0.0  ;;  %v8022_v49 = vrot.slane %v8021_v14, 4 }
 0x773   :  { %v8083_v54 = vadd.f32 %v8082_v21, %v15601_v40  ;;  %v8908_v31 = vsel %vm8828_vm14, %v8657_v44, %v8907_v17  ;;  %v17087_v61 = vrot.slane %v17086_v24, 1  ;;  %v15655_v2 = vadd.f32 %v8005_v35, %v17080_v53  ;;  %v17090_v40 = vld [vmem:[#allocation51_spill] sm:$0xff]  ;;  %v17092_v35 = vld [vmem:[#allocation14_spill] sm:$0xff]  ;;  %v17093_v17 = vld [vmem:[#allocation45_spill] sm:$0xff] }
 0x774   :  { %v15643_v47 = vmul.f32 1.442695, %v17085_v46  ;;  %v8658_v23 = vmin.f32 %v8530_v8, -1.000005e-05  ;;  %v8018_v22 = vadd.f32 %v8017_v19, %v17082_v56  ;;  %v4062_v20 = vrot.slane %v17088_v30, 2  ;;  %v17091_v21 = vld [vmem:[#allocation43_spill] sm:$0xff] }
 0x775   :  { %v7999_v29 = vadd.f32 %v17087_v61, %v17086_v24  ;;  %v5318_v27 = vsel %vm55_vm0, %v17089_v28, 0.0  ;;  %v15661_v48 = vadd.f32 %v8012_v16, %v8011_v36  ;;  %v15664_v52 = vmax.f32 %v8390_v51, -11.512925 }
 0x776   :  { %v5319_v32 = vrot.slane %v5318_v27, 4  ;;  %v15666_v55 = vadd.f32 %v8022_v49, %v8021_v14  ;;  %v4063_v11 = vmax.f32 %v17088_v30, %v4062_v20  ;;  %v5325_v53 = vsel %vm55_vm0, %v17091_v21, 0.0 }
 0x777   :  { %v8391_v5 = vsub.f32 %v7999_v29, %v17090_v40  ;;  %v5332_v0 = vsel %vm55_vm0, %v17092_v35, 0.0  ;;  %v9827_v8 = vpop.eup %9826  ;;  %v8644_v56 = vmin.f32 %v17093_v17, -1.000005e-05  ;;  %v5326_v19 = vrot.slane %v5325_v53, 4  ;;  %v17095_v17 = vld [vmem:[#allocation59_spill] sm:$0xff] }
 0x778   :  { %v5320_v36 = vadd.f32 %v5319_v32, %v5318_v27  ;;  %v5333_v44 = vrot.slane %v5332_v0, 4  ;;  %v9829_v16 = vpop.eup %9828  ;;  %v8909_v26 = vsel %vm8830_vm15, %v8658_v23, %v8908_v31  ;;  %v5171_v14 = vsel %vm55_vm0, %v9827_v8, 0.0 }
 0x779   :  { %v8645_v51 = vmin.f32 %v17094_v38, -1.000005e-05  ;;  %v4064_v46 = vrot.slane %v4063_v11, 1  ;;  %v5649_v49 = vmul.f32 0.6931472, %v9829_v16  ;;  %v5172_v24 = vrot.slane %v5171_v14, 4 }
 0x77a   :  { %v5321_v61 = vrot.slane %v5320_v36, 2  ;;  %v5327_v29 = vadd.f32 %v5326_v19, %v5325_v53  ;;  %v9831_v30 = vpop.eup %9830  ;;  %v8019_v20 = vrot.slane %v8018_v22, 1  ;;  %v8519_v28 = vmax.f32 %v8391_v5, -11.512925 }
 0x77b   :  { %v15677_v40 = vmax.f32 %v4063_v11, %v4064_v46  ;;  %v5334_v27 = vadd.f32 %v5333_v44, %v5332_v0  ;;  %v9833_v32 = vpop.eup %9832  ;;  %v5809_v21 = vadd.f32 %v5649_v49, %v15540_v37  ;;  %v5173_v35 = vadd.f32 %v5172_v24, %v5171_v14  ;;  %v17097_v24 = vld [vmem:[#allocation36_spill] sm:$0xff] }
 0x77c   :  { %v5627_v31 = vmul.f32 0.6931472, %v9831_v30  ;;  %v5322_v23 = vadd.f32 %v5321_v61, %v5320_v36  ;;  %v5629_v8 = vmul.f32 0.6931472, %v9833_v32  ;;  %v5328_v16 = vrot.slane %v5327_v29, 2 }
 0x77d   :  { %v4289_v38 = vsub.f32 %v17095_v17, %v15677_v40  ;;  %v5335_v41 = vrot.slane %v5334_v27, 2  ;;  %v9835_v33 = vpop.eup %9834  ;;  %v8403_v53 = vsub.f32 %v8083_v54, %v5809_v21  ;;  %v5174_v19 = vrot.slane %v5173_v35, 2 }
 0x77e   :  { %v5798_v5 = vadd.f32 %v5627_v31, %v17096_v57  ;;  %v5323_v11 = vrot.slane %v5322_v23, 1  ;;  %v5631_v46 = vmul.f32 0.6931472, %v9835_v33  ;;  %v8646_v0 = vmin.f32 %v15664_v52, -1.000005e-05  ;;  %v15684_v14 = vpop.eup %9836  ;;  %v17098_v33 = vld [vmem:[#allocation84_spill] sm:$0xff] }
 0x77f   :  { %v4528_v44 = vmul.f32 1.442695, %v4289_v38  ;;  %v5329_v37 = vadd.f32 %v5328_v16, %v5327_v29  ;;  %v8531_v36 = vmax.f32 %v8403_v53, -11.512925  ;;  %v5175_v49 = vadd.f32 %v5174_v19, %v5173_v35 }
 0x780   :  { %v5799_v61 = vadd.f32 %v5629_v8, %v17097_v24  ;;  %v5324_v30 = vadd.f32 %v5323_v11, %v5322_v23  ;;  %v8392_v32 = vsub.f32 %v15655_v2, %v5798_v5  ;;  %v8897_v54 = vsel %vm8820_vm10, %v8645_v51, %v8644_v56 }
 0x781   :  { %9838 = vpow2.f32 %v4528_v44  ;;  %v5330_v21 = vrot.slane %v5329_v37, 1  ;;  %v8659_v57 = vmin.f32 %v8531_v36, -1.000005e-05  ;;  %v5176_v31 = vrot.slane %v5175_v49, 1 }
 0x782   :  { %v5800_v17 = vadd.f32 %v5631_v46, %v17098_v33  ;;  %v5336_v52 = vadd.f32 %v5335_v41, %v5334_v27  ;;  %v8020_v38 = vadd.f32 %v8019_v20, %v8018_v22  ;;  %v8024_v29 = vrot.slane %v15666_v55, 2 }
 0x783   :  { %v5331_v16 = vadd.f32 %v5330_v21, %v5329_v37  ;;  %9840 = vlog2.f32 %v5324_v30  ;;  %v8910_v35 = vsel %vm8832_vm2, %v8659_v57, %v8909_v26  ;;  %v5177_v8 = vadd.f32 %v5176_v31, %v5175_v49  ;;  %v17105_v57 = vld [vmem:[#allocation90_spill] sm:$0xff] }
 0x784   :  { %v8393_v23 = vsub.f32 %v15661_v48, %v5799_v61  ;;  %v5337_v2 = vrot.slane %v5336_v52, 1  ;;  %v8988_v56 = vsel %vm55_vm0, %v8910_v35, 0.0  ;;  %v8520_v51 = vmax.f32 %v8392_v32, -11.512925  ;;  %v17103_v32 = vld [vmem:[#allocation93_spill] sm:$0xff]  ;;  %v17107_v35 = vld [vmem:[#allocation42_spill] sm:$0xff] }
 0x785   :  { %v8898_v53 = vsel %vm8822_vm11, %v8646_v0, %v8897_v54  ;;  %9842 = vlog2.f32 %v5331_v16  ;;  %8989 = vadd.xlane.f32.xlu0 %v8988_v56  ;;  %v8394_v41 = vsub.f32 %v8020_v38, %v5800_v17  ;;  %v8647_v22 = vmin.f32 %v8519_v28, -1.000005e-05  ;;  %v17106_v17 = vld [vmem:[#allocation94_spill] sm:$0xff] }
 0x786   :  { %9844 = vlog2.f32 %v5177_v8  ;;  %v5338_v20 = vadd.f32 %v5337_v2, %v5336_v52  ;;  %v17099_v27 = vrot.slane %v15514_v42, 4  ;;  %v17100_v48 = vrot.slane %v15578_v4, 4  ;;  %v17109_v2 = vld [vmem:[#allocation38_spill] sm:$0xff] }
 0x787   :  { %v8025_v11 = vadd.f32 %v8024_v29, %v15666_v55  ;;  %v15709_v46 = vsel %vm55_vm0, %v15544_v43, 0.0  ;;  %v8521_v28 = vmax.f32 %v8393_v23, -11.512925  ;;  %v8899_v0 = vsel %vm8824_vm12, %v8647_v22, %v8898_v53 }
 0x788   :  { %v15698_v19 = vadd.f32 %v17099_v27, %v15514_v42  ;;  %v15703_v26 = vadd.f32 %v17100_v48, %v15578_v4  ;;  %9846 = vlog2.f32 %v5338_v20  ;;  %v5403_v42 = vrot.slane %v15647_v25, 4 }
 0x789   :  { %v17101_v4 = vsel %vm15428_vm6, %v15310_v10, 0.0  ;;  %v8648_v55 = vmin.f32 %v8520_v51, -1.000005e-05  ;;  %9848 = vpow2.f32 %v15643_v47  ;;  %v15724_v43 = vsel %vm55_vm0, %v15548_v13, 0.0  ;;  %v17104_v13 = vld [vmem:[#allocation91_spill] sm:$0xff] }
 0x78a   :  { %v15719_v37 = vsel %vm55_vm0, %v17101_v4, 0.0  ;;  %v17102_v36 = vsel %vm15438_vm7, %v15329_v50, 0.0  ;;  %v8522_v1 = vmax.f32 %v8394_v41, -11.512925  ;;  %v8026_v61 = vrot.slane %v8025_v11, 1  ;;  %v17111_v41 = vld [vmem:[#allocation40_spill] sm:$0xff] }
 0x78b   :  { %v15731_v49 = vsel %vm55_vm0, %v17102_v36, 0.0  ;;  %v8900_v30 = vsel %vm8826_vm13, %v8648_v55, %v8899_v0  ;;  %v8649_v47 = vmin.f32 %v8521_v28, -1.000005e-05  ;;  %v8173_v54 = vrot.slane %v17103_v32, 1  ;;  %v17113_v55 = vld [vmem:[#allocation92_spill] sm:$0xff] }
 0x78c   :  { %v8185_v21 = vrot.slane %v17104_v13, 2  ;;  %v8189_v59 = vsel %vm55_vm0, %v17105_v57, 0.0  ;;  %v15741_v50 = vadd.f32 %v5403_v42, %v15647_v25  ;;  %v15746_v33 = vsel %vm55_vm0, %v15552_v58, 0.0  ;;  %v17112_v58 = vld [vmem:[#allocation39_spill] sm:$0xff] }
 0x78d   :  { %v4006_v52 = vrot.slane %v17106_v17, 2  ;;  %v8650_v29 = vmin.f32 %v8522_v1, -1.000005e-05  ;;  %v8901_v16 = vsel %vm8828_vm14, %v8649_v47, %v8900_v30  ;;  %v17108_v8 = vrot.slane %v17107_v35, 1  ;;  %v17114_v30 = vld [vmem:[#allocation80_spill] sm:$0xff] }
 0x78e   :  { %v9839_v38 = vpop.eup %9838  ;;  %v17110_v25 = vrot.slane %v17109_v2, 2  ;;  %v8190_v53 = vrot.slane %v8189_v59, 4  ;;  %v8414_v22 = vsub.f32 %v17112_v58, %v17111_v41  ;;  %v8027_v48 = vadd.f32 %v8026_v61, %v8025_v11  ;;  %v17116_v41 = vld [vmem:[#allocation87_spill] sm:$0xff] }
 0x78f   :  { %v8167_v23 = vadd.f32 %v17108_v8, %v17107_v35  ;;  %v5339_v51 = vsel %vm55_vm0, %v9839_v38, 0.0  ;;  %v4007_v20 = vmax.f32 %v17106_v17, %v4006_v52  ;;  %v8174_v0 = vadd.f32 %v8173_v54, %v17103_v32 }
 0x790   :  { %v8179_v56 = vadd.f32 %v17110_v25, %v17109_v2  ;;  %v9841_v27 = vpop.eup %9840  ;;  %v5340_v28 = vrot.slane %v5339_v51, 4  ;;  %v8186_v42 = vadd.f32 %v8185_v21, %v17104_v13  ;;  %v8902_v4 = vsel %vm8830_vm15, %v8650_v29, %v8901_v16  ;;  %v17115_v2 = vld [vmem:[#allocation89_spill] sm:$0xff] }
 0x791   :  { %v8415_v36 = vsub.f32 %v8167_v23, %v17113_v55  ;;  %v4008_v1 = vrot.slane %v4007_v20, 1  ;;  %v5262_v47 = vsel %vm55_vm0, %v17114_v30, 0.0  ;;  %v5675_v35 = vmul.f32 0.6931472, %v9841_v27 }
 0x792   :  { %v9843_v57 = vpop.eup %9842  ;;  %v5341_v38 = vadd.f32 %v5340_v28, %v5339_v51  ;;  %v8180_v8 = vrot.slane %v8179_v56, 1  ;;  %v5263_v17 = vrot.slane %v5262_v47, 4  ;;  %v8191_v11 = vadd.f32 %v8190_v53, %v8189_v59  ;;  %v17117_v51 = vld [vmem:[#allocation102_spill] sm:$0xff]  ;;  %v17118_v28 = vld [vmem:[#allocation81_spill] sm:$0xff] }
 0x793   :  { %v9845_v52 = vpop.eup %9844  ;;  %v8542_v61 = vmax.f32 %v8414_v22, -11.512925  ;;  %v8668_v32 = vmin.f32 %v17115_v2, -1.000005e-05  ;;  %v15767_v54 = vmax.f32 %v4007_v20, %v4008_v1  ;;  %v8187_v29 = vrot.slane %v8186_v42, 1  ;;  %v17119_v22 = vld [vmem:[#allocation29_spill] sm:$0xff] }
 0x794   :  { %v5633_v13 = vmul.f32 0.6931472, %v9845_v52  ;;  %v5342_v21 = vrot.slane %v5341_v38, 2  ;;  %v5264_v16 = vadd.f32 %v5263_v17, %v5262_v47  ;;  %v5677_v25 = vmul.f32 0.6931472, %v9843_v57 }
 0x795   :  { %v9847_v23 = vpop.eup %9846  ;;  %v8669_v58 = vmin.f32 %v17116_v41, -1.000005e-05  ;;  %v4281_v27 = vsub.f32 %v17117_v51, %v15767_v54  ;;  %v5269_v55 = vsel %vm55_vm0, %v17118_v28, 0.0  ;;  %v5822_v20 = vadd.f32 %v5675_v35, %v17119_v22  ;;  %v17120_v51 = vld [vmem:[#allocation17_spill] sm:$0xff] }
 0x796   :  { %v5801_v59 = vadd.f32 %v5633_v13, %v15604_v15  ;;  %v5343_v53 = vadd.f32 %v5342_v21, %v5341_v38  ;;  %v5265_v1 = vrot.slane %v5264_v16, 2  ;;  %v15776_v30 = vpop.eup %9848  ;;  %v8192_v52 = vrot.slane %v8191_v11, 2 }
 0x797   :  { %v8670_v47 = vmin.f32 %v8542_v61, -1.000005e-05  ;;  %v4512_v17 = vmul.f32 1.442695, %v4281_v27  ;;  %v5270_v57 = vrot.slane %v5269_v55, 4  ;;  %v5823_v31 = vadd.f32 %v5677_v25, %v17120_v51  ;;  %v17121_v61 = vld [vmem:[#allocation86_spill] sm:$0xff] }
 0x798   :  { %v8395_v2 = vsub.f32 %v8027_v48, %v5801_v59  ;;  %v5344_v41 = vrot.slane %v5343_v53, 1  ;;  %v5679_v24 = vmul.f32 0.6931472, %v9847_v23  ;;  %v5266_v44 = vadd.f32 %v5265_v1, %v5264_v16  ;;  %v17122_v23 = vld [vmem:[#allocation30_spill] sm:$0xff] }
 0x799   :  { %v8918_v28 = vsel %vm8820_vm10, %v8669_v58, %v8668_v32  ;;  %9850 = vpow2.f32 %v4512_v17  ;;  %v5271_v15 = vadd.f32 %v5270_v57, %v5269_v55  ;;  %v8416_v35 = vsub.f32 %v8174_v0, %v5822_v20 }
 0x79a   :  { %v8523_v38 = vmax.f32 %v8395_v2, -11.512925  ;;  %v5345_v13 = vadd.f32 %v5344_v41, %v5343_v53  ;;  %v5267_v21 = vrot.slane %v5266_v44, 1  ;;  %v8181_v22 = vadd.f32 %v8180_v8, %v8179_v56 }
 0x79b   :  { %v8543_v10 = vmax.f32 %v8415_v36, -11.512925  ;;  %v5272_v5 = vrot.slane %v5271_v15, 2  ;;  %v5276_v27 = vsel %vm55_vm0, %v17121_v61, 0.0  ;;  %v5824_v16 = vadd.f32 %v5679_v24, %v17122_v23 }
 0x79c   :  { %v8651_v48 = vmin.f32 %v8523_v38, -1.000005e-05  ;;  %9852 = vlog2.f32 %v5345_v13  ;;  %v5268_v59 = vadd.f32 %v5267_v21, %v5266_v44  ;;  %v8188_v25 = vadd.f32 %v8187_v29, %v8186_v42 }
 0x79d   :  { %v8919_v32 = vsel %vm8822_vm11, %v8670_v47, %v8918_v28  ;;  %v5273_v58 = vadd.f32 %v5272_v5, %v5271_v15  ;;  %v5277_v55 = vrot.slane %v5276_v27, 4  ;;  %v8193_v0 = vadd.f32 %v8192_v52, %v8191_v11 }
 0x79e   :  { %v8903_v53 = vsel %vm8832_vm2, %v8651_v48, %v8902_v4  ;;  %v8417_v20 = vsub.f32 %v8181_v22, %v5823_v31  ;;  %v8544_v56 = vmax.f32 %v8416_v35, -11.512925  ;;  %9854 = vlog2.f32 %v5268_v59 }
 0x79f   :  { %v8985_v36 = vsel %vm55_vm0, %v8903_v53, 0.0  ;;  %v5274_v8 = vrot.slane %v5273_v58, 1  ;;  %v5278_v1 = vadd.f32 %v5277_v55, %v5276_v27  ;;  %v17123_v17 = vrot.slane %v15625_v7, 4 }
 0x7a0   :  { %v8281_v44 = vrot.slane %v15719_v37, 4  ;;  %8986 = vadd.xlane.f32.xlu1 %v8985_v36  ;;  %v8418_v5 = vsub.f32 %v8188_v25, %v5824_v16  ;;  %v8671_v42 = vmin.f32 %v8543_v10, -1.000005e-05  ;;  %v17124_v4 = vrot.slane %v15709_v46, 4 }
 0x7a1   :  { %v15789_v24 = vadd.f32 %v17123_v17, %v15625_v7  ;;  %v5424_v11 = vrot.slane %v15746_v33, 4  ;;  %v5275_v29 = vadd.f32 %v5274_v8, %v5273_v58  ;;  %v5279_v52 = vrot.slane %v5278_v1, 2 }
 0x7a2   :  { %v15795_v31 = vadd.f32 %v17124_v4, %v15709_v46  ;;  %v5405_v47 = vrot.slane %v15741_v50, 2  ;;  %v17125_v7 = vrot.slane %v15724_v43, 4  ;;  %v8545_v2 = vmax.f32 %v8417_v20, -11.512925  ;;  %v17128_v20 = vld [vmem:[#allocation101_spill] sm:$0xff] }
 0x7a3   :  { %v8920_v41 = vsel %vm8824_vm12, %v8671_v42, %v8919_v32  ;;  %v8262_v10 = vrot.slane %v15703_v26, 2  ;;  %v8194_v51 = vrot.slane %v8193_v0, 1  ;;  %v8672_v28 = vmin.f32 %v8544_v56, -1.000005e-05 }
 0x7a4   :  { %v15802_v57 = vadd.f32 %v17125_v7, %v15724_v43  ;;  %v5280_v46 = vadd.f32 %v5279_v52, %v5278_v1  ;;  %v17126_v15 = vrot.slane %v15635_v45, 4  ;;  %v8288_v13 = vrot.slane %v15731_v49, 4 }
 0x7a5   :  { %v8546_v35 = vmax.f32 %v8418_v5, -11.512925  ;;  %9856 = vlog2.f32 %v5275_v29  ;;  %v5412_v43 = vrot.slane %v15795_v31, 2  ;;  %v15815_v21 = vsel %vm55_vm0, %v15505_v34, 0.0 }
 0x7a6   :  { %v15809_v38 = vadd.f32 %v17126_v15, %v15635_v45  ;;  %v8921_v22 = vsel %vm8826_vm13, %v8672_v28, %v8920_v41  ;;  %v5281_v61 = vrot.slane %v5280_v46, 1  ;;  %v9851_v27 = vpop.eup %9850  ;;  %v15819_v48 = vadd.f32 %v5405_v47, %v15741_v50 }
 0x7a7   :  { %v5419_v45 = vrot.slane %v15802_v57, 2  ;;  %v15823_v23 = vadd.f32 %v5424_v11, %v15746_v33  ;;  %v8673_v16 = vmin.f32 %v8545_v2, -1.000005e-05  ;;  %v8195_v59 = vadd.f32 %v8194_v51, %v8193_v0  ;;  %v17129_v33 = vld [vmem:[#allocation97_spill] sm:$0xff]  ;;  %v17132_v11 = vld [vmem:[#allocation107_spill] sm:$0xff] }
 0x7a8   :  { %v5282_v25 = vadd.f32 %v5281_v61, %v5280_v46  ;;  %v5283_v32 = vsel %vm55_vm0, %v9851_v27, 0.0  ;;  %v17127_v34 = vrot.slane %v14968_v63, 1  ;;  %v8674_v55 = vmin.f32 %v8546_v35, -1.000005e-05  ;;  %v17133_v46 = vld [vmem:[#allocation61_spill] sm:$0xff]  ;;  %v17134_v27 = vld [vmem:[#allocation118_spill] sm:$0xff] }
 0x7a9   :  { %v8922_v53 = vsel %vm8828_vm14, %v8673_v16, %v8921_v22  ;;  %v5284_v50 = vrot.slane %v5283_v32, 4  ;;  %v8117_v56 = vrot.slane %v17128_v20, 1  ;;  %v9853_v36 = vpop.eup %9852  ;;  %v8133_v8 = vsel %vm55_vm0, %v17129_v33, 0.0  ;;  %v17135_v33 = vld [vmem:[#allocation109_spill] sm:$0xff] }
 0x7aa   :  { %v15829_v58 = vadd.f32 %v17127_v34, %v14968_v63  ;;  %9858 = vlog2.f32 %v5282_v25  ;;  %v4118_v0 = vrot.slane %v15240_v12, 2  ;;  %v5374_v1 = vsel %vm55_vm0, %v15294_v3, 0.0  ;;  %v17130_v63 = vld [vmem:[#allocation106_spill] sm:$0xff] }
 0x7ab   :  { %v5681_v17 = vmul.f32 0.6931472, %v9853_v36  ;;  %v5285_v5 = vadd.f32 %v5284_v50, %v5283_v32  ;;  %v17131_v42 = vrot.slane %v17130_v63, 2  ;;  %v8129_v29 = vrot.slane %v17132_v11, 2  ;;  %v9855_v41 = vpop.eup %9854 }
 0x7ac   :  { %v8923_v52 = vsel %vm8830_vm15, %v8674_v55, %v8922_v53  ;;  %v4119_v47 = vmax.f32 %v15240_v12, %v4118_v0  ;;  %v5375_v7 = vrot.slane %v5374_v1, 4  ;;  %v5381_v2 = vsel %vm55_vm0, %v15299_v39, 0.0 }
 0x7ad   :  { %v15841_v4 = vadd.f32 %v17131_v42, %v17130_v63  ;;  %v5825_v3 = vadd.f32 %v5681_v17, %v15677_v40  ;;  %v5286_v51 = vrot.slane %v5285_v5, 2  ;;  %v8134_v28 = vrot.slane %v8133_v8, 4  ;;  %v17136_v63 = vld [vmem:[#allocation13_spill] sm:$0xff] }
 0x7ae   :  { %v8406_v15 = vsub.f32 %v17133_v46, %v15152_v6  ;;  %v4120_v35 = vrot.slane %v4119_v47, 1  ;;  %v5376_v22 = vadd.f32 %v5375_v7, %v5374_v1  ;;  %v5382_v61 = vrot.slane %v5381_v2, 4  ;;  %v17137_v7 = vld [vmem:[#allocation98_spill] sm:$0xff]  ;;  %v17139_v46 = vld [vmem:[#allocation105_spill] sm:$0xff] }
 0x7af   :  { %v5388_v16 = vsel %vm55_vm0, %v17134_v27, 0.0  ;;  %v8419_v25 = vsub.f32 %v8195_v59, %v5825_v3  ;;  %v5287_v12 = vadd.f32 %v5286_v51, %v5285_v5  ;;  %v8130_v32 = vadd.f32 %v8129_v29, %v17132_v11  ;;  %v17138_v3 = vld [vmem:[#allocation95_spill] sm:$0xff] }
 0x7b0   :  { %v5389_v34 = vrot.slane %v5388_v16, 4  ;;  %v5659_v39 = vmul.f32 0.6931472, %v9855_v41  ;;  %v15854_v55 = vmax.f32 %v4119_v47, %v4120_v35  ;;  %v5377_v40 = vrot.slane %v5376_v22, 2 }
 0x7b1   :  { %v5383_v53 = vadd.f32 %v5382_v61, %v5381_v2  ;;  %v8547_v50 = vmax.f32 %v8419_v25, -11.512925  ;;  %v5288_v36 = vrot.slane %v5287_v12, 1  ;;  %v8407_v6 = vsub.f32 %v15829_v58, %v17135_v33 }
 0x7b2   :  { %v5390_v0 = vadd.f32 %v5389_v34, %v5388_v16  ;;  %v9857_v1 = vpop.eup %9856  ;;  %v8135_v17 = vadd.f32 %v8134_v28, %v8133_v8  ;;  %v4297_v59 = vsub.f32 %v17136_v63, %v15854_v55  ;;  %v5378_v5 = vadd.f32 %v5377_v40, %v5376_v22 }
 0x7b3   :  { %v5384_v42 = vrot.slane %v5383_v53, 2  ;;  %v8675_v11 = vmin.f32 %v8547_v50, -1.000005e-05  ;;  %v5289_v29 = vadd.f32 %v5288_v36, %v5287_v12  ;;  %v8660_v47 = vmin.f32 %v17137_v7, -1.000005e-05  ;;  %v17140_v36 = vld [vmem:[#allocation103_spill] sm:$0xff] }
 0x7b4   :  { %v5391_v41 = vrot.slane %v5390_v0, 2  ;;  %v5814_v2 = vadd.f32 %v5659_v39, %v17138_v3  ;;  %v8534_v51 = vmax.f32 %v8406_v15, -11.512925  ;;  %v8661_v35 = vmin.f32 %v17139_v46, -1.000005e-05  ;;  %v17142_v3 = vld [vmem:[#allocation96_spill] sm:$0xff] }
 0x7b5   :  { %v4544_v61 = vmul.f32 1.442695, %v4297_v59  ;;  %v8924_v58 = vsel %vm8832_vm2, %v8675_v11, %v8923_v52  ;;  %v5661_v27 = vmul.f32 0.6931472, %v9857_v1  ;;  %9860 = vlog2.f32 %v5289_v29 }
 0x7b6   :  { %v5385_v8 = vadd.f32 %v5384_v42, %v5383_v53  ;;  %v8994_v28 = vsel %vm55_vm0, %v8924_v58, 0.0  ;;  %v8136_v22 = vrot.slane %v8135_v17, 2  ;;  %v5379_v16 = vrot.slane %v5378_v5, 1 }
 0x7b7   :  { %9862 = vpow2.f32 %v4544_v61  ;;  %v9859_v25 = vpop.eup %9858  ;;  %v5413_v12 = vadd.f32 %v5412_v43, %v15795_v31  ;;  %8995 = vadd.xlane.f32.xlu0 %v8994_v28  ;;  %v8118_v15 = vadd.f32 %v8117_v56, %v17128_v20  ;;  %v8124_v34 = vrot.slane %v15841_v4, 1 }
 0x7b8   :  { %v5392_v39 = vadd.f32 %v5391_v41, %v5390_v0  ;;  %v5420_v52 = vadd.f32 %v5419_v45, %v15802_v57  ;;  %v5426_v40 = vrot.slane %v15823_v23, 2  ;;  %v5663_v53 = vmul.f32 0.6931472, %v9859_v25 }
 0x7b9   :  { %v8131_v50 = vrot.slane %v8130_v32, 1  ;;  %v5815_v33 = vadd.f32 %v5661_v27, %v17140_v36  ;;  %v8408_v1 = vsub.f32 %v8118_v15, %v5814_v2  ;;  %v8662_v63 = vmin.f32 %v8534_v51, -1.000005e-05 }
 0x7ba   :  { %v5386_v59 = vrot.slane %v5385_v8, 1  ;;  %v8137_v31 = vadd.f32 %v8136_v22, %v8135_v17  ;;  %v8535_v43 = vmax.f32 %v8407_v6, -11.512925  ;;  %v8911_v20 = vsel %vm8820_vm10, %v8661_v35, %v8660_v47 }
 0x7bb   :  { %v5380_v56 = vadd.f32 %v5379_v16, %v5378_v5  ;;  %v5407_v0 = vrot.slane %v15819_v48, 1  ;;  %v17141_v42 = vrot.slane %v15698_v19, 2  ;;  %v8125_v45 = vadd.f32 %v8124_v34, %v15841_v4 }
 0x7bc   :  { %v5393_v11 = vrot.slane %v5392_v39, 1  ;;  %v5414_v29 = vrot.slane %v5413_v12, 1  ;;  %v5421_v7 = vrot.slane %v5420_v52, 1  ;;  %v5427_v41 = vadd.f32 %v5426_v40, %v15823_v23 }
 0x7bd   :  { %v15880_v57 = vadd.f32 %v17141_v42, %v15698_v19  ;;  %v5816_v17 = vadd.f32 %v5663_v53, %v17142_v3  ;;  %v8409_v6 = vsub.f32 %v8125_v45, %v5815_v33  ;;  %v8536_v2 = vmax.f32 %v8408_v1, -11.512925  ;;  %v17143_v42 = vld [vmem:[#allocation113_spill] sm:$0xff] }
 0x7be   :  { %v8912_v5 = vsel %vm8822_vm11, %v8662_v63, %v8911_v20  ;;  %v5387_v47 = vadd.f32 %v5386_v59, %v5385_v8  ;;  %v8132_v51 = vadd.f32 %v8131_v50, %v8130_v32  ;;  %v8138_v46 = vrot.slane %v8137_v31, 1 }
 0x7bf   :  { %v8663_v35 = vmin.f32 %v8535_v43, -1.000005e-05  ;;  %9864 = vlog2.f32 %v5380_v56  ;;  %v8269_v19 = vrot.slane %v15789_v24, 2  ;;  %v15890_v4 = vadd.f32 %v8281_v44, %v15719_v37 }
 0x7c0   :  { %v8295_v23 = vrot.slane %v15815_v21, 4  ;;  %v5394_v61 = vadd.f32 %v5393_v11, %v5392_v39  ;;  %v5408_v58 = vadd.f32 %v5407_v0, %v15819_v48  ;;  %v15897_v27 = vadd.f32 %v8262_v10, %v15703_v26 }
 0x7c1   :  { %v8410_v32 = vsub.f32 %v8132_v51, %v5816_v17  ;;  %v8913_v8 = vsel %vm8824_vm12, %v8663_v35, %v8912_v5  ;;  %v5415_v28 = vadd.f32 %v5414_v29, %v5413_v12  ;;  %v8537_v22 = vmax.f32 %v8409_v6, -11.512925  ;;  %v17144_v51 = vld [vmem:[#allocation112_spill] sm:$0xff] }
 0x7c2   :  { %v8664_v16 = vmin.f32 %v8536_v2, -1.000005e-05  ;;  %9866 = vlog2.f32 %v5387_v47  ;;  %v9861_v25 = vpop.eup %9860  ;;  %v5422_v37 = vadd.f32 %v5421_v7, %v5420_v52  ;;  %v5428_v44 = vrot.slane %v5427_v41, 1 }
 0x7c3   :  { %v8139_v15 = vadd.f32 %v8138_v46, %v8137_v31  ;;  %v4174_v34 = vrot.slane %v15463_v18, 2  ;;  %v5665_v48 = vmul.f32 0.6931472, %v9861_v25  ;;  %9868 = vlog2.f32 %v5394_v61 }
 0x7c4   :  { %v9863_v39 = vpop.eup %9862  ;;  %v8914_v40 = vsel %vm8826_vm13, %v8664_v16, %v8913_v8  ;;  %v5430_v26 = vsel %vm55_vm0, %v15610_v9, 0.0  ;;  %v8538_v10 = vmax.f32 %v8410_v32, -11.512925  ;;  %v8665_v36 = vmin.f32 %v8537_v22, -1.000005e-05  ;;  %v17145_v8 = vld [vmem:[#allocation119_spill] sm:$0xff] }
 0x7c5   :  { %v5395_v12 = vsel %vm55_vm0, %v9863_v39, 0.0  ;;  %v4175_v53 = vmax.f32 %v15463_v18, %v4174_v34  ;;  %v5431_v50 = vrot.slane %v5430_v26, 4  ;;  %v5817_v52 = vadd.f32 %v5665_v48, %v15767_v54  ;;  %v17146_v34 = vld [vmem:[#allocation111_spill] sm:$0xff] }
 0x7c6   :  { %v5396_v33 = vrot.slane %v5395_v12, 4  ;;  %v5437_v1 = vsel %vm55_vm0, %v15684_v14, 0.0  ;;  %v5429_v63 = vadd.f32 %v5428_v44, %v5427_v41  ;;  %9870 = vlog2.f32 %v5408_v58 }
 0x7c7   :  { %v4176_v59 = vrot.slane %v4175_v53, 1  ;;  %v5432_v31 = vadd.f32 %v5431_v50, %v5430_v26  ;;  %v8411_v43 = vsub.f32 %v8139_v15, %v5817_v52  ;;  %v8915_v9 = vsel %vm8828_vm14, %v8665_v36, %v8914_v40  ;;  %v17148_v26 = vld [vmem:[#allocation117_spill] sm:$0xff] }
 0x7c8   :  { %v5397_v20 = vadd.f32 %v5396_v33, %v5395_v12  ;;  %v5438_v56 = vrot.slane %v5437_v1, 4  ;;  %v8666_v0 = vmin.f32 %v8538_v10, -1.000005e-05  ;;  %v8245_v18 = vsel %vm55_vm0, %v17143_v42, 0.0  ;;  %v17150_v12 = vld [vmem:[#allocation7_spill] sm:$0xff] }
 0x7c9   :  { %v15912_v45 = vmax.f32 %v4175_v53, %v4176_v59  ;;  %v5433_v54 = vrot.slane %v5432_v31, 2  ;;  %v8539_v11 = vmax.f32 %v8411_v43, -11.512925  ;;  %v5444_v14 = vsel %vm55_vm0, %v15776_v30, 0.0 }
 0x7ca   :  { %v5398_v29 = vrot.slane %v5397_v20, 2  ;;  %v5439_v7 = vadd.f32 %v5438_v56, %v5437_v1  ;;  %9872 = vlog2.f32 %v5415_v28  ;;  %v8916_v41 = vsel %vm8830_vm15, %v8666_v0, %v8915_v9  ;;  %v17152_v0 = vld [vmem:[#allocation114_spill] sm:$0xff] }
 0x7cb   :  { %v4305_v3 = vsub.f32 %v15396_v60, %v15912_v45  ;;  %v5434_v17 = vadd.f32 %v5433_v54, %v5432_v31  ;;  %9874 = vlog2.f32 %v5422_v37  ;;  %v8667_v2 = vmin.f32 %v8539_v11, -1.000005e-05  ;;  %v17153_v54 = vld [vmem:[#allocation124_spill] sm:$0xff] }
 0x7cc   :  { %v9865_v6 = vpop.eup %9864  ;;  %v5399_v5 = vadd.f32 %v5398_v29, %v5397_v20  ;;  %v5440_v47 = vrot.slane %v5439_v7, 2  ;;  %v8241_v46 = vrot.slane %v17144_v51, 2  ;;  %v8246_v35 = vrot.slane %v8245_v18, 4  ;;  %v17154_v29 = vld [vmem:[#allocation126_spill] sm:$0xff] }
 0x7cd   :  { %v4560_v61 = vmul.f32 1.442695, %v4305_v3  ;;  %v5445_v58 = vrot.slane %v5444_v14, 4  ;;  %v8917_v32 = vsel %vm8832_vm2, %v8667_v2, %v8916_v41  ;;  %v8422_v28 = vsub.f32 %v17145_v8, %v15411_v62 }
 0x7ce   :  { %v5400_v30 = vrot.slane %v5399_v5, 1  ;;  %v5441_v22 = vadd.f32 %v5440_v47, %v5439_v7  ;;  %v8991_v60 = vsel %vm55_vm0, %v8917_v32, 0.0  ;;  %v5691_v25 = vmul.f32 0.6931472, %v9865_v6  ;;  %v17155_v6 = vld [vmem:[#allocation110_spill] sm:$0xff] }
 0x7cf   :  { %v9867_v16 = vpop.eup %9866  ;;  %9876 = vpow2.f32 %v4560_v61  ;;  %v5435_v37 = vrot.slane %v5434_v17, 1  ;;  %v8276_v44 = vrot.slane %v15809_v38, 2  ;;  %8992 = vadd.xlane.f32.xlu1 %v8991_v60  ;;  %v17147_v39 = vrot.slane %v17146_v34, 2 }
 0x7d0   :  { %9878 = vlog2.f32 %v5429_v63  ;;  %v5401_v15 = vadd.f32 %v5400_v30, %v5399_v5  ;;  %v9869_v40 = vpop.eup %9868  ;;  %v17149_v62 = vrot.slane %v17148_v26, 1  ;;  %v8229_v53 = vrot.slane %v17150_v12, 1  ;;  %v17151_v63 = vld [vmem:[#allocation108_spill] sm:$0xff] }
 0x7d1   :  { %v8235_v48 = vadd.f32 %v17147_v39, %v17146_v34  ;;  %v8242_v50 = vadd.f32 %v8241_v46, %v17144_v51  ;;  %v5446_v52 = vadd.f32 %v5445_v58, %v5444_v14  ;;  %v5693_v36 = vmul.f32 0.6931472, %v9867_v16  ;;  %v17156_v16 = vld [vmem:[#allocation116_spill] sm:$0xff] }
 0x7d2   :  { %v8223_v10 = vadd.f32 %v17149_v62, %v17148_v26  ;;  %9880 = vlog2.f32 %v5401_v15  ;;  %v8247_v33 = vadd.f32 %v8246_v35, %v8245_v18  ;;  %v5442_v1 = vrot.slane %v5441_v22, 1 }
 0x7d3   :  { %v5830_v59 = vadd.f32 %v5691_v25, %v17151_v63  ;;  %v8550_v31 = vmax.f32 %v8422_v28, -11.512925  ;;  %v5436_v43 = vadd.f32 %v5435_v37, %v5434_v17  ;;  %v5447_v9 = vrot.slane %v5446_v52, 2  ;;  %v9871_v20 = vpop.eup %9870 }
 0x7d4   :  { %v8236_v56 = vrot.slane %v8235_v48, 1  ;;  %v8423_v42 = vsub.f32 %v8223_v10, %v17152_v0  ;;  %v8676_v11 = vmin.f32 %v17153_v54, -1.000005e-05  ;;  %v8677_v7 = vmin.f32 %v17154_v29, -1.000005e-05 }
 0x7d5   :  { %v15940_v14 = vadd.f32 %v8288_v13, %v15731_v49  ;;  %v5695_v18 = vmul.f32 0.6931472, %v9869_v40  ;;  %v8230_v41 = vadd.f32 %v8229_v53, %v17150_v12  ;;  %v5448_v3 = vadd.f32 %v5447_v9, %v5446_v52  ;;  %v17157_v53 = vld [vmem:[#allocation16_spill] sm:$0xff] }
 0x7d6   :  { %v5831_v17 = vadd.f32 %v5693_v36, %v17155_v6  ;;  %v8243_v2 = vrot.slane %v8242_v50, 1  ;;  %v8248_v5 = vrot.slane %v8247_v33, 2  ;;  %v5443_v47 = vadd.f32 %v5442_v1, %v5441_v22  ;;  %v17159_v6 = vld [vmem:[#allocation100_spill] sm:$0xff] }
 0x7d7   :  { %v8424_v51 = vsub.f32 %v8230_v41, %v5830_v59  ;;  %v8678_v46 = vmin.f32 %v8550_v31, -1.000005e-05  ;;  %v5449_v35 = vrot.slane %v5448_v3, 1  ;;  %9882 = vlog2.f32 %v5436_v43  ;;  %v9873_v61 = vpop.eup %9872 }
 0x7d8   :  { %v8257_v58 = vrot.slane %v15880_v57, 1  ;;  %v8237_v32 = vadd.f32 %v8236_v56, %v8235_v48  ;;  %v8551_v30 = vmax.f32 %v8423_v42, -11.512925  ;;  %v8925_v49 = vsel %vm8820_vm10, %v8677_v7, %v8676_v11  ;;  %v9875_v13 = vpop.eup %9874 }
 0x7d9   :  { %v5699_v8 = vmul.f32 0.6931472, %v9871_v20  ;;  %v8270_v28 = vadd.f32 %v8269_v19, %v15789_v24  ;;  %v5832_v60 = vadd.f32 %v5695_v18, %v17156_v16  ;;  %v5450_v22 = vadd.f32 %v5449_v35, %v5448_v3 }
 0x7da   :  { %v8283_v25 = vrot.slane %v15890_v4, 2  ;;  %v8249_v37 = vadd.f32 %v8248_v5, %v8247_v33  ;;  %v8425_v15 = vsub.f32 %v8237_v32, %v5831_v17  ;;  %9884 = vlog2.f32 %v5443_v47  ;;  %v17160_v5 = vld [vmem:[#allocation127_spill] sm:$0xff] }
 0x7db   :  { %v15954_v34 = vadd.f32 %v8295_v23, %v15815_v21  ;;  %v8244_v39 = vadd.f32 %v8243_v2, %v8242_v50  ;;  %v8552_v48 = vmax.f32 %v8424_v51, -11.512925  ;;  %v8926_v40 = vsel %vm8822_vm11, %v8678_v46, %v8925_v49 }
 0x7dc   :  { %v9877_v26 = vpop.eup %9876  ;;  %v5701_v62 = vmul.f32 0.6931472, %v9873_v61  ;;  %v8264_v24 = vrot.slane %v15897_v27, 1  ;;  %v8277_v19 = vadd.f32 %v8276_v44, %v15809_v38  ;;  %v8679_v10 = vmin.f32 %v8551_v30, -1.000005e-05  ;;  %v17158_v38 = vld [vmem:[#allocation99_spill] sm:$0xff] }
 0x7dd   :  { %v9879_v12 = vpop.eup %9878  ;;  %v5834_v52 = vadd.f32 %v5699_v8, %v17157_v53  ;;  %v8426_v36 = vsub.f32 %v8244_v39, %v5832_v60  ;;  %v5451_v33 = vsel %vm55_vm0, %v9877_v26, 0.0  ;;  %9886 = vlog2.f32 %v5450_v22 }
 0x7de   :  { %v8250_v21 = vrot.slane %v8249_v37, 1  ;;  %v8553_v23 = vmax.f32 %v8425_v15, -11.512925  ;;  %v8927_v50 = vsel %vm8824_vm12, %v8679_v10, %v8926_v40  ;;  %v5452_v1 = vrot.slane %v5451_v33, 4 }
 0x7df   :  { %v9881_v63 = vpop.eup %9880  ;;  %v5703_v59 = vmul.f32 0.6931472, %v9875_v13  ;;  %v8258_v31 = vadd.f32 %v8257_v58, %v15880_v57  ;;  %v8271_v43 = vrot.slane %v8270_v28, 1  ;;  %v8680_v9 = vmin.f32 %v8552_v48, -1.000005e-05  ;;  %v17161_v58 = vld [vmem:[#allocation121_spill] sm:$0xff] }
 0x7e0   :  { %v5835_v44 = vadd.f32 %v5701_v62, %v17158_v38  ;;  %v8265_v20 = vadd.f32 %v8264_v24, %v15897_v27  ;;  %v5697_v56 = vmul.f32 0.6931472, %v9881_v63  ;;  %v5453_v0 = vadd.f32 %v5452_v1, %v5451_v33 }
 0x7e1   :  { %v5705_v42 = vmul.f32 0.6931472, %v9879_v12  ;;  %v8428_v54 = vsub.f32 %v8258_v31, %v5834_v52  ;;  %v8554_v11 = vmax.f32 %v8426_v36, -11.512925  ;;  %v8928_v29 = vsel %vm8826_vm13, %v8680_v9, %v8927_v50  ;;  %v17162_v36 = vld [vmem:[#allocation123_spill] sm:$0xff]  ;;  %v17163_v31 = vld [vmem:[#allocation122_spill] sm:$0xff] }
 0x7e2   :  { %v5833_v7 = vadd.f32 %v5697_v56, %v15854_v55  ;;  %v8251_v18 = vadd.f32 %v8250_v21, %v8249_v37  ;;  %v8681_v41 = vmin.f32 %v8553_v23, -1.000005e-05  ;;  %v5454_v3 = vrot.slane %v5453_v0, 2 }
 0x7e3   :  { %v5836_v57 = vadd.f32 %v5703_v59, %v17159_v6  ;;  %v8278_v17 = vrot.slane %v8277_v19, 1  ;;  %v8290_v2 = vrot.slane %v15940_v14, 2  ;;  %v8301_v27 = vsel %vm55_vm0, %v17160_v5, 0.0 }
 0x7e4   :  { %v9883_v47 = vpop.eup %9882  ;;  %v8429_v51 = vsub.f32 %v8265_v20, %v5835_v44  ;;  %v8427_v46 = vsub.f32 %v8251_v18, %v5833_v7  ;;  %v8929_v35 = vsel %vm8828_vm14, %v8681_v41, %v8928_v29  ;;  %v5455_v61 = vadd.f32 %v5454_v3, %v5453_v0 }
 0x7e5   :  { %v5837_v32 = vadd.f32 %v5705_v42, %v17161_v58  ;;  %v8272_v55 = vadd.f32 %v8271_v43, %v8270_v28  ;;  %v8284_v30 = vadd.f32 %v8283_v25, %v15890_v4  ;;  %v8682_v49 = vmin.f32 %v8554_v11, -1.000005e-05 }
 0x7e6   :  { %v8556_v13 = vmax.f32 %v8428_v54, -11.512925  ;;  %v8555_v8 = vmax.f32 %v8427_v46, -11.512925  ;;  %v5456_v16 = vrot.slane %v5455_v61, 1  ;;  %v8302_v60 = vrot.slane %v8301_v27, 4 }
 0x7e7   :  { %v9885_v22 = vpop.eup %9884  ;;  %v8930_v37 = vsel %vm8830_vm15, %v8682_v49, %v8929_v35  ;;  %v5707_v15 = vmul.f32 0.6931472, %v9883_v47  ;;  %v8297_v39 = vrot.slane %v15954_v34, 2  ;;  %v8430_v48 = vsub.f32 %v8272_v55, %v5836_v57  ;;  %v17164_v54 = vld [vmem:[#allocation125_spill] sm:$0xff] }
 0x7e8   :  { %v8557_v40 = vmax.f32 %v8429_v51, -11.512925  ;;  %v8683_v26 = vmin.f32 %v8555_v8, -1.000005e-05  ;;  %v5457_v62 = vadd.f32 %v5456_v16, %v5455_v61  ;;  %v8291_v24 = vadd.f32 %v8290_v2, %v15940_v14 }
 0x7e9   :  { %v8279_v28 = vadd.f32 %v8278_v17, %v8277_v19  ;;  %v8285_v10 = vrot.slane %v8284_v30, 1  ;;  %v5709_v12 = vmul.f32 0.6931472, %v9885_v22  ;;  %v8303_v53 = vadd.f32 %v8302_v60, %v8301_v27  ;;  %v8957_v22 = vpop.xlane.xlu0 %8956 }
 0x7ea   :  { %v9887_v4 = vpop.eup %9886  ;;  %v8931_v25 = vsel %vm8832_vm2, %v8683_v26, %v8930_v37  ;;  %9888 = vlog2.f32 %v5457_v62  ;;  %v5838_v33 = vadd.f32 %v5707_v15, %v17162_v36  ;;  %v8298_v21 = vadd.f32 %v8297_v39, %v15954_v34  ;;  %v8960_v62 = vpop.xlane.xlu1 %8959 }
 0x7eb   :  { %v8997_v52 = vsel %vm55_vm0, %v8931_v25, 0.0  ;;  %v8558_v23 = vmax.f32 %v8430_v48, -11.512925  ;;  %v8292_v50 = vrot.slane %v8291_v24, 1  ;;  %v8431_v1 = vsub.f32 %v8279_v28, %v5837_v32 }
 0x7ec   :  { %8998 = vadd.xlane.f32.xlu1 %v8997_v52  ;;  %v8684_v63 = vmin.f32 %v8556_v13, -1.000005e-05  ;;  %v8685_v14 = vmin.f32 %v8557_v40, -1.000005e-05  ;;  %v5711_v19 = vmul.f32 0.6931472, %v9887_v4  ;;  %v8286_v59 = vadd.f32 %v8285_v10, %v8284_v30 }
 0x7ed   :  { %v5839_v43 = vadd.f32 %v5709_v12, %v17163_v31  ;;  %v8304_v9 = vrot.slane %v8303_v53, 2  ;;  %v8299_v38 = vrot.slane %v8298_v21, 1  ;;  %v8686_v20 = vmin.f32 %v8558_v23, -1.000005e-05  ;;  %v17166_v40 = vld [vmem:[#allocation12_spill] sm:$0xff] }
 0x7ee   :  { %v8432_v44 = vsub.f32 %v8286_v59, %v5838_v33  ;;  %v8293_v56 = vadd.f32 %v8292_v50, %v8291_v24  ;;  %v8559_v0 = vmax.f32 %v8431_v1, -11.512925  ;;  %v8932_v42 = vsel %vm8820_vm10, %v8685_v14, %v8684_v63 }
 0x7ef   :  { %v5840_v34 = vadd.f32 %v5711_v19, %v17164_v54  ;;  %v8305_v11 = vadd.f32 %v8304_v9, %v8303_v53  ;;  %v8300_v7 = vadd.f32 %v8299_v38, %v8298_v21  ;;  %v8933_v41 = vsel %vm8822_vm11, %v8686_v20, %v8932_v42  ;;  %v8969_v21 = vpop.xlane.xlu1 %8968 }
 0x7f0   :  { %v8433_v29 = vsub.f32 %v8293_v56, %v5839_v43  ;;  %v8560_v18 = vmax.f32 %v8432_v44, -11.512925  ;;  %v8687_v3 = vmin.f32 %v8559_v0, -1.000005e-05  ;;  %v17165_v37 = vlaneseq }
 0x7f1   :  { %v8434_v6 = vsub.f32 %v8300_v7, %v5840_v34  ;;  %v8306_v57 = vrot.slane %v8305_v11, 1  ;;  %vm9037_vm10 = vcmask 195712   ;;  %vm9044_vm11 = vcmask 261312  }
 0x7f2   :  { %v8561_v17 = vmax.f32 %v8433_v29, -11.512925  ;;  %v8934_v2 = vsel %vm8824_vm12, %v8687_v3, %v8933_v41  ;;  %v8688_v27 = vmin.f32 %v8560_v18, -1.000005e-05  ;;  %v15993_v15 = vand.u32 127, %v17165_v37 }
 0x7f3   :  { %v8562_v51 = vmax.f32 %v8434_v6, -11.512925  ;;  %v8307_v61 = vadd.f32 %v8306_v57, %v8305_v11  ;;  %vm9051_vm12 = vcmask 326912   ;;  %v8975_v38 = vpop.xlane.xlu1 %8974  ;;  %vm9086_vm3 = vcmask 654912  }
 0x7f4   :  { %v8935_v46 = vsel %vm8826_vm13, %v8688_v27, %v8934_v2  ;;  %v8689_v58 = vmin.f32 %v8561_v17, -1.000005e-05  ;;  %v9025_v39 = vadd.s32 4294967288, %v15993_v15  ;;  %v9032_v48 = vadd.s32 4294967280, %v15993_v15 }
 0x7f5   :  { %v8690_v30 = vmin.f32 %v8562_v51, -1.000005e-05  ;;  %v9046_v28 = vadd.s32 4294967264, %v15993_v15  ;;  %v9023_v10 = vsub.s32 %v15993_v15, %v17166_v40  ;;  %v9039_v4 = vadd.s32 4294967272, %v15993_v15 }
 0x7f6   :  { %v8936_v55 = vsel %vm8828_vm14, %v8689_v58, %v8935_v46  ;;  %v9028_v26 = vsub.s32 %v9025_v39, %v17166_v40  ;;  %v9035_v24 = vsub.s32 %v9032_v48, %v17166_v40  ;;  %v9060_v23 = vadd.s32 4294967248, %v15993_v15 }
 0x7f7   :  { %v9889_v5 = vpop.eup %9888  ;;  %v8937_v13 = vsel %vm8830_vm15, %v8690_v30, %v8936_v55  ;;  %v9049_v52 = vsub.s32 %v9046_v28, %v17166_v40  ;;  %v9024_v36 = vrot.slane %v8957_v22, %v9023_v10  ;;  %v9042_v33 = vsub.s32 %v9039_v4, %v17166_v40  ;;  %v8981_v7 = vpop.xlane.xlu1 %8980 }
 0x7f8   :  { %v5713_v47 = vmul.f32 0.6931472, %v9889_v5  ;;  %v9029_v12 = vrot.slane %v8960_v62, %v9028_v26  ;;  %v9053_v50 = vadd.s32 4294967256, %v15993_v15  ;;  %v9063_v59 = vsub.s32 %v9060_v23, %v17166_v40 }
 0x7f9   :  { %v9050_v14 = vrot.slane %v8969_v21, %v9049_v52  ;;  %v9074_v31 = vadd.s32 4294967232, %v15993_v15  ;;  %v9067_v9 = vadd.s32 4294967240, %v15993_v15  ;;  %vm9058_vm13 = vcmask 392512  }
 0x7fa   :  { %v5841_v35 = vadd.f32 %v5713_v47, %v15912_v45  ;;  %v8966_v45 = vpop.xlane.xlu0 %8965  ;;  %v9056_v43 = vsub.s32 %v9053_v50, %v17166_v40  ;;  %v9064_v0 = vrot.slane %v8975_v38, %v9063_v59  ;;  %v9088_v54 = vadd.s32 4294967216, %v15993_v15 }
 0x7fb   :  { %v9043_v19 = vrot.slane %v8966_v45, %v9042_v33  ;;  %v9077_v42 = vsub.s32 %v9074_v31, %v17166_v40  ;;  %v9070_v11 = vsub.s32 %v9067_v9, %v17166_v40  ;;  %vm9065_vm14 = vcmask 458112  }
 0x7fc   :  { %v8435_v32 = vsub.f32 %v8307_v61, %v5841_v35  ;;  %v9081_v29 = vadd.s32 4294967224, %v15993_v15  ;;  %vm9072_vm15 = vcmask 523712   ;;  %v9091_v57 = vsub.s32 %v9088_v54, %v17166_v40 }
 0x7fd   :  { %v9078_v6 = vrot.slane %v8981_v7, %v9077_v42  ;;  %v9102_v17 = vadd.s32 4294967200, %v15993_v15  ;;  %v9095_v27 = vadd.s32 4294967208, %v15993_v15  ;;  %vm9093_vm4 = vcmask 720512  }
 0x7fe   :  { %v8563_v49 = vmax.f32 %v8435_v32, -11.512925  ;;  %v8963_v25 = vpop.xlane.xlu0 %8962  ;;  %v9084_v5 = vsub.s32 %v9081_v29, %v17166_v40  ;;  %v9116_v32 = vadd.s32 4294967184, %v15993_v15  ;;  %vm9100_vm5 = vcmask 786112  }
 0x7ff   :  { %v9036_v53 = vrot.slane %v8963_v25, %v9035_v24  ;;  %v9105_v58 = vsub.s32 %v9102_v17, %v17166_v40  ;;  %v9098_v30 = vsub.s32 %v9095_v27, %v17166_v40  ;;  %vm9107_vm1 = vcmask 851712  }
 0x800   :  { %v8691_v8 = vmin.f32 %v8563_v49, -1.000005e-05  ;;  %v9109_v49 = vadd.s32 4294967192, %v15993_v15  ;;  %v9119_v45 = vsub.s32 %v9116_v32, %v17166_v40  ;;  %vm9114_vm6 = vcmask 917312  }
 0x801   :  { %vm9121_vm7 = vcmask 982912   ;;  %vm9128_vm8 = vcmask 1048512  }
 0x802   :  { %v8938_v16 = vsel %vm8832_vm2, %v8691_v8, %v8937_v13  ;;  %v8972_v44 = vpop.xlane.xlu0 %8971  ;;  %vm9079_vm2 = vcmask 589312   ;;  %v9112_v48 = vsub.s32 %v9109_v49, %v17166_v40 }
 0x803   :  { %v9000_v60 = vsel %vm55_vm0, %v8938_v16, 0.0  ;;  %vm9030_vm0 = vcmask 130112   ;;  %v9057_v34 = vrot.slane %v8972_v44, %v9056_v43 }
 0x804   :  { %9001 = vadd.xlane.f32.xlu0 %v9000_v60  ;;  %v9031_v1 = vsel %vm9030_vm0, %v9029_v12, %v9024_v36  ;;  %v9123_v60 = vadd.s32 4294967176, %v15993_v15 }
 0x805   :  { %v9038_v63 = vsel %vm9037_vm10, %v9036_v53, %v9031_v1 }
 0x806   :  { %v9045_v20 = vsel %vm9044_vm11, %v9043_v19, %v9038_v63  ;;  %v8978_v18 = vpop.xlane.xlu0 %8977  ;;  %v9126_v28 = vsub.s32 %v9123_v60, %v17166_v40 }
 0x807   :  { %v9052_v56 = vsel %vm9051_vm12, %v9050_v14, %v9045_v20  ;;  %v9071_v2 = vrot.slane %v8978_v18, %v9070_v11 }
 0x808   :  { %v9059_v41 = vsel %vm9058_vm13, %v9057_v34, %v9052_v56 }
 0x809   :  { %v9066_v3 = vsel %vm9065_vm14, %v9064_v0, %v9059_v41 }
 0x80a   :  { %v8984_v51 = vpop.xlane.xlu0 %8983  ;;  %v9073_v46 = vsel %vm9072_vm15, %v9071_v2, %v9066_v3 }
 0x80b   :  { %v9080_v35 = vsel %vm9079_vm2, %v9078_v6, %v9073_v46  ;;  %v9085_v55 = vrot.slane %v8984_v51, %v9084_v5 }
 0x80d   :  { %v9087_v16 = vsel %vm9086_vm3, %v9085_v55, %v9080_v35 }
 0x80e   :  { %v8990_v8 = vpop.xlane.xlu0 %8989 }
 0x80f   :  { %v9099_v39 = vrot.slane %v8990_v8, %v9098_v30 }
 0x829   :  { %v8987_v47 = vpop.xlane.xlu1 %8986 }
 0x82a   :  { %v9092_v61 = vrot.slane %v8987_v47, %v9091_v57 }
 0x82c   :  { %v9094_v22 = vsel %vm9093_vm4, %v9092_v61, %v9087_v16 }
 0x82d   :  { %v9101_v24 = vsel %vm9100_vm5, %v9099_v39, %v9094_v22 }
 0x840   :  { %v8996_v62 = vpop.xlane.xlu0 %8995 }
 0x841   :  { %v9113_v25 = vrot.slane %v8996_v62, %v9112_v48 }
 0x858   :  { %v8993_v13 = vpop.xlane.xlu1 %8992 }
 0x859   :  { %v9106_v37 = vrot.slane %v8993_v13, %v9105_v58 }
 0x85b   :  { %v9108_v10 = vsel %vm9107_vm1, %v9106_v37, %v9101_v24 }
 0x85c   :  { %v9115_v53 = vsel %vm9114_vm6, %v9113_v25, %v9108_v10 }
 0x875   :  { %v8999_v26 = vpop.xlane.xlu1 %8998 }
 0x876   :  { %v9120_v4 = vrot.slane %v8999_v26, %v9119_v45 }
 0x878   :  { %v9122_v52 = vsel %vm9121_vm7, %v9120_v4, %v9115_v53 }
 0x88d   :  { %v9002_v15 = vpop.xlane.xlu0 %9001 }
 0x88e   :  { %v9127_v12 = vrot.slane %v9002_v15, %v9126_v28 }
 0x890   :  { %v9129_v36 = vsel %vm9128_vm8, %v9127_v12, %v9122_v52 }
 0x891   :  { %9131 = vst [vmem:[#allocation2] sm:$0x1] %v9129_v36 }
 0x892   :  { %9902 = shalt.err (!%p9899_p4)
}
 0x893   :  { %9141 = dma.vmem_to_hbm [thread:$0]  %s9139_s23, 16, %s16038_s8, [#allocation3]  }
 0x894   :  { %9911 = dma.done.wait [#allocation3], 16  }
 0x895   :  { %9912 = vsyncadd [#allocation3], 4294967280 }
 0x896   :  { %9145 = vsyncpa [#allocation3], 1 }

</bundles_post_ra>
